<compile_context>
chip_gen: v7x
topology: tpu7x:2x2x1
jax: 0.10.0
libtpu: 0.0.40
codegen_flags: <defaults>
</compile_context>

<pallas_src>
import functools

import jax
import jax.numpy as jnp
from jax.experimental import pallas as pl
from jax.experimental.pallas import tpu as pltpu


# ----------------------------------------------------------------------------
# Pallas kernels
# ----------------------------------------------------------------------------
def _matmul_bias_act_kernel(apply_relu, fuse_add, x_ref, w_ref, b_ref, *rest):
    """o = act((x @ w) + bias [+ residual]) with K-resident f32 accumulator."""
    if fuse_add:
        r_ref, o_ref, acc_ref = rest
    else:
        o_ref, acc_ref = rest

    k = pl.program_id(2)

    @pl.when(k == 0)
    def _():
        acc_ref[...] = jnp.zeros_like(acc_ref)

    acc_ref[...] += jnp.dot(
        x_ref[...], w_ref[...], preferred_element_type=jnp.float32
    )

    @pl.when(k == pl.num_programs(2) - 1)
    def _():
        y = acc_ref[...] + b_ref[...]
        if fuse_add:
            y = y + r_ref[...].astype(jnp.float32)
        if apply_relu:
            y = jnp.maximum(y, 0.0)
        o_ref[...] = y.astype(o_ref.dtype)


def _avgpool_kernel(x_ref, o_ref):
    # global average pool over the spatial axis for one lane-dense C chunk
    o_ref[...] = jnp.mean(x_ref[...].astype(jnp.float32), axis=1)


# ----------------------------------------------------------------------------
# Cached pallas_call builders
# ----------------------------------------------------------------------------
_TM, _TN, _TK = 256, 256, 512  # default MXU tile sizes (128-aligned)


def _round_up(x, m):
    return (x + m - 1) // m * m


@functools.lru_cache(maxsize=None)
def _get_matmul(Mp, Kp, Np, tm, tk, tn, apply_relu, fuse_add, out_dtype_name):
    out_dtype = jnp.dtype(out_dtype_name)
    grid = (Mp // tm, Np // tn, Kp // tk)

    in_specs = [
        pl.BlockSpec((tm, tk), lambda i, j, k: (i, k)),   # x
        pl.BlockSpec((tk, tn), lambda i, j, k: (k, j)),   # w
        pl.BlockSpec((1, tn), lambda i, j, k: (0, j)),    # bias
    ]
    if fuse_add:
        in_specs.append(pl.BlockSpec((tm, tn), lambda i, j, k: (i, j)))  # res

    flops = 2 * Mp * Kp * Np
    bytes_accessed = int(
        2 * (Mp * Kp + Kp * Np)                      # bf16 x, w
        + (2 * Mp * Np if fuse_add else 0)           # bf16 residual
        + 4 * Np                                     # f32 bias
        + out_dtype.itemsize * Mp * Np               # output
    )

    return pl.pallas_call(
        functools.partial(_matmul_bias_act_kernel, apply_relu, fuse_add),
        out_shape=jax.ShapeDtypeStruct((Mp, Np), out_dtype),
        grid_spec=pltpu.PrefetchScalarGridSpec(
            num_scalar_prefetch=0,
            grid=grid,
            in_specs=in_specs,
            out_specs=pl.BlockSpec((tm, tn), lambda i, j, k: (i, j)),
            scratch_shapes=[pltpu.VMEM((tm, tn), jnp.float32)],
        ),
        compiler_params=pltpu.CompilerParams(
            dimension_semantics=("parallel", "parallel", "arbitrary"),
        ),
        cost_estimate=pl.CostEstimate(
            flops=flops, transcendentals=0, bytes_accessed=bytes_accessed
        ),
    )


@functools.lru_cache(maxsize=None)
def _get_avgpool(B, S, C, tc):
    return pl.pallas_call(
        _avgpool_kernel,
        out_shape=jax.ShapeDtypeStruct((B, C), jnp.float32),
        grid_spec=pltpu.PrefetchScalarGridSpec(
            num_scalar_prefetch=0,
            grid=(C // tc,),
            in_specs=[pl.BlockSpec((B, S, tc), lambda c: (0, 0, c))],
            out_specs=pl.BlockSpec((B, tc), lambda c: (0, c)),
        ),
        compiler_params=pltpu.CompilerParams(
            dimension_semantics=("parallel",),
        ),
    )


# ----------------------------------------------------------------------------
# Kernel wrappers (padding to 128-aligned lane-dense tiles, bf16 MXU inputs)
# ----------------------------------------------------------------------------
def matmul_bias_act(x, w, bias, *, relu, residual=None,
                    out_dtype=jnp.bfloat16):
    M, K = x.shape
    N = w.shape[1]

    tm = min(_TM, _round_up(M, 8))
    tk = min(_TK, _round_up(K, 128))
    tn = min(_TN, _round_up(N, 128))
    Mp, Kp, Np = _round_up(M, tm), _round_up(K, tk), _round_up(N, tn)

    xp = jnp.pad(x.astype(jnp.bfloat16), ((0, Mp - M), (0, Kp - K)))
    wp = jnp.pad(w.astype(jnp.bfloat16), ((0, Kp - K), (0, Np - N)))
    bp = jnp.pad(bias.astype(jnp.float32).reshape(1, N), ((0, 0), (0, Np - N)))

    args = [xp, wp, bp]
    if residual is not None:
        rp = jnp.pad(residual.astype(jnp.bfloat16),
                     ((0, Mp - M), (0, Np - N)))
        args.append(rp)

    fn = _get_matmul(Mp, Kp, Np, tm, tk, tn, bool(relu),
                     residual is not None, jnp.dtype(out_dtype).name)
    out = fn(*args)
    return out[:M, :N]


def global_avgpool(x_bsc):
    B, S, C = x_bsc.shape
    tc = C
    for cand in (512, 256, 128):
        if C % cand == 0:
            tc = cand
            break
    return _get_avgpool(B, S, C, tc)(x_bsc)


# ----------------------------------------------------------------------------
# Plain-JAX glue: im2col, conv dispatch, parameter construction
# ----------------------------------------------------------------------------
def im2col(x, kh, kw, stride, pad):
    """x: (B, H, W, C) NHWC -> ((B*Ho*Wo, kh*kw*C), Ho, Wo)."""
    B, H, W, C = x.shape
    xp = jnp.pad(x, ((0, 0), (pad, pad), (pad, pad), (0, 0)))
    Ho = (H + 2 * pad - kh) // stride + 1
    Wo = (W + 2 * pad - kw) // stride + 1
    cols = []
    for i in range(kh):
        for j in range(kw):
            cols.append(
                xp[:, i:i + (Ho - 1) * stride + 1:stride,
                      j:j + (Wo - 1) * stride + 1:stride, :]
            )
    patches = jnp.concatenate(cols, axis=-1)       # (B, Ho, Wo, kh*kw*C)
    return patches.reshape(B * Ho * Wo, kh * kw * C), Ho, Wo


def conv_bn(x, p, stride, pad, relu, residual=None):
    """Conv2d + folded BatchNorm (+ residual + ReLU) via the Pallas matmul."""
    w = p["w"]                                     # HWIO, bf16, BN scale folded
    kh, kw, cin, cout = w.shape
    B = x.shape[0]

    if kh == 1 and kw == 1:
        xs = x if stride == 1 else x[:, ::stride, ::stride, :]
        Ho, Wo = xs.shape[1], xs.shape[2]
        cols = xs.reshape(B * Ho * Wo, cin)        # no im2col copy for 1x1
    else:
        # TODO(synk): 3x3/7x7 patch extraction stays as JAX glue (fused under
        # the single jit) instead of an in-kernel DMA window gather.
        cols, Ho, Wo = im2col(x, kh, kw, stride, pad)

    res = None
    if residual is not None:
        res = residual.reshape(B * Ho * Wo, cout)

    y = matmul_bias_act(cols, w.reshape(kh * kw * cin, cout), p["bias"],
                        relu=relu, residual=res)
    return y.reshape(B, Ho, Wo, cout)


def bottleneck(x, p, stride):
    if "downsample" in p:
        identity = conv_bn(x, p["downsample"], stride, 0, relu=False)
    else:
        identity = x
    out = conv_bn(x, p["conv1"], 1, 0, relu=True)
    out = conv_bn(out, p["conv2"], stride, 1, relu=True)
    # residual add + ReLU fused into the conv3 matmul epilogue
    out = conv_bn(out, p["conv3"], 1, 0, relu=True, residual=identity)
    return out


def _conv_bn_params(key, kh, kw, cin, cout):
    kw_, kg, kb, km, kv = jax.random.split(key, 5)
    fan_in = kh * kw * cin
    w = jax.random.normal(kw_, (kh, kw, cin, cout), jnp.float32) * jnp.sqrt(2.0 / fan_in)
    gamma = jax.random.uniform(kg, (cout,), jnp.float32, 0.5, 1.5)
    beta = jax.random.normal(kb, (cout,), jnp.float32) * 0.1
    mean = jax.random.normal(km, (cout,), jnp.float32) * 0.1
    var = jax.random.uniform(kv, (cout,), jnp.float32, 0.5, 1.5)
    scale = gamma / jnp.sqrt(var + 1e-5)
    bias = beta - mean * scale
    # Fold BN scale into the conv weight; store weights in bf16 for the MXU.
    w_folded = (w * scale[None, None, None, :]).astype(jnp.bfloat16)
    return {"w": w_folded, "bias": bias}


# ResNet-50: stem(7x7/2,64) + maxpool + layers [3,4,6,3] bottlenecks, expansion 4.
_RESNET50_CFG = [(64, 3, 1), (128, 4, 2), (256, 6, 2), (512, 3, 2)]


def make_encoder_params(key, embed_size):
    k_stem, k_layers, k_embed = jax.random.split(key, 3)
    params = {"stem": _conv_bn_params(k_stem, 7, 7, 3, 64)}

    layers = []
    in_c = 64
    k = k_layers
    for width, nblocks, stride in _RESNET50_CFG:
        blocks = []
        for bi in range(nblocks):
            k, k1, k2, k3, k4 = jax.random.split(k, 5)
            s = stride if bi == 0 else 1
            blk = {
                "conv1": _conv_bn_params(k1, 1, 1, in_c, width),
                "conv2": _conv_bn_params(k2, 3, 3, width, width),
                "conv3": _conv_bn_params(k3, 1, 1, width, width * 4),
            }
            if s != 1 or in_c != width * 4:
                blk["downsample"] = _conv_bn_params(k4, 1, 1, in_c, width * 4)
            blocks.append(blk)
            in_c = width * 4
        layers.append(blocks)
    params["layers"] = layers

    ke1, ke2 = jax.random.split(k_embed)
    fc_in = 512 * 4                                 # resnet.fc.in_features = 2048
    params["embed_w"] = (
        jax.random.normal(ke1, (fc_in, embed_size), jnp.float32) / jnp.sqrt(fc_in)
    ).astype(jnp.bfloat16)
    params["embed_b"] = jax.random.normal(ke2, (embed_size,), jnp.float32) * 0.01
    return params


def _encoder_cnn_forward(params, images_nchw):
    """EncoderCNN.forward: resnet50-without-fc -> flatten -> embed Linear."""
    x = jnp.transpose(images_nchw, (0, 2, 3, 1)).astype(jnp.bfloat16)  # NCHW->NHWC

    # stem: conv7x7/2 + folded BN + ReLU
    x = conv_bn(x, params["stem"], stride=2, pad=3, relu=True)

    # TODO(synk): nn.MaxPool2d(3, 2, 1) kept as plain-JAX glue (strided windowed
    # max fuses fine under the single jit; no dedicated Pallas kernel).
    x = jax.lax.reduce_window(
        x, jnp.asarray(-jnp.inf, x.dtype), jax.lax.max,
        (1, 3, 3, 1), (1, 2, 2, 1),
        [(0, 0), (1, 1), (1, 1), (0, 0)],
    )

    for layer, (_, _, stride) in zip(params["layers"], _RESNET50_CFG):
        for bi, blk in enumerate(layer):
            x = bottleneck(x, blk, stride if bi == 0 else 1)

    # AdaptiveAvgPool2d((1,1)) + view + Linear
    B, H, W, C = x.shape
    pooled = global_avgpool(x.reshape(B, H * W, C))               # (B, C) f32
    feats = matmul_bias_act(pooled, params["embed_w"], params["embed_b"],
                            relu=False, out_dtype=jnp.float32)
    return feats                                                  # (B, embed)


encoder_cnn_forward = jax.jit(_encoder_cnn_forward)


if __name__ == "__main__":
    key = jax.random.PRNGKey(0)
    k_params, k_img = jax.random.split(key)

    embed_size = 32
    params = make_encoder_params(k_params, embed_size)

    # PyTorch-style NCHW images (small spatial size; downsamples cleanly to 1x1).
    images = jax.random.normal(k_img, (2, 3, 16, 16), jnp.float32)

    features = encoder_cnn_forward(params, images)
    features = jax.block_until_ready(features)

    assert features.shape == (2, embed_size)
    assert features.dtype == jnp.float32
    assert bool(jnp.all(jnp.isfinite(features)))
    print("KERNEL_OK")
</pallas_src>

<mosaic_0001>
module attributes {stable_mosaic.version = 11 : i64} {
  func.func @_matmul_bias_act_kernel(%arg0: i32, %arg1: i32, %arg2: i32, %arg3: memref<128x256xbf16, #tpu.memory_space<vmem>>, %arg4: memref<256x128xbf16, #tpu.memory_space<vmem>>, %arg5: memref<1x128xf32, #tpu.memory_space<vmem>>, %arg6: memref<128x128xbf16, #tpu.memory_space<vmem>>, %arg7: memref<128x128xf32, #tpu.memory_space<vmem>>) attributes {dimension_semantics = [#tpu.dimension_semantics<parallel>, #tpu.dimension_semantics<parallel>, #tpu.dimension_semantics<arbitrary>], iteration_bounds = array<i64: 1, 1, 1>, scalar_prefetch = 0 : i64, scratch_operands = 1 : i64, tpu.core_type = #tpu.core_type<tc>, window_params = [{transform_indices = @transform_0, window_bounds = array<i64: 128, 256>}, {transform_indices = @transform_1, window_bounds = array<i64: 256, 128>}, {transform_indices = @transform_2, window_bounds = array<i64: 1, 128>}, {transform_indices = @transform_3, window_bounds = array<i64: 128, 128>}]} {
    %c0_i32 = arith.constant 0 : i32
    %0 = arith.cmpi eq, %arg2, %c0_i32 : i32
    %1 = arith.extui %0 : i1 to i32
    %c0_i32_0 = arith.constant 0 : i32
    %2 = arith.cmpi ne, %1, %c0_i32_0 : i32
    scf.if %2 {
      %cst_10 = arith.constant 0.000000e+00 : f32
      %12 = vector.broadcast %cst_10 : f32 to vector<128x128xf32>
      %c0_11 = arith.constant 0 : index
      %c0_12 = arith.constant 0 : index
      %13 = vector.load %arg7[%c0_11, %c0_12] : memref<128x128xf32, #tpu.memory_space<vmem>>, vector<128x128xf32>
      tpu.vector_store %arg7[%c0_11, %c0_12], %12 {strides = array<i32>} : memref<128x128xf32, #tpu.memory_space<vmem>>, vector<128x128xf32>,
    } else {
    }
    %c0 = arith.constant 0 : index
    %c0_1 = arith.constant 0 : index
    %3 = vector.load %arg7[%c0, %c0_1] : memref<128x128xf32, #tpu.memory_space<vmem>>, vector<128x128xf32>
    %c0_2 = arith.constant 0 : index
    %c0_3 = arith.constant 0 : index
    %4 = vector.load %arg3[%c0_2, %c0_3] : memref<128x256xbf16, #tpu.memory_space<vmem>>, vector<128x256xbf16>
    %c0_4 = arith.constant 0 : index
    %c0_5 = arith.constant 0 : index
    %5 = vector.load %arg4[%c0_4, %c0_5] : memref<256x128xbf16, #tpu.memory_space<vmem>>, vector<256x128xbf16>
    %cst = arith.constant dense<0.000000e+00> : vector<128x128xf32>
    %6 = tpu.matmul %4, %5, %cst {dimension_numbers = #tpu.dot_dimension_numbers<[1], [0], [0], [1], [0, 0, 1, 1], [], []>} : vector<128x256xbf16>, vector<256x128xbf16>, vector<128x128xf32> -> vector<128x128xf32>
    %7 = arith.addf %3, %6 : vector<128x128xf32>
    %c0_6 = arith.constant 0 : index
    %c0_7 = arith.constant 0 : index
    %8 = vector.load %arg7[%c0_6, %c0_7] : memref<128x128xf32, #tpu.memory_space<vmem>>, vector<128x128xf32>
    tpu.vector_store %arg7[%c0_6, %c0_7], %7 {strides = array<i32>} : memref<128x128xf32, #tpu.memory_space<vmem>>, vector<128x128xf32>,
    %c0_i32_8 = arith.constant 0 : i32
    %9 = arith.cmpi eq, %arg2, %c0_i32_8 : i32
    %10 = arith.extui %9 : i1 to i32
    %c0_i32_9 = arith.constant 0 : i32
    %11 = arith.cmpi ne, %10, %c0_i32_9 : i32
    scf.if %11 {
      %c0_10 = arith.constant 0 : index
      %c0_11 = arith.constant 0 : index
      %12 = vector.load %arg7[%c0_10, %c0_11] : memref<128x128xf32, #tpu.memory_space<vmem>>, vector<128x128xf32>
      %c0_12 = arith.constant 0 : index
      %c0_13 = arith.constant 0 : index
      %13 = vector.load %arg5[%c0_12, %c0_13] : memref<1x128xf32, #tpu.memory_space<vmem>>, vector<1x128xf32>
      %14 = vector.broadcast %13 : vector<1x128xf32> to vector<128x128xf32>
      %15 = arith.addf %12, %14 : vector<128x128xf32>
      %cst_14 = arith.constant 0.000000e+00 : f32
      %16 = vector.broadcast %cst_14 : f32 to vector<128x128xf32>
      %17 = arith.maximumf %15, %16 : vector<128x128xf32>
      %18 = arith.truncf %17 : vector<128x128xf32> to vector<128x128xbf16>
      %c0_15 = arith.constant 0 : index
      %c0_16 = arith.constant 0 : index
      %19 = vector.load %arg6[%c0_15, %c0_16] : memref<128x128xbf16, #tpu.memory_space<vmem>>, vector<128x128xbf16>
      tpu.vector_store %arg6[%c0_15, %c0_16], %18 {strides = array<i32>} : memref<128x128xbf16, #tpu.memory_space<vmem>>, vector<128x128xbf16>,
    } else {
    }
    return
  }
  func.func @transform_0(%arg0: i32, %arg1: i32, %arg2: i32) -> (i32, i32) {
    %c0_i32 = arith.constant 0 : i32
    return %arg0, %arg2 : i32, i32
  }
  func.func @transform_1(%arg0: i32, %arg1: i32, %arg2: i32) -> (i32, i32) {
    %c0_i32 = arith.constant 0 : i32
    return %arg2, %arg1 : i32, i32
  }
  func.func @transform_2(%arg0: i32, %arg1: i32, %arg2: i32) -> (i32, i32) {
    %c0_i32 = arith.constant 0 : i32
    %c0_i32_0 = arith.constant 0 : i32
    return %c0_i32, %arg1 : i32, i32
  }
  func.func @transform_3(%arg0: i32, %arg1: i32, %arg2: i32) -> (i32, i32) {
    %c0_i32 = arith.constant 0 : i32
    return %arg0, %arg1 : i32, i32
  }
}

module attributes {stable_mosaic.version = 11 : i64} {
  func.func @_matmul_bias_act_kernel(%arg0: i32, %arg1: i32, %arg2: i32, %arg3: memref<32x128xbf16, #tpu.memory_space<vmem>>, %arg4: memref<128x128xbf16, #tpu.memory_space<vmem>>, %arg5: memref<1x128xf32, #tpu.memory_space<vmem>>, %arg6: memref<32x128xbf16, #tpu.memory_space<vmem>>, %arg7: memref<32x128xf32, #tpu.memory_space<vmem>>) attributes {dimension_semantics = [#tpu.dimension_semantics<parallel>, #tpu.dimension_semantics<parallel>, #tpu.dimension_semantics<arbitrary>], iteration_bounds = array<i64: 1, 1, 1>, scalar_prefetch = 0 : i64, scratch_operands = 1 : i64, tpu.core_type = #tpu.core_type<tc>, window_params = [{transform_indices = @transform_0, window_bounds = array<i64: 32, 128>}, {transform_indices = @transform_1, window_bounds = array<i64: 128, 128>}, {transform_indices = @transform_2, window_bounds = array<i64: 1, 128>}, {transform_indices = @transform_3, window_bounds = array<i64: 32, 128>}]} {
    %c0_i32 = arith.constant 0 : i32
    %0 = arith.cmpi eq, %arg2, %c0_i32 : i32
    %1 = arith.extui %0 : i1 to i32
    %c0_i32_0 = arith.constant 0 : i32
    %2 = arith.cmpi ne, %1, %c0_i32_0 : i32
    scf.if %2 {
      %cst_10 = arith.constant 0.000000e+00 : f32
      %12 = vector.broadcast %cst_10 : f32 to vector<32x128xf32>
      %c0_11 = arith.constant 0 : index
      %c0_12 = arith.constant 0 : index
      %13 = vector.load %arg7[%c0_11, %c0_12] : memref<32x128xf32, #tpu.memory_space<vmem>>, vector<32x128xf32>
      tpu.vector_store %arg7[%c0_11, %c0_12], %12 {strides = array<i32>} : memref<32x128xf32, #tpu.memory_space<vmem>>, vector<32x128xf32>,
    } else {
    }
    %c0 = arith.constant 0 : index
    %c0_1 = arith.constant 0 : index
    %3 = vector.load %arg7[%c0, %c0_1] : memref<32x128xf32, #tpu.memory_space<vmem>>, vector<32x128xf32>
    %c0_2 = arith.constant 0 : index
    %c0_3 = arith.constant 0 : index
    %4 = vector.load %arg3[%c0_2, %c0_3] : memref<32x128xbf16, #tpu.memory_space<vmem>>, vector<32x128xbf16>
    %c0_4 = arith.constant 0 : index
    %c0_5 = arith.constant 0 : index
    %5 = vector.load %arg4[%c0_4, %c0_5] : memref<128x128xbf16, #tpu.memory_space<vmem>>, vector<128x128xbf16>
    %cst = arith.constant dense<0.000000e+00> : vector<32x128xf32>
    %6 = tpu.matmul %4, %5, %cst {dimension_numbers = #tpu.dot_dimension_numbers<[1], [0], [0], [1], [0, 0, 1, 1], [], []>} : vector<32x128xbf16>, vector<128x128xbf16>, vector<32x128xf32> -> vector<32x128xf32>
    %7 = arith.addf %3, %6 : vector<32x128xf32>
    %c0_6 = arith.constant 0 : index
    %c0_7 = arith.constant 0 : index
    %8 = vector.load %arg7[%c0_6, %c0_7] : memref<32x128xf32, #tpu.memory_space<vmem>>, vector<32x128xf32>
    tpu.vector_store %arg7[%c0_6, %c0_7], %7 {strides = array<i32>} : memref<32x128xf32, #tpu.memory_space<vmem>>, vector<32x128xf32>,
    %c0_i32_8 = arith.constant 0 : i32
    %9 = arith.cmpi eq, %arg2, %c0_i32_8 : i32
    %10 = arith.extui %9 : i1 to i32
    %c0_i32_9 = arith.constant 0 : i32
    %11 = arith.cmpi ne, %10, %c0_i32_9 : i32
    scf.if %11 {
      %c0_10 = arith.constant 0 : index
      %c0_11 = arith.constant 0 : index
      %12 = vector.load %arg7[%c0_10, %c0_11] : memref<32x128xf32, #tpu.memory_space<vmem>>, vector<32x128xf32>
      %c0_12 = arith.constant 0 : index
      %c0_13 = arith.constant 0 : index
      %13 = vector.load %arg5[%c0_12, %c0_13] : memref<1x128xf32, #tpu.memory_space<vmem>>, vector<1x128xf32>
      %14 = vector.broadcast %13 : vector<1x128xf32> to vector<32x128xf32>
      %15 = arith.addf %12, %14 : vector<32x128xf32>
      %cst_14 = arith.constant 0.000000e+00 : f32
      %16 = vector.broadcast %cst_14 : f32 to vector<32x128xf32>
      %17 = arith.maximumf %15, %16 : vector<32x128xf32>
      %18 = arith.truncf %17 : vector<32x128xf32> to vector<32x128xbf16>
      %c0_15 = arith.constant 0 : index
      %c0_16 = arith.constant 0 : index
      %19 = vector.load %arg6[%c0_15, %c0_16] : memref<32x128xbf16, #tpu.memory_space<vmem>>, vector<32x128xbf16>
      tpu.vector_store %arg6[%c0_15, %c0_16], %18 {strides = array<i32>} : memref<32x128xbf16, #tpu.memory_space<vmem>>, vector<32x128xbf16>,
    } else {
    }
    return
  }
  func.func @transform_0(%arg0: i32, %arg1: i32, %arg2: i32) -> (i32, i32) {
    %c0_i32 = arith.constant 0 : i32
    return %arg0, %arg2 : i32, i32
  }
  func.func @transform_1(%arg0: i32, %arg1: i32, %arg2: i32) -> (i32, i32) {
    %c0_i32 = arith.constant 0 : i32
    return %arg2, %arg1 : i32, i32
  }
  func.func @transform_2(%arg0: i32, %arg1: i32, %arg2: i32) -> (i32, i32) {
    %c0_i32 = arith.constant 0 : i32
    %c0_i32_0 = arith.constant 0 : i32
    return %c0_i32, %arg1 : i32, i32
  }
  func.func @transform_3(%arg0: i32, %arg1: i32, %arg2: i32) -> (i32, i32) {
    %c0_i32 = arith.constant 0 : i32
    return %arg0, %arg1 : i32, i32
  }
}

module attributes {stable_mosaic.version = 11 : i64} {
  func.func @_matmul_bias_act_kernel(%arg0: i32, %arg1: i32, %arg2: i32, %arg3: memref<32x512xbf16, #tpu.memory_space<vmem>>, %arg4: memref<512x128xbf16, #tpu.memory_space<vmem>>, %arg5: memref<1x128xf32, #tpu.memory_space<vmem>>, %arg6: memref<32x128xbf16, #tpu.memory_space<vmem>>, %arg7: memref<32x128xf32, #tpu.memory_space<vmem>>) attributes {dimension_semantics = [#tpu.dimension_semantics<parallel>, #tpu.dimension_semantics<parallel>, #tpu.dimension_semantics<arbitrary>], iteration_bounds = array<i64: 1, 1, 2>, scalar_prefetch = 0 : i64, scratch_operands = 1 : i64, tpu.core_type = #tpu.core_type<tc>, window_params = [{transform_indices = @transform_0, window_bounds = array<i64: 32, 512>}, {transform_indices = @transform_1, window_bounds = array<i64: 512, 128>}, {transform_indices = @transform_2, window_bounds = array<i64: 1, 128>}, {transform_indices = @transform_3, window_bounds = array<i64: 32, 128>}]} {
    %c0_i32 = arith.constant 0 : i32
    %0 = arith.cmpi eq, %arg2, %c0_i32 : i32
    %1 = arith.extui %0 : i1 to i32
    %c0_i32_0 = arith.constant 0 : i32
    %2 = arith.cmpi ne, %1, %c0_i32_0 : i32
    scf.if %2 {
      %cst_9 = arith.constant 0.000000e+00 : f32
      %12 = vector.broadcast %cst_9 : f32 to vector<32x128xf32>
      %c0_10 = arith.constant 0 : index
      %c0_11 = arith.constant 0 : index
      %13 = vector.load %arg7[%c0_10, %c0_11] : memref<32x128xf32, #tpu.memory_space<vmem>>, vector<32x128xf32>
      tpu.vector_store %arg7[%c0_10, %c0_11], %12 {strides = array<i32>} : memref<32x128xf32, #tpu.memory_space<vmem>>, vector<32x128xf32>,
    } else {
    }
    %c0 = arith.constant 0 : index
    %c0_1 = arith.constant 0 : index
    %3 = vector.load %arg7[%c0, %c0_1] : memref<32x128xf32, #tpu.memory_space<vmem>>, vector<32x128xf32>
    %c0_2 = arith.constant 0 : index
    %c0_3 = arith.constant 0 : index
    %4 = vector.load %arg3[%c0_2, %c0_3] : memref<32x512xbf16, #tpu.memory_space<vmem>>, vector<32x512xbf16>
    %c0_4 = arith.constant 0 : index
    %c0_5 = arith.constant 0 : index
    %5 = vector.load %arg4[%c0_4, %c0_5] : memref<512x128xbf16, #tpu.memory_space<vmem>>, vector<512x128xbf16>
    %cst = arith.constant dense<0.000000e+00> : vector<32x128xf32>
    %6 = tpu.matmul %4, %5, %cst {dimension_numbers = #tpu.dot_dimension_numbers<[1], [0], [0], [1], [0, 0, 1, 1], [], []>} : vector<32x512xbf16>, vector<512x128xbf16>, vector<32x128xf32> -> vector<32x128xf32>
    %7 = arith.addf %3, %6 : vector<32x128xf32>
    %c0_6 = arith.constant 0 : index
    %c0_7 = arith.constant 0 : index
    %8 = vector.load %arg7[%c0_6, %c0_7] : memref<32x128xf32, #tpu.memory_space<vmem>>, vector<32x128xf32>
    tpu.vector_store %arg7[%c0_6, %c0_7], %7 {strides = array<i32>} : memref<32x128xf32, #tpu.memory_space<vmem>>, vector<32x128xf32>,
    %c1_i32 = arith.constant 1 : i32
    %9 = arith.cmpi eq, %arg2, %c1_i32 : i32
    %10 = arith.extui %9 : i1 to i32
    %c0_i32_8 = arith.constant 0 : i32
    %11 = arith.cmpi ne, %10, %c0_i32_8 : i32
    scf.if %11 {
      %c0_9 = arith.constant 0 : index
      %c0_10 = arith.constant 0 : index
      %12 = vector.load %arg7[%c0_9, %c0_10] : memref<32x128xf32, #tpu.memory_space<vmem>>, vector<32x128xf32>
      %c0_11 = arith.constant 0 : index
      %c0_12 = arith.constant 0 : index
      %13 = vector.load %arg5[%c0_11, %c0_12] : memref<1x128xf32, #tpu.memory_space<vmem>>, vector<1x128xf32>
      %14 = vector.broadcast %13 : vector<1x128xf32> to vector<32x128xf32>
      %15 = arith.addf %12, %14 : vector<32x128xf32>
      %cst_13 = arith.constant 0.000000e+00 : f32
      %16 = vector.broadcast %cst_13 : f32 to vector<32x128xf32>
      %17 = arith.maximumf %15, %16 : vector<32x128xf32>
      %18 = arith.truncf %17 : vector<32x128xf32> to vector<32x128xbf16>
      %c0_14 = arith.constant 0 : index
      %c0_15 = arith.constant 0 : index
      %19 = vector.load %arg6[%c0_14, %c0_15] : memref<32x128xbf16, #tpu.memory_space<vmem>>, vector<32x128xbf16>
      tpu.vector_store %arg6[%c0_14, %c0_15], %18 {strides = array<i32>} : memref<32x128xbf16, #tpu.memory_space<vmem>>, vector<32x128xbf16>,
    } else {
    }
    return
  }
  func.func @transform_0(%arg0: i32, %arg1: i32, %arg2: i32) -> (i32, i32) {
    %c0_i32 = arith.constant 0 : i32
    return %arg0, %arg2 : i32, i32
  }
  func.func @transform_1(%arg0: i32, %arg1: i32, %arg2: i32) -> (i32, i32) {
    %c0_i32 = arith.constant 0 : i32
    return %arg2, %arg1 : i32, i32
  }
  func.func @transform_2(%arg0: i32, %arg1: i32, %arg2: i32) -> (i32, i32) {
    %c0_i32 = arith.constant 0 : i32
    %c0_i32_0 = arith.constant 0 : i32
    return %c0_i32, %arg1 : i32, i32
  }
  func.func @transform_3(%arg0: i32, %arg1: i32, %arg2: i32) -> (i32, i32) {
    %c0_i32 = arith.constant 0 : i32
    return %arg0, %arg1 : i32, i32
  }
}

module attributes {stable_mosaic.version = 11 : i64} {
  func.func @_matmul_bias_act_kernel(%arg0: i32, %arg1: i32, %arg2: i32, %arg3: memref<32x128xbf16, #tpu.memory_space<vmem>>, %arg4: memref<128x256xbf16, #tpu.memory_space<vmem>>, %arg5: memref<1x256xf32, #tpu.memory_space<vmem>>, %arg6: memref<32x256xbf16, #tpu.memory_space<vmem>>, %arg7: memref<32x256xf32, #tpu.memory_space<vmem>>) attributes {dimension_semantics = [#tpu.dimension_semantics<parallel>, #tpu.dimension_semantics<parallel>, #tpu.dimension_semantics<arbitrary>], iteration_bounds = array<i64: 1, 1, 1>, scalar_prefetch = 0 : i64, scratch_operands = 1 : i64, tpu.core_type = #tpu.core_type<tc>, window_params = [{transform_indices = @transform_0, window_bounds = array<i64: 32, 128>}, {transform_indices = @transform_1, window_bounds = array<i64: 128, 256>}, {transform_indices = @transform_2, window_bounds = array<i64: 1, 256>}, {transform_indices = @transform_3, window_bounds = array<i64: 32, 256>}]} {
    %c0_i32 = arith.constant 0 : i32
    %0 = arith.cmpi eq, %arg2, %c0_i32 : i32
    %1 = arith.extui %0 : i1 to i32
    %c0_i32_0 = arith.constant 0 : i32
    %2 = arith.cmpi ne, %1, %c0_i32_0 : i32
    scf.if %2 {
      %cst_10 = arith.constant 0.000000e+00 : f32
      %12 = vector.broadcast %cst_10 : f32 to vector<32x256xf32>
      %c0_11 = arith.constant 0 : index
      %c0_12 = arith.constant 0 : index
      %13 = vector.load %arg7[%c0_11, %c0_12] : memref<32x256xf32, #tpu.memory_space<vmem>>, vector<32x256xf32>
      tpu.vector_store %arg7[%c0_11, %c0_12], %12 {strides = array<i32>} : memref<32x256xf32, #tpu.memory_space<vmem>>, vector<32x256xf32>,
    } else {
    }
    %c0 = arith.constant 0 : index
    %c0_1 = arith.constant 0 : index
    %3 = vector.load %arg7[%c0, %c0_1] : memref<32x256xf32, #tpu.memory_space<vmem>>, vector<32x256xf32>
    %c0_2 = arith.constant 0 : index
    %c0_3 = arith.constant 0 : index
    %4 = vector.load %arg3[%c0_2, %c0_3] : memref<32x128xbf16, #tpu.memory_space<vmem>>, vector<32x128xbf16>
    %c0_4 = arith.constant 0 : index
    %c0_5 = arith.constant 0 : index
    %5 = vector.load %arg4[%c0_4, %c0_5] : memref<128x256xbf16, #tpu.memory_space<vmem>>, vector<128x256xbf16>
    %cst = arith.constant dense<0.000000e+00> : vector<32x256xf32>
    %6 = tpu.matmul %4, %5, %cst {dimension_numbers = #tpu.dot_dimension_numbers<[1], [0], [0], [1], [0, 0, 1, 1], [], []>} : vector<32x128xbf16>, vector<128x256xbf16>, vector<32x256xf32> -> vector<32x256xf32>
    %7 = arith.addf %3, %6 : vector<32x256xf32>
    %c0_6 = arith.constant 0 : index
    %c0_7 = arith.constant 0 : index
    %8 = vector.load %arg7[%c0_6, %c0_7] : memref<32x256xf32, #tpu.memory_space<vmem>>, vector<32x256xf32>
    tpu.vector_store %arg7[%c0_6, %c0_7], %7 {strides = array<i32>} : memref<32x256xf32, #tpu.memory_space<vmem>>, vector<32x256xf32>,
    %c0_i32_8 = arith.constant 0 : i32
    %9 = arith.cmpi eq, %arg2, %c0_i32_8 : i32
    %10 = arith.extui %9 : i1 to i32
    %c0_i32_9 = arith.constant 0 : i32
    %11 = arith.cmpi ne, %10, %c0_i32_9 : i32
    scf.if %11 {
      %c0_10 = arith.constant 0 : index
      %c0_11 = arith.constant 0 : index
      %12 = vector.load %arg7[%c0_10, %c0_11] : memref<32x256xf32, #tpu.memory_space<vmem>>, vector<32x256xf32>
      %c0_12 = arith.constant 0 : index
      %c0_13 = arith.constant 0 : index
      %13 = vector.load %arg5[%c0_12, %c0_13] : memref<1x256xf32, #tpu.memory_space<vmem>>, vector<1x256xf32>
      %14 = vector.broadcast %13 : vector<1x256xf32> to vector<32x256xf32>
      %15 = arith.addf %12, %14 : vector<32x256xf32>
      %16 = arith.truncf %15 : vector<32x256xf32> to vector<32x256xbf16>
      %c0_14 = arith.constant 0 : index
      %c0_15 = arith.constant 0 : index
      %17 = vector.load %arg6[%c0_14, %c0_15] : memref<32x256xbf16, #tpu.memory_space<vmem>>, vector<32x256xbf16>
      tpu.vector_store %arg6[%c0_14, %c0_15], %16 {strides = array<i32>} : memref<32x256xbf16, #tpu.memory_space<vmem>>, vector<32x256xbf16>,
    } else {
    }
    return
  }
  func.func @transform_0(%arg0: i32, %arg1: i32, %arg2: i32) -> (i32, i32) {
    %c0_i32 = arith.constant 0 : i32
    return %arg0, %arg2 : i32, i32
  }
  func.func @transform_1(%arg0: i32, %arg1: i32, %arg2: i32) -> (i32, i32) {
    %c0_i32 = arith.constant 0 : i32
    return %arg2, %arg1 : i32, i32
  }
  func.func @transform_2(%arg0: i32, %arg1: i32, %arg2: i32) -> (i32, i32) {
    %c0_i32 = arith.constant 0 : i32
    %c0_i32_0 = arith.constant 0 : i32
    return %c0_i32, %arg1 : i32, i32
  }
  func.func @transform_3(%arg0: i32, %arg1: i32, %arg2: i32) -> (i32, i32) {
    %c0_i32 = arith.constant 0 : i32
    return %arg0, %arg1 : i32, i32
  }
}

module attributes {stable_mosaic.version = 11 : i64} {
  func.func @_matmul_bias_act_kernel(%arg0: i32, %arg1: i32, %arg2: i32, %arg3: memref<32x128xbf16, #tpu.memory_space<vmem>>, %arg4: memref<128x256xbf16, #tpu.memory_space<vmem>>, %arg5: memref<1x256xf32, #tpu.memory_space<vmem>>, %arg6: memref<32x256xbf16, #tpu.memory_space<vmem>>, %arg7: memref<32x256xbf16, #tpu.memory_space<vmem>>, %arg8: memref<32x256xf32, #tpu.memory_space<vmem>>) attributes {dimension_semantics = [#tpu.dimension_semantics<parallel>, #tpu.dimension_semantics<parallel>, #tpu.dimension_semantics<arbitrary>], iteration_bounds = array<i64: 1, 1, 1>, scalar_prefetch = 0 : i64, scratch_operands = 1 : i64, tpu.core_type = #tpu.core_type<tc>, window_params = [{transform_indices = @transform_0, window_bounds = array<i64: 32, 128>}, {transform_indices = @transform_1, window_bounds = array<i64: 128, 256>}, {transform_indices = @transform_2, window_bounds = array<i64: 1, 256>}, {transform_indices = @transform_3, window_bounds = array<i64: 32, 256>}, {transform_indices = @transform_4, window_bounds = array<i64: 32, 256>}]} {
    %c0_i32 = arith.constant 0 : i32
    %0 = arith.cmpi eq, %arg2, %c0_i32 : i32
    %1 = arith.extui %0 : i1 to i32
    %c0_i32_0 = arith.constant 0 : i32
    %2 = arith.cmpi ne, %1, %c0_i32_0 : i32
    scf.if %2 {
      %cst_10 = arith.constant 0.000000e+00 : f32
      %12 = vector.broadcast %cst_10 : f32 to vector<32x256xf32>
      %c0_11 = arith.constant 0 : index
      %c0_12 = arith.constant 0 : index
      %13 = vector.load %arg8[%c0_11, %c0_12] : memref<32x256xf32, #tpu.memory_space<vmem>>, vector<32x256xf32>
      tpu.vector_store %arg8[%c0_11, %c0_12], %12 {strides = array<i32>} : memref<32x256xf32, #tpu.memory_space<vmem>>, vector<32x256xf32>,
    } else {
    }
    %c0 = arith.constant 0 : index
    %c0_1 = arith.constant 0 : index
    %3 = vector.load %arg8[%c0, %c0_1] : memref<32x256xf32, #tpu.memory_space<vmem>>, vector<32x256xf32>
    %c0_2 = arith.constant 0 : index
    %c0_3 = arith.constant 0 : index
    %4 = vector.load %arg3[%c0_2, %c0_3] : memref<32x128xbf16, #tpu.memory_space<vmem>>, vector<32x128xbf16>
    %c0_4 = arith.constant 0 : index
    %c0_5 = arith.constant 0 : index
    %5 = vector.load %arg4[%c0_4, %c0_5] : memref<128x256xbf16, #tpu.memory_space<vmem>>, vector<128x256xbf16>
    %cst = arith.constant dense<0.000000e+00> : vector<32x256xf32>
    %6 = tpu.matmul %4, %5, %cst {dimension_numbers = #tpu.dot_dimension_numbers<[1], [0], [0], [1], [0, 0, 1, 1], [], []>} : vector<32x128xbf16>, vector<128x256xbf16>, vector<32x256xf32> -> vector<32x256xf32>
    %7 = arith.addf %3, %6 : vector<32x256xf32>
    %c0_6 = arith.constant 0 : index
    %c0_7 = arith.constant 0 : index
    %8 = vector.load %arg8[%c0_6, %c0_7] : memref<32x256xf32, #tpu.memory_space<vmem>>, vector<32x256xf32>
    tpu.vector_store %arg8[%c0_6, %c0_7], %7 {strides = array<i32>} : memref<32x256xf32, #tpu.memory_space<vmem>>, vector<32x256xf32>,
    %c0_i32_8 = arith.constant 0 : i32
    %9 = arith.cmpi eq, %arg2, %c0_i32_8 : i32
    %10 = arith.extui %9 : i1 to i32
    %c0_i32_9 = arith.constant 0 : i32
    %11 = arith.cmpi ne, %10, %c0_i32_9 : i32
    scf.if %11 {
      %c0_10 = arith.constant 0 : index
      %c0_11 = arith.constant 0 : index
      %12 = vector.load %arg8[%c0_10, %c0_11] : memref<32x256xf32, #tpu.memory_space<vmem>>, vector<32x256xf32>
      %c0_12 = arith.constant 0 : index
      %c0_13 = arith.constant 0 : index
      %13 = vector.load %arg5[%c0_12, %c0_13] : memref<1x256xf32, #tpu.memory_space<vmem>>, vector<1x256xf32>
      %14 = vector.broadcast %13 : vector<1x256xf32> to vector<32x256xf32>
      %15 = arith.addf %12, %14 : vector<32x256xf32>
      %c0_14 = arith.constant 0 : index
      %c0_15 = arith.constant 0 : index
      %16 = vector.load %arg6[%c0_14, %c0_15] : memref<32x256xbf16, #tpu.memory_space<vmem>>, vector<32x256xbf16>
      %17 = arith.extf %16 : vector<32x256xbf16> to vector<32x256xf32>
      %18 = arith.addf %15, %17 : vector<32x256xf32>
      %cst_16 = arith.constant 0.000000e+00 : f32
      %19 = vector.broadcast %cst_16 : f32 to vector<32x256xf32>
      %20 = arith.maximumf %18, %19 : vector<32x256xf32>
      %21 = arith.truncf %20 : vector<32x256xf32> to vector<32x256xbf16>
      %c0_17 = arith.constant 0 : index
      %c0_18 = arith.constant 0 : index
      %22 = vector.load %arg7[%c0_17, %c0_18] : memref<32x256xbf16, #tpu.memory_space<vmem>>, vector<32x256xbf16>
      tpu.vector_store %arg7[%c0_17, %c0_18], %21 {strides = array<i32>} : memref<32x256xbf16, #tpu.memory_space<vmem>>, vector<32x256xbf16>,
    } else {
    }
    return
  }
  func.func @transform_0(%arg0: i32, %arg1: i32, %arg2: i32) -> (i32, i32) {
    %c0_i32 = arith.constant 0 : i32
    return %arg0, %arg2 : i32, i32
  }
  func.func @transform_1(%arg0: i32, %arg1: i32, %arg2: i32) -> (i32, i32) {
    %c0_i32 = arith.constant 0 : i32
    return %arg2, %arg1 : i32, i32
  }
  func.func @transform_2(%arg0: i32, %arg1: i32, %arg2: i32) -> (i32, i32) {
    %c0_i32 = arith.constant 0 : i32
    %c0_i32_0 = arith.constant 0 : i32
    return %c0_i32, %arg1 : i32, i32
  }
  func.func @transform_3(%arg0: i32, %arg1: i32, %arg2: i32) -> (i32, i32) {
    %c0_i32 = arith.constant 0 : i32
    return %arg0, %arg1 : i32, i32
  }
  func.func @transform_4(%arg0: i32, %arg1: i32, %arg2: i32) -> (i32, i32) {
    %c0_i32 = arith.constant 0 : i32
    return %arg0, %arg1 : i32, i32
  }
}

module attributes {stable_mosaic.version = 11 : i64} {
  func.func @_matmul_bias_act_kernel(%arg0: i32, %arg1: i32, %arg2: i32, %arg3: memref<32x256xbf16, #tpu.memory_space<vmem>>, %arg4: memref<256x128xbf16, #tpu.memory_space<vmem>>, %arg5: memref<1x128xf32, #tpu.memory_space<vmem>>, %arg6: memref<32x128xbf16, #tpu.memory_space<vmem>>, %arg7: memref<32x128xf32, #tpu.memory_space<vmem>>) attributes {dimension_semantics = [#tpu.dimension_semantics<parallel>, #tpu.dimension_semantics<parallel>, #tpu.dimension_semantics<arbitrary>], iteration_bounds = array<i64: 1, 1, 1>, scalar_prefetch = 0 : i64, scratch_operands = 1 : i64, tpu.core_type = #tpu.core_type<tc>, window_params = [{transform_indices = @transform_0, window_bounds = array<i64: 32, 256>}, {transform_indices = @transform_1, window_bounds = array<i64: 256, 128>}, {transform_indices = @transform_2, window_bounds = array<i64: 1, 128>}, {transform_indices = @transform_3, window_bounds = array<i64: 32, 128>}]} {
    %c0_i32 = arith.constant 0 : i32
    %0 = arith.cmpi eq, %arg2, %c0_i32 : i32
    %1 = arith.extui %0 : i1 to i32
    %c0_i32_0 = arith.constant 0 : i32
    %2 = arith.cmpi ne, %1, %c0_i32_0 : i32
    scf.if %2 {
      %cst_10 = arith.constant 0.000000e+00 : f32
      %12 = vector.broadcast %cst_10 : f32 to vector<32x128xf32>
      %c0_11 = arith.constant 0 : index
      %c0_12 = arith.constant 0 : index
      %13 = vector.load %arg7[%c0_11, %c0_12] : memref<32x128xf32, #tpu.memory_space<vmem>>, vector<32x128xf32>
      tpu.vector_store %arg7[%c0_11, %c0_12], %12 {strides = array<i32>} : memref<32x128xf32, #tpu.memory_space<vmem>>, vector<32x128xf32>,
    } else {
    }
    %c0 = arith.constant 0 : index
    %c0_1 = arith.constant 0 : index
    %3 = vector.load %arg7[%c0, %c0_1] : memref<32x128xf32, #tpu.memory_space<vmem>>, vector<32x128xf32>
    %c0_2 = arith.constant 0 : index
    %c0_3 = arith.constant 0 : index
    %4 = vector.load %arg3[%c0_2, %c0_3] : memref<32x256xbf16, #tpu.memory_space<vmem>>, vector<32x256xbf16>
    %c0_4 = arith.constant 0 : index
    %c0_5 = arith.constant 0 : index
    %5 = vector.load %arg4[%c0_4, %c0_5] : memref<256x128xbf16, #tpu.memory_space<vmem>>, vector<256x128xbf16>
    %cst = arith.constant dense<0.000000e+00> : vector<32x128xf32>
    %6 = tpu.matmul %4, %5, %cst {dimension_numbers = #tpu.dot_dimension_numbers<[1], [0], [0], [1], [0, 0, 1, 1], [], []>} : vector<32x256xbf16>, vector<256x128xbf16>, vector<32x128xf32> -> vector<32x128xf32>
    %7 = arith.addf %3, %6 : vector<32x128xf32>
    %c0_6 = arith.constant 0 : index
    %c0_7 = arith.constant 0 : index
    %8 = vector.load %arg7[%c0_6, %c0_7] : memref<32x128xf32, #tpu.memory_space<vmem>>, vector<32x128xf32>
    tpu.vector_store %arg7[%c0_6, %c0_7], %7 {strides = array<i32>} : memref<32x128xf32, #tpu.memory_space<vmem>>, vector<32x128xf32>,
    %c0_i32_8 = arith.constant 0 : i32
    %9 = arith.cmpi eq, %arg2, %c0_i32_8 : i32
    %10 = arith.extui %9 : i1 to i32
    %c0_i32_9 = arith.constant 0 : i32
    %11 = arith.cmpi ne, %10, %c0_i32_9 : i32
    scf.if %11 {
      %c0_10 = arith.constant 0 : index
      %c0_11 = arith.constant 0 : index
      %12 = vector.load %arg7[%c0_10, %c0_11] : memref<32x128xf32, #tpu.memory_space<vmem>>, vector<32x128xf32>
      %c0_12 = arith.constant 0 : index
      %c0_13 = arith.constant 0 : index
      %13 = vector.load %arg5[%c0_12, %c0_13] : memref<1x128xf32, #tpu.memory_space<vmem>>, vector<1x128xf32>
      %14 = vector.broadcast %13 : vector<1x128xf32> to vector<32x128xf32>
      %15 = arith.addf %12, %14 : vector<32x128xf32>
      %cst_14 = arith.constant 0.000000e+00 : f32
      %16 = vector.broadcast %cst_14 : f32 to vector<32x128xf32>
      %17 = arith.maximumf %15, %16 : vector<32x128xf32>
      %18 = arith.truncf %17 : vector<32x128xf32> to vector<32x128xbf16>
      %c0_15 = arith.constant 0 : index
      %c0_16 = arith.constant 0 : index
      %19 = vector.load %arg6[%c0_15, %c0_16] : memref<32x128xbf16, #tpu.memory_space<vmem>>, vector<32x128xbf16>
      tpu.vector_store %arg6[%c0_15, %c0_16], %18 {strides = array<i32>} : memref<32x128xbf16, #tpu.memory_space<vmem>>, vector<32x128xbf16>,
    } else {
    }
    return
  }
  func.func @transform_0(%arg0: i32, %arg1: i32, %arg2: i32) -> (i32, i32) {
    %c0_i32 = arith.constant 0 : i32
    return %arg0, %arg2 : i32, i32
  }
  func.func @transform_1(%arg0: i32, %arg1: i32, %arg2: i32) -> (i32, i32) {
    %c0_i32 = arith.constant 0 : i32
    return %arg2, %arg1 : i32, i32
  }
  func.func @transform_2(%arg0: i32, %arg1: i32, %arg2: i32) -> (i32, i32) {
    %c0_i32 = arith.constant 0 : i32
    %c0_i32_0 = arith.constant 0 : i32
    return %c0_i32, %arg1 : i32, i32
  }
  func.func @transform_3(%arg0: i32, %arg1: i32, %arg2: i32) -> (i32, i32) {
    %c0_i32 = arith.constant 0 : i32
    return %arg0, %arg1 : i32, i32
  }
}

module attributes {stable_mosaic.version = 11 : i64} {
  func.func @_matmul_bias_act_kernel(%arg0: i32, %arg1: i32, %arg2: i32, %arg3: memref<8x512xbf16, #tpu.memory_space<vmem>>, %arg4: memref<512x128xbf16, #tpu.memory_space<vmem>>, %arg5: memref<1x128xf32, #tpu.memory_space<vmem>>, %arg6: memref<8x128xbf16, #tpu.memory_space<vmem>>, %arg7: memref<8x128xf32, #tpu.memory_space<vmem>>) attributes {dimension_semantics = [#tpu.dimension_semantics<parallel>, #tpu.dimension_semantics<parallel>, #tpu.dimension_semantics<arbitrary>], iteration_bounds = array<i64: 1, 1, 3>, scalar_prefetch = 0 : i64, scratch_operands = 1 : i64, tpu.core_type = #tpu.core_type<tc>, window_params = [{transform_indices = @transform_0, window_bounds = array<i64: 8, 512>}, {transform_indices = @transform_1, window_bounds = array<i64: 512, 128>}, {transform_indices = @transform_2, window_bounds = array<i64: 1, 128>}, {transform_indices = @transform_3, window_bounds = array<i64: 8, 128>}]} {
    %c0_i32 = arith.constant 0 : i32
    %0 = arith.cmpi eq, %arg2, %c0_i32 : i32
    %1 = arith.extui %0 : i1 to i32
    %c0_i32_0 = arith.constant 0 : i32
    %2 = arith.cmpi ne, %1, %c0_i32_0 : i32
    scf.if %2 {
      %cst_9 = arith.constant 0.000000e+00 : f32
      %12 = vector.broadcast %cst_9 : f32 to vector<8x128xf32>
      %c0_10 = arith.constant 0 : index
      %c0_11 = arith.constant 0 : index
      %13 = vector.load %arg7[%c0_10, %c0_11] : memref<8x128xf32, #tpu.memory_space<vmem>>, vector<8x128xf32>
      tpu.vector_store %arg7[%c0_10, %c0_11], %12 {strides = array<i32>} : memref<8x128xf32, #tpu.memory_space<vmem>>, vector<8x128xf32>,
    } else {
    }
    %c0 = arith.constant 0 : index
    %c0_1 = arith.constant 0 : index
    %3 = vector.load %arg7[%c0, %c0_1] : memref<8x128xf32, #tpu.memory_space<vmem>>, vector<8x128xf32>
    %c0_2 = arith.constant 0 : index
    %c0_3 = arith.constant 0 : index
    %4 = vector.load %arg3[%c0_2, %c0_3] : memref<8x512xbf16, #tpu.memory_space<vmem>>, vector<8x512xbf16>
    %c0_4 = arith.constant 0 : index
    %c0_5 = arith.constant 0 : index
    %5 = vector.load %arg4[%c0_4, %c0_5] : memref<512x128xbf16, #tpu.memory_space<vmem>>, vector<512x128xbf16>
    %cst = arith.constant dense<0.000000e+00> : vector<8x128xf32>
    %6 = tpu.matmul %4, %5, %cst {dimension_numbers = #tpu.dot_dimension_numbers<[1], [0], [0], [1], [0, 0, 1, 1], [], []>} : vector<8x512xbf16>, vector<512x128xbf16>, vector<8x128xf32> -> vector<8x128xf32>
    %7 = arith.addf %3, %6 : vector<8x128xf32>
    %c0_6 = arith.constant 0 : index
    %c0_7 = arith.constant 0 : index
    %8 = vector.load %arg7[%c0_6, %c0_7] : memref<8x128xf32, #tpu.memory_space<vmem>>, vector<8x128xf32>
    tpu.vector_store %arg7[%c0_6, %c0_7], %7 {strides = array<i32>} : memref<8x128xf32, #tpu.memory_space<vmem>>, vector<8x128xf32>,
    %c2_i32 = arith.constant 2 : i32
    %9 = arith.cmpi eq, %arg2, %c2_i32 : i32
    %10 = arith.extui %9 : i1 to i32
    %c0_i32_8 = arith.constant 0 : i32
    %11 = arith.cmpi ne, %10, %c0_i32_8 : i32
    scf.if %11 {
      %c0_9 = arith.constant 0 : index
      %c0_10 = arith.constant 0 : index
      %12 = vector.load %arg7[%c0_9, %c0_10] : memref<8x128xf32, #tpu.memory_space<vmem>>, vector<8x128xf32>
      %c0_11 = arith.constant 0 : index
      %c0_12 = arith.constant 0 : index
      %13 = vector.load %arg5[%c0_11, %c0_12] : memref<1x128xf32, #tpu.memory_space<vmem>>, vector<1x128xf32>
      %14 = vector.broadcast %13 : vector<1x128xf32> to vector<8x128xf32>
      %15 = arith.addf %12, %14 : vector<8x128xf32>
      %cst_13 = arith.constant 0.000000e+00 : f32
      %16 = vector.broadcast %cst_13 : f32 to vector<8x128xf32>
      %17 = arith.maximumf %15, %16 : vector<8x128xf32>
      %18 = arith.truncf %17 : vector<8x128xf32> to vector<8x128xbf16>
      %c0_14 = arith.constant 0 : index
      %c0_15 = arith.constant 0 : index
      %19 = vector.load %arg6[%c0_14, %c0_15] : memref<8x128xbf16, #tpu.memory_space<vmem>>, vector<8x128xbf16>
      tpu.vector_store %arg6[%c0_14, %c0_15], %18 {strides = array<i32>} : memref<8x128xbf16, #tpu.memory_space<vmem>>, vector<8x128xbf16>,
    } else {
    }
    return
  }
  func.func @transform_0(%arg0: i32, %arg1: i32, %arg2: i32) -> (i32, i32) {
    %c0_i32 = arith.constant 0 : i32
    return %arg0, %arg2 : i32, i32
  }
  func.func @transform_1(%arg0: i32, %arg1: i32, %arg2: i32) -> (i32, i32) {
    %c0_i32 = arith.constant 0 : i32
    return %arg2, %arg1 : i32, i32
  }
  func.func @transform_2(%arg0: i32, %arg1: i32, %arg2: i32) -> (i32, i32) {
    %c0_i32 = arith.constant 0 : i32
    %c0_i32_0 = arith.constant 0 : i32
    return %c0_i32, %arg1 : i32, i32
  }
  func.func @transform_3(%arg0: i32, %arg1: i32, %arg2: i32) -> (i32, i32) {
    %c0_i32 = arith.constant 0 : i32
    return %arg0, %arg1 : i32, i32
  }
}

module attributes {stable_mosaic.version = 11 : i64} {
  func.func @_matmul_bias_act_kernel(%arg0: i32, %arg1: i32, %arg2: i32, %arg3: memref<8x256xbf16, #tpu.memory_space<vmem>>, %arg4: memref<256x256xbf16, #tpu.memory_space<vmem>>, %arg5: memref<1x256xf32, #tpu.memory_space<vmem>>, %arg6: memref<8x256xbf16, #tpu.memory_space<vmem>>, %arg7: memref<8x256xf32, #tpu.memory_space<vmem>>) attributes {dimension_semantics = [#tpu.dimension_semantics<parallel>, #tpu.dimension_semantics<parallel>, #tpu.dimension_semantics<arbitrary>], iteration_bounds = array<i64: 1, 2, 1>, scalar_prefetch = 0 : i64, scratch_operands = 1 : i64, tpu.core_type = #tpu.core_type<tc>, window_params = [{transform_indices = @transform_0, window_bounds = array<i64: 8, 256>}, {transform_indices = @transform_1, window_bounds = array<i64: 256, 256>}, {transform_indices = @transform_2, window_bounds = array<i64: 1, 256>}, {transform_indices = @transform_3, window_bounds = array<i64: 8, 256>}]} {
    %c0_i32 = arith.constant 0 : i32
    %0 = arith.cmpi eq, %arg2, %c0_i32 : i32
    %1 = arith.extui %0 : i1 to i32
    %c0_i32_0 = arith.constant 0 : i32
    %2 = arith.cmpi ne, %1, %c0_i32_0 : i32
    scf.if %2 {
      %cst_10 = arith.constant 0.000000e+00 : f32
      %12 = vector.broadcast %cst_10 : f32 to vector<8x256xf32>
      %c0_11 = arith.constant 0 : index
      %c0_12 = arith.constant 0 : index
      %13 = vector.load %arg7[%c0_11, %c0_12] : memref<8x256xf32, #tpu.memory_space<vmem>>, vector<8x256xf32>
      tpu.vector_store %arg7[%c0_11, %c0_12], %12 {strides = array<i32>} : memref<8x256xf32, #tpu.memory_space<vmem>>, vector<8x256xf32>,
    } else {
    }
    %c0 = arith.constant 0 : index
    %c0_1 = arith.constant 0 : index
    %3 = vector.load %arg7[%c0, %c0_1] : memref<8x256xf32, #tpu.memory_space<vmem>>, vector<8x256xf32>
    %c0_2 = arith.constant 0 : index
    %c0_3 = arith.constant 0 : index
    %4 = vector.load %arg3[%c0_2, %c0_3] : memref<8x256xbf16, #tpu.memory_space<vmem>>, vector<8x256xbf16>
    %c0_4 = arith.constant 0 : index
    %c0_5 = arith.constant 0 : index
    %5 = vector.load %arg4[%c0_4, %c0_5] : memref<256x256xbf16, #tpu.memory_space<vmem>>, vector<256x256xbf16>
    %cst = arith.constant dense<0.000000e+00> : vector<8x256xf32>
    %6 = tpu.matmul %4, %5, %cst {dimension_numbers = #tpu.dot_dimension_numbers<[1], [0], [0], [1], [0, 0, 1, 1], [], []>} : vector<8x256xbf16>, vector<256x256xbf16>, vector<8x256xf32> -> vector<8x256xf32>
    %7 = arith.addf %3, %6 : vector<8x256xf32>
    %c0_6 = arith.constant 0 : index
    %c0_7 = arith.constant 0 : index
    %8 = vector.load %arg7[%c0_6, %c0_7] : memref<8x256xf32, #tpu.memory_space<vmem>>, vector<8x256xf32>
    tpu.vector_store %arg7[%c0_6, %c0_7], %7 {strides = array<i32>} : memref<8x256xf32, #tpu.memory_space<vmem>>, vector<8x256xf32>,
    %c0_i32_8 = arith.constant 0 : i32
    %9 = arith.cmpi eq, %arg2, %c0_i32_8 : i32
    %10 = arith.extui %9 : i1 to i32
    %c0_i32_9 = arith.constant 0 : i32
    %11 = arith.cmpi ne, %10, %c0_i32_9 : i32
    scf.if %11 {
      %c0_10 = arith.constant 0 : index
      %c0_11 = arith.constant 0 : index
      %12 = vector.load %arg7[%c0_10, %c0_11] : memref<8x256xf32, #tpu.memory_space<vmem>>, vector<8x256xf32>
      %c0_12 = arith.constant 0 : index
      %c0_13 = arith.constant 0 : index
      %13 = vector.load %arg5[%c0_12, %c0_13] : memref<1x256xf32, #tpu.memory_space<vmem>>, vector<1x256xf32>
      %14 = vector.broadcast %13 : vector<1x256xf32> to vector<8x256xf32>
      %15 = arith.addf %12, %14 : vector<8x256xf32>
      %16 = arith.truncf %15 : vector<8x256xf32> to vector<8x256xbf16>
      %c0_14 = arith.constant 0 : index
      %c0_15 = arith.constant 0 : index
      %17 = vector.load %arg6[%c0_14, %c0_15] : memref<8x256xbf16, #tpu.memory_space<vmem>>, vector<8x256xbf16>
      tpu.vector_store %arg6[%c0_14, %c0_15], %16 {strides = array<i32>} : memref<8x256xbf16, #tpu.memory_space<vmem>>, vector<8x256xbf16>,
    } else {
    }
    return
  }
  func.func @transform_0(%arg0: i32, %arg1: i32, %arg2: i32) -> (i32, i32) {
    %c0_i32 = arith.constant 0 : i32
    return %arg0, %arg2 : i32, i32
  }
  func.func @transform_1(%arg0: i32, %arg1: i32, %arg2: i32) -> (i32, i32) {
    %c0_i32 = arith.constant 0 : i32
    return %arg2, %arg1 : i32, i32
  }
  func.func @transform_2(%arg0: i32, %arg1: i32, %arg2: i32) -> (i32, i32) {
    %c0_i32 = arith.constant 0 : i32
    %c0_i32_0 = arith.constant 0 : i32
    return %c0_i32, %arg1 : i32, i32
  }
  func.func @transform_3(%arg0: i32, %arg1: i32, %arg2: i32) -> (i32, i32) {
    %c0_i32 = arith.constant 0 : i32
    return %arg0, %arg1 : i32, i32
  }
}

module attributes {stable_mosaic.version = 11 : i64} {
  func.func @_matmul_bias_act_kernel(%arg0: i32, %arg1: i32, %arg2: i32, %arg3: memref<8x512xbf16, #tpu.memory_space<vmem>>, %arg4: memref<512x128xbf16, #tpu.memory_space<vmem>>, %arg5: memref<1x128xf32, #tpu.memory_space<vmem>>, %arg6: memref<8x128xbf16, #tpu.memory_space<vmem>>, %arg7: memref<8x128xf32, #tpu.memory_space<vmem>>) attributes {dimension_semantics = [#tpu.dimension_semantics<parallel>, #tpu.dimension_semantics<parallel>, #tpu.dimension_semantics<arbitrary>], iteration_bounds = array<i64: 1, 1, 1>, scalar_prefetch = 0 : i64, scratch_operands = 1 : i64, tpu.core_type = #tpu.core_type<tc>, window_params = [{transform_indices = @transform_0, window_bounds = array<i64: 8, 512>}, {transform_indices = @transform_1, window_bounds = array<i64: 512, 128>}, {transform_indices = @transform_2, window_bounds = array<i64: 1, 128>}, {transform_indices = @transform_3, window_bounds = array<i64: 8, 128>}]} {
    %c0_i32 = arith.constant 0 : i32
    %0 = arith.cmpi eq, %arg2, %c0_i32 : i32
    %1 = arith.extui %0 : i1 to i32
    %c0_i32_0 = arith.constant 0 : i32
    %2 = arith.cmpi ne, %1, %c0_i32_0 : i32
    scf.if %2 {
      %cst_10 = arith.constant 0.000000e+00 : f32
      %12 = vector.broadcast %cst_10 : f32 to vector<8x128xf32>
      %c0_11 = arith.constant 0 : index
      %c0_12 = arith.constant 0 : index
      %13 = vector.load %arg7[%c0_11, %c0_12] : memref<8x128xf32, #tpu.memory_space<vmem>>, vector<8x128xf32>
      tpu.vector_store %arg7[%c0_11, %c0_12], %12 {strides = array<i32>} : memref<8x128xf32, #tpu.memory_space<vmem>>, vector<8x128xf32>,
    } else {
    }
    %c0 = arith.constant 0 : index
    %c0_1 = arith.constant 0 : index
    %3 = vector.load %arg7[%c0, %c0_1] : memref<8x128xf32, #tpu.memory_space<vmem>>, vector<8x128xf32>
    %c0_2 = arith.constant 0 : index
    %c0_3 = arith.constant 0 : index
    %4 = vector.load %arg3[%c0_2, %c0_3] : memref<8x512xbf16, #tpu.memory_space<vmem>>, vector<8x512xbf16>
    %c0_4 = arith.constant 0 : index
    %c0_5 = arith.constant 0 : index
    %5 = vector.load %arg4[%c0_4, %c0_5] : memref<512x128xbf16, #tpu.memory_space<vmem>>, vector<512x128xbf16>
    %cst = arith.constant dense<0.000000e+00> : vector<8x128xf32>
    %6 = tpu.matmul %4, %5, %cst {dimension_numbers = #tpu.dot_dimension_numbers<[1], [0], [0], [1], [0, 0, 1, 1], [], []>} : vector<8x512xbf16>, vector<512x128xbf16>, vector<8x128xf32> -> vector<8x128xf32>
    %7 = arith.addf %3, %6 : vector<8x128xf32>
    %c0_6 = arith.constant 0 : index
    %c0_7 = arith.constant 0 : index
    %8 = vector.load %arg7[%c0_6, %c0_7] : memref<8x128xf32, #tpu.memory_space<vmem>>, vector<8x128xf32>
    tpu.vector_store %arg7[%c0_6, %c0_7], %7 {strides = array<i32>} : memref<8x128xf32, #tpu.memory_space<vmem>>, vector<8x128xf32>,
    %c0_i32_8 = arith.constant 0 : i32
    %9 = arith.cmpi eq, %arg2, %c0_i32_8 : i32
    %10 = arith.extui %9 : i1 to i32
    %c0_i32_9 = arith.constant 0 : i32
    %11 = arith.cmpi ne, %10, %c0_i32_9 : i32
    scf.if %11 {
      %c0_10 = arith.constant 0 : index
      %c0_11 = arith.constant 0 : index
      %12 = vector.load %arg7[%c0_10, %c0_11] : memref<8x128xf32, #tpu.memory_space<vmem>>, vector<8x128xf32>
      %c0_12 = arith.constant 0 : index
      %c0_13 = arith.constant 0 : index
      %13 = vector.load %arg5[%c0_12, %c0_13] : memref<1x128xf32, #tpu.memory_space<vmem>>, vector<1x128xf32>
      %14 = vector.broadcast %13 : vector<1x128xf32> to vector<8x128xf32>
      %15 = arith.addf %12, %14 : vector<8x128xf32>
      %cst_14 = arith.constant 0.000000e+00 : f32
      %16 = vector.broadcast %cst_14 : f32 to vector<8x128xf32>
      %17 = arith.maximumf %15, %16 : vector<8x128xf32>
      %18 = arith.truncf %17 : vector<8x128xf32> to vector<8x128xbf16>
      %c0_15 = arith.constant 0 : index
      %c0_16 = arith.constant 0 : index
      %19 = vector.load %arg6[%c0_15, %c0_16] : memref<8x128xbf16, #tpu.memory_space<vmem>>, vector<8x128xbf16>
      tpu.vector_store %arg6[%c0_15, %c0_16], %18 {strides = array<i32>} : memref<8x128xbf16, #tpu.memory_space<vmem>>, vector<8x128xbf16>,
    } else {
    }
    return
  }
  func.func @transform_0(%arg0: i32, %arg1: i32, %arg2: i32) -> (i32, i32) {
    %c0_i32 = arith.constant 0 : i32
    return %arg0, %arg2 : i32, i32
  }
  func.func @transform_1(%arg0: i32, %arg1: i32, %arg2: i32) -> (i32, i32) {
    %c0_i32 = arith.constant 0 : i32
    return %arg2, %arg1 : i32, i32
  }
  func.func @transform_2(%arg0: i32, %arg1: i32, %arg2: i32) -> (i32, i32) {
    %c0_i32 = arith.constant 0 : i32
    %c0_i32_0 = arith.constant 0 : i32
    return %c0_i32, %arg1 : i32, i32
  }
  func.func @transform_3(%arg0: i32, %arg1: i32, %arg2: i32) -> (i32, i32) {
    %c0_i32 = arith.constant 0 : i32
    return %arg0, %arg1 : i32, i32
  }
}

module attributes {stable_mosaic.version = 11 : i64} {
  func.func @_matmul_bias_act_kernel(%arg0: i32, %arg1: i32, %arg2: i32, %arg3: memref<8x128xbf16, #tpu.memory_space<vmem>>, %arg4: memref<128x256xbf16, #tpu.memory_space<vmem>>, %arg5: memref<1x256xf32, #tpu.memory_space<vmem>>, %arg6: memref<8x256xbf16, #tpu.memory_space<vmem>>, %arg7: memref<8x256xbf16, #tpu.memory_space<vmem>>, %arg8: memref<8x256xf32, #tpu.memory_space<vmem>>) attributes {dimension_semantics = [#tpu.dimension_semantics<parallel>, #tpu.dimension_semantics<parallel>, #tpu.dimension_semantics<arbitrary>], iteration_bounds = array<i64: 1, 2, 1>, scalar_prefetch = 0 : i64, scratch_operands = 1 : i64, tpu.core_type = #tpu.core_type<tc>, window_params = [{transform_indices = @transform_0, window_bounds = array<i64: 8, 128>}, {transform_indices = @transform_1, window_bounds = array<i64: 128, 256>}, {transform_indices = @transform_2, window_bounds = array<i64: 1, 256>}, {transform_indices = @transform_3, window_bounds = array<i64: 8, 256>}, {transform_indices = @transform_4, window_bounds = array<i64: 8, 256>}]} {
    %c0_i32 = arith.constant 0 : i32
    %0 = arith.cmpi eq, %arg2, %c0_i32 : i32
    %1 = arith.extui %0 : i1 to i32
    %c0_i32_0 = arith.constant 0 : i32
    %2 = arith.cmpi ne, %1, %c0_i32_0 : i32
    scf.if %2 {
      %cst_10 = arith.constant 0.000000e+00 : f32
      %12 = vector.broadcast %cst_10 : f32 to vector<8x256xf32>
      %c0_11 = arith.constant 0 : index
      %c0_12 = arith.constant 0 : index
      %13 = vector.load %arg8[%c0_11, %c0_12] : memref<8x256xf32, #tpu.memory_space<vmem>>, vector<8x256xf32>
      tpu.vector_store %arg8[%c0_11, %c0_12], %12 {strides = array<i32>} : memref<8x256xf32, #tpu.memory_space<vmem>>, vector<8x256xf32>,
    } else {
    }
    %c0 = arith.constant 0 : index
    %c0_1 = arith.constant 0 : index
    %3 = vector.load %arg8[%c0, %c0_1] : memref<8x256xf32, #tpu.memory_space<vmem>>, vector<8x256xf32>
    %c0_2 = arith.constant 0 : index
    %c0_3 = arith.constant 0 : index
    %4 = vector.load %arg3[%c0_2, %c0_3] : memref<8x128xbf16, #tpu.memory_space<vmem>>, vector<8x128xbf16>
    %c0_4 = arith.constant 0 : index
    %c0_5 = arith.constant 0 : index
    %5 = vector.load %arg4[%c0_4, %c0_5] : memref<128x256xbf16, #tpu.memory_space<vmem>>, vector<128x256xbf16>
    %cst = arith.constant dense<0.000000e+00> : vector<8x256xf32>
    %6 = tpu.matmul %4, %5, %cst {dimension_numbers = #tpu.dot_dimension_numbers<[1], [0], [0], [1], [0, 0, 1, 1], [], []>} : vector<8x128xbf16>, vector<128x256xbf16>, vector<8x256xf32> -> vector<8x256xf32>
    %7 = arith.addf %3, %6 : vector<8x256xf32>
    %c0_6 = arith.constant 0 : index
    %c0_7 = arith.constant 0 : index
    %8 = vector.load %arg8[%c0_6, %c0_7] : memref<8x256xf32, #tpu.memory_space<vmem>>, vector<8x256xf32>
    tpu.vector_store %arg8[%c0_6, %c0_7], %7 {strides = array<i32>} : memref<8x256xf32, #tpu.memory_space<vmem>>, vector<8x256xf32>,
    %c0_i32_8 = arith.constant 0 : i32
    %9 = arith.cmpi eq, %arg2, %c0_i32_8 : i32
    %10 = arith.extui %9 : i1 to i32
    %c0_i32_9 = arith.constant 0 : i32
    %11 = arith.cmpi ne, %10, %c0_i32_9 : i32
    scf.if %11 {
      %c0_10 = arith.constant 0 : index
      %c0_11 = arith.constant 0 : index
      %12 = vector.load %arg8[%c0_10, %c0_11] : memref<8x256xf32, #tpu.memory_space<vmem>>, vector<8x256xf32>
      %c0_12 = arith.constant 0 : index
      %c0_13 = arith.constant 0 : index
      %13 = vector.load %arg5[%c0_12, %c0_13] : memref<1x256xf32, #tpu.memory_space<vmem>>, vector<1x256xf32>
      %14 = vector.broadcast %13 : vector<1x256xf32> to vector<8x256xf32>
      %15 = arith.addf %12, %14 : vector<8x256xf32>
      %c0_14 = arith.constant 0 : index
      %c0_15 = arith.constant 0 : index
      %16 = vector.load %arg6[%c0_14, %c0_15] : memref<8x256xbf16, #tpu.memory_space<vmem>>, vector<8x256xbf16>
      %17 = arith.extf %16 : vector<8x256xbf16> to vector<8x256xf32>
      %18 = arith.addf %15, %17 : vector<8x256xf32>
      %cst_16 = arith.constant 0.000000e+00 : f32
      %19 = vector.broadcast %cst_16 : f32 to vector<8x256xf32>
      %20 = arith.maximumf %18, %19 : vector<8x256xf32>
      %21 = arith.truncf %20 : vector<8x256xf32> to vector<8x256xbf16>
      %c0_17 = arith.constant 0 : index
      %c0_18 = arith.constant 0 : index
      %22 = vector.load %arg7[%c0_17, %c0_18] : memref<8x256xbf16, #tpu.memory_space<vmem>>, vector<8x256xbf16>
      tpu.vector_store %arg7[%c0_17, %c0_18], %21 {strides = array<i32>} : memref<8x256xbf16, #tpu.memory_space<vmem>>, vector<8x256xbf16>,
    } else {
    }
    return
  }
  func.func @transform_0(%arg0: i32, %arg1: i32, %arg2: i32) -> (i32, i32) {
    %c0_i32 = arith.constant 0 : i32
    return %arg0, %arg2 : i32, i32
  }
  func.func @transform_1(%arg0: i32, %arg1: i32, %arg2: i32) -> (i32, i32) {
    %c0_i32 = arith.constant 0 : i32
    return %arg2, %arg1 : i32, i32
  }
  func.func @transform_2(%arg0: i32, %arg1: i32, %arg2: i32) -> (i32, i32) {
    %c0_i32 = arith.constant 0 : i32
    %c0_i32_0 = arith.constant 0 : i32
    return %c0_i32, %arg1 : i32, i32
  }
  func.func @transform_3(%arg0: i32, %arg1: i32, %arg2: i32) -> (i32, i32) {
    %c0_i32 = arith.constant 0 : i32
    return %arg0, %arg1 : i32, i32
  }
  func.func @transform_4(%arg0: i32, %arg1: i32, %arg2: i32) -> (i32, i32) {
    %c0_i32 = arith.constant 0 : i32
    return %arg0, %arg1 : i32, i32
  }
}

module attributes {stable_mosaic.version = 11 : i64} {
  func.func @_matmul_bias_act_kernel(%arg0: i32, %arg1: i32, %arg2: i32, %arg3: memref<8x512xbf16, #tpu.memory_space<vmem>>, %arg4: memref<512x256xbf16, #tpu.memory_space<vmem>>, %arg5: memref<1x256xf32, #tpu.memory_space<vmem>>, %arg6: memref<8x256xbf16, #tpu.memory_space<vmem>>, %arg7: memref<8x256xf32, #tpu.memory_space<vmem>>) attributes {dimension_semantics = [#tpu.dimension_semantics<parallel>, #tpu.dimension_semantics<parallel>, #tpu.dimension_semantics<arbitrary>], iteration_bounds = array<i64: 1, 1, 1>, scalar_prefetch = 0 : i64, scratch_operands = 1 : i64, tpu.core_type = #tpu.core_type<tc>, window_params = [{transform_indices = @transform_0, window_bounds = array<i64: 8, 512>}, {transform_indices = @transform_1, window_bounds = array<i64: 512, 256>}, {transform_indices = @transform_2, window_bounds = array<i64: 1, 256>}, {transform_indices = @transform_3, window_bounds = array<i64: 8, 256>}]} {
    %c0_i32 = arith.constant 0 : i32
    %0 = arith.cmpi eq, %arg2, %c0_i32 : i32
    %1 = arith.extui %0 : i1 to i32
    %c0_i32_0 = arith.constant 0 : i32
    %2 = arith.cmpi ne, %1, %c0_i32_0 : i32
    scf.if %2 {
      %cst_10 = arith.constant 0.000000e+00 : f32
      %12 = vector.broadcast %cst_10 : f32 to vector<8x256xf32>
      %c0_11 = arith.constant 0 : index
      %c0_12 = arith.constant 0 : index
      %13 = vector.load %arg7[%c0_11, %c0_12] : memref<8x256xf32, #tpu.memory_space<vmem>>, vector<8x256xf32>
      tpu.vector_store %arg7[%c0_11, %c0_12], %12 {strides = array<i32>} : memref<8x256xf32, #tpu.memory_space<vmem>>, vector<8x256xf32>,
    } else {
    }
    %c0 = arith.constant 0 : index
    %c0_1 = arith.constant 0 : index
    %3 = vector.load %arg7[%c0, %c0_1] : memref<8x256xf32, #tpu.memory_space<vmem>>, vector<8x256xf32>
    %c0_2 = arith.constant 0 : index
    %c0_3 = arith.constant 0 : index
    %4 = vector.load %arg3[%c0_2, %c0_3] : memref<8x512xbf16, #tpu.memory_space<vmem>>, vector<8x512xbf16>
    %c0_4 = arith.constant 0 : index
    %c0_5 = arith.constant 0 : index
    %5 = vector.load %arg4[%c0_4, %c0_5] : memref<512x256xbf16, #tpu.memory_space<vmem>>, vector<512x256xbf16>
    %cst = arith.constant dense<0.000000e+00> : vector<8x256xf32>
    %6 = tpu.matmul %4, %5, %cst {dimension_numbers = #tpu.dot_dimension_numbers<[1], [0], [0], [1], [0, 0, 1, 1], [], []>} : vector<8x512xbf16>, vector<512x256xbf16>, vector<8x256xf32> -> vector<8x256xf32>
    %7 = arith.addf %3, %6 : vector<8x256xf32>
    %c0_6 = arith.constant 0 : index
    %c0_7 = arith.constant 0 : index
    %8 = vector.load %arg7[%c0_6, %c0_7] : memref<8x256xf32, #tpu.memory_space<vmem>>, vector<8x256xf32>
    tpu.vector_store %arg7[%c0_6, %c0_7], %7 {strides = array<i32>} : memref<8x256xf32, #tpu.memory_space<vmem>>, vector<8x256xf32>,
    %c0_i32_8 = arith.constant 0 : i32
    %9 = arith.cmpi eq, %arg2, %c0_i32_8 : i32
    %10 = arith.extui %9 : i1 to i32
    %c0_i32_9 = arith.constant 0 : i32
    %11 = arith.cmpi ne, %10, %c0_i32_9 : i32
    scf.if %11 {
      %c0_10 = arith.constant 0 : index
      %c0_11 = arith.constant 0 : index
      %12 = vector.load %arg7[%c0_10, %c0_11] : memref<8x256xf32, #tpu.memory_space<vmem>>, vector<8x256xf32>
      %c0_12 = arith.constant 0 : index
      %c0_13 = arith.constant 0 : index
      %13 = vector.load %arg5[%c0_12, %c0_13] : memref<1x256xf32, #tpu.memory_space<vmem>>, vector<1x256xf32>
      %14 = vector.broadcast %13 : vector<1x256xf32> to vector<8x256xf32>
      %15 = arith.addf %12, %14 : vector<8x256xf32>
      %cst_14 = arith.constant 0.000000e+00 : f32
      %16 = vector.broadcast %cst_14 : f32 to vector<8x256xf32>
      %17 = arith.maximumf %15, %16 : vector<8x256xf32>
      %18 = arith.truncf %17 : vector<8x256xf32> to vector<8x256xbf16>
      %c0_15 = arith.constant 0 : index
      %c0_16 = arith.constant 0 : index
      %19 = vector.load %arg6[%c0_15, %c0_16] : memref<8x256xbf16, #tpu.memory_space<vmem>>, vector<8x256xbf16>
      tpu.vector_store %arg6[%c0_15, %c0_16], %18 {strides = array<i32>} : memref<8x256xbf16, #tpu.memory_space<vmem>>, vector<8x256xbf16>,
    } else {
    }
    return
  }
  func.func @transform_0(%arg0: i32, %arg1: i32, %arg2: i32) -> (i32, i32) {
    %c0_i32 = arith.constant 0 : i32
    return %arg0, %arg2 : i32, i32
  }
  func.func @transform_1(%arg0: i32, %arg1: i32, %arg2: i32) -> (i32, i32) {
    %c0_i32 = arith.constant 0 : i32
    return %arg2, %arg1 : i32, i32
  }
  func.func @transform_2(%arg0: i32, %arg1: i32, %arg2: i32) -> (i32, i32) {
    %c0_i32 = arith.constant 0 : i32
    %c0_i32_0 = arith.constant 0 : i32
    return %c0_i32, %arg1 : i32, i32
  }
  func.func @transform_3(%arg0: i32, %arg1: i32, %arg2: i32) -> (i32, i32) {
    %c0_i32 = arith.constant 0 : i32
    return %arg0, %arg1 : i32, i32
  }
}

module attributes {stable_mosaic.version = 11 : i64} {
  func.func @_matmul_bias_act_kernel(%arg0: i32, %arg1: i32, %arg2: i32, %arg3: memref<8x512xbf16, #tpu.memory_space<vmem>>, %arg4: memref<512x256xbf16, #tpu.memory_space<vmem>>, %arg5: memref<1x256xf32, #tpu.memory_space<vmem>>, %arg6: memref<8x256xbf16, #tpu.memory_space<vmem>>, %arg7: memref<8x256xf32, #tpu.memory_space<vmem>>) attributes {dimension_semantics = [#tpu.dimension_semantics<parallel>, #tpu.dimension_semantics<parallel>, #tpu.dimension_semantics<arbitrary>], iteration_bounds = array<i64: 1, 1, 5>, scalar_prefetch = 0 : i64, scratch_operands = 1 : i64, tpu.core_type = #tpu.core_type<tc>, window_params = [{transform_indices = @transform_0, window_bounds = array<i64: 8, 512>}, {transform_indices = @transform_1, window_bounds = array<i64: 512, 256>}, {transform_indices = @transform_2, window_bounds = array<i64: 1, 256>}, {transform_indices = @transform_3, window_bounds = array<i64: 8, 256>}]} {
    %c0_i32 = arith.constant 0 : i32
    %0 = arith.cmpi eq, %arg2, %c0_i32 : i32
    %1 = arith.extui %0 : i1 to i32
    %c0_i32_0 = arith.constant 0 : i32
    %2 = arith.cmpi ne, %1, %c0_i32_0 : i32
    scf.if %2 {
      %cst_9 = arith.constant 0.000000e+00 : f32
      %12 = vector.broadcast %cst_9 : f32 to vector<8x256xf32>
      %c0_10 = arith.constant 0 : index
      %c0_11 = arith.constant 0 : index
      %13 = vector.load %arg7[%c0_10, %c0_11] : memref<8x256xf32, #tpu.memory_space<vmem>>, vector<8x256xf32>
      tpu.vector_store %arg7[%c0_10, %c0_11], %12 {strides = array<i32>} : memref<8x256xf32, #tpu.memory_space<vmem>>, vector<8x256xf32>,
    } else {
    }
    %c0 = arith.constant 0 : index
    %c0_1 = arith.constant 0 : index
    %3 = vector.load %arg7[%c0, %c0_1] : memref<8x256xf32, #tpu.memory_space<vmem>>, vector<8x256xf32>
    %c0_2 = arith.constant 0 : index
    %c0_3 = arith.constant 0 : index
    %4 = vector.load %arg3[%c0_2, %c0_3] : memref<8x512xbf16, #tpu.memory_space<vmem>>, vector<8x512xbf16>
    %c0_4 = arith.constant 0 : index
    %c0_5 = arith.constant 0 : index
    %5 = vector.load %arg4[%c0_4, %c0_5] : memref<512x256xbf16, #tpu.memory_space<vmem>>, vector<512x256xbf16>
    %cst = arith.constant dense<0.000000e+00> : vector<8x256xf32>
    %6 = tpu.matmul %4, %5, %cst {dimension_numbers = #tpu.dot_dimension_numbers<[1], [0], [0], [1], [0, 0, 1, 1], [], []>} : vector<8x512xbf16>, vector<512x256xbf16>, vector<8x256xf32> -> vector<8x256xf32>
    %7 = arith.addf %3, %6 : vector<8x256xf32>
    %c0_6 = arith.constant 0 : index
    %c0_7 = arith.constant 0 : index
    %8 = vector.load %arg7[%c0_6, %c0_7] : memref<8x256xf32, #tpu.memory_space<vmem>>, vector<8x256xf32>
    tpu.vector_store %arg7[%c0_6, %c0_7], %7 {strides = array<i32>} : memref<8x256xf32, #tpu.memory_space<vmem>>, vector<8x256xf32>,
    %c4_i32 = arith.constant 4 : i32
    %9 = arith.cmpi eq, %arg2, %c4_i32 : i32
    %10 = arith.extui %9 : i1 to i32
    %c0_i32_8 = arith.constant 0 : i32
    %11 = arith.cmpi ne, %10, %c0_i32_8 : i32
    scf.if %11 {
      %c0_9 = arith.constant 0 : index
      %c0_10 = arith.constant 0 : index
      %12 = vector.load %arg7[%c0_9, %c0_10] : memref<8x256xf32, #tpu.memory_space<vmem>>, vector<8x256xf32>
      %c0_11 = arith.constant 0 : index
      %c0_12 = arith.constant 0 : index
      %13 = vector.load %arg5[%c0_11, %c0_12] : memref<1x256xf32, #tpu.memory_space<vmem>>, vector<1x256xf32>
      %14 = vector.broadcast %13 : vector<1x256xf32> to vector<8x256xf32>
      %15 = arith.addf %12, %14 : vector<8x256xf32>
      %cst_13 = arith.constant 0.000000e+00 : f32
      %16 = vector.broadcast %cst_13 : f32 to vector<8x256xf32>
      %17 = arith.maximumf %15, %16 : vector<8x256xf32>
      %18 = arith.truncf %17 : vector<8x256xf32> to vector<8x256xbf16>
      %c0_14 = arith.constant 0 : index
      %c0_15 = arith.constant 0 : index
      %19 = vector.load %arg6[%c0_14, %c0_15] : memref<8x256xbf16, #tpu.memory_space<vmem>>, vector<8x256xbf16>
      tpu.vector_store %arg6[%c0_14, %c0_15], %18 {strides = array<i32>} : memref<8x256xbf16, #tpu.memory_space<vmem>>, vector<8x256xbf16>,
    } else {
    }
    return
  }
  func.func @transform_0(%arg0: i32, %arg1: i32, %arg2: i32) -> (i32, i32) {
    %c0_i32 = arith.constant 0 : i32
    return %arg0, %arg2 : i32, i32
  }
  func.func @transform_1(%arg0: i32, %arg1: i32, %arg2: i32) -> (i32, i32) {
    %c0_i32 = arith.constant 0 : i32
    return %arg2, %arg1 : i32, i32
  }
  func.func @transform_2(%arg0: i32, %arg1: i32, %arg2: i32) -> (i32, i32) {
    %c0_i32 = arith.constant 0 : i32
    %c0_i32_0 = arith.constant 0 : i32
    return %c0_i32, %arg1 : i32, i32
  }
  func.func @transform_3(%arg0: i32, %arg1: i32, %arg2: i32) -> (i32, i32) {
    %c0_i32 = arith.constant 0 : i32
    return %arg0, %arg1 : i32, i32
  }
}

module attributes {stable_mosaic.version = 11 : i64} {
  func.func @_matmul_bias_act_kernel(%arg0: i32, %arg1: i32, %arg2: i32, %arg3: memref<8x512xbf16, #tpu.memory_space<vmem>>, %arg4: memref<512x256xbf16, #tpu.memory_space<vmem>>, %arg5: memref<1x256xf32, #tpu.memory_space<vmem>>, %arg6: memref<8x256xbf16, #tpu.memory_space<vmem>>, %arg7: memref<8x256xf32, #tpu.memory_space<vmem>>) attributes {dimension_semantics = [#tpu.dimension_semantics<parallel>, #tpu.dimension_semantics<parallel>, #tpu.dimension_semantics<arbitrary>], iteration_bounds = array<i64: 1, 4, 1>, scalar_prefetch = 0 : i64, scratch_operands = 1 : i64, tpu.core_type = #tpu.core_type<tc>, window_params = [{transform_indices = @transform_0, window_bounds = array<i64: 8, 512>}, {transform_indices = @transform_1, window_bounds = array<i64: 512, 256>}, {transform_indices = @transform_2, window_bounds = array<i64: 1, 256>}, {transform_indices = @transform_3, window_bounds = array<i64: 8, 256>}]} {
    %c0_i32 = arith.constant 0 : i32
    %0 = arith.cmpi eq, %arg2, %c0_i32 : i32
    %1 = arith.extui %0 : i1 to i32
    %c0_i32_0 = arith.constant 0 : i32
    %2 = arith.cmpi ne, %1, %c0_i32_0 : i32
    scf.if %2 {
      %cst_10 = arith.constant 0.000000e+00 : f32
      %12 = vector.broadcast %cst_10 : f32 to vector<8x256xf32>
      %c0_11 = arith.constant 0 : index
      %c0_12 = arith.constant 0 : index
      %13 = vector.load %arg7[%c0_11, %c0_12] : memref<8x256xf32, #tpu.memory_space<vmem>>, vector<8x256xf32>
      tpu.vector_store %arg7[%c0_11, %c0_12], %12 {strides = array<i32>} : memref<8x256xf32, #tpu.memory_space<vmem>>, vector<8x256xf32>,
    } else {
    }
    %c0 = arith.constant 0 : index
    %c0_1 = arith.constant 0 : index
    %3 = vector.load %arg7[%c0, %c0_1] : memref<8x256xf32, #tpu.memory_space<vmem>>, vector<8x256xf32>
    %c0_2 = arith.constant 0 : index
    %c0_3 = arith.constant 0 : index
    %4 = vector.load %arg3[%c0_2, %c0_3] : memref<8x512xbf16, #tpu.memory_space<vmem>>, vector<8x512xbf16>
    %c0_4 = arith.constant 0 : index
    %c0_5 = arith.constant 0 : index
    %5 = vector.load %arg4[%c0_4, %c0_5] : memref<512x256xbf16, #tpu.memory_space<vmem>>, vector<512x256xbf16>
    %cst = arith.constant dense<0.000000e+00> : vector<8x256xf32>
    %6 = tpu.matmul %4, %5, %cst {dimension_numbers = #tpu.dot_dimension_numbers<[1], [0], [0], [1], [0, 0, 1, 1], [], []>} : vector<8x512xbf16>, vector<512x256xbf16>, vector<8x256xf32> -> vector<8x256xf32>
    %7 = arith.addf %3, %6 : vector<8x256xf32>
    %c0_6 = arith.constant 0 : index
    %c0_7 = arith.constant 0 : index
    %8 = vector.load %arg7[%c0_6, %c0_7] : memref<8x256xf32, #tpu.memory_space<vmem>>, vector<8x256xf32>
    tpu.vector_store %arg7[%c0_6, %c0_7], %7 {strides = array<i32>} : memref<8x256xf32, #tpu.memory_space<vmem>>, vector<8x256xf32>,
    %c0_i32_8 = arith.constant 0 : i32
    %9 = arith.cmpi eq, %arg2, %c0_i32_8 : i32
    %10 = arith.extui %9 : i1 to i32
    %c0_i32_9 = arith.constant 0 : i32
    %11 = arith.cmpi ne, %10, %c0_i32_9 : i32
    scf.if %11 {
      %c0_10 = arith.constant 0 : index
      %c0_11 = arith.constant 0 : index
      %12 = vector.load %arg7[%c0_10, %c0_11] : memref<8x256xf32, #tpu.memory_space<vmem>>, vector<8x256xf32>
      %c0_12 = arith.constant 0 : index
      %c0_13 = arith.constant 0 : index
      %13 = vector.load %arg5[%c0_12, %c0_13] : memref<1x256xf32, #tpu.memory_space<vmem>>, vector<1x256xf32>
      %14 = vector.broadcast %13 : vector<1x256xf32> to vector<8x256xf32>
      %15 = arith.addf %12, %14 : vector<8x256xf32>
      %16 = arith.truncf %15 : vector<8x256xf32> to vector<8x256xbf16>
      %c0_14 = arith.constant 0 : index
      %c0_15 = arith.constant 0 : index
      %17 = vector.load %arg6[%c0_14, %c0_15] : memref<8x256xbf16, #tpu.memory_space<vmem>>, vector<8x256xbf16>
      tpu.vector_store %arg6[%c0_14, %c0_15], %16 {strides = array<i32>} : memref<8x256xbf16, #tpu.memory_space<vmem>>, vector<8x256xbf16>,
    } else {
    }
    return
  }
  func.func @transform_0(%arg0: i32, %arg1: i32, %arg2: i32) -> (i32, i32) {
    %c0_i32 = arith.constant 0 : i32
    return %arg0, %arg2 : i32, i32
  }
  func.func @transform_1(%arg0: i32, %arg1: i32, %arg2: i32) -> (i32, i32) {
    %c0_i32 = arith.constant 0 : i32
    return %arg2, %arg1 : i32, i32
  }
  func.func @transform_2(%arg0: i32, %arg1: i32, %arg2: i32) -> (i32, i32) {
    %c0_i32 = arith.constant 0 : i32
    %c0_i32_0 = arith.constant 0 : i32
    return %c0_i32, %arg1 : i32, i32
  }
  func.func @transform_3(%arg0: i32, %arg1: i32, %arg2: i32) -> (i32, i32) {
    %c0_i32 = arith.constant 0 : i32
    return %arg0, %arg1 : i32, i32
  }
}

module attributes {stable_mosaic.version = 11 : i64} {
  func.func @_matmul_bias_act_kernel(%arg0: i32, %arg1: i32, %arg2: i32, %arg3: memref<8x256xbf16, #tpu.memory_space<vmem>>, %arg4: memref<256x256xbf16, #tpu.memory_space<vmem>>, %arg5: memref<1x256xf32, #tpu.memory_space<vmem>>, %arg6: memref<8x256xbf16, #tpu.memory_space<vmem>>, %arg7: memref<8x256xbf16, #tpu.memory_space<vmem>>, %arg8: memref<8x256xf32, #tpu.memory_space<vmem>>) attributes {dimension_semantics = [#tpu.dimension_semantics<parallel>, #tpu.dimension_semantics<parallel>, #tpu.dimension_semantics<arbitrary>], iteration_bounds = array<i64: 1, 4, 1>, scalar_prefetch = 0 : i64, scratch_operands = 1 : i64, tpu.core_type = #tpu.core_type<tc>, window_params = [{transform_indices = @transform_0, window_bounds = array<i64: 8, 256>}, {transform_indices = @transform_1, window_bounds = array<i64: 256, 256>}, {transform_indices = @transform_2, window_bounds = array<i64: 1, 256>}, {transform_indices = @transform_3, window_bounds = array<i64: 8, 256>}, {transform_indices = @transform_4, window_bounds = array<i64: 8, 256>}]} {
    %c0_i32 = arith.constant 0 : i32
    %0 = arith.cmpi eq, %arg2, %c0_i32 : i32
    %1 = arith.extui %0 : i1 to i32
    %c0_i32_0 = arith.constant 0 : i32
    %2 = arith.cmpi ne, %1, %c0_i32_0 : i32
    scf.if %2 {
      %cst_10 = arith.constant 0.000000e+00 : f32
      %12 = vector.broadcast %cst_10 : f32 to vector<8x256xf32>
      %c0_11 = arith.constant 0 : index
      %c0_12 = arith.constant 0 : index
      %13 = vector.load %arg8[%c0_11, %c0_12] : memref<8x256xf32, #tpu.memory_space<vmem>>, vector<8x256xf32>
      tpu.vector_store %arg8[%c0_11, %c0_12], %12 {strides = array<i32>} : memref<8x256xf32, #tpu.memory_space<vmem>>, vector<8x256xf32>,
    } else {
    }
    %c0 = arith.constant 0 : index
    %c0_1 = arith.constant 0 : index
    %3 = vector.load %arg8[%c0, %c0_1] : memref<8x256xf32, #tpu.memory_space<vmem>>, vector<8x256xf32>
    %c0_2 = arith.constant 0 : index
    %c0_3 = arith.constant 0 : index
    %4 = vector.load %arg3[%c0_2, %c0_3] : memref<8x256xbf16, #tpu.memory_space<vmem>>, vector<8x256xbf16>
    %c0_4 = arith.constant 0 : index
    %c0_5 = arith.constant 0 : index
    %5 = vector.load %arg4[%c0_4, %c0_5] : memref<256x256xbf16, #tpu.memory_space<vmem>>, vector<256x256xbf16>
    %cst = arith.constant dense<0.000000e+00> : vector<8x256xf32>
    %6 = tpu.matmul %4, %5, %cst {dimension_numbers = #tpu.dot_dimension_numbers<[1], [0], [0], [1], [0, 0, 1, 1], [], []>} : vector<8x256xbf16>, vector<256x256xbf16>, vector<8x256xf32> -> vector<8x256xf32>
    %7 = arith.addf %3, %6 : vector<8x256xf32>
    %c0_6 = arith.constant 0 : index
    %c0_7 = arith.constant 0 : index
    %8 = vector.load %arg8[%c0_6, %c0_7] : memref<8x256xf32, #tpu.memory_space<vmem>>, vector<8x256xf32>
    tpu.vector_store %arg8[%c0_6, %c0_7], %7 {strides = array<i32>} : memref<8x256xf32, #tpu.memory_space<vmem>>, vector<8x256xf32>,
    %c0_i32_8 = arith.constant 0 : i32
    %9 = arith.cmpi eq, %arg2, %c0_i32_8 : i32
    %10 = arith.extui %9 : i1 to i32
    %c0_i32_9 = arith.constant 0 : i32
    %11 = arith.cmpi ne, %10, %c0_i32_9 : i32
    scf.if %11 {
      %c0_10 = arith.constant 0 : index
      %c0_11 = arith.constant 0 : index
      %12 = vector.load %arg8[%c0_10, %c0_11] : memref<8x256xf32, #tpu.memory_space<vmem>>, vector<8x256xf32>
      %c0_12 = arith.constant 0 : index
      %c0_13 = arith.constant 0 : index
      %13 = vector.load %arg5[%c0_12, %c0_13] : memref<1x256xf32, #tpu.memory_space<vmem>>, vector<1x256xf32>
      %14 = vector.broadcast %13 : vector<1x256xf32> to vector<8x256xf32>
      %15 = arith.addf %12, %14 : vector<8x256xf32>
      %c0_14 = arith.constant 0 : index
      %c0_15 = arith.constant 0 : index
      %16 = vector.load %arg6[%c0_14, %c0_15] : memref<8x256xbf16, #tpu.memory_space<vmem>>, vector<8x256xbf16>
      %17 = arith.extf %16 : vector<8x256xbf16> to vector<8x256xf32>
      %18 = arith.addf %15, %17 : vector<8x256xf32>
      %cst_16 = arith.constant 0.000000e+00 : f32
      %19 = vector.broadcast %cst_16 : f32 to vector<8x256xf32>
      %20 = arith.maximumf %18, %19 : vector<8x256xf32>
      %21 = arith.truncf %20 : vector<8x256xf32> to vector<8x256xbf16>
      %c0_17 = arith.constant 0 : index
      %c0_18 = arith.constant 0 : index
      %22 = vector.load %arg7[%c0_17, %c0_18] : memref<8x256xbf16, #tpu.memory_space<vmem>>, vector<8x256xbf16>
      tpu.vector_store %arg7[%c0_17, %c0_18], %21 {strides = array<i32>} : memref<8x256xbf16, #tpu.memory_space<vmem>>, vector<8x256xbf16>,
    } else {
    }
    return
  }
  func.func @transform_0(%arg0: i32, %arg1: i32, %arg2: i32) -> (i32, i32) {
    %c0_i32 = arith.constant 0 : i32
    return %arg0, %arg2 : i32, i32
  }
  func.func @transform_1(%arg0: i32, %arg1: i32, %arg2: i32) -> (i32, i32) {
    %c0_i32 = arith.constant 0 : i32
    return %arg2, %arg1 : i32, i32
  }
  func.func @transform_2(%arg0: i32, %arg1: i32, %arg2: i32) -> (i32, i32) {
    %c0_i32 = arith.constant 0 : i32
    %c0_i32_0 = arith.constant 0 : i32
    return %c0_i32, %arg1 : i32, i32
  }
  func.func @transform_3(%arg0: i32, %arg1: i32, %arg2: i32) -> (i32, i32) {
    %c0_i32 = arith.constant 0 : i32
    return %arg0, %arg1 : i32, i32
  }
  func.func @transform_4(%arg0: i32, %arg1: i32, %arg2: i32) -> (i32, i32) {
    %c0_i32 = arith.constant 0 : i32
    return %arg0, %arg1 : i32, i32
  }
}

module attributes {stable_mosaic.version = 11 : i64} {
  func.func @_matmul_bias_act_kernel(%arg0: i32, %arg1: i32, %arg2: i32, %arg3: memref<8x512xbf16, #tpu.memory_space<vmem>>, %arg4: memref<512x256xbf16, #tpu.memory_space<vmem>>, %arg5: memref<1x256xf32, #tpu.memory_space<vmem>>, %arg6: memref<8x256xbf16, #tpu.memory_space<vmem>>, %arg7: memref<8x256xf32, #tpu.memory_space<vmem>>) attributes {dimension_semantics = [#tpu.dimension_semantics<parallel>, #tpu.dimension_semantics<parallel>, #tpu.dimension_semantics<arbitrary>], iteration_bounds = array<i64: 1, 1, 2>, scalar_prefetch = 0 : i64, scratch_operands = 1 : i64, tpu.core_type = #tpu.core_type<tc>, window_params = [{transform_indices = @transform_0, window_bounds = array<i64: 8, 512>}, {transform_indices = @transform_1, window_bounds = array<i64: 512, 256>}, {transform_indices = @transform_2, window_bounds = array<i64: 1, 256>}, {transform_indices = @transform_3, window_bounds = array<i64: 8, 256>}]} {
    %c0_i32 = arith.constant 0 : i32
    %0 = arith.cmpi eq, %arg2, %c0_i32 : i32
    %1 = arith.extui %0 : i1 to i32
    %c0_i32_0 = arith.constant 0 : i32
    %2 = arith.cmpi ne, %1, %c0_i32_0 : i32
    scf.if %2 {
      %cst_9 = arith.constant 0.000000e+00 : f32
      %12 = vector.broadcast %cst_9 : f32 to vector<8x256xf32>
      %c0_10 = arith.constant 0 : index
      %c0_11 = arith.constant 0 : index
      %13 = vector.load %arg7[%c0_10, %c0_11] : memref<8x256xf32, #tpu.memory_space<vmem>>, vector<8x256xf32>
      tpu.vector_store %arg7[%c0_10, %c0_11], %12 {strides = array<i32>} : memref<8x256xf32, #tpu.memory_space<vmem>>, vector<8x256xf32>,
    } else {
    }
    %c0 = arith.constant 0 : index
    %c0_1 = arith.constant 0 : index
    %3 = vector.load %arg7[%c0, %c0_1] : memref<8x256xf32, #tpu.memory_space<vmem>>, vector<8x256xf32>
    %c0_2 = arith.constant 0 : index
    %c0_3 = arith.constant 0 : index
    %4 = vector.load %arg3[%c0_2, %c0_3] : memref<8x512xbf16, #tpu.memory_space<vmem>>, vector<8x512xbf16>
    %c0_4 = arith.constant 0 : index
    %c0_5 = arith.constant 0 : index
    %5 = vector.load %arg4[%c0_4, %c0_5] : memref<512x256xbf16, #tpu.memory_space<vmem>>, vector<512x256xbf16>
    %cst = arith.constant dense<0.000000e+00> : vector<8x256xf32>
    %6 = tpu.matmul %4, %5, %cst {dimension_numbers = #tpu.dot_dimension_numbers<[1], [0], [0], [1], [0, 0, 1, 1], [], []>} : vector<8x512xbf16>, vector<512x256xbf16>, vector<8x256xf32> -> vector<8x256xf32>
    %7 = arith.addf %3, %6 : vector<8x256xf32>
    %c0_6 = arith.constant 0 : index
    %c0_7 = arith.constant 0 : index
    %8 = vector.load %arg7[%c0_6, %c0_7] : memref<8x256xf32, #tpu.memory_space<vmem>>, vector<8x256xf32>
    tpu.vector_store %arg7[%c0_6, %c0_7], %7 {strides = array<i32>} : memref<8x256xf32, #tpu.memory_space<vmem>>, vector<8x256xf32>,
    %c1_i32 = arith.constant 1 : i32
    %9 = arith.cmpi eq, %arg2, %c1_i32 : i32
    %10 = arith.extui %9 : i1 to i32
    %c0_i32_8 = arith.constant 0 : i32
    %11 = arith.cmpi ne, %10, %c0_i32_8 : i32
    scf.if %11 {
      %c0_9 = arith.constant 0 : index
      %c0_10 = arith.constant 0 : index
      %12 = vector.load %arg7[%c0_9, %c0_10] : memref<8x256xf32, #tpu.memory_space<vmem>>, vector<8x256xf32>
      %c0_11 = arith.constant 0 : index
      %c0_12 = arith.constant 0 : index
      %13 = vector.load %arg5[%c0_11, %c0_12] : memref<1x256xf32, #tpu.memory_space<vmem>>, vector<1x256xf32>
      %14 = vector.broadcast %13 : vector<1x256xf32> to vector<8x256xf32>
      %15 = arith.addf %12, %14 : vector<8x256xf32>
      %cst_13 = arith.constant 0.000000e+00 : f32
      %16 = vector.broadcast %cst_13 : f32 to vector<8x256xf32>
      %17 = arith.maximumf %15, %16 : vector<8x256xf32>
      %18 = arith.truncf %17 : vector<8x256xf32> to vector<8x256xbf16>
      %c0_14 = arith.constant 0 : index
      %c0_15 = arith.constant 0 : index
      %19 = vector.load %arg6[%c0_14, %c0_15] : memref<8x256xbf16, #tpu.memory_space<vmem>>, vector<8x256xbf16>
      tpu.vector_store %arg6[%c0_14, %c0_15], %18 {strides = array<i32>} : memref<8x256xbf16, #tpu.memory_space<vmem>>, vector<8x256xbf16>,
    } else {
    }
    return
  }
  func.func @transform_0(%arg0: i32, %arg1: i32, %arg2: i32) -> (i32, i32) {
    %c0_i32 = arith.constant 0 : i32
    return %arg0, %arg2 : i32, i32
  }
  func.func @transform_1(%arg0: i32, %arg1: i32, %arg2: i32) -> (i32, i32) {
    %c0_i32 = arith.constant 0 : i32
    return %arg2, %arg1 : i32, i32
  }
  func.func @transform_2(%arg0: i32, %arg1: i32, %arg2: i32) -> (i32, i32) {
    %c0_i32 = arith.constant 0 : i32
    %c0_i32_0 = arith.constant 0 : i32
    return %c0_i32, %arg1 : i32, i32
  }
  func.func @transform_3(%arg0: i32, %arg1: i32, %arg2: i32) -> (i32, i32) {
    %c0_i32 = arith.constant 0 : i32
    return %arg0, %arg1 : i32, i32
  }
}

module attributes {stable_mosaic.version = 11 : i64} {
  func.func @_matmul_bias_act_kernel(%arg0: i32, %arg1: i32, %arg2: i32, %arg3: memref<8x512xbf16, #tpu.memory_space<vmem>>, %arg4: memref<512x256xbf16, #tpu.memory_space<vmem>>, %arg5: memref<1x256xf32, #tpu.memory_space<vmem>>, %arg6: memref<8x256xbf16, #tpu.memory_space<vmem>>, %arg7: memref<8x256xf32, #tpu.memory_space<vmem>>) attributes {dimension_semantics = [#tpu.dimension_semantics<parallel>, #tpu.dimension_semantics<parallel>, #tpu.dimension_semantics<arbitrary>], iteration_bounds = array<i64: 1, 2, 2>, scalar_prefetch = 0 : i64, scratch_operands = 1 : i64, tpu.core_type = #tpu.core_type<tc>, window_params = [{transform_indices = @transform_0, window_bounds = array<i64: 8, 512>}, {transform_indices = @transform_1, window_bounds = array<i64: 512, 256>}, {transform_indices = @transform_2, window_bounds = array<i64: 1, 256>}, {transform_indices = @transform_3, window_bounds = array<i64: 8, 256>}]} {
    %c0_i32 = arith.constant 0 : i32
    %0 = arith.cmpi eq, %arg2, %c0_i32 : i32
    %1 = arith.extui %0 : i1 to i32
    %c0_i32_0 = arith.constant 0 : i32
    %2 = arith.cmpi ne, %1, %c0_i32_0 : i32
    scf.if %2 {
      %cst_9 = arith.constant 0.000000e+00 : f32
      %12 = vector.broadcast %cst_9 : f32 to vector<8x256xf32>
      %c0_10 = arith.constant 0 : index
      %c0_11 = arith.constant 0 : index
      %13 = vector.load %arg7[%c0_10, %c0_11] : memref<8x256xf32, #tpu.memory_space<vmem>>, vector<8x256xf32>
      tpu.vector_store %arg7[%c0_10, %c0_11], %12 {strides = array<i32>} : memref<8x256xf32, #tpu.memory_space<vmem>>, vector<8x256xf32>,
    } else {
    }
    %c0 = arith.constant 0 : index
    %c0_1 = arith.constant 0 : index
    %3 = vector.load %arg7[%c0, %c0_1] : memref<8x256xf32, #tpu.memory_space<vmem>>, vector<8x256xf32>
    %c0_2 = arith.constant 0 : index
    %c0_3 = arith.constant 0 : index
    %4 = vector.load %arg3[%c0_2, %c0_3] : memref<8x512xbf16, #tpu.memory_space<vmem>>, vector<8x512xbf16>
    %c0_4 = arith.constant 0 : index
    %c0_5 = arith.constant 0 : index
    %5 = vector.load %arg4[%c0_4, %c0_5] : memref<512x256xbf16, #tpu.memory_space<vmem>>, vector<512x256xbf16>
    %cst = arith.constant dense<0.000000e+00> : vector<8x256xf32>
    %6 = tpu.matmul %4, %5, %cst {dimension_numbers = #tpu.dot_dimension_numbers<[1], [0], [0], [1], [0, 0, 1, 1], [], []>} : vector<8x512xbf16>, vector<512x256xbf16>, vector<8x256xf32> -> vector<8x256xf32>
    %7 = arith.addf %3, %6 : vector<8x256xf32>
    %c0_6 = arith.constant 0 : index
    %c0_7 = arith.constant 0 : index
    %8 = vector.load %arg7[%c0_6, %c0_7] : memref<8x256xf32, #tpu.memory_space<vmem>>, vector<8x256xf32>
    tpu.vector_store %arg7[%c0_6, %c0_7], %7 {strides = array<i32>} : memref<8x256xf32, #tpu.memory_space<vmem>>, vector<8x256xf32>,
    %c1_i32 = arith.constant 1 : i32
    %9 = arith.cmpi eq, %arg2, %c1_i32 : i32
    %10 = arith.extui %9 : i1 to i32
    %c0_i32_8 = arith.constant 0 : i32
    %11 = arith.cmpi ne, %10, %c0_i32_8 : i32
    scf.if %11 {
      %c0_9 = arith.constant 0 : index
      %c0_10 = arith.constant 0 : index
      %12 = vector.load %arg7[%c0_9, %c0_10] : memref<8x256xf32, #tpu.memory_space<vmem>>, vector<8x256xf32>
      %c0_11 = arith.constant 0 : index
      %c0_12 = arith.constant 0 : index
      %13 = vector.load %arg5[%c0_11, %c0_12] : memref<1x256xf32, #tpu.memory_space<vmem>>, vector<1x256xf32>
      %14 = vector.broadcast %13 : vector<1x256xf32> to vector<8x256xf32>
      %15 = arith.addf %12, %14 : vector<8x256xf32>
      %cst_13 = arith.constant 0.000000e+00 : f32
      %16 = vector.broadcast %cst_13 : f32 to vector<8x256xf32>
      %17 = arith.maximumf %15, %16 : vector<8x256xf32>
      %18 = arith.truncf %17 : vector<8x256xf32> to vector<8x256xbf16>
      %c0_14 = arith.constant 0 : index
      %c0_15 = arith.constant 0 : index
      %19 = vector.load %arg6[%c0_14, %c0_15] : memref<8x256xbf16, #tpu.memory_space<vmem>>, vector<8x256xbf16>
      tpu.vector_store %arg6[%c0_14, %c0_15], %18 {strides = array<i32>} : memref<8x256xbf16, #tpu.memory_space<vmem>>, vector<8x256xbf16>,
    } else {
    }
    return
  }
  func.func @transform_0(%arg0: i32, %arg1: i32, %arg2: i32) -> (i32, i32) {
    %c0_i32 = arith.constant 0 : i32
    return %arg0, %arg2 : i32, i32
  }
  func.func @transform_1(%arg0: i32, %arg1: i32, %arg2: i32) -> (i32, i32) {
    %c0_i32 = arith.constant 0 : i32
    return %arg2, %arg1 : i32, i32
  }
  func.func @transform_2(%arg0: i32, %arg1: i32, %arg2: i32) -> (i32, i32) {
    %c0_i32 = arith.constant 0 : i32
    %c0_i32_0 = arith.constant 0 : i32
    return %c0_i32, %arg1 : i32, i32
  }
  func.func @transform_3(%arg0: i32, %arg1: i32, %arg2: i32) -> (i32, i32) {
    %c0_i32 = arith.constant 0 : i32
    return %arg0, %arg1 : i32, i32
  }
}

module attributes {stable_mosaic.version = 11 : i64} {
  func.func @_matmul_bias_act_kernel(%arg0: i32, %arg1: i32, %arg2: i32, %arg3: memref<8x512xbf16, #tpu.memory_space<vmem>>, %arg4: memref<512x256xbf16, #tpu.memory_space<vmem>>, %arg5: memref<1x256xf32, #tpu.memory_space<vmem>>, %arg6: memref<8x256xbf16, #tpu.memory_space<vmem>>, %arg7: memref<8x256xf32, #tpu.memory_space<vmem>>) attributes {dimension_semantics = [#tpu.dimension_semantics<parallel>, #tpu.dimension_semantics<parallel>, #tpu.dimension_semantics<arbitrary>], iteration_bounds = array<i64: 1, 2, 9>, scalar_prefetch = 0 : i64, scratch_operands = 1 : i64, tpu.core_type = #tpu.core_type<tc>, window_params = [{transform_indices = @transform_0, window_bounds = array<i64: 8, 512>}, {transform_indices = @transform_1, window_bounds = array<i64: 512, 256>}, {transform_indices = @transform_2, window_bounds = array<i64: 1, 256>}, {transform_indices = @transform_3, window_bounds = array<i64: 8, 256>}]} {
    %c0_i32 = arith.constant 0 : i32
    %0 = arith.cmpi eq, %arg2, %c0_i32 : i32
    %1 = arith.extui %0 : i1 to i32
    %c0_i32_0 = arith.constant 0 : i32
    %2 = arith.cmpi ne, %1, %c0_i32_0 : i32
    scf.if %2 {
      %cst_9 = arith.constant 0.000000e+00 : f32
      %12 = vector.broadcast %cst_9 : f32 to vector<8x256xf32>
      %c0_10 = arith.constant 0 : index
      %c0_11 = arith.constant 0 : index
      %13 = vector.load %arg7[%c0_10, %c0_11] : memref<8x256xf32, #tpu.memory_space<vmem>>, vector<8x256xf32>
      tpu.vector_store %arg7[%c0_10, %c0_11], %12 {strides = array<i32>} : memref<8x256xf32, #tpu.memory_space<vmem>>, vector<8x256xf32>,
    } else {
    }
    %c0 = arith.constant 0 : index
    %c0_1 = arith.constant 0 : index
    %3 = vector.load %arg7[%c0, %c0_1] : memref<8x256xf32, #tpu.memory_space<vmem>>, vector<8x256xf32>
    %c0_2 = arith.constant 0 : index
    %c0_3 = arith.constant 0 : index
    %4 = vector.load %arg3[%c0_2, %c0_3] : memref<8x512xbf16, #tpu.memory_space<vmem>>, vector<8x512xbf16>
    %c0_4 = arith.constant 0 : index
    %c0_5 = arith.constant 0 : index
    %5 = vector.load %arg4[%c0_4, %c0_5] : memref<512x256xbf16, #tpu.memory_space<vmem>>, vector<512x256xbf16>
    %cst = arith.constant dense<0.000000e+00> : vector<8x256xf32>
    %6 = tpu.matmul %4, %5, %cst {dimension_numbers = #tpu.dot_dimension_numbers<[1], [0], [0], [1], [0, 0, 1, 1], [], []>} : vector<8x512xbf16>, vector<512x256xbf16>, vector<8x256xf32> -> vector<8x256xf32>
    %7 = arith.addf %3, %6 : vector<8x256xf32>
    %c0_6 = arith.constant 0 : index
    %c0_7 = arith.constant 0 : index
    %8 = vector.load %arg7[%c0_6, %c0_7] : memref<8x256xf32, #tpu.memory_space<vmem>>, vector<8x256xf32>
    tpu.vector_store %arg7[%c0_6, %c0_7], %7 {strides = array<i32>} : memref<8x256xf32, #tpu.memory_space<vmem>>, vector<8x256xf32>,
    %c8_i32 = arith.constant 8 : i32
    %9 = arith.cmpi eq, %arg2, %c8_i32 : i32
    %10 = arith.extui %9 : i1 to i32
    %c0_i32_8 = arith.constant 0 : i32
    %11 = arith.cmpi ne, %10, %c0_i32_8 : i32
    scf.if %11 {
      %c0_9 = arith.constant 0 : index
      %c0_10 = arith.constant 0 : index
      %12 = vector.load %arg7[%c0_9, %c0_10] : memref<8x256xf32, #tpu.memory_space<vmem>>, vector<8x256xf32>
      %c0_11 = arith.constant 0 : index
      %c0_12 = arith.constant 0 : index
      %13 = vector.load %arg5[%c0_11, %c0_12] : memref<1x256xf32, #tpu.memory_space<vmem>>, vector<1x256xf32>
      %14 = vector.broadcast %13 : vector<1x256xf32> to vector<8x256xf32>
      %15 = arith.addf %12, %14 : vector<8x256xf32>
      %cst_13 = arith.constant 0.000000e+00 : f32
      %16 = vector.broadcast %cst_13 : f32 to vector<8x256xf32>
      %17 = arith.maximumf %15, %16 : vector<8x256xf32>
      %18 = arith.truncf %17 : vector<8x256xf32> to vector<8x256xbf16>
      %c0_14 = arith.constant 0 : index
      %c0_15 = arith.constant 0 : index
      %19 = vector.load %arg6[%c0_14, %c0_15] : memref<8x256xbf16, #tpu.memory_space<vmem>>, vector<8x256xbf16>
      tpu.vector_store %arg6[%c0_14, %c0_15], %18 {strides = array<i32>} : memref<8x256xbf16, #tpu.memory_space<vmem>>, vector<8x256xbf16>,
    } else {
    }
    return
  }
  func.func @transform_0(%arg0: i32, %arg1: i32, %arg2: i32) -> (i32, i32) {
    %c0_i32 = arith.constant 0 : i32
    return %arg0, %arg2 : i32, i32
  }
  func.func @transform_1(%arg0: i32, %arg1: i32, %arg2: i32) -> (i32, i32) {
    %c0_i32 = arith.constant 0 : i32
    return %arg2, %arg1 : i32, i32
  }
  func.func @transform_2(%arg0: i32, %arg1: i32, %arg2: i32) -> (i32, i32) {
    %c0_i32 = arith.constant 0 : i32
    %c0_i32_0 = arith.constant 0 : i32
    return %c0_i32, %arg1 : i32, i32
  }
  func.func @transform_3(%arg0: i32, %arg1: i32, %arg2: i32) -> (i32, i32) {
    %c0_i32 = arith.constant 0 : i32
    return %arg0, %arg1 : i32, i32
  }
}

module attributes {stable_mosaic.version = 11 : i64} {
  func.func @_matmul_bias_act_kernel(%arg0: i32, %arg1: i32, %arg2: i32, %arg3: memref<8x512xbf16, #tpu.memory_space<vmem>>, %arg4: memref<512x256xbf16, #tpu.memory_space<vmem>>, %arg5: memref<1x256xf32, #tpu.memory_space<vmem>>, %arg6: memref<8x256xbf16, #tpu.memory_space<vmem>>, %arg7: memref<8x256xf32, #tpu.memory_space<vmem>>) attributes {dimension_semantics = [#tpu.dimension_semantics<parallel>, #tpu.dimension_semantics<parallel>, #tpu.dimension_semantics<arbitrary>], iteration_bounds = array<i64: 1, 8, 2>, scalar_prefetch = 0 : i64, scratch_operands = 1 : i64, tpu.core_type = #tpu.core_type<tc>, window_params = [{transform_indices = @transform_0, window_bounds = array<i64: 8, 512>}, {transform_indices = @transform_1, window_bounds = array<i64: 512, 256>}, {transform_indices = @transform_2, window_bounds = array<i64: 1, 256>}, {transform_indices = @transform_3, window_bounds = array<i64: 8, 256>}]} {
    %c0_i32 = arith.constant 0 : i32
    %0 = arith.cmpi eq, %arg2, %c0_i32 : i32
    %1 = arith.extui %0 : i1 to i32
    %c0_i32_0 = arith.constant 0 : i32
    %2 = arith.cmpi ne, %1, %c0_i32_0 : i32
    scf.if %2 {
      %cst_9 = arith.constant 0.000000e+00 : f32
      %12 = vector.broadcast %cst_9 : f32 to vector<8x256xf32>
      %c0_10 = arith.constant 0 : index
      %c0_11 = arith.constant 0 : index
      %13 = vector.load %arg7[%c0_10, %c0_11] : memref<8x256xf32, #tpu.memory_space<vmem>>, vector<8x256xf32>
      tpu.vector_store %arg7[%c0_10, %c0_11], %12 {strides = array<i32>} : memref<8x256xf32, #tpu.memory_space<vmem>>, vector<8x256xf32>,
    } else {
    }
    %c0 = arith.constant 0 : index
    %c0_1 = arith.constant 0 : index
    %3 = vector.load %arg7[%c0, %c0_1] : memref<8x256xf32, #tpu.memory_space<vmem>>, vector<8x256xf32>
    %c0_2 = arith.constant 0 : index
    %c0_3 = arith.constant 0 : index
    %4 = vector.load %arg3[%c0_2, %c0_3] : memref<8x512xbf16, #tpu.memory_space<vmem>>, vector<8x512xbf16>
    %c0_4 = arith.constant 0 : index
    %c0_5 = arith.constant 0 : index
    %5 = vector.load %arg4[%c0_4, %c0_5] : memref<512x256xbf16, #tpu.memory_space<vmem>>, vector<512x256xbf16>
    %cst = arith.constant dense<0.000000e+00> : vector<8x256xf32>
    %6 = tpu.matmul %4, %5, %cst {dimension_numbers = #tpu.dot_dimension_numbers<[1], [0], [0], [1], [0, 0, 1, 1], [], []>} : vector<8x512xbf16>, vector<512x256xbf16>, vector<8x256xf32> -> vector<8x256xf32>
    %7 = arith.addf %3, %6 : vector<8x256xf32>
    %c0_6 = arith.constant 0 : index
    %c0_7 = arith.constant 0 : index
    %8 = vector.load %arg7[%c0_6, %c0_7] : memref<8x256xf32, #tpu.memory_space<vmem>>, vector<8x256xf32>
    tpu.vector_store %arg7[%c0_6, %c0_7], %7 {strides = array<i32>} : memref<8x256xf32, #tpu.memory_space<vmem>>, vector<8x256xf32>,
    %c1_i32 = arith.constant 1 : i32
    %9 = arith.cmpi eq, %arg2, %c1_i32 : i32
    %10 = arith.extui %9 : i1 to i32
    %c0_i32_8 = arith.constant 0 : i32
    %11 = arith.cmpi ne, %10, %c0_i32_8 : i32
    scf.if %11 {
      %c0_9 = arith.constant 0 : index
      %c0_10 = arith.constant 0 : index
      %12 = vector.load %arg7[%c0_9, %c0_10] : memref<8x256xf32, #tpu.memory_space<vmem>>, vector<8x256xf32>
      %c0_11 = arith.constant 0 : index
      %c0_12 = arith.constant 0 : index
      %13 = vector.load %arg5[%c0_11, %c0_12] : memref<1x256xf32, #tpu.memory_space<vmem>>, vector<1x256xf32>
      %14 = vector.broadcast %13 : vector<1x256xf32> to vector<8x256xf32>
      %15 = arith.addf %12, %14 : vector<8x256xf32>
      %16 = arith.truncf %15 : vector<8x256xf32> to vector<8x256xbf16>
      %c0_13 = arith.constant 0 : index
      %c0_14 = arith.constant 0 : index
      %17 = vector.load %arg6[%c0_13, %c0_14] : memref<8x256xbf16, #tpu.memory_space<vmem>>, vector<8x256xbf16>
      tpu.vector_store %arg6[%c0_13, %c0_14], %16 {strides = array<i32>} : memref<8x256xbf16, #tpu.memory_space<vmem>>, vector<8x256xbf16>,
    } else {
    }
    return
  }
  func.func @transform_0(%arg0: i32, %arg1: i32, %arg2: i32) -> (i32, i32) {
    %c0_i32 = arith.constant 0 : i32
    return %arg0, %arg2 : i32, i32
  }
  func.func @transform_1(%arg0: i32, %arg1: i32, %arg2: i32) -> (i32, i32) {
    %c0_i32 = arith.constant 0 : i32
    return %arg2, %arg1 : i32, i32
  }
  func.func @transform_2(%arg0: i32, %arg1: i32, %arg2: i32) -> (i32, i32) {
    %c0_i32 = arith.constant 0 : i32
    %c0_i32_0 = arith.constant 0 : i32
    return %c0_i32, %arg1 : i32, i32
  }
  func.func @transform_3(%arg0: i32, %arg1: i32, %arg2: i32) -> (i32, i32) {
    %c0_i32 = arith.constant 0 : i32
    return %arg0, %arg1 : i32, i32
  }
}

module attributes {stable_mosaic.version = 11 : i64} {
  func.func @_matmul_bias_act_kernel(%arg0: i32, %arg1: i32, %arg2: i32, %arg3: memref<8x512xbf16, #tpu.memory_space<vmem>>, %arg4: memref<512x256xbf16, #tpu.memory_space<vmem>>, %arg5: memref<1x256xf32, #tpu.memory_space<vmem>>, %arg6: memref<8x256xbf16, #tpu.memory_space<vmem>>, %arg7: memref<8x256xbf16, #tpu.memory_space<vmem>>, %arg8: memref<8x256xf32, #tpu.memory_space<vmem>>) attributes {dimension_semantics = [#tpu.dimension_semantics<parallel>, #tpu.dimension_semantics<parallel>, #tpu.dimension_semantics<arbitrary>], iteration_bounds = array<i64: 1, 8, 1>, scalar_prefetch = 0 : i64, scratch_operands = 1 : i64, tpu.core_type = #tpu.core_type<tc>, window_params = [{transform_indices = @transform_0, window_bounds = array<i64: 8, 512>}, {transform_indices = @transform_1, window_bounds = array<i64: 512, 256>}, {transform_indices = @transform_2, window_bounds = array<i64: 1, 256>}, {transform_indices = @transform_3, window_bounds = array<i64: 8, 256>}, {transform_indices = @transform_4, window_bounds = array<i64: 8, 256>}]} {
    %c0_i32 = arith.constant 0 : i32
    %0 = arith.cmpi eq, %arg2, %c0_i32 : i32
    %1 = arith.extui %0 : i1 to i32
    %c0_i32_0 = arith.constant 0 : i32
    %2 = arith.cmpi ne, %1, %c0_i32_0 : i32
    scf.if %2 {
      %cst_10 = arith.constant 0.000000e+00 : f32
      %12 = vector.broadcast %cst_10 : f32 to vector<8x256xf32>
      %c0_11 = arith.constant 0 : index
      %c0_12 = arith.constant 0 : index
      %13 = vector.load %arg8[%c0_11, %c0_12] : memref<8x256xf32, #tpu.memory_space<vmem>>, vector<8x256xf32>
      tpu.vector_store %arg8[%c0_11, %c0_12], %12 {strides = array<i32>} : memref<8x256xf32, #tpu.memory_space<vmem>>, vector<8x256xf32>,
    } else {
    }
    %c0 = arith.constant 0 : index
    %c0_1 = arith.constant 0 : index
    %3 = vector.load %arg8[%c0, %c0_1] : memref<8x256xf32, #tpu.memory_space<vmem>>, vector<8x256xf32>
    %c0_2 = arith.constant 0 : index
    %c0_3 = arith.constant 0 : index
    %4 = vector.load %arg3[%c0_2, %c0_3] : memref<8x512xbf16, #tpu.memory_space<vmem>>, vector<8x512xbf16>
    %c0_4 = arith.constant 0 : index
    %c0_5 = arith.constant 0 : index
    %5 = vector.load %arg4[%c0_4, %c0_5] : memref<512x256xbf16, #tpu.memory_space<vmem>>, vector<512x256xbf16>
    %cst = arith.constant dense<0.000000e+00> : vector<8x256xf32>
    %6 = tpu.matmul %4, %5, %cst {dimension_numbers = #tpu.dot_dimension_numbers<[1], [0], [0], [1], [0, 0, 1, 1], [], []>} : vector<8x512xbf16>, vector<512x256xbf16>, vector<8x256xf32> -> vector<8x256xf32>
    %7 = arith.addf %3, %6 : vector<8x256xf32>
    %c0_6 = arith.constant 0 : index
    %c0_7 = arith.constant 0 : index
    %8 = vector.load %arg8[%c0_6, %c0_7] : memref<8x256xf32, #tpu.memory_space<vmem>>, vector<8x256xf32>
    tpu.vector_store %arg8[%c0_6, %c0_7], %7 {strides = array<i32>} : memref<8x256xf32, #tpu.memory_space<vmem>>, vector<8x256xf32>,
    %c0_i32_8 = arith.constant 0 : i32
    %9 = arith.cmpi eq, %arg2, %c0_i32_8 : i32
    %10 = arith.extui %9 : i1 to i32
    %c0_i32_9 = arith.constant 0 : i32
    %11 = arith.cmpi ne, %10, %c0_i32_9 : i32
    scf.if %11 {
      %c0_10 = arith.constant 0 : index
      %c0_11 = arith.constant 0 : index
      %12 = vector.load %arg8[%c0_10, %c0_11] : memref<8x256xf32, #tpu.memory_space<vmem>>, vector<8x256xf32>
      %c0_12 = arith.constant 0 : index
      %c0_13 = arith.constant 0 : index
      %13 = vector.load %arg5[%c0_12, %c0_13] : memref<1x256xf32, #tpu.memory_space<vmem>>, vector<1x256xf32>
      %14 = vector.broadcast %13 : vector<1x256xf32> to vector<8x256xf32>
      %15 = arith.addf %12, %14 : vector<8x256xf32>
      %c0_14 = arith.constant 0 : index
      %c0_15 = arith.constant 0 : index
      %16 = vector.load %arg6[%c0_14, %c0_15] : memref<8x256xbf16, #tpu.memory_space<vmem>>, vector<8x256xbf16>
      %17 = arith.extf %16 : vector<8x256xbf16> to vector<8x256xf32>
      %18 = arith.addf %15, %17 : vector<8x256xf32>
      %cst_16 = arith.constant 0.000000e+00 : f32
      %19 = vector.broadcast %cst_16 : f32 to vector<8x256xf32>
      %20 = arith.maximumf %18, %19 : vector<8x256xf32>
      %21 = arith.truncf %20 : vector<8x256xf32> to vector<8x256xbf16>
      %c0_17 = arith.constant 0 : index
      %c0_18 = arith.constant 0 : index
      %22 = vector.load %arg7[%c0_17, %c0_18] : memref<8x256xbf16, #tpu.memory_space<vmem>>, vector<8x256xbf16>
      tpu.vector_store %arg7[%c0_17, %c0_18], %21 {strides = array<i32>} : memref<8x256xbf16, #tpu.memory_space<vmem>>, vector<8x256xbf16>,
    } else {
    }
    return
  }
  func.func @transform_0(%arg0: i32, %arg1: i32, %arg2: i32) -> (i32, i32) {
    %c0_i32 = arith.constant 0 : i32
    return %arg0, %arg2 : i32, i32
  }
  func.func @transform_1(%arg0: i32, %arg1: i32, %arg2: i32) -> (i32, i32) {
    %c0_i32 = arith.constant 0 : i32
    return %arg2, %arg1 : i32, i32
  }
  func.func @transform_2(%arg0: i32, %arg1: i32, %arg2: i32) -> (i32, i32) {
    %c0_i32 = arith.constant 0 : i32
    %c0_i32_0 = arith.constant 0 : i32
    return %c0_i32, %arg1 : i32, i32
  }
  func.func @transform_3(%arg0: i32, %arg1: i32, %arg2: i32) -> (i32, i32) {
    %c0_i32 = arith.constant 0 : i32
    return %arg0, %arg1 : i32, i32
  }
  func.func @transform_4(%arg0: i32, %arg1: i32, %arg2: i32) -> (i32, i32) {
    %c0_i32 = arith.constant 0 : i32
    return %arg0, %arg1 : i32, i32
  }
}

module attributes {stable_mosaic.version = 11 : i64} {
  func.func @_matmul_bias_act_kernel(%arg0: i32, %arg1: i32, %arg2: i32, %arg3: memref<8x512xbf16, #tpu.memory_space<vmem>>, %arg4: memref<512x256xbf16, #tpu.memory_space<vmem>>, %arg5: memref<1x256xf32, #tpu.memory_space<vmem>>, %arg6: memref<8x256xbf16, #tpu.memory_space<vmem>>, %arg7: memref<8x256xf32, #tpu.memory_space<vmem>>) attributes {dimension_semantics = [#tpu.dimension_semantics<parallel>, #tpu.dimension_semantics<parallel>, #tpu.dimension_semantics<arbitrary>], iteration_bounds = array<i64: 1, 2, 4>, scalar_prefetch = 0 : i64, scratch_operands = 1 : i64, tpu.core_type = #tpu.core_type<tc>, window_params = [{transform_indices = @transform_0, window_bounds = array<i64: 8, 512>}, {transform_indices = @transform_1, window_bounds = array<i64: 512, 256>}, {transform_indices = @transform_2, window_bounds = array<i64: 1, 256>}, {transform_indices = @transform_3, window_bounds = array<i64: 8, 256>}]} {
    %c0_i32 = arith.constant 0 : i32
    %0 = arith.cmpi eq, %arg2, %c0_i32 : i32
    %1 = arith.extui %0 : i1 to i32
    %c0_i32_0 = arith.constant 0 : i32
    %2 = arith.cmpi ne, %1, %c0_i32_0 : i32
    scf.if %2 {
      %cst_9 = arith.constant 0.000000e+00 : f32
      %12 = vector.broadcast %cst_9 : f32 to vector<8x256xf32>
      %c0_10 = arith.constant 0 : index
      %c0_11 = arith.constant 0 : index
      %13 = vector.load %arg7[%c0_10, %c0_11] : memref<8x256xf32, #tpu.memory_space<vmem>>, vector<8x256xf32>
      tpu.vector_store %arg7[%c0_10, %c0_11], %12 {strides = array<i32>} : memref<8x256xf32, #tpu.memory_space<vmem>>, vector<8x256xf32>,
    } else {
    }
    %c0 = arith.constant 0 : index
    %c0_1 = arith.constant 0 : index
    %3 = vector.load %arg7[%c0, %c0_1] : memref<8x256xf32, #tpu.memory_space<vmem>>, vector<8x256xf32>
    %c0_2 = arith.constant 0 : index
    %c0_3 = arith.constant 0 : index
    %4 = vector.load %arg3[%c0_2, %c0_3] : memref<8x512xbf16, #tpu.memory_space<vmem>>, vector<8x512xbf16>
    %c0_4 = arith.constant 0 : index
    %c0_5 = arith.constant 0 : index
    %5 = vector.load %arg4[%c0_4, %c0_5] : memref<512x256xbf16, #tpu.memory_space<vmem>>, vector<512x256xbf16>
    %cst = arith.constant dense<0.000000e+00> : vector<8x256xf32>
    %6 = tpu.matmul %4, %5, %cst {dimension_numbers = #tpu.dot_dimension_numbers<[1], [0], [0], [1], [0, 0, 1, 1], [], []>} : vector<8x512xbf16>, vector<512x256xbf16>, vector<8x256xf32> -> vector<8x256xf32>
    %7 = arith.addf %3, %6 : vector<8x256xf32>
    %c0_6 = arith.constant 0 : index
    %c0_7 = arith.constant 0 : index
    %8 = vector.load %arg7[%c0_6, %c0_7] : memref<8x256xf32, #tpu.memory_space<vmem>>, vector<8x256xf32>
    tpu.vector_store %arg7[%c0_6, %c0_7], %7 {strides = array<i32>} : memref<8x256xf32, #tpu.memory_space<vmem>>, vector<8x256xf32>,
    %c3_i32 = arith.constant 3 : i32
    %9 = arith.cmpi eq, %arg2, %c3_i32 : i32
    %10 = arith.extui %9 : i1 to i32
    %c0_i32_8 = arith.constant 0 : i32
    %11 = arith.cmpi ne, %10, %c0_i32_8 : i32
    scf.if %11 {
      %c0_9 = arith.constant 0 : index
      %c0_10 = arith.constant 0 : index
      %12 = vector.load %arg7[%c0_9, %c0_10] : memref<8x256xf32, #tpu.memory_space<vmem>>, vector<8x256xf32>
      %c0_11 = arith.constant 0 : index
      %c0_12 = arith.constant 0 : index
      %13 = vector.load %arg5[%c0_11, %c0_12] : memref<1x256xf32, #tpu.memory_space<vmem>>, vector<1x256xf32>
      %14 = vector.broadcast %13 : vector<1x256xf32> to vector<8x256xf32>
      %15 = arith.addf %12, %14 : vector<8x256xf32>
      %cst_13 = arith.constant 0.000000e+00 : f32
      %16 = vector.broadcast %cst_13 : f32 to vector<8x256xf32>
      %17 = arith.maximumf %15, %16 : vector<8x256xf32>
      %18 = arith.truncf %17 : vector<8x256xf32> to vector<8x256xbf16>
      %c0_14 = arith.constant 0 : index
      %c0_15 = arith.constant 0 : index
      %19 = vector.load %arg6[%c0_14, %c0_15] : memref<8x256xbf16, #tpu.memory_space<vmem>>, vector<8x256xbf16>
      tpu.vector_store %arg6[%c0_14, %c0_15], %18 {strides = array<i32>} : memref<8x256xbf16, #tpu.memory_space<vmem>>, vector<8x256xbf16>,
    } else {
    }
    return
  }
  func.func @transform_0(%arg0: i32, %arg1: i32, %arg2: i32) -> (i32, i32) {
    %c0_i32 = arith.constant 0 : i32
    return %arg0, %arg2 : i32, i32
  }
  func.func @transform_1(%arg0: i32, %arg1: i32, %arg2: i32) -> (i32, i32) {
    %c0_i32 = arith.constant 0 : i32
    return %arg2, %arg1 : i32, i32
  }
  func.func @transform_2(%arg0: i32, %arg1: i32, %arg2: i32) -> (i32, i32) {
    %c0_i32 = arith.constant 0 : i32
    %c0_i32_0 = arith.constant 0 : i32
    return %c0_i32, %arg1 : i32, i32
  }
  func.func @transform_3(%arg0: i32, %arg1: i32, %arg2: i32) -> (i32, i32) {
    %c0_i32 = arith.constant 0 : i32
    return %arg0, %arg1 : i32, i32
  }
}

module attributes {stable_mosaic.version = 11 : i64} {
  func.func @_avgpool_kernel(%arg0: i32, %arg1: memref<2x1x512xbf16, #tpu.memory_space<vmem>>, %arg2: memref<2x512xf32, #tpu.memory_space<vmem>>) attributes {dimension_semantics = [#tpu.dimension_semantics<parallel>], iteration_bounds = array<i64: 4>, scalar_prefetch = 0 : i64, scratch_operands = 0 : i64, tpu.core_type = #tpu.core_type<tc>, window_params = [{transform_indices = @transform_0, window_bounds = array<i64: 2, 1, 512>}, {transform_indices = @transform_1, window_bounds = array<i64: 2, 512>}]} {
    %c0 = arith.constant 0 : index
    %c0_0 = arith.constant 0 : index
    %c0_1 = arith.constant 0 : index
    %0 = vector.load %arg1[%c0, %c0_0, %c0_1] : memref<2x1x512xbf16, #tpu.memory_space<vmem>>, vector<2x1x512xbf16>
    %1 = arith.extf %0 : vector<2x1x512xbf16> to vector<2x1x512xf32>
    %cst = arith.constant dense<0.000000e+00> : vector<2x512xf32>
    %2 = vector.multi_reduction <add>, %1, %cst [1] : vector<2x1x512xf32> to vector<2x512xf32>
    %cst_2 = arith.constant 1.000000e+00 : f32
    %3 = vector.broadcast %cst_2 : f32 to vector<2x512xf32>
    %4 = arith.divf %2, %3 : vector<2x512xf32>
    %c0_3 = arith.constant 0 : index
    %c0_4 = arith.constant 0 : index
    %5 = vector.load %arg2[%c0_3, %c0_4] : memref<2x512xf32, #tpu.memory_space<vmem>>, vector<2x512xf32>
    tpu.vector_store %arg2[%c0_3, %c0_4], %4 {strides = array<i32>} : memref<2x512xf32, #tpu.memory_space<vmem>>, vector<2x512xf32>,
    return
  }
  func.func @transform_0(%arg0: i32) -> (i32, i32, i32) {
    %c0_i32 = arith.constant 0 : i32
    %c0_i32_0 = arith.constant 0 : i32
    %c0_i32_1 = arith.constant 0 : i32
    return %c0_i32, %c0_i32_0, %arg0 : i32, i32, i32
  }
  func.func @transform_1(%arg0: i32) -> (i32, i32) {
    %c0_i32 = arith.constant 0 : i32
    %c0_i32_0 = arith.constant 0 : i32
    return %c0_i32, %arg0 : i32, i32
  }
}

module attributes {stable_mosaic.version = 11 : i64} {
  func.func @_matmul_bias_act_kernel(%arg0: i32, %arg1: i32, %arg2: i32, %arg3: memref<8x512xbf16, #tpu.memory_space<vmem>>, %arg4: memref<512x128xbf16, #tpu.memory_space<vmem>>, %arg5: memref<1x128xf32, #tpu.memory_space<vmem>>, %arg6: memref<8x128xf32, #tpu.memory_space<vmem>>, %arg7: memref<8x128xf32, #tpu.memory_space<vmem>>) attributes {dimension_semantics = [#tpu.dimension_semantics<parallel>, #tpu.dimension_semantics<parallel>, #tpu.dimension_semantics<arbitrary>], iteration_bounds = array<i64: 1, 1, 4>, scalar_prefetch = 0 : i64, scratch_operands = 1 : i64, tpu.core_type = #tpu.core_type<tc>, window_params = [{transform_indices = @transform_0, window_bounds = array<i64: 8, 512>}, {transform_indices = @transform_1, window_bounds = array<i64: 512, 128>}, {transform_indices = @transform_2, window_bounds = array<i64: 1, 128>}, {transform_indices = @transform_3, window_bounds = array<i64: 8, 128>}]} {
    %c0_i32 = arith.constant 0 : i32
    %0 = arith.cmpi eq, %arg2, %c0_i32 : i32
    %1 = arith.extui %0 : i1 to i32
    %c0_i32_0 = arith.constant 0 : i32
    %2 = arith.cmpi ne, %1, %c0_i32_0 : i32
    scf.if %2 {
      %cst_9 = arith.constant 0.000000e+00 : f32
      %12 = vector.broadcast %cst_9 : f32 to vector<8x128xf32>
      %c0_10 = arith.constant 0 : index
      %c0_11 = arith.constant 0 : index
      %13 = vector.load %arg7[%c0_10, %c0_11] : memref<8x128xf32, #tpu.memory_space<vmem>>, vector<8x128xf32>
      tpu.vector_store %arg7[%c0_10, %c0_11], %12 {strides = array<i32>} : memref<8x128xf32, #tpu.memory_space<vmem>>, vector<8x128xf32>,
    } else {
    }
    %c0 = arith.constant 0 : index
    %c0_1 = arith.constant 0 : index
    %3 = vector.load %arg7[%c0, %c0_1] : memref<8x128xf32, #tpu.memory_space<vmem>>, vector<8x128xf32>
    %c0_2 = arith.constant 0 : index
    %c0_3 = arith.constant 0 : index
    %4 = vector.load %arg3[%c0_2, %c0_3] : memref<8x512xbf16, #tpu.memory_space<vmem>>, vector<8x512xbf16>
    %c0_4 = arith.constant 0 : index
    %c0_5 = arith.constant 0 : index
    %5 = vector.load %arg4[%c0_4, %c0_5] : memref<512x128xbf16, #tpu.memory_space<vmem>>, vector<512x128xbf16>
    %cst = arith.constant dense<0.000000e+00> : vector<8x128xf32>
    %6 = tpu.matmul %4, %5, %cst {dimension_numbers = #tpu.dot_dimension_numbers<[1], [0], [0], [1], [0, 0, 1, 1], [], []>} : vector<8x512xbf16>, vector<512x128xbf16>, vector<8x128xf32> -> vector<8x128xf32>
    %7 = arith.addf %3, %6 : vector<8x128xf32>
    %c0_6 = arith.constant 0 : index
    %c0_7 = arith.constant 0 : index
    %8 = vector.load %arg7[%c0_6, %c0_7] : memref<8x128xf32, #tpu.memory_space<vmem>>, vector<8x128xf32>
    tpu.vector_store %arg7[%c0_6, %c0_7], %7 {strides = array<i32>} : memref<8x128xf32, #tpu.memory_space<vmem>>, vector<8x128xf32>,
    %c3_i32 = arith.constant 3 : i32
    %9 = arith.cmpi eq, %arg2, %c3_i32 : i32
    %10 = arith.extui %9 : i1 to i32
    %c0_i32_8 = arith.constant 0 : i32
    %11 = arith.cmpi ne, %10, %c0_i32_8 : i32
    scf.if %11 {
      %c0_9 = arith.constant 0 : index
      %c0_10 = arith.constant 0 : index
      %12 = vector.load %arg7[%c0_9, %c0_10] : memref<8x128xf32, #tpu.memory_space<vmem>>, vector<8x128xf32>
      %c0_11 = arith.constant 0 : index
      %c0_12 = arith.constant 0 : index
      %13 = vector.load %arg5[%c0_11, %c0_12] : memref<1x128xf32, #tpu.memory_space<vmem>>, vector<1x128xf32>
      %14 = vector.broadcast %13 : vector<1x128xf32> to vector<8x128xf32>
      %15 = arith.addf %12, %14 : vector<8x128xf32>
      %c0_13 = arith.constant 0 : index
      %c0_14 = arith.constant 0 : index
      %16 = vector.load %arg6[%c0_13, %c0_14] : memref<8x128xf32, #tpu.memory_space<vmem>>, vector<8x128xf32>
      tpu.vector_store %arg6[%c0_13, %c0_14], %15 {strides = array<i32>} : memref<8x128xf32, #tpu.memory_space<vmem>>, vector<8x128xf32>,
    } else {
    }
    return
  }
  func.func @transform_0(%arg0: i32, %arg1: i32, %arg2: i32) -> (i32, i32) {
    %c0_i32 = arith.constant 0 : i32
    return %arg0, %arg2 : i32, i32
  }
  func.func @transform_1(%arg0: i32, %arg1: i32, %arg2: i32) -> (i32, i32) {
    %c0_i32 = arith.constant 0 : i32
    return %arg2, %arg1 : i32, i32
  }
  func.func @transform_2(%arg0: i32, %arg1: i32, %arg2: i32) -> (i32, i32) {
    %c0_i32 = arith.constant 0 : i32
    %c0_i32_0 = arith.constant 0 : i32
    return %c0_i32, %arg1 : i32, i32
  }
  func.func @transform_3(%arg0: i32, %arg1: i32, %arg2: i32) -> (i32, i32) {
    %c0_i32 = arith.constant 0 : i32
    return %arg0, %arg1 : i32, i32
  }
}

</mosaic_0001>

<bundles_post_ra>
// kernel: _encoder_cnn_forward.57
= control target key start
LH: loop header
LB: loop body
LE: loop exit
PB: predicated region body
PF: predicated region fallthrough
CT: control target
= control target key end

     0   :  { %s339_s1 = inlined_call_operand.vmem [shape: bf16[128,128], index: 1, kind: input, shape index: {}]   ;;  %s340_s0 = inlined_call_operand.vmem [shape: bf16[32,128], index: 0, kind: input, shape index: {}]   ;;  %s341_s2 = inlined_call_operand.vmem [shape: f32[1,128], index: 2, kind: input, shape index: {}]   ;;  %s342_s3 = inlined_call_operand.vmem [shape: bf16[32,128], index: 3, kind: output, shape index: {}]  }
   0x1   :  { %v270_v0 = vld [vmem:[%s339_s1] sm:$0xff]   ;;  %v271_v1 = vld [vmem:[%s339_s1 + $0x8] sm:$0xff]   ;;  %v272_v2 = vld [vmem:[%s339_s1 + $0x10] sm:$0xff]  }
   0x2   :  { %250 = vmatprep.subr.bf16.mxu0 %v270_v0  ;;  %v273_v3 = vld [vmem:[%s339_s1 + $0x18] sm:$0xff]   ;;  %v278_v4 = vld [vmem:[%s340_s0] sm:$0xff]   ;;  %v275_v6 = vld [vmem:[%s339_s1 + $0x28] sm:$0xff]  }
   0x3   :  { %251 = vmatpush3.bf16.msra.mxu0 %v270_v0  ;;  %266 = vmatprep.mubr.bf16.mxu0 %v278_v4  ;;  %v274_v5 = vld [vmem:[%s339_s1 + $0x20] sm:$0xff]   ;;  %v276_v7 = vld [vmem:[%s339_s1 + $0x30] sm:$0xff]   ;;  %v277_v8 = vld [vmem:[%s339_s1 + $0x38] sm:$0xff]  }
   0x4   :  { %252 = vmatprep.subr.bf16.mxu0 %v271_v1  ;;  %v279_v9 = vld [vmem:[%s340_s0 + $0x8] sm:$0xff]   ;;  %v220_v10 = vld [vmem:[%s341_s2] ss:$0 sm:$0xff] }
   0x7   :  { %253 = vmatpush3.bf16.msra.mxu0 %v271_v1 }
   0x8   :  { %254 = vmatprep.subr.bf16.mxu0 %v272_v2 }
   0xb   :  { %255 = vmatpush3.bf16.msra.mxu0 %v272_v2 }
   0xc   :  { %256 = vmatprep.subr.bf16.mxu0 %v273_v3 }
   0xf   :  { %257 = vmatpush3.bf16.msra.mxu0 %v273_v3 }
  0x10   :  { %258 = vmatprep.subr.bf16.mxu0 %v274_v5 }
  0x13   :  { %259 = vmatpush3.bf16.msra.mxu0 %v274_v5 }
  0x14   :  { %260 = vmatprep.subr.bf16.mxu0 %v275_v6 }
  0x17   :  { %261 = vmatpush3.bf16.msra.mxu0 %v275_v6 }
  0x18   :  { %262 = vmatprep.subr.bf16.mxu0 %v276_v7 }
  0x1b   :  { %263 = vmatpush3.bf16.msra.mxu0 %v276_v7 }
  0x1c   :  { %264 = vmatprep.subr.bf16.mxu0 %v277_v8 }
  0x1f   :  { %265 = vmatpush3.bf16.msra.mxu0 %v277_v8 }
  0x22   :  { %267 = vmatmul.mubr.bf16.vlgmr.msra.gmra.mrb[0].mxu0 %v279_v9 }
  0xf5   :  { %v268_v11 = vpop.f32.mrb[0].mxu0 }
  0xf6   :  { %v180_v12 = vadd.f32 %v268_v11, %v220_v10  ;;  %v141_v13 = vpop.f32.mrb[1].mxu0 }
  0xf7   :  { %v178_v14 = vadd.f32 %v220_v10, %v141_v13  ;;  %v269_v15 = vpop.f32.mrb[2].mxu0 }
  0xf8   :  { %v181_v16 = vadd.f32 %v269_v15, %v220_v10  ;;  %v144_v17 = vpop.f32.mrb[3].mxu0  ;;  %v184_v19 = vmax.f32 %v180_v12, 0.0 }
  0xf9   :  { %v179_v18 = vadd.f32 %v220_v10, %v144_v17  ;;  %v182_v21 = vmax.f32 %v178_v14, 0.0 }
  0xfa   :  { %v185_v20 = vmax.f32 %v181_v16, 0.0 }
  0xfb   :  { %v183_v22 = vmax.f32 %v179_v18, 0.0 }
  0xfc   :  { %v237_v23 = vpack.c.bf16 %v185_v20, %v184_v19 }
  0xfd   :  { %v232_v24 = vpack.c.bf16 %v183_v22, %v182_v21 }
  0xfe   :  { %239 = vst [vmem:[%s342_s3 + $0x8] sm:$0xff] %v237_v23  }
  0xff   :  { %233 = vst [vmem:[%s342_s3] sm:$0xff] %v232_v24  }

// kernel: _encoder_cnn_forward.55
= control target key start
LH: loop header
LB: loop body
LE: loop exit
PB: predicated region body
PF: predicated region fallthrough
CT: control target
= control target key end

     0   :  { %s939_s1 = inlined_call_operand.vmem [shape: bf16[256,128], index: 1, kind: input, shape index: {}]   ;;  %s940_s0 = inlined_call_operand.vmem [shape: bf16[128,256], index: 0, kind: input, shape index: {}]   ;;  %s941_s2 = inlined_call_operand.vmem [shape: f32[1,128], index: 2, kind: input, shape index: {}]   ;;  %s942_s3 = inlined_call_operand.vmem [shape: bf16[128,128], index: 3, kind: output, shape index: {}]  }
   0x1   :  { %v738_v0 = vld [vmem:[%s939_s1 + $0x40] sm:$0xff]   ;;  %v740_v2 = vld [vmem:[%s939_s1 + $0x48] sm:$0xff]   ;;  %v742_v4 = vld [vmem:[%s939_s1 + $0x50] sm:$0xff]  }
   0x2   :  { %v739_v1 = vld [vmem:[%s939_s1] sm:$0xff]   ;;  %658 = vmatprep.subr.bf16.mxu0 %v738_v0  ;;  %722 = vmatprep.subr.bf16.mxu1 %v738_v0  ;;  %v741_v3 = vld [vmem:[%s939_s1 + $0x8] sm:$0xff]   ;;  %v743_v5 = vld [vmem:[%s939_s1 + $0x10] sm:$0xff]  }
   0x3   :  { %659 = vmatpush3.bf16.msra.mxu0 %v739_v1  ;;  %730 = vmatpush3.bf16.msra.mxu1 %v739_v1  ;;  %v744_v6 = vld [vmem:[%s939_s1 + $0x58] sm:$0xff]   ;;  %v746_v8 = vld [vmem:[%s939_s1 + $0x60] sm:$0xff]   ;;  %v748_v10 = vld [vmem:[%s939_s1 + $0x68] sm:$0xff]  }
   0x4   :  { %660 = vmatprep.subr.bf16.mxu0 %v740_v2  ;;  %723 = vmatprep.subr.bf16.mxu1 %v740_v2  ;;  %v745_v7 = vld [vmem:[%s939_s1 + $0x18] sm:$0xff]   ;;  %v747_v9 = vld [vmem:[%s939_s1 + $0x20] sm:$0xff]   ;;  %v749_v13 = vld [vmem:[%s939_s1 + $0x28] sm:$0xff]  }
   0x5   :  { %v756_v11 = vld [vmem:[%s940_s0 + $0x4] ss:$8 sps:$4 sm:$0xff]   ;;  %v750_v14 = vld [vmem:[%s939_s1 + $0x70] sm:$0xff]   ;;  %v752_v16 = vld [vmem:[%s939_s1 + $0x78] sm:$0xff]  }
   0x6   :  { %v759_v12 = vld [vmem:[%s940_s0 + $0x44] ss:$8 sps:$4 sm:$0xff]   ;;  %307 = vmatprep.mubr.bf16.mxu0 %v756_v11  ;;  %v751_v15 = vld [vmem:[%s939_s1 + $0x30] sm:$0xff]   ;;  %v753_v17 = vld [vmem:[%s939_s1 + $0x38] sm:$0xff]  }
   0x7   :  { %661 = vmatpush3.bf16.msra.mxu0 %v741_v3  ;;  %731 = vmatpush3.bf16.msra.mxu1 %v741_v3  ;;  %v754_v18 = vld [vmem:[%s940_s0] ss:$8 sps:$4 sm:$0xff]   ;;  %v760_v20 = vld [vmem:[%s940_s0 + $0x14] ss:$8 sps:$4 sm:$0xff]   ;;  %v764_v22 = vld [vmem:[%s940_s0 + $0x10] ss:$8 sps:$4 sm:$0xff]  }
   0x8   :  { %662 = vmatprep.subr.bf16.mxu0 %v742_v4  ;;  %724 = vmatprep.subr.bf16.mxu1 %v742_v4  ;;  %v757_v19 = vld [vmem:[%s940_s0 + $0x40] ss:$8 sps:$4 sm:$0xff]   ;;  %v762_v21 = vld [vmem:[%s940_s0 + $0x54] ss:$8 sps:$4 sm:$0xff]   ;;  %v765_v23 = vld [vmem:[%s940_s0 + $0x50] ss:$8 sps:$4 sm:$0xff]  }
   0x9   :  { %339 = vmatprep.mubr.bf16.mxu1 %v759_v12  ;;  %v766_v24 = vld [vmem:[%s940_s0 + $0x24] ss:$8 sps:$4 sm:$0xff]   ;;  %v770_v26 = vld [vmem:[%s940_s0 + $0x20] ss:$8 sps:$4 sm:$0xff]   ;;  %v772_v28 = vld [vmem:[%s940_s0 + $0x34] ss:$8 sps:$4 sm:$0xff]  }
   0xa   :  { %v768_v25 = vld [vmem:[%s940_s0 + $0x64] ss:$8 sps:$4 sm:$0xff]   ;;  %v771_v27 = vld [vmem:[%s940_s0 + $0x60] ss:$8 sps:$4 sm:$0xff]   ;;  %v774_v29 = vld [vmem:[%s940_s0 + $0x74] ss:$8 sps:$4 sm:$0xff]  }
   0xb   :  { %663 = vmatpush3.bf16.msra.mxu0 %v743_v5  ;;  %732 = vmatpush3.bf16.msra.mxu1 %v743_v5  ;;  %v776_v30 = vld [vmem:[%s940_s0 + $0x30] ss:$8 sps:$4 sm:$0xff]   ;;  %v897_v35 = vld [vmem:[%s941_s2] ss:$0 sm:$0xff] }
   0xc   :  { %664 = vmatprep.subr.bf16.mxu0 %v744_v6  ;;  %725 = vmatprep.subr.bf16.mxu1 %v744_v6  ;;  %v777_v31 = vld [vmem:[%s940_s0 + $0x70] ss:$8 sps:$4 sm:$0xff]  }
   0xf   :  { %665 = vmatpush3.bf16.msra.mxu0 %v745_v7  ;;  %733 = vmatpush3.bf16.msra.mxu1 %v745_v7 }
  0x10   :  { %666 = vmatprep.subr.bf16.mxu0 %v746_v8  ;;  %726 = vmatprep.subr.bf16.mxu1 %v746_v8 }
  0x13   :  { %667 = vmatpush3.bf16.msra.mxu0 %v747_v9  ;;  %734 = vmatpush3.bf16.msra.mxu1 %v747_v9 }
  0x14   :  { %668 = vmatprep.subr.bf16.mxu0 %v748_v10  ;;  %727 = vmatprep.subr.bf16.mxu1 %v748_v10 }
  0x17   :  { %669 = vmatpush3.bf16.msra.mxu0 %v749_v13  ;;  %735 = vmatpush3.bf16.msra.mxu1 %v749_v13 }
  0x18   :  { %670 = vmatprep.subr.bf16.mxu0 %v750_v14  ;;  %728 = vmatprep.subr.bf16.mxu1 %v750_v14 }
  0x1b   :  { %671 = vmatpush3.bf16.msra.mxu0 %v751_v15  ;;  %736 = vmatpush3.bf16.msra.mxu1 %v751_v15 }
  0x1c   :  { %672 = vmatprep.subr.bf16.mxu0 %v752_v16  ;;  %729 = vmatprep.subr.bf16.mxu1 %v752_v16 }
  0x1f   :  { %673 = vmatpush3.bf16.msra.mxu0 %v753_v17  ;;  %737 = vmatpush3.bf16.msra.mxu1 %v753_v17 }
  0x22   :  { %308 = vmatmul.mubr.bf16.vlgmr.msra.gmra.mrb[0].mxu0 %v754_v18  ;;  %340 = vmatmul.mubr.bf16.vlgmr.msra.gmra.mrb[0].mxu1 %v757_v19 }
  0x23   :  { %315 = vmatprep.mubr.bf16.mxu0 %v760_v20  ;;  %347 = vmatprep.mubr.bf16.mxu1 %v762_v21 }
  0x2a   :  { %316 = vmatmul.mubr.bf16.gmra.mrb[4].mxu0 %v764_v22  ;;  %348 = vmatmul.mubr.bf16.gmra.mrb[4].mxu1 %v765_v23 }
  0x2b   :  { %323 = vmatprep.mubr.bf16.mxu0 %v766_v24  ;;  %355 = vmatprep.mubr.bf16.mxu1 %v768_v25 }
  0x32   :  { %324 = vmatmul.mubr.bf16.gmra.mrb[8].mxu0 %v770_v26  ;;  %356 = vmatmul.mubr.bf16.gmra.mrb[8].mxu1 %v771_v27 }
  0x33   :  { %331 = vmatprep.mubr.bf16.mxu0 %v772_v28  ;;  %363 = vmatprep.mubr.bf16.mxu1 %v774_v29 }
  0x3a   :  { %332 = vmatmul.mubr.bf16.gmra.mrb[12].mxu0 %v776_v30  ;;  %364 = vmatmul.mubr.bf16.gmra.mrb[12].mxu1 %v777_v31 }
  0xf5   :  { %v674_v32 = vpop.f32.mrb[0].mxu0  ;;  %v698_v33 = vpop.f32.mrb[0].mxu1 }
  0xf6   :  { %v675_v34 = vpop.f32.mrb[1].mxu0  ;;  %v699_v36 = vpop.f32.mrb[1].mxu1 }
  0xf7   :  { %v676_v37 = vadd.f32 %v675_v34, %v674_v32  ;;  %v700_v38 = vadd.f32 %v699_v36, %v698_v33  ;;  %v677_v39 = vpop.f32.mrb[2].mxu0  ;;  %v701_v40 = vpop.f32.mrb[2].mxu1 }
  0xf8   :  { %v678_v41 = vpop.f32.mrb[3].mxu0  ;;  %v702_v42 = vpop.f32.mrb[3].mxu1 }
  0xf9   :  { %v430_v43 = vadd.f32 %v676_v37, %v897_v35  ;;  %v438_v44 = vadd.f32 %v700_v38, %v897_v35  ;;  %v679_v45 = vadd.f32 %v678_v41, %v677_v39  ;;  %v703_v46 = vadd.f32 %v702_v42, %v701_v40 }
  0xfb   :  { %v431_v47 = vadd.f32 %v679_v45, %v897_v35  ;;  %v439_v48 = vadd.f32 %v703_v46, %v897_v35  ;;  %v446_v49 = vmax.f32 %v430_v43, 0.0  ;;  %v454_v50 = vmax.f32 %v438_v44, 0.0 }
  0xfd   :  { %v447_v51 = vmax.f32 %v431_v47, 0.0  ;;  %v455_v52 = vmax.f32 %v439_v48, 0.0  ;;  %v680_v53 = vpop.f32.mrb[4].mxu0  ;;  %v704_v54 = vpop.f32.mrb[4].mxu1 }
  0xfe   :  { %v681_v55 = vpop.f32.mrb[5].mxu0  ;;  %v705_v56 = vpop.f32.mrb[5].mxu1 }
  0xff   :  { %v614_v57 = vpack.c.bf16 %v447_v51, %v446_v49  ;;  %v634_v58 = vpack.c.bf16 %v455_v52, %v454_v50  ;;  %v682_v59 = vadd.f32 %v681_v55, %v680_v53  ;;  %v706_v60 = vadd.f32 %v705_v56, %v704_v54  ;;  %v683_v61 = vpop.f32.mrb[6].mxu0  ;;  %v707_v62 = vpop.f32.mrb[6].mxu1 }
 0x100   :  { %v684_v63 = vpop.f32.mrb[7].mxu0  ;;  %v708_v0 = vpop.f32.mrb[7].mxu1 }
 0x101   :  { %615 = vst [vmem:[%s942_s3] sm:$0xff] %v614_v57   ;;  %654 = vst [vmem:[%s942_s3 + $0x20] sm:$0xff] %v634_v58   ;;  %v432_v1 = vadd.f32 %v682_v59, %v897_v35  ;;  %v440_v2 = vadd.f32 %v706_v60, %v897_v35  ;;  %v685_v3 = vadd.f32 %v684_v63, %v683_v61 }
 0x102   :  { %v709_v4 = vadd.f32 %v708_v0, %v707_v62 }
 0x103   :  { %v433_v5 = vadd.f32 %v685_v3, %v897_v35  ;;  %v448_v7 = vmax.f32 %v432_v1, 0.0  ;;  %v456_v8 = vmax.f32 %v440_v2, 0.0 }
 0x104   :  { %v441_v6 = vadd.f32 %v709_v4, %v897_v35 }
 0x105   :  { %v449_v9 = vmax.f32 %v433_v5, 0.0  ;;  %v686_v11 = vpop.f32.mrb[8].mxu0  ;;  %v710_v12 = vpop.f32.mrb[8].mxu1 }
 0x106   :  { %v457_v10 = vmax.f32 %v441_v6, 0.0  ;;  %v687_v13 = vpop.f32.mrb[9].mxu0  ;;  %v711_v14 = vpop.f32.mrb[9].mxu1 }
 0x107   :  { %v619_v15 = vpack.c.bf16 %v449_v9, %v448_v7  ;;  %v688_v17 = vadd.f32 %v687_v13, %v686_v11  ;;  %v712_v18 = vadd.f32 %v711_v14, %v710_v12  ;;  %v689_v19 = vpop.f32.mrb[10].mxu0  ;;  %v713_v20 = vpop.f32.mrb[10].mxu1 }
 0x108   :  { %v639_v16 = vpack.c.bf16 %v457_v10, %v456_v8  ;;  %v690_v21 = vpop.f32.mrb[11].mxu0  ;;  %v714_v22 = vpop.f32.mrb[11].mxu1 }
 0x109   :  { %651 = vst [vmem:[%s942_s3 + $0x8] sm:$0xff] %v619_v15   ;;  %v434_v23 = vadd.f32 %v688_v17, %v897_v35  ;;  %v442_v24 = vadd.f32 %v712_v18, %v897_v35  ;;  %v691_v25 = vadd.f32 %v690_v21, %v689_v19  ;;  %v715_v26 = vadd.f32 %v714_v22, %v713_v20 }
 0x10a   :  { %655 = vst [vmem:[%s942_s3 + $0x28] sm:$0xff] %v639_v16  }
 0x10b   :  { %v435_v27 = vadd.f32 %v691_v25, %v897_v35  ;;  %v443_v28 = vadd.f32 %v715_v26, %v897_v35  ;;  %v450_v29 = vmax.f32 %v434_v23, 0.0  ;;  %v458_v30 = vmax.f32 %v442_v24, 0.0 }
 0x10d   :  { %v451_v31 = vmax.f32 %v435_v27, 0.0  ;;  %v459_v32 = vmax.f32 %v443_v28, 0.0  ;;  %v692_v33 = vpop.f32.mrb[12].mxu0  ;;  %v716_v34 = vpop.f32.mrb[12].mxu1 }
 0x10e   :  { %v693_v36 = vpop.f32.mrb[13].mxu0  ;;  %v717_v37 = vpop.f32.mrb[13].mxu1 }
 0x10f   :  { %v624_v38 = vpack.c.bf16 %v451_v31, %v450_v29  ;;  %v644_v39 = vpack.c.bf16 %v459_v32, %v458_v30  ;;  %v694_v40 = vadd.f32 %v693_v36, %v692_v33  ;;  %v718_v41 = vadd.f32 %v717_v37, %v716_v34  ;;  %v695_v42 = vpop.f32.mrb[14].mxu0  ;;  %v719_v43 = vpop.f32.mrb[14].mxu1 }
 0x110   :  { %v696_v44 = vpop.f32.mrb[15].mxu0  ;;  %v720_v45 = vpop.f32.mrb[15].mxu1 }
 0x111   :  { %652 = vst [vmem:[%s942_s3 + $0x10] sm:$0xff] %v624_v38   ;;  %656 = vst [vmem:[%s942_s3 + $0x30] sm:$0xff] %v644_v39   ;;  %v436_v46 = vadd.f32 %v694_v40, %v897_v35  ;;  %v444_v47 = vadd.f32 %v718_v41, %v897_v35  ;;  %v697_v48 = vadd.f32 %v696_v44, %v695_v42 }
 0x112   :  { %v721_v49 = vadd.f32 %v720_v45, %v719_v43 }
 0x113   :  { %v437_v50 = vadd.f32 %v697_v48, %v897_v35  ;;  %v452_v52 = vmax.f32 %v436_v46, 0.0  ;;  %v460_v53 = vmax.f32 %v444_v47, 0.0 }
 0x114   :  { %v445_v51 = vadd.f32 %v721_v49, %v897_v35 }
 0x115   :  { %v453_v54 = vmax.f32 %v437_v50, 0.0 }
 0x116   :  { %v461_v55 = vmax.f32 %v445_v51, 0.0 }
 0x117   :  { %v629_v56 = vpack.c.bf16 %v453_v54, %v452_v52 }
 0x118   :  { %v649_v57 = vpack.c.bf16 %v461_v55, %v460_v53 }
 0x119   :  { %653 = vst [vmem:[%s942_s3 + $0x18] sm:$0xff] %v629_v56  }
 0x11a   :  { %657 = vst [vmem:[%s942_s3 + $0x38] sm:$0xff] %v649_v57  }

// kernel: _encoder_cnn_forward.58
= control target key start
LH: loop header
LB: loop body
LE: loop exit
PB: predicated region body
PF: predicated region fallthrough
CT: control target
= control target key end

     0   :  { %s1144_s12 = smov 0   ;;  %s1146_s13 = smov 0   ;;  %s1264_s0 = inlined_call_operand.vmem [shape: bf16[32,1024], index: 0, kind: input, shape index: {}]   ;;  %s1265_s1 = inlined_call_operand.vmem [shape: bf16[1024,128], index: 1, kind: input, shape index: {}]   ;;  %s1266_s2 = inlined_call_operand.vmem [shape: f32[1,128], index: 2, kind: input, shape index: {}]   ;;  %s1267_s3 = inlined_call_operand.vmem [shape: bf16[32,128], index: 3, kind: output, shape index: {}]  }
   0x1   :  { %s1148_s14 = smov 0   ;;  %s1150_s15 = smov 0  }
   0x2   :  { %s1152_s16 = smov 0  }
   0x3 LB: > { %s25_s17 = sadd.s32 1, %s1117_s15  ;;  %p48_p1 = scmp.ne.s32.totalorder %s1109_s13, %s1105_s12  ;;  %s1121_s16 = sphi %s1152_s16, %s13_s16   ;;  %s1117_s15 = sphi %s1150_s15, %s1271_s15   ;;  %s1113_s14 = sphi %s1148_s14, %s1270_s14   ;;  %s1109_s13 = sphi %s1146_s13, %s1269_s13   ;;  %s1105_s12 = sphi %s1144_s12, %s1268_s12  }
   0x4   : > { %p26_p0 = scmp.ge.s32.totalorder %s25_s17, 2  ;;  %p49_p2 = scmp.eq.s32.totalorder %s1121_s16, 0 }
   0x5   : > { %s41_s19 = sadd.s32 1, %s1109_s13  ;;  %p867_p5 = scmp.ge.s32.totalorder %s1121_s16, 2 }
   0x6   : > { %s1273_s17 = smov (%p26_p0, %s25_s17), 0  ;;  %p50_p3 = por %p49_p2, %p48_p1 }
   0x7   : > { %s37_s18 = ssub.s32 %s1117_s15, %s1273_s17  ;;  %162 = sbr.rel (%p867_p5) target bundleno = 22 (0x16), region = 20 }
   0x8   : > { %p39_p4 = scmp.eq.s32.totalorder %s37_s18, 0 }
   0xa   : > { %s1179_s20 = scalar_select %p39_p4, %s1109_s13, %s41_s19  }
   0xe   : > { %165 = sbr.rel (!%p50_p3) target bundleno = 22 (0x16), region = 24  ;;  %s167_s21 = sand.u32 (%p50_p3), 1, %s1109_s13  }
   0xf   : > { %s926_s22 = sshll.u32 (%p50_p3), %s1117_s15, 4  ;;  %s868_s23 = sshll.u32 (%p50_p3), %s167_s21, 6 }
  0x10   : > { %s175_s26 = scalar_lea.vmem (%p50_p3), %s1264_s0, %s926_s22  ;;  %s169_s27 = scalar_lea.vmem (%p50_p3), [#allocation3], %s868_s23 }
  0x11   : > { %v188_v0 = vld [vmem:[%s175_s26] sm:$0xff] (%p50_p3)  ;;  %v190_v1 = vld [vmem:[%s175_s26 + $0x8] sm:$0xff] (%p50_p3) }
  0x12   : > { %v192_v2 = vld [vmem:[%s175_s26 + $0x20] sm:$0xff] (%p50_p3)  ;;  %189 = vst [vmem:[%s169_s27] sm:$0xff] (%p50_p3), %v188_v0  ;;  %191 = vst [vmem:[%s169_s27 + $0x8] sm:$0xff] (%p50_p3), %v190_v1  ;;  %v194_v3 = vld [vmem:[%s175_s26 + $0x28] sm:$0xff] (%p50_p3) }
  0x13   : > { %193 = vst [vmem:[%s169_s27 + $0x10] sm:$0xff] (%p50_p3), %v192_v2  ;;  %v196_v4 = vld [vmem:[%s175_s26 + $0x40] sm:$0xff] (%p50_p3)  ;;  %v198_v5 = vld [vmem:[%s175_s26 + $0x48] sm:$0xff] (%p50_p3)  ;;  %195 = vst [vmem:[%s169_s27 + $0x18] sm:$0xff] (%p50_p3), %v194_v3 }
  0x14   : > { %197 = vst [vmem:[%s169_s27 + $0x20] sm:$0xff] (%p50_p3), %v196_v4  ;;  %199 = vst [vmem:[%s169_s27 + $0x28] sm:$0xff] (%p50_p3), %v198_v5  ;;  %v200_v6 = vld [vmem:[%s175_s26 + $0x60] sm:$0xff] (%p50_p3)  ;;  %v202_v7 = vld [vmem:[%s175_s26 + $0x68] sm:$0xff] (%p50_p3) }
  0x15   : > { %201 = vst [vmem:[%s169_s27 + $0x30] sm:$0xff] %v200_v6  ;;  %203 = vst [vmem:[%s169_s27 + $0x38] sm:$0xff] %v202_v7 }
  0x16 PF: > { %p871_p6 = scmp.ge.s32.totalorder %s1121_s16, 1  ;;  %p220_p7 = scmp.lt.s32.totalorder %s1121_s16, 3 }
  0x18   : > { %p221_p8 = pnand %p871_p6, %p220_p7 }
  0x19   : > { %s227_s28 = sand.u32 (!%p221_p8), 1, %s1105_s12   ;;  %s873_s29 = sshll.u32 (!%p221_p8), %s1113_s14, 6 }
  0x1a   : > { %224 = sbr.rel (%p221_p8) target bundleno = 319 (0x13f), region = 51  ;;  %s872_s30 = sshll.u32 (!%p221_p8), %s227_s28, 6 }
  0x1b   : > { %p267_p9 = scmp.lt.s32.totalorder (!%p221_p8), %s873_s29, 127  ;;  %s1196_s8 = scalar_lea.vmem (!%p221_p8), [#allocation3], %s872_s30 }
  0x1c   : > { %p875_p10 = scmp.ne.s32.totalorder (!%p221_p8), %s1113_s14, 0 }
  0x21   : > { %s1275_s29 = smov (!%p267_p9, %s873_s29), 127  ;;  %291 = sbr.rel (%p875_p10) target bundleno = 40 (0x28), region = 59 }
  0x22   : > { %s874_s4 = sshll.u32 %s1275_s29, 2  ;;  %v1123_v8 = vmov (!%p875_p10), 0.0  }
  0x23   : > { %s1194_s7 = scalar_lea.vmem %s1265_s1, %s874_s4  ;;  %292 = vst [vmem:[#allocation2] sm:$0xff] (!%p875_p10), %v1123_v8  ;;  %293 = vst [vmem:[#allocation2 + $0x8] sm:$0xff] (!%p875_p10), %v1123_v8 }
  0x24   : > { %294 = vst [vmem:[#allocation2 + $0x10] sm:$0xff] (!%p875_p10), %v1123_v8  ;;  %295 = vst [vmem:[#allocation2 + $0x18] sm:$0xff] (!%p875_p10), %v1123_v8 }
  0x28 PF: > { %v1039_v9 = vld [vmem:[%s1194_s7 + $0x40] sm:$0xff]   ;;  %v1043_v13 = vld [vmem:[%s1194_s7 + $0x48] sm:$0xff]   ;;  %v1047_v17 = vld [vmem:[%s1194_s7 + $0x50] sm:$0xff]   ;;  %p916_p11 = scmp.ne.s32.totalorder %s1113_s14, 1 }
  0x29   : > { %v1040_v10 = vld [vmem:[%s1194_s7 + $0xc0] sm:$0xff]   ;;  %942 = vmatprep.subr.bf16.mxu0 %v1039_v9  ;;  %v1044_v14 = vld [vmem:[%s1194_s7 + $0xc8] sm:$0xff]   ;;  %v1048_v18 = vld [vmem:[%s1194_s7 + $0xd0] sm:$0xff]  }
  0x2a   : > { %v1041_v11 = vld [vmem:[%s1194_s7] sm:$0xff]   ;;  %970 = vmatprep.subr.bf16.mxu1 %v1040_v10  ;;  %v1045_v15 = vld [vmem:[%s1194_s7 + $0x8] sm:$0xff]   ;;  %v1049_v19 = vld [vmem:[%s1194_s7 + $0x10] sm:$0xff]  }
  0x2b   : > { %v1042_v12 = vld [vmem:[%s1194_s7 + $0x80] sm:$0xff]   ;;  %943 = vmatpush3.bf16.msra.mxu0 %v1041_v11  ;;  %v1046_v16 = vld [vmem:[%s1194_s7 + $0x88] sm:$0xff]   ;;  %v1050_v20 = vld [vmem:[%s1194_s7 + $0x90] sm:$0xff]  }
  0x2c   : > { %971 = vmatpush3.bf16.msra.mxu1 %v1042_v12  ;;  %944 = vmatprep.subr.bf16.mxu0 %v1043_v13  ;;  %v1051_v21 = vld [vmem:[%s1194_s7 + $0x58] sm:$0xff]   ;;  %v1055_v25 = vld [vmem:[%s1194_s7 + $0x60] sm:$0xff]   ;;  %v1059_v29 = vld [vmem:[%s1194_s7 + $0x68] sm:$0xff]  }
  0x2d   : > { %972 = vmatprep.subr.bf16.mxu1 %v1044_v14  ;;  %v1052_v22 = vld [vmem:[%s1194_s7 + $0xd8] sm:$0xff]   ;;  %v1056_v26 = vld [vmem:[%s1194_s7 + $0xe0] sm:$0xff]   ;;  %v1060_v30 = vld [vmem:[%s1194_s7 + $0xe8] sm:$0xff]  }
  0x2e   : > { %v1053_v23 = vld [vmem:[%s1194_s7 + $0x18] sm:$0xff]   ;;  %v1057_v27 = vld [vmem:[%s1194_s7 + $0x20] sm:$0xff]   ;;  %v1061_v31 = vld [vmem:[%s1194_s7 + $0x28] sm:$0xff]  }
  0x2f   : > { %945 = vmatpush3.bf16.msra.mxu0 %v1045_v15  ;;  %v1054_v24 = vld [vmem:[%s1194_s7 + $0x98] sm:$0xff]   ;;  %v1058_v28 = vld [vmem:[%s1194_s7 + $0xa0] sm:$0xff]   ;;  %v1062_v32 = vld [vmem:[%s1194_s7 + $0xa8] sm:$0xff]  }
  0x30   : > { %973 = vmatpush3.bf16.msra.mxu1 %v1046_v16  ;;  %946 = vmatprep.subr.bf16.mxu0 %v1047_v17  ;;  %v1063_v33 = vld [vmem:[%s1194_s7 + $0x70] sm:$0xff]   ;;  %v1067_v37 = vld [vmem:[%s1194_s7 + $0x78] sm:$0xff]   ;;  %v296_v58 = vld [vmem:[#allocation2] sm:$0xff] }
  0x31   : > { %974 = vmatprep.subr.bf16.mxu1 %v1048_v18  ;;  %v1064_v34 = vld [vmem:[%s1194_s7 + $0xf0] sm:$0xff]   ;;  %v1068_v38 = vld [vmem:[%s1194_s7 + $0xf8] sm:$0xff]   ;;  %v297_v63 = vld [vmem:[#allocation2 + $0x8] sm:$0xff] }
  0x32   : > { %v1065_v35 = vld [vmem:[%s1194_s7 + $0x30] sm:$0xff]   ;;  %v1069_v39 = vld [vmem:[%s1194_s7 + $0x38] sm:$0xff]  }
  0x33   : > { %947 = vmatpush3.bf16.msra.mxu0 %v1049_v19  ;;  %v1066_v36 = vld [vmem:[%s1194_s7 + $0xb0] sm:$0xff]   ;;  %v1070_v40 = vld [vmem:[%s1194_s7 + $0xb8] sm:$0xff]  }
  0x34   : > { %975 = vmatpush3.bf16.msra.mxu1 %v1050_v20  ;;  %948 = vmatprep.subr.bf16.mxu0 %v1051_v21  ;;  %v1071_v41 = vld [vmem:[%s1196_s8] ss:$16 sps:$4 sm:$0xff]   ;;  %v1073_v42 = vld [vmem:[%s1196_s8 + $0x4] ss:$16 sps:$4 sm:$0xff]   ;;  %v1074_v43 = vld [vmem:[%s1196_s8 + $0x8] ss:$16 sps:$4 sm:$0xff]  }
  0x35   : > { %976 = vmatprep.subr.bf16.mxu1 %v1052_v22  ;;  %v1076_v44 = vld [vmem:[%s1196_s8 + $0xc] ss:$16 sps:$4 sm:$0xff]   ;;  %636 = vmatprep.mubr.bf16.mxu0 %v1073_v42  ;;  %v1077_v45 = vld [vmem:[%s1196_s8 + $0x24] ss:$16 sps:$4 sm:$0xff]   ;;  %v1081_v47 = vld [vmem:[%s1196_s8 + $0x20] ss:$16 sps:$4 sm:$0xff]  }
  0x36   : > { %685 = vmatprep.mubr.bf16.mxu1 %v1076_v44  ;;  %v1079_v46 = vld [vmem:[%s1196_s8 + $0x2c] ss:$16 sps:$4 sm:$0xff]   ;;  %v1082_v48 = vld [vmem:[%s1196_s8 + $0x28] ss:$16 sps:$4 sm:$0xff]   ;;  %v298_v12 = vld [vmem:[#allocation2 + $0x10] sm:$0xff] }
  0x37   : > { %949 = vmatpush3.bf16.msra.mxu0 %v1053_v23  ;;  %v299_v17 = vld [vmem:[#allocation2 + $0x18] sm:$0xff]  ;;  %v917_v23 = vld [vmem:[%s1266_s2] ss:$0 sm:$0xff] (!%p916_p11) }
  0x38   : > { %977 = vmatpush3.bf16.msra.mxu1 %v1054_v24  ;;  %950 = vmatprep.subr.bf16.mxu0 %v1055_v25 }
  0x39   : > { %978 = vmatprep.subr.bf16.mxu1 %v1056_v26 }
  0x3b   : > { %951 = vmatpush3.bf16.msra.mxu0 %v1057_v27 }
  0x3c   : > { %979 = vmatpush3.bf16.msra.mxu1 %v1058_v28  ;;  %952 = vmatprep.subr.bf16.mxu0 %v1059_v29 }
  0x3d   : > { %980 = vmatprep.subr.bf16.mxu1 %v1060_v30 }
  0x3f   : > { %953 = vmatpush3.bf16.msra.mxu0 %v1061_v31 }
  0x40   : > { %981 = vmatpush3.bf16.msra.mxu1 %v1062_v32  ;;  %954 = vmatprep.subr.bf16.mxu0 %v1063_v33 }
  0x41   : > { %982 = vmatprep.subr.bf16.mxu1 %v1064_v34 }
  0x43   : > { %955 = vmatpush3.bf16.msra.mxu0 %v1065_v35 }
  0x44   : > { %983 = vmatpush3.bf16.msra.mxu1 %v1066_v36  ;;  %956 = vmatprep.subr.bf16.mxu0 %v1067_v37 }
  0x45   : > { %984 = vmatprep.subr.bf16.mxu1 %v1068_v38 }
  0x47   : > { %957 = vmatpush3.bf16.msra.mxu0 %v1069_v39 }
  0x48   : > { %985 = vmatpush3.bf16.msra.mxu1 %v1070_v40 }
  0x4a   : > { %637 = vmatmul.mubr.bf16.vlgmr.msra.gmra.mrb[0].mxu0 %v1071_v41 }
  0x4b   : > { %686 = vmatmul.mubr.bf16.vlgmr.msra.gmra.mrb[0].mxu1 %v1074_v43  ;;  %644 = vmatprep.mubr.bf16.mxu0 %v1077_v45 }
  0x4c   : > { %693 = vmatprep.mubr.bf16.mxu1 %v1079_v46 }
  0x52   : > { %645 = vmatmul.mubr.bf16.gmra.mrb[4].mxu0 %v1081_v47 }
  0x53   : > { %694 = vmatmul.mubr.bf16.gmra.mrb[4].mxu1 %v1082_v48 }
 0x11d   : > { %v958_v49 = vpop.f32.mrb[0].mxu0 }
 0x11e   : > { %v986_v50 = vpop.f32.mrb[0].mxu1  ;;  %v959_v51 = vpop.f32.mrb[1].mxu0 }
 0x11f   : > { %v960_v52 = vadd.f32 %v959_v51, %v958_v49  ;;  %v987_v53 = vpop.f32.mrb[1].mxu1  ;;  %v961_v54 = vpop.f32.mrb[2].mxu0 }
 0x120   : > { %v988_v55 = vadd.f32 %v987_v53, %v986_v50  ;;  %v989_v56 = vpop.f32.mrb[2].mxu1  ;;  %v962_v57 = vpop.f32.mrb[3].mxu0 }
 0x121   : > { %v963_v59 = vadd.f32 %v962_v57, %v961_v54  ;;  %v990_v60 = vpop.f32.mrb[3].mxu1 }
 0x122   : > { %v688_v61 = vadd.f32 %v988_v55, %v960_v52  ;;  %v991_v62 = vadd.f32 %v990_v60, %v989_v56 }
 0x124   : > { %v702_v0 = vadd.f32 %v688_v61, %v296_v58  ;;  %v691_v1 = vadd.f32 %v991_v62, %v963_v59 }
 0x125   : > { %v964_v2 = vpop.f32.mrb[4].mxu0 }
 0x126   : > { %706 = vst [vmem:[#allocation2] sm:$0xff] %v702_v0  ;;  %v703_v3 = vadd.f32 %v691_v1, %v297_v63  ;;  %v992_v4 = vpop.f32.mrb[4].mxu1  ;;  %v965_v5 = vpop.f32.mrb[5].mxu0 }
 0x127   : > { %v966_v6 = vadd.f32 %v965_v5, %v964_v2  ;;  %v993_v7 = vpop.f32.mrb[5].mxu1  ;;  %v967_v8 = vpop.f32.mrb[6].mxu0 }
 0x128   : > { %707 = vst [vmem:[#allocation2 + $0x8] sm:$0xff] %v703_v3  ;;  %v994_v9 = vadd.f32 %v993_v7, %v992_v4  ;;  %v995_v10 = vpop.f32.mrb[6].mxu1  ;;  %v968_v11 = vpop.f32.mrb[7].mxu0 }
 0x129   : > { %v969_v13 = vadd.f32 %v968_v11, %v967_v8  ;;  %v996_v14 = vpop.f32.mrb[7].mxu1 }
 0x12a   : > { %v696_v15 = vadd.f32 %v994_v9, %v966_v6  ;;  %v997_v16 = vadd.f32 %v996_v14, %v995_v10  ;;  %713 = sbr.rel (%p916_p11) target bundleno = 319 (0x13f), region = 63 }
 0x12c   : > { %v704_v18 = vadd.f32 %v696_v15, %v298_v12  ;;  %v699_v19 = vadd.f32 %v997_v16, %v969_v13 }
 0x12d   : > { %v714_v21 = vld [vmem:[#allocation2] sm:$0xff] (!%p916_p11) }
 0x12e   : > { %708 = vst [vmem:[#allocation2 + $0x10] sm:$0xff] %v704_v18  ;;  %v705_v20 = vadd.f32 %v699_v19, %v299_v17  ;;  %v725_v24 = vadd.f32 (!%p916_p11), %v917_v23, %v714_v21 }
 0x12f   : > { %v715_v22 = vld [vmem:[#allocation2 + $0x8] sm:$0xff] (!%p916_p11) }
 0x130   : > { %709 = vst [vmem:[#allocation2 + $0x18] sm:$0xff] %v705_v20  ;;  %v726_v25 = vadd.f32 (!%p916_p11), %v917_v23, %v715_v22  ;;  %v729_v30 = vmax.f32 (!%p916_p11), %v725_v24, 0.0 }
 0x132   : > { %v730_v31 = vmax.f32 %v726_v25, 0.0 }
 0x134   : > { %v934_v34 = vpack.c.bf16 %v730_v31, %v729_v30 }
 0x135   : > { %v716_v26 = vld [vmem:[#allocation2 + $0x10] sm:$0xff] }
 0x136   : > { %v727_v28 = vadd.f32 %v917_v23, %v716_v26  ;;  %935 = vst [vmem:[%s1267_s3] sm:$0xff] %v934_v34  }
 0x137   : > { %v717_v27 = vld [vmem:[#allocation2 + $0x18] sm:$0xff] }
 0x138   : > { %v728_v29 = vadd.f32 %v917_v23, %v717_v27  ;;  %v731_v32 = vmax.f32 %v727_v28, 0.0 }
 0x13a   : > { %v732_v33 = vmax.f32 %v728_v29, 0.0 }
 0x13c   : > { %v939_v35 = vpack.c.bf16 %v732_v33, %v731_v32 }
 0x13e   : > { %941 = vst [vmem:[%s1267_s3 + $0x8] sm:$0xff] %v939_v35  }
 0x13f PF: > { %s13_s16 = sadd.s32 1, %s1121_s16   ;;  %s1268_s12 = smov %s1109_s13 }
 0x140   : > { %p10_p12 = scmp.ge.s32.totalorder %s13_s16, 4   ;;  %s1269_s13 = smov %s1179_s20 }
 0x141   : > { %s1270_s14 = smov %s1117_s15  ;;  %s1271_s15 = smov %s1273_s17 }
 0x142   :  { %12 = sbr.rel (!%p10_p12) target bundleno = 3 (0x3), region = 104 }

// kernel: _encoder_cnn_forward.56
= control target key start
LH: loop header
LB: loop body
LE: loop exit
PB: predicated region body
PF: predicated region fallthrough
CT: control target
= control target key end

     0   :  { %v348_v1 = vmov 0   ;;  %v229_v19 = vlaneseq  ;;  %s438_s1 = inlined_call_operand.vmem [shape: bf16[128,256], index: 1, kind: input, shape index: {}]   ;;  %s439_s0 = inlined_call_operand.vmem [shape: bf16[32,128], index: 0, kind: input, shape index: {}]   ;;  %s440_s2 = inlined_call_operand.vmem [shape: f32[1,256], index: 2, kind: input, shape index: {}]   ;;  %s441_s3 = inlined_call_operand.vmem [shape: bf16[32,256], index: 3, kind: output, shape index: {}]  }
   0x1   :  { %v322_v0 = vld [vmem:[%s438_s1 + $0x4] ss:$8 sps:$4 sm:$0xff]   ;;  %179 = vmatprep.mubr.bf16.mxu0 %v348_v1  ;;  %189 = vmatprep.mubr.bf16.mxu1 %v348_v1  ;;  %v324_v2 = vld [vmem:[%s438_s1] ss:$8 sps:$4 sm:$0xff]   ;;  %v325_v3 = vld [vmem:[%s438_s1 + $0x14] ss:$8 sps:$4 sm:$0xff]  }
   0x2   :  { %147 = vmatprep.subr.bf16.mxu0 %v322_v0  ;;  %305 = vmatprep.subr.bf16.mxu1 %v322_v0  ;;  %v327_v4 = vld [vmem:[%s438_s1 + $0x10] ss:$8 sps:$4 sm:$0xff]   ;;  %v328_v5 = vld [vmem:[%s438_s1 + $0x24] ss:$8 sps:$4 sm:$0xff]   ;;  %v330_v6 = vld [vmem:[%s438_s1 + $0x20] ss:$8 sps:$4 sm:$0xff]  }
   0x3   :  { %148 = vmatpush1.bf16.msra.mxu0 %v324_v2  ;;  %313 = vmatpush1.bf16.msra.mxu1 %v324_v2  ;;  %v331_v7 = vld [vmem:[%s438_s1 + $0x34] ss:$8 sps:$4 sm:$0xff]   ;;  %v333_v8 = vld [vmem:[%s438_s1 + $0x30] ss:$8 sps:$4 sm:$0xff]   ;;  %v334_v9 = vld [vmem:[%s438_s1 + $0x44] ss:$8 sps:$4 sm:$0xff]  }
   0x4   :  { %149 = vmatprep.subr.bf16.mxu0 %v325_v3  ;;  %306 = vmatprep.subr.bf16.mxu1 %v325_v3  ;;  %v336_v10 = vld [vmem:[%s438_s1 + $0x40] ss:$8 sps:$4 sm:$0xff]   ;;  %v337_v11 = vld [vmem:[%s438_s1 + $0x54] ss:$8 sps:$4 sm:$0xff]   ;;  %v339_v12 = vld [vmem:[%s438_s1 + $0x50] ss:$8 sps:$4 sm:$0xff]  }
   0x5   :  { %v340_v13 = vld [vmem:[%s438_s1 + $0x64] ss:$8 sps:$4 sm:$0xff]   ;;  %v342_v14 = vld [vmem:[%s438_s1 + $0x60] ss:$8 sps:$4 sm:$0xff]   ;;  %v343_v15 = vld [vmem:[%s438_s1 + $0x74] ss:$8 sps:$4 sm:$0xff]  }
   0x6   :  { %v345_v16 = vld [vmem:[%s438_s1 + $0x70] ss:$8 sps:$4 sm:$0xff]   ;;  %v346_v17 = vld [vmem:[%s439_s0] sm:$0xff]   ;;  %v347_v18 = vld [vmem:[%s439_s0 + $0x8] sm:$0xff]   ;;  %v230_v20 = vshrl.u32 %v229_v19, 7 }
   0x7   :  { %150 = vmatpush1.bf16.msra.mxu0 %v327_v4  ;;  %314 = vmatpush1.bf16.msra.mxu1 %v327_v4  ;;  %v227_v22 = vld [vmem:[%s440_s2] sm:$0x3] }
   0x8   :  { %151 = vmatprep.subr.bf16.mxu0 %v328_v5  ;;  %307 = vmatprep.subr.bf16.mxu1 %v328_v5  ;;  %v231_v21 = vsub.s32 0, %v230_v20  ;;  %v235_v23 = vsub.s32 1, %v230_v20 }
   0xa   :  { %v232_v24 = vrot.slane %v227_v22, %v231_v21  ;;  %v236_v25 = vrot.slane %v227_v22, %v235_v23 }
   0xb   :  { %152 = vmatpush1.bf16.msra.mxu0 %v330_v6  ;;  %315 = vmatpush1.bf16.msra.mxu1 %v330_v6 }
   0xc   :  { %153 = vmatprep.subr.bf16.mxu0 %v331_v7  ;;  %308 = vmatprep.subr.bf16.mxu1 %v331_v7 }
   0xf   :  { %154 = vmatpush1.bf16.msra.mxu0 %v333_v8  ;;  %316 = vmatpush1.bf16.msra.mxu1 %v333_v8 }
  0x10   :  { %155 = vmatprep.subr.bf16.mxu0 %v334_v9  ;;  %309 = vmatprep.subr.bf16.mxu1 %v334_v9 }
  0x13   :  { %156 = vmatpush1.bf16.msra.mxu0 %v336_v10  ;;  %317 = vmatpush1.bf16.msra.mxu1 %v336_v10 }
  0x14   :  { %157 = vmatprep.subr.bf16.mxu0 %v337_v11  ;;  %310 = vmatprep.subr.bf16.mxu1 %v337_v11 }
  0x17   :  { %158 = vmatpush1.bf16.msra.mxu0 %v339_v12  ;;  %318 = vmatpush1.bf16.msra.mxu1 %v339_v12 }
  0x18   :  { %159 = vmatprep.subr.bf16.mxu0 %v340_v13  ;;  %311 = vmatprep.subr.bf16.mxu1 %v340_v13 }
  0x1b   :  { %160 = vmatpush1.bf16.msra.mxu0 %v342_v14  ;;  %319 = vmatpush1.bf16.msra.mxu1 %v342_v14 }
  0x1c   :  { %161 = vmatprep.subr.bf16.mxu0 %v343_v15  ;;  %312 = vmatprep.subr.bf16.mxu1 %v343_v15 }
  0x1f   :  { %162 = vmatpush1.bf16.msra.mxu0 %v345_v16  ;;  %320 = vmatpush1.bf16.msra.mxu1 %v345_v16 }
  0x22   :  { %180 = vmatmul.mubr.bf16.vlgmr.msra.gmra.mrb[0].mxu0 %v346_v17  ;;  %190 = vmatmul.mubr.bf16.vlgmr.msra.gmra.mrb[0].mxu1 %v347_v18 }
  0xf5   :  { %v181_v26 = vpop.f32.mrb[0].mxu0  ;;  %v191_v27 = vpop.f32.mrb[0].mxu1 }
  0xf6   :  { %v239_v28 = vadd.f32 %v232_v24, %v181_v26  ;;  %v243_v29 = vadd.f32 %v232_v24, %v191_v27  ;;  %v183_v30 = vpop.f32.mrb[1].mxu0  ;;  %v193_v31 = vpop.f32.mrb[1].mxu1 }
  0xf7   :  { %v240_v32 = vadd.f32 %v236_v25, %v183_v30  ;;  %v244_v33 = vadd.f32 %v236_v25, %v193_v31  ;;  %v185_v34 = vpop.f32.mrb[2].mxu0  ;;  %v195_v35 = vpop.f32.mrb[2].mxu1 }
  0xf8   :  { %v241_v36 = vadd.f32 %v232_v24, %v185_v34  ;;  %v245_v37 = vadd.f32 %v232_v24, %v195_v35  ;;  %v187_v38 = vpop.f32.mrb[3].mxu0  ;;  %v197_v39 = vpop.f32.mrb[3].mxu1 }
  0xf9   :  { %v301_v40 = vpack.c.bf16 %v240_v32, %v239_v28  ;;  %v303_v41 = vpack.c.bf16 %v244_v33, %v243_v29  ;;  %v242_v42 = vadd.f32 %v236_v25, %v187_v38  ;;  %v246_v43 = vadd.f32 %v236_v25, %v197_v39 }
  0xfb   :  { %271 = vst [vmem:[%s441_s3] sm:$0xff] %v301_v40  ;;  %273 = vst [vmem:[%s441_s3 + $0x10] sm:$0xff] %v303_v41  ;;  %v302_v44 = vpack.c.bf16 %v242_v42, %v241_v36  ;;  %v304_v45 = vpack.c.bf16 %v246_v43, %v245_v37 }
  0xfd   :  { %272 = vst [vmem:[%s441_s3 + $0x8] sm:$0xff] %v302_v44  ;;  %274 = vst [vmem:[%s441_s3 + $0x18] sm:$0xff] %v304_v45 }

// kernel: _encoder_cnn_forward.59
= control target key start
LH: loop header
LB: loop body
LE: loop exit
PB: predicated region body
PF: predicated region fallthrough
CT: control target
= control target key end

     0   :  { %v379_v1 = vmov 0   ;;  %v232_v19 = vlaneseq  ;;  %s486_s1 = inlined_call_operand.vmem [shape: bf16[128,256], index: 1, kind: input, shape index: {}]   ;;  %s487_s0 = inlined_call_operand.vmem [shape: bf16[32,128], index: 0, kind: input, shape index: {}]   ;;  %s488_s2 = inlined_call_operand.vmem [shape: f32[1,256], index: 2, kind: input, shape index: {}]   ;;  %s489_s3 = inlined_call_operand.vmem [shape: bf16[32,256], index: 3, kind: input, shape index: {}]   ;;  %s490_s4 = inlined_call_operand.vmem [shape: bf16[32,256], index: 4, kind: output, shape index: {}]  }
   0x1   :  { %v353_v0 = vld [vmem:[%s486_s1 + $0x4] ss:$8 sps:$4 sm:$0xff]   ;;  %182 = vmatprep.mubr.bf16.mxu0 %v379_v1  ;;  %192 = vmatprep.mubr.bf16.mxu1 %v379_v1  ;;  %v355_v2 = vld [vmem:[%s486_s1] ss:$8 sps:$4 sm:$0xff]   ;;  %v356_v3 = vld [vmem:[%s486_s1 + $0x14] ss:$8 sps:$4 sm:$0xff]  }
   0x2   :  { %150 = vmatprep.subr.bf16.mxu0 %v353_v0  ;;  %336 = vmatprep.subr.bf16.mxu1 %v353_v0  ;;  %v358_v4 = vld [vmem:[%s486_s1 + $0x10] ss:$8 sps:$4 sm:$0xff]   ;;  %v359_v5 = vld [vmem:[%s486_s1 + $0x24] ss:$8 sps:$4 sm:$0xff]   ;;  %v361_v6 = vld [vmem:[%s486_s1 + $0x20] ss:$8 sps:$4 sm:$0xff]  }
   0x3   :  { %151 = vmatpush1.bf16.msra.mxu0 %v355_v2  ;;  %344 = vmatpush1.bf16.msra.mxu1 %v355_v2  ;;  %v362_v7 = vld [vmem:[%s486_s1 + $0x34] ss:$8 sps:$4 sm:$0xff]   ;;  %v364_v8 = vld [vmem:[%s486_s1 + $0x30] ss:$8 sps:$4 sm:$0xff]   ;;  %v365_v9 = vld [vmem:[%s486_s1 + $0x44] ss:$8 sps:$4 sm:$0xff]  }
   0x4   :  { %152 = vmatprep.subr.bf16.mxu0 %v356_v3  ;;  %337 = vmatprep.subr.bf16.mxu1 %v356_v3  ;;  %v367_v10 = vld [vmem:[%s486_s1 + $0x40] ss:$8 sps:$4 sm:$0xff]   ;;  %v368_v11 = vld [vmem:[%s486_s1 + $0x54] ss:$8 sps:$4 sm:$0xff]   ;;  %v370_v12 = vld [vmem:[%s486_s1 + $0x50] ss:$8 sps:$4 sm:$0xff]  }
   0x5   :  { %v371_v13 = vld [vmem:[%s486_s1 + $0x64] ss:$8 sps:$4 sm:$0xff]   ;;  %v373_v14 = vld [vmem:[%s486_s1 + $0x60] ss:$8 sps:$4 sm:$0xff]   ;;  %v374_v15 = vld [vmem:[%s486_s1 + $0x74] ss:$8 sps:$4 sm:$0xff]  }
   0x6   :  { %v376_v16 = vld [vmem:[%s486_s1 + $0x70] ss:$8 sps:$4 sm:$0xff]   ;;  %v377_v17 = vld [vmem:[%s487_s0] sm:$0xff]   ;;  %v378_v18 = vld [vmem:[%s487_s0 + $0x8] sm:$0xff]   ;;  %v233_v20 = vshrl.u32 %v232_v19, 7 }
   0x7   :  { %153 = vmatpush1.bf16.msra.mxu0 %v358_v4  ;;  %345 = vmatpush1.bf16.msra.mxu1 %v358_v4  ;;  %v230_v22 = vld [vmem:[%s488_s2] sm:$0x3]  ;;  %v252_v25 = vld [vmem:[%s489_s3 + $0x10] sm:$0xff]  ;;  %v251_v28 = vld [vmem:[%s489_s3 + $0x8] sm:$0xff] }
   0x8   :  { %154 = vmatprep.subr.bf16.mxu0 %v359_v5  ;;  %338 = vmatprep.subr.bf16.mxu1 %v359_v5  ;;  %v234_v21 = vsub.s32 0, %v233_v20  ;;  %v238_v23 = vsub.s32 1, %v233_v20  ;;  %v250_v24 = vld [vmem:[%s489_s3] sm:$0xff]  ;;  %v253_v29 = vld [vmem:[%s489_s3 + $0x18] sm:$0xff]  ;;  %v258_v31 = vunpack.c.l.bf16 %v252_v25  ;;  %v259_v35 = vunpack.c.h.bf16 %v252_v25 }
   0x9   :  { %v254_v30 = vunpack.c.l.bf16 %v250_v24  ;;  %v255_v34 = vunpack.c.h.bf16 %v250_v24  ;;  %v256_v40 = vunpack.c.l.bf16 %v251_v28  ;;  %v260_v41 = vunpack.c.l.bf16 %v253_v29 }
   0xa   :  { %v235_v26 = vrot.slane %v230_v22, %v234_v21  ;;  %v239_v27 = vrot.slane %v230_v22, %v238_v23  ;;  %v257_v46 = vunpack.c.h.bf16 %v251_v28  ;;  %v261_v47 = vunpack.c.h.bf16 %v253_v29 }
   0xb   :  { %155 = vmatpush1.bf16.msra.mxu0 %v361_v6  ;;  %346 = vmatpush1.bf16.msra.mxu1 %v361_v6 }
   0xc   :  { %156 = vmatprep.subr.bf16.mxu0 %v362_v7  ;;  %339 = vmatprep.subr.bf16.mxu1 %v362_v7 }
   0xf   :  { %157 = vmatpush1.bf16.msra.mxu0 %v364_v8  ;;  %347 = vmatpush1.bf16.msra.mxu1 %v364_v8 }
  0x10   :  { %158 = vmatprep.subr.bf16.mxu0 %v365_v9  ;;  %340 = vmatprep.subr.bf16.mxu1 %v365_v9 }
  0x13   :  { %159 = vmatpush1.bf16.msra.mxu0 %v367_v10  ;;  %348 = vmatpush1.bf16.msra.mxu1 %v367_v10 }
  0x14   :  { %160 = vmatprep.subr.bf16.mxu0 %v368_v11  ;;  %341 = vmatprep.subr.bf16.mxu1 %v368_v11 }
  0x17   :  { %161 = vmatpush1.bf16.msra.mxu0 %v370_v12  ;;  %349 = vmatpush1.bf16.msra.mxu1 %v370_v12 }
  0x18   :  { %162 = vmatprep.subr.bf16.mxu0 %v371_v13  ;;  %342 = vmatprep.subr.bf16.mxu1 %v371_v13 }
  0x1b   :  { %163 = vmatpush1.bf16.msra.mxu0 %v373_v14  ;;  %350 = vmatpush1.bf16.msra.mxu1 %v373_v14 }
  0x1c   :  { %164 = vmatprep.subr.bf16.mxu0 %v374_v15  ;;  %343 = vmatprep.subr.bf16.mxu1 %v374_v15 }
  0x1f   :  { %165 = vmatpush1.bf16.msra.mxu0 %v376_v16  ;;  %351 = vmatpush1.bf16.msra.mxu1 %v376_v16 }
  0x22   :  { %183 = vmatmul.mubr.bf16.vlgmr.msra.gmra.mrb[0].mxu0 %v377_v17  ;;  %193 = vmatmul.mubr.bf16.vlgmr.msra.gmra.mrb[0].mxu1 %v378_v18 }
  0xf5   :  { %v184_v32 = vpop.f32.mrb[0].mxu0  ;;  %v194_v33 = vpop.f32.mrb[0].mxu1 }
  0xf6   :  { %v242_v36 = vadd.f32 %v235_v26, %v184_v32  ;;  %v246_v37 = vadd.f32 %v235_v26, %v194_v33  ;;  %v186_v38 = vpop.f32.mrb[1].mxu0  ;;  %v196_v39 = vpop.f32.mrb[1].mxu1 }
  0xf7   :  { %v243_v42 = vadd.f32 %v239_v27, %v186_v38  ;;  %v247_v43 = vadd.f32 %v239_v27, %v196_v39  ;;  %v188_v44 = vpop.f32.mrb[2].mxu0  ;;  %v198_v45 = vpop.f32.mrb[2].mxu1 }
  0xf8   :  { %v262_v48 = vadd.f32 %v254_v30, %v242_v36  ;;  %v266_v49 = vadd.f32 %v258_v31, %v246_v37  ;;  %v244_v50 = vadd.f32 %v235_v26, %v188_v44  ;;  %v248_v51 = vadd.f32 %v235_v26, %v198_v45  ;;  %v190_v52 = vpop.f32.mrb[3].mxu0  ;;  %v200_v53 = vpop.f32.mrb[3].mxu1 }
  0xf9   :  { %v263_v54 = vadd.f32 %v255_v34, %v243_v42  ;;  %v267_v55 = vadd.f32 %v259_v35, %v247_v43  ;;  %v245_v56 = vadd.f32 %v239_v27, %v190_v52  ;;  %v249_v57 = vadd.f32 %v239_v27, %v200_v53 }
  0xfa   :  { %v270_v58 = vmax.f32 %v262_v48, 0.0  ;;  %v274_v59 = vmax.f32 %v266_v49, 0.0  ;;  %v264_v60 = vadd.f32 %v256_v40, %v244_v50  ;;  %v268_v61 = vadd.f32 %v260_v41, %v248_v51 }
  0xfb   :  { %v271_v62 = vmax.f32 %v263_v54, 0.0  ;;  %v275_v63 = vmax.f32 %v267_v55, 0.0  ;;  %v265_v0 = vadd.f32 %v257_v46, %v245_v56  ;;  %v269_v1 = vadd.f32 %v261_v47, %v249_v57 }
  0xfc   :  { %v272_v2 = vmax.f32 %v264_v60, 0.0  ;;  %v276_v3 = vmax.f32 %v268_v61, 0.0 }
  0xfd   :  { %v332_v4 = vpack.c.bf16 %v271_v62, %v270_v58  ;;  %v334_v5 = vpack.c.bf16 %v275_v63, %v274_v59  ;;  %v273_v6 = vmax.f32 %v265_v0, 0.0  ;;  %v277_v7 = vmax.f32 %v269_v1, 0.0 }
  0xff   :  { %302 = vst [vmem:[%s490_s4] sm:$0xff] %v332_v4  ;;  %304 = vst [vmem:[%s490_s4 + $0x10] sm:$0xff] %v334_v5  ;;  %v333_v8 = vpack.c.bf16 %v273_v6, %v272_v2  ;;  %v335_v9 = vpack.c.bf16 %v277_v7, %v276_v3 }
 0x101   :  { %303 = vst [vmem:[%s490_s4 + $0x8] sm:$0xff] %v333_v8  ;;  %305 = vst [vmem:[%s490_s4 + $0x18] sm:$0xff] %v335_v9 }

// kernel: _encoder_cnn_forward.60
= control target key start
LH: loop header
LB: loop body
LE: loop exit
PB: predicated region body
PF: predicated region fallthrough
CT: control target
= control target key end

     0   :  { %s477_s1 = inlined_call_operand.vmem [shape: bf16[256,128], index: 1, kind: input, shape index: {}]   ;;  %s478_s0 = inlined_call_operand.vmem [shape: bf16[32,256], index: 0, kind: input, shape index: {}]   ;;  %s479_s2 = inlined_call_operand.vmem [shape: f32[1,128], index: 2, kind: input, shape index: {}]   ;;  %s480_s3 = inlined_call_operand.vmem [shape: bf16[32,128], index: 3, kind: output, shape index: {}]  }
   0x1   :  { %v366_v0 = vld [vmem:[%s477_s1 + $0x40] sm:$0xff]   ;;  %v368_v2 = vld [vmem:[%s477_s1 + $0x48] sm:$0xff]   ;;  %v370_v4 = vld [vmem:[%s477_s1 + $0x50] sm:$0xff]  }
   0x2   :  { %v367_v1 = vld [vmem:[%s477_s1] sm:$0xff]   ;;  %322 = vmatprep.subr.bf16.mxu0 %v366_v0  ;;  %350 = vmatprep.subr.bf16.mxu1 %v366_v0  ;;  %v369_v3 = vld [vmem:[%s477_s1 + $0x8] sm:$0xff]   ;;  %v371_v5 = vld [vmem:[%s477_s1 + $0x10] sm:$0xff]  }
   0x3   :  { %323 = vmatpush3.bf16.msra.mxu0 %v367_v1  ;;  %358 = vmatpush3.bf16.msra.mxu1 %v367_v1  ;;  %v372_v6 = vld [vmem:[%s477_s1 + $0x58] sm:$0xff]   ;;  %v374_v8 = vld [vmem:[%s477_s1 + $0x60] sm:$0xff]   ;;  %v376_v10 = vld [vmem:[%s477_s1 + $0x68] sm:$0xff]  }
   0x4   :  { %324 = vmatprep.subr.bf16.mxu0 %v368_v2  ;;  %351 = vmatprep.subr.bf16.mxu1 %v368_v2  ;;  %v373_v7 = vld [vmem:[%s477_s1 + $0x18] sm:$0xff]   ;;  %v375_v9 = vld [vmem:[%s477_s1 + $0x20] sm:$0xff]   ;;  %v377_v13 = vld [vmem:[%s477_s1 + $0x28] sm:$0xff]  }
   0x5   :  { %v384_v11 = vld [vmem:[%s478_s0 + $0x4] ss:$8 sps:$4 sm:$0xff]   ;;  %v387_v12 = vld [vmem:[%s478_s0 + $0x14] ss:$8 sps:$4 sm:$0xff]   ;;  %v382_v18 = vld [vmem:[%s478_s0] ss:$8 sps:$4 sm:$0xff]  }
   0x6   :  { %v378_v14 = vld [vmem:[%s477_s1 + $0x70] sm:$0xff]   ;;  %211 = vmatprep.mubr.bf16.mxu0 %v384_v11  ;;  %219 = vmatprep.mubr.bf16.mxu1 %v387_v12  ;;  %v380_v16 = vld [vmem:[%s477_s1 + $0x78] sm:$0xff]   ;;  %v302_v23 = vld [vmem:[%s479_s2] ss:$0 sm:$0xff] }
   0x7   :  { %325 = vmatpush3.bf16.msra.mxu0 %v369_v3  ;;  %359 = vmatpush3.bf16.msra.mxu1 %v369_v3  ;;  %v379_v15 = vld [vmem:[%s477_s1 + $0x30] sm:$0xff]   ;;  %v381_v17 = vld [vmem:[%s477_s1 + $0x38] sm:$0xff]  }
   0x8   :  { %326 = vmatprep.subr.bf16.mxu0 %v370_v4  ;;  %352 = vmatprep.subr.bf16.mxu1 %v370_v4  ;;  %v385_v19 = vld [vmem:[%s478_s0 + $0x10] ss:$8 sps:$4 sm:$0xff]  }
   0xb   :  { %327 = vmatpush3.bf16.msra.mxu0 %v371_v5  ;;  %360 = vmatpush3.bf16.msra.mxu1 %v371_v5 }
   0xc   :  { %328 = vmatprep.subr.bf16.mxu0 %v372_v6  ;;  %353 = vmatprep.subr.bf16.mxu1 %v372_v6 }
   0xf   :  { %329 = vmatpush3.bf16.msra.mxu0 %v373_v7  ;;  %361 = vmatpush3.bf16.msra.mxu1 %v373_v7 }
  0x10   :  { %330 = vmatprep.subr.bf16.mxu0 %v374_v8  ;;  %354 = vmatprep.subr.bf16.mxu1 %v374_v8 }
  0x13   :  { %331 = vmatpush3.bf16.msra.mxu0 %v375_v9  ;;  %362 = vmatpush3.bf16.msra.mxu1 %v375_v9 }
  0x14   :  { %332 = vmatprep.subr.bf16.mxu0 %v376_v10  ;;  %355 = vmatprep.subr.bf16.mxu1 %v376_v10 }
  0x17   :  { %333 = vmatpush3.bf16.msra.mxu0 %v377_v13  ;;  %363 = vmatpush3.bf16.msra.mxu1 %v377_v13 }
  0x18   :  { %334 = vmatprep.subr.bf16.mxu0 %v378_v14  ;;  %356 = vmatprep.subr.bf16.mxu1 %v378_v14 }
  0x1b   :  { %335 = vmatpush3.bf16.msra.mxu0 %v379_v15  ;;  %364 = vmatpush3.bf16.msra.mxu1 %v379_v15 }
  0x1c   :  { %336 = vmatprep.subr.bf16.mxu0 %v380_v16  ;;  %357 = vmatprep.subr.bf16.mxu1 %v380_v16 }
  0x1f   :  { %337 = vmatpush3.bf16.msra.mxu0 %v381_v17  ;;  %365 = vmatpush3.bf16.msra.mxu1 %v381_v17 }
  0x22   :  { %212 = vmatmul.mubr.bf16.vlgmr.msra.gmra.mrb[0].mxu0 %v382_v18  ;;  %220 = vmatmul.mubr.bf16.vlgmr.msra.gmra.mrb[0].mxu1 %v385_v19 }
  0xf5   :  { %v338_v20 = vpop.f32.mrb[0].mxu0  ;;  %v344_v21 = vpop.f32.mrb[0].mxu1 }
  0xf6   :  { %v339_v22 = vpop.f32.mrb[1].mxu0  ;;  %v345_v24 = vpop.f32.mrb[1].mxu1 }
  0xf7   :  { %v340_v25 = vadd.f32 %v339_v22, %v338_v20  ;;  %v346_v26 = vadd.f32 %v345_v24, %v344_v21  ;;  %v341_v27 = vpop.f32.mrb[2].mxu0  ;;  %v347_v28 = vpop.f32.mrb[2].mxu1 }
  0xf8   :  { %v342_v29 = vpop.f32.mrb[3].mxu0  ;;  %v348_v30 = vpop.f32.mrb[3].mxu1 }
  0xf9   :  { %v250_v31 = vadd.f32 %v340_v25, %v302_v23  ;;  %v252_v32 = vadd.f32 %v346_v26, %v302_v23  ;;  %v343_v33 = vadd.f32 %v342_v29, %v341_v27  ;;  %v349_v34 = vadd.f32 %v348_v30, %v347_v28 }
  0xfb   :  { %v251_v35 = vadd.f32 %v343_v33, %v302_v23  ;;  %v253_v36 = vadd.f32 %v349_v34, %v302_v23  ;;  %v254_v37 = vmax.f32 %v250_v31, 0.0  ;;  %v256_v38 = vmax.f32 %v252_v32, 0.0 }
  0xfd   :  { %v255_v39 = vmax.f32 %v251_v35, 0.0  ;;  %v257_v40 = vmax.f32 %v253_v36, 0.0 }
  0xff   :  { %v314_v41 = vpack.c.bf16 %v255_v39, %v254_v37  ;;  %v319_v42 = vpack.c.bf16 %v257_v40, %v256_v38 }
 0x101   :  { %315 = vst [vmem:[%s480_s3] sm:$0xff] %v314_v41   ;;  %321 = vst [vmem:[%s480_s3 + $0x8] sm:$0xff] %v319_v42  }

// kernel: _encoder_cnn_forward.68
= control target key start
LH: loop header
LB: loop body
LE: loop exit
PB: predicated region body
PF: predicated region fallthrough
CT: control target
= control target key end

     0   :  { %s942_s12 = smov 0   ;;  %s944_s13 = smov 0   ;;  %s1025_s0 = inlined_call_operand.vmem [shape: bf16[8,1536], index: 0, kind: input, shape index: {}]   ;;  %s1026_s1 = inlined_call_operand.vmem [shape: bf16[1536,128], index: 1, kind: input, shape index: {}]   ;;  %s1027_s2 = inlined_call_operand.vmem [shape: f32[1,128], index: 2, kind: input, shape index: {}]   ;;  %s1028_s3 = inlined_call_operand.vmem [shape: bf16[8,128], index: 3, kind: output, shape index: {}]  }
   0x1   :  { %s946_s14 = smov 0  }
   0x2 LB: > { %s25_s15 = sadd.s32 1, %s915_s13  ;;  %p745_p0 = scmp.ge.s32.totalorder %s919_s14, 1  ;;  %s919_s14 = sphi %s946_s14, %s13_s14   ;;  %s915_s13 = sphi %s944_s13, %s1030_s13   ;;  %s911_s12 = sphi %s942_s12, %s1029_s12  }
   0x3   : > { %p26_p1 = scmp.ge.s32.totalorder %s25_s15, 3  ;;  %p189_p2 = scmp.lt.s32.totalorder %s919_s14, 4 }
   0x5   : > { %s1032_s15 = smov (%p26_p1, %s25_s15), 0  ;;  %p190_p3 = pnand %p745_p0, %p189_p2 }
   0x6   : > { %s746_s16 = sshll.u32 (!%p190_p3), %s911_s12, 2  ;;  %s748_s17 = sshll.u32 (!%p190_p3), %s911_s12, 6 }
   0x7   : > { %193 = sbr.rel (%p190_p3) target bundleno = 293 (0x125), region = 32  ;;  %p233_p4 = scmp.lt.s32.totalorder (!%p190_p3), %s746_s16, 11 }
   0x8   : > { %p241_p5 = scmp.lt.s32.totalorder (!%p190_p3), %s748_s17, 191  ;;  %p750_p6 = scmp.ne.s32.totalorder (!%p190_p3), %s911_s12, 0 }
   0xe   : > { %s1034_s16 = smov (!%p233_p4, %s746_s16), 11  ;;  %s1036_s17 = smov (!%p241_p5, %s748_s17), 191 }
   0xf   : > { %s747_s18 = sshll.u32 %s1034_s16, 2  ;;  %s749_s22 = sshll.u32 %s1036_s17, 2  ;;  %v921_v0 = vmov (!%p750_p6), 0.0  }
  0x10   : > { %s967_s21 = scalar_lea.vmem %s1025_s0, %s747_s18  ;;  %s972_s25 = scalar_lea.vmem %s1026_s1, %s749_s22  ;;  %264 = vst [vmem:[#allocation2] sm:$0xff] (!%p750_p6), %v921_v0 }
  0x11   : > { %263 = sbr.rel (%p750_p6) target bundleno = 24 (0x18), region = 36 }
  0x18 PF: > { %v861_v1 = vld [vmem:[%s972_s25 + $0x40] sm:$0xff]   ;;  %v865_v5 = vld [vmem:[%s972_s25 + $0x48] sm:$0xff]   ;;  %v869_v9 = vld [vmem:[%s972_s25 + $0x50] sm:$0xff]   ;;  %p787_p7 = scmp.ne.s32.totalorder %s911_s12, 2 }
  0x19   : > { %v862_v2 = vld [vmem:[%s972_s25 + $0xc0] sm:$0xff]   ;;  %792 = vmatprep.subr.bf16.mxu0 %v861_v1  ;;  %v866_v6 = vld [vmem:[%s972_s25 + $0xc8] sm:$0xff]   ;;  %v870_v10 = vld [vmem:[%s972_s25 + $0xd0] sm:$0xff]  }
  0x1a   : > { %v863_v3 = vld [vmem:[%s972_s25] sm:$0xff]   ;;  %814 = vmatprep.subr.bf16.mxu1 %v862_v2  ;;  %v867_v7 = vld [vmem:[%s972_s25 + $0x8] sm:$0xff]   ;;  %v871_v11 = vld [vmem:[%s972_s25 + $0x10] sm:$0xff]  }
  0x1b   : > { %v864_v4 = vld [vmem:[%s972_s25 + $0x80] sm:$0xff]   ;;  %793 = vmatpush3.bf16.msra.mxu0 %v863_v3  ;;  %v868_v8 = vld [vmem:[%s972_s25 + $0x88] sm:$0xff]   ;;  %v872_v12 = vld [vmem:[%s972_s25 + $0x90] sm:$0xff]  }
  0x1c   : > { %815 = vmatpush3.bf16.msra.mxu1 %v864_v4  ;;  %794 = vmatprep.subr.bf16.mxu0 %v865_v5  ;;  %v873_v13 = vld [vmem:[%s972_s25 + $0x58] sm:$0xff]   ;;  %v877_v17 = vld [vmem:[%s972_s25 + $0x60] sm:$0xff]   ;;  %v881_v21 = vld [vmem:[%s972_s25 + $0x68] sm:$0xff]  }
  0x1d   : > { %816 = vmatprep.subr.bf16.mxu1 %v866_v6  ;;  %v874_v14 = vld [vmem:[%s972_s25 + $0xd8] sm:$0xff]   ;;  %v878_v18 = vld [vmem:[%s972_s25 + $0xe0] sm:$0xff]   ;;  %v882_v22 = vld [vmem:[%s972_s25 + $0xe8] sm:$0xff]  }
  0x1e   : > { %v875_v15 = vld [vmem:[%s972_s25 + $0x18] sm:$0xff]   ;;  %v879_v19 = vld [vmem:[%s972_s25 + $0x20] sm:$0xff]   ;;  %v883_v23 = vld [vmem:[%s972_s25 + $0x28] sm:$0xff]  }
  0x1f   : > { %795 = vmatpush3.bf16.msra.mxu0 %v867_v7  ;;  %v876_v16 = vld [vmem:[%s972_s25 + $0x98] sm:$0xff]   ;;  %v880_v20 = vld [vmem:[%s972_s25 + $0xa0] sm:$0xff]   ;;  %v884_v24 = vld [vmem:[%s972_s25 + $0xa8] sm:$0xff]  }
  0x20   : > { %817 = vmatpush3.bf16.msra.mxu1 %v868_v8  ;;  %796 = vmatprep.subr.bf16.mxu0 %v869_v9  ;;  %v885_v25 = vld [vmem:[%s972_s25 + $0x70] sm:$0xff]   ;;  %v889_v29 = vld [vmem:[%s972_s25 + $0x78] sm:$0xff]   ;;  %v266_v33 = vld [vmem:[%s967_s21] sm:$0xff] }
  0x21   : > { %818 = vmatprep.subr.bf16.mxu1 %v870_v10  ;;  %v886_v26 = vld [vmem:[%s972_s25 + $0xf0] sm:$0xff]   ;;  %v890_v30 = vld [vmem:[%s972_s25 + $0xf8] sm:$0xff]   ;;  %v267_v34 = vld [vmem:[%s967_s21 + $0x8] sm:$0xff]  ;;  %v751_v35 = vcombine.low %v266_v33, %v266_v33  ;;  %v752_v36 = vcombine.high %v266_v33, %v266_v33 }
  0x22   : > { %v887_v27 = vld [vmem:[%s972_s25 + $0x30] sm:$0xff]   ;;  %v891_v31 = vld [vmem:[%s972_s25 + $0x38] sm:$0xff]   ;;  %v753_v37 = vcombine.low %v267_v34, %v267_v34  ;;  %v754_v38 = vcombine.high %v267_v34, %v267_v34  ;;  %v265_v47 = vld [vmem:[#allocation2] sm:$0xff] }
  0x23   : > { %797 = vmatpush3.bf16.msra.mxu0 %v871_v11  ;;  %v888_v28 = vld [vmem:[%s972_s25 + $0xb0] sm:$0xff]   ;;  %v892_v32 = vld [vmem:[%s972_s25 + $0xb8] sm:$0xff]   ;;  %570 = vmatprep.mubr.bf16.mxu0 %v752_v36  ;;  %v788_v53 = vld [vmem:[%s1027_s2] ss:$0 sm:$0xff] (!%p787_p7) }
  0x24   : > { %819 = vmatpush3.bf16.msra.mxu1 %v872_v12  ;;  %798 = vmatprep.subr.bf16.mxu0 %v873_v13 }
  0x25   : > { %820 = vmatprep.subr.bf16.mxu1 %v874_v14  ;;  %610 = vmatprep.mubr.bf16.mxu1 %v754_v38 }
  0x27   : > { %799 = vmatpush3.bf16.msra.mxu0 %v875_v15 }
  0x28   : > { %821 = vmatpush3.bf16.msra.mxu1 %v876_v16  ;;  %800 = vmatprep.subr.bf16.mxu0 %v877_v17 }
  0x29   : > { %822 = vmatprep.subr.bf16.mxu1 %v878_v18 }
  0x2b   : > { %801 = vmatpush3.bf16.msra.mxu0 %v879_v19 }
  0x2c   : > { %823 = vmatpush3.bf16.msra.mxu1 %v880_v20  ;;  %802 = vmatprep.subr.bf16.mxu0 %v881_v21 }
  0x2d   : > { %824 = vmatprep.subr.bf16.mxu1 %v882_v22 }
  0x2f   : > { %803 = vmatpush3.bf16.msra.mxu0 %v883_v23 }
  0x30   : > { %825 = vmatpush3.bf16.msra.mxu1 %v884_v24  ;;  %804 = vmatprep.subr.bf16.mxu0 %v885_v25 }
  0x31   : > { %826 = vmatprep.subr.bf16.mxu1 %v886_v26 }
  0x33   : > { %805 = vmatpush3.bf16.msra.mxu0 %v887_v27 }
  0x34   : > { %827 = vmatpush3.bf16.msra.mxu1 %v888_v28  ;;  %806 = vmatprep.subr.bf16.mxu0 %v889_v29 }
  0x35   : > { %828 = vmatprep.subr.bf16.mxu1 %v890_v30 }
  0x37   : > { %807 = vmatpush3.bf16.msra.mxu0 %v891_v31 }
  0x38   : > { %829 = vmatpush3.bf16.msra.mxu1 %v892_v32 }
  0x3a   : > { %571 = vmatmul.mubr.bf16.vlgmr.msra.gmra.mrb[0].mxu0 %v751_v35 }
  0x3b   : > { %611 = vmatmul.mubr.bf16.vlgmr.msra.gmra.mrb[0].mxu1 %v753_v37 }
 0x10d   : > { %v808_v39 = vpop.f32.mrb[0].mxu0 }
 0x10e   : > { %v830_v40 = vpop.f32.mrb[0].mxu1  ;;  %v809_v41 = vpop.f32.mrb[1].mxu0 }
 0x10f   : > { %v831_v42 = vpop.f32.mrb[1].mxu1  ;;  %v810_v43 = vadd.f32 %v809_v41, %v808_v39  ;;  %v811_v45 = vpop.f32.mrb[2].mxu0 }
 0x110   : > { %v832_v44 = vadd.f32 %v831_v42, %v830_v40  ;;  %v833_v46 = vpop.f32.mrb[2].mxu1  ;;  %v812_v48 = vpop.f32.mrb[3].mxu0  ;;  %623 = sbr.rel (%p787_p7) target bundleno = 293 (0x125), region = 40 }
 0x111   : > { %v834_v49 = vpop.f32.mrb[3].mxu1 }
 0x112   : > { %v613_v50 = vadd.f32 %v832_v44, %v810_v43 }
 0x114   : > { %v618_v51 = vadd.f32 %v613_v50, %v265_v47 }
 0x116   : > { %619 = vst [vmem:[#allocation2] sm:$0xff] %v618_v51 }
 0x11d   : > { %v624_v52 = vld [vmem:[#allocation2] sm:$0xff] }
 0x11e   : > { %v632_v54 = vadd.f32 %v788_v53, %v624_v52 }
 0x120   : > { %v633_v55 = vmax.f32 %v632_v54, 0.0 }
 0x122   : > { %v634_v56 = vpack.c.bf16 %v633_v55, %v633_v55 }
 0x124   : > { %635 = vst [vmem:[%s1028_s3] sm:$0xf] %v634_v56 }
 0x125 PF: > { %s13_s14 = sadd.s32 1, %s919_s14   ;;  %s1029_s12 = smov %s915_s13 }
 0x126   : > { %p10_p8 = scmp.ge.s32.totalorder %s13_s14, 5   ;;  %s1030_s13 = smov %s1032_s15 }
 0x128   :  { %12 = sbr.rel (!%p10_p8) target bundleno = 2 (0x2), region = 76 }

// kernel: _encoder_cnn_forward.66
= control target key start
LH: loop header
LB: loop body
LE: loop exit
PB: predicated region body
PF: predicated region fallthrough
CT: control target
= control target key end

     0   :  { %s1028_s12 = smov 0   ;;  %s1030_s13 = smov 0   ;;  %s1207_s0 = inlined_call_operand.vmem [shape: bf16[8,256], index: 0, kind: input, shape index: {}]   ;;  %s1208_s1 = inlined_call_operand.vmem [shape: bf16[256,512], index: 1, kind: input, shape index: {}]   ;;  %s1209_s2 = inlined_call_operand.vmem [shape: f32[1,512], index: 2, kind: input, shape index: {}]   ;;  %s1210_s3 = inlined_call_operand.vmem [shape: bf16[8,512], index: 3, kind: output, shape index: {}]  }
   0x1   :  { %s1032_s14 = smov 0   ;;  %s1034_s15 = smov 0  }
   0x2   :  { %s1036_s16 = smov 0  }
   0x3 LB: > { %s28_s17 = sadd.s32 1, %s1002_s15  ;;  %p76_p1 = scmp.ne.s32.totalorder %s994_s13, %s990_s12  ;;  %s1006_s16 = sphi %s1036_s16, %s13_s16   ;;  %s1002_s15 = sphi %s1034_s15, %s1214_s15   ;;  %s998_s14 = sphi %s1032_s14, %s1213_s14   ;;  %s994_s13 = sphi %s1030_s13, %s1212_s13   ;;  %s990_s12 = sphi %s1028_s12, %s1211_s12  }
   0x4   : > { %p30_p0 = scmp.ge.s32.totalorder %s28_s17, 2  ;;  %p77_p2 = scmp.eq.s32.totalorder %s1006_s16, 0 }
   0x5   : > { %s69_s19 = sadd.s32 1, %s994_s13  ;;  %p830_p5 = scmp.ge.s32.totalorder %s1006_s16, 2 }
   0x6   : > { %s1216_s17 = smov (%p30_p0, %s28_s17), 0  ;;  %p78_p3 = por %p77_p2, %p76_p1 }
   0x7   : > { %s65_s18 = ssub.s32 %s1002_s15, %s1216_s17  ;;  %169 = sbr.rel (%p830_p5) target bundleno = 34 (0x22), region = 20 }
   0x8   : > { %p67_p4 = scmp.eq.s32.totalorder %s65_s18, 0 }
   0xa   : > { %s1063_s20 = scalar_select %p67_p4, %s994_s13, %s69_s19  }
   0xe   : > { %172 = sbr.rel (!%p78_p3) target bundleno = 34 (0x22), region = 24  ;;  %s174_s21 = sand.u32 (%p78_p3), 1, %s994_s13  }
   0xf   : > { %s876_s22 = sshll.u32 (%p78_p3), %s1002_s15, 3  ;;  %s831_s23 = sshll.u32 (%p78_p3), %s174_s21, 8 }
  0x10   : > { %s1071_s26 = scalar_lea.vmem (%p78_p3), %s1208_s1, %s876_s22  ;;  %s1076_s27 = scalar_lea.vmem (%p78_p3), [#allocation3], %s831_s23 }
  0x11   : > { %v272_v0 = vld [vmem:[%s1071_s26] sm:$0xff] (%p78_p3)  ;;  %v274_v1 = vld [vmem:[%s1071_s26 + $0x10] sm:$0xff] (%p78_p3) }
  0x12   : > { %v276_v2 = vld [vmem:[%s1071_s26 + $0x20] sm:$0xff] (%p78_p3)  ;;  %273 = vst [vmem:[%s1076_s27] sm:$0xff] (%p78_p3), %v272_v0  ;;  %275 = vst [vmem:[%s1076_s27 + $0x8] sm:$0xff] (%p78_p3), %v274_v1  ;;  %v278_v3 = vld [vmem:[%s1071_s26 + $0x30] sm:$0xff] (%p78_p3) }
  0x13   : > { %277 = vst [vmem:[%s1076_s27 + $0x10] sm:$0xff] (%p78_p3), %v276_v2  ;;  %v280_v4 = vld [vmem:[%s1071_s26 + $0x40] sm:$0xff] (%p78_p3)  ;;  %v282_v5 = vld [vmem:[%s1071_s26 + $0x50] sm:$0xff] (%p78_p3)  ;;  %279 = vst [vmem:[%s1076_s27 + $0x18] sm:$0xff] (%p78_p3), %v278_v3 }
  0x14   : > { %281 = vst [vmem:[%s1076_s27 + $0x20] sm:$0xff] (%p78_p3), %v280_v4  ;;  %283 = vst [vmem:[%s1076_s27 + $0x28] sm:$0xff] (%p78_p3), %v282_v5  ;;  %v284_v6 = vld [vmem:[%s1071_s26 + $0x60] sm:$0xff] (%p78_p3)  ;;  %v286_v7 = vld [vmem:[%s1071_s26 + $0x70] sm:$0xff] (%p78_p3) }
  0x15   : > { %v288_v8 = vld [vmem:[%s1071_s26 + $0x80] sm:$0xff]  ;;  %285 = vst [vmem:[%s1076_s27 + $0x30] sm:$0xff] %v284_v6  ;;  %287 = vst [vmem:[%s1076_s27 + $0x38] sm:$0xff] %v286_v7  ;;  %v290_v9 = vld [vmem:[%s1071_s26 + $0x90] sm:$0xff] }
  0x16   : > { %289 = vst [vmem:[%s1076_s27 + $0x40] sm:$0xff] %v288_v8  ;;  %v292_v10 = vld [vmem:[%s1071_s26 + $0xa0] sm:$0xff]  ;;  %v294_v11 = vld [vmem:[%s1071_s26 + $0xb0] sm:$0xff]  ;;  %291 = vst [vmem:[%s1076_s27 + $0x48] sm:$0xff] %v290_v9 }
  0x17   : > { %293 = vst [vmem:[%s1076_s27 + $0x50] sm:$0xff] %v292_v10  ;;  %295 = vst [vmem:[%s1076_s27 + $0x58] sm:$0xff] %v294_v11  ;;  %v296_v12 = vld [vmem:[%s1071_s26 + $0xc0] sm:$0xff]  ;;  %v298_v13 = vld [vmem:[%s1071_s26 + $0xd0] sm:$0xff] }
  0x18   : > { %v300_v14 = vld [vmem:[%s1071_s26 + $0xe0] sm:$0xff]  ;;  %297 = vst [vmem:[%s1076_s27 + $0x60] sm:$0xff] %v296_v12  ;;  %299 = vst [vmem:[%s1076_s27 + $0x68] sm:$0xff] %v298_v13  ;;  %v302_v15 = vld [vmem:[%s1071_s26 + $0xf0] sm:$0xff] }
  0x19   : > { %301 = vst [vmem:[%s1076_s27 + $0x70] sm:$0xff] %v300_v14  ;;  %v304_v16 = vld [vmem:[%s1071_s26 + $0x100] sm:$0xff]  ;;  %v306_v17 = vld [vmem:[%s1071_s26 + $0x110] sm:$0xff]  ;;  %303 = vst [vmem:[%s1076_s27 + $0x78] sm:$0xff] %v302_v15 }
  0x1a   : > { %305 = vst [vmem:[%s1076_s27 + $0x80] sm:$0xff] %v304_v16  ;;  %307 = vst [vmem:[%s1076_s27 + $0x88] sm:$0xff] %v306_v17  ;;  %v308_v18 = vld [vmem:[%s1071_s26 + $0x120] sm:$0xff]  ;;  %v310_v19 = vld [vmem:[%s1071_s26 + $0x130] sm:$0xff] }
  0x1b   : > { %v312_v20 = vld [vmem:[%s1071_s26 + $0x140] sm:$0xff]  ;;  %309 = vst [vmem:[%s1076_s27 + $0x90] sm:$0xff] %v308_v18  ;;  %311 = vst [vmem:[%s1076_s27 + $0x98] sm:$0xff] %v310_v19  ;;  %v314_v21 = vld [vmem:[%s1071_s26 + $0x150] sm:$0xff] }
  0x1c   : > { %313 = vst [vmem:[%s1076_s27 + $0xa0] sm:$0xff] %v312_v20  ;;  %v316_v22 = vld [vmem:[%s1071_s26 + $0x160] sm:$0xff]  ;;  %v318_v23 = vld [vmem:[%s1071_s26 + $0x170] sm:$0xff]  ;;  %315 = vst [vmem:[%s1076_s27 + $0xa8] sm:$0xff] %v314_v21 }
  0x1d   : > { %317 = vst [vmem:[%s1076_s27 + $0xb0] sm:$0xff] %v316_v22  ;;  %319 = vst [vmem:[%s1076_s27 + $0xb8] sm:$0xff] %v318_v23  ;;  %v320_v24 = vld [vmem:[%s1071_s26 + $0x180] sm:$0xff]  ;;  %v322_v25 = vld [vmem:[%s1071_s26 + $0x190] sm:$0xff] }
  0x1e   : > { %v324_v26 = vld [vmem:[%s1071_s26 + $0x1a0] sm:$0xff]  ;;  %321 = vst [vmem:[%s1076_s27 + $0xc0] sm:$0xff] %v320_v24  ;;  %323 = vst [vmem:[%s1076_s27 + $0xc8] sm:$0xff] %v322_v25  ;;  %v326_v27 = vld [vmem:[%s1071_s26 + $0x1b0] sm:$0xff] }
  0x1f   : > { %325 = vst [vmem:[%s1076_s27 + $0xd0] sm:$0xff] %v324_v26  ;;  %v328_v28 = vld [vmem:[%s1071_s26 + $0x1c0] sm:$0xff]  ;;  %v330_v29 = vld [vmem:[%s1071_s26 + $0x1d0] sm:$0xff]  ;;  %327 = vst [vmem:[%s1076_s27 + $0xd8] sm:$0xff] %v326_v27 }
  0x20   : > { %329 = vst [vmem:[%s1076_s27 + $0xe0] sm:$0xff] %v328_v28  ;;  %331 = vst [vmem:[%s1076_s27 + $0xe8] sm:$0xff] %v330_v29  ;;  %v332_v30 = vld [vmem:[%s1071_s26 + $0x1e0] sm:$0xff]  ;;  %v334_v31 = vld [vmem:[%s1071_s26 + $0x1f0] sm:$0xff] }
  0x21   : > { %333 = vst [vmem:[%s1076_s27 + $0xf0] sm:$0xff] %v332_v30  ;;  %335 = vst [vmem:[%s1076_s27 + $0xf8] sm:$0xff] %v334_v31 }
  0x22 PF: > { %p834_p6 = scmp.ge.s32.totalorder %s1006_s16, 1  ;;  %p348_p7 = scmp.lt.s32.totalorder %s1006_s16, 3 }
  0x24   : > { %p349_p8 = pnand %p834_p6, %p348_p7 }
  0x25   : > { %s355_s28 = sand.u32 (!%p349_p8), 1, %s990_s12   ;;  %v1145_v32 = vld [vmem:[%s1207_s0] sm:$0xff] (!%p349_p8)  ;;  %s836_s6 = sshll.u32 (!%p349_p8), %s998_s14, 1  ;;  %v682_v3 = vlaneseq (!%p349_p8) }
  0x26   : > { %352 = sbr.rel (%p349_p8) target bundleno = 323 (0x143), region = 66  ;;  %s835_s4 = sshll.u32 (!%p349_p8), %s355_s28, 8  ;;  %v840_v33 = vcombine.high (!%p349_p8), %v1145_v32, %v1145_v32  ;;  %v839_v2 = vcombine.low (!%p349_p8), %v1145_v32, %v1145_v32 }
  0x27   : > { %s1149_s5 = scalar_lea.vmem (!%p349_p8), [#allocation3], %s835_s4  ;;  %p408_p9 = scmp.lt.s32.totalorder (!%p349_p8), %s836_s6, 3  ;;  %v683_v4 = vshrl.u32 (!%p349_p8), %v682_v3, 7 }
  0x28   : > { %v918_v34 = vld [vmem:[%s1149_s5 + $0x4] ss:$8 sps:$4 sm:$0xff] (!%p349_p8)   ;;  %662 = vmatprep.mubr.bf16.mxu0 (!%p349_p8), %v840_v33  ;;  %v920_v35 = vld [vmem:[%s1149_s5] ss:$8 sps:$4 sm:$0xff] (!%p349_p8)   ;;  %v921_v36 = vld [vmem:[%s1149_s5 + $0x14] ss:$8 sps:$4 sm:$0xff] (!%p349_p8)  }
  0x29   : > { %630 = vmatprep.subr.bf16.mxu0 (!%p349_p8), %v918_v34  ;;  %v923_v37 = vld [vmem:[%s1149_s5 + $0x10] ss:$8 sps:$4 sm:$0xff] (!%p349_p8)   ;;  %v924_v38 = vld [vmem:[%s1149_s5 + $0x24] ss:$8 sps:$4 sm:$0xff] (!%p349_p8)   ;;  %v926_v39 = vld [vmem:[%s1149_s5 + $0x20] ss:$8 sps:$4 sm:$0xff] (!%p349_p8)  }
  0x2a   : > { %631 = vmatpush1.bf16.msra.mxu0 (!%p349_p8), %v920_v35  ;;  %v927_v40 = vld [vmem:[%s1149_s5 + $0x34] ss:$8 sps:$4 sm:$0xff] (!%p349_p8)   ;;  %v929_v41 = vld [vmem:[%s1149_s5 + $0x30] ss:$8 sps:$4 sm:$0xff] (!%p349_p8)   ;;  %v930_v42 = vld [vmem:[%s1149_s5 + $0x44] ss:$8 sps:$4 sm:$0xff] (!%p349_p8)  }
  0x2b   : > { %632 = vmatprep.subr.bf16.mxu0 (!%p349_p8), %v921_v36  ;;  %v932_v43 = vld [vmem:[%s1149_s5 + $0x40] ss:$8 sps:$4 sm:$0xff] (!%p349_p8)   ;;  %v933_v44 = vld [vmem:[%s1149_s5 + $0x54] ss:$8 sps:$4 sm:$0xff] (!%p349_p8)   ;;  %v935_v45 = vld [vmem:[%s1149_s5 + $0x50] ss:$8 sps:$4 sm:$0xff] (!%p349_p8)  }
  0x2c   : > { %v936_v46 = vld [vmem:[%s1149_s5 + $0x64] ss:$8 sps:$4 sm:$0xff] (!%p349_p8)   ;;  %v938_v47 = vld [vmem:[%s1149_s5 + $0x60] ss:$8 sps:$4 sm:$0xff] (!%p349_p8)   ;;  %v939_v48 = vld [vmem:[%s1149_s5 + $0x74] ss:$8 sps:$4 sm:$0xff] (!%p349_p8)  }
  0x2d   : > { %v941_v49 = vld [vmem:[%s1149_s5 + $0x70] ss:$8 sps:$4 sm:$0xff]   ;;  %v942_v50 = vld [vmem:[%s1149_s5 + $0x84] ss:$8 sps:$4 sm:$0xff]   ;;  %v944_v51 = vld [vmem:[%s1149_s5 + $0x80] ss:$8 sps:$4 sm:$0xff]  }
  0x2e   : > { %633 = vmatpush1.bf16.msra.mxu0 %v923_v37  ;;  %v945_v52 = vld [vmem:[%s1149_s5 + $0x94] ss:$8 sps:$4 sm:$0xff]   ;;  %v947_v53 = vld [vmem:[%s1149_s5 + $0x90] ss:$8 sps:$4 sm:$0xff]   ;;  %v948_v54 = vld [vmem:[%s1149_s5 + $0xa4] ss:$8 sps:$4 sm:$0xff]  }
  0x2f   : > { %634 = vmatprep.subr.bf16.mxu0 %v924_v38  ;;  %v950_v55 = vld [vmem:[%s1149_s5 + $0xa0] ss:$8 sps:$4 sm:$0xff]   ;;  %v951_v56 = vld [vmem:[%s1149_s5 + $0xb4] ss:$8 sps:$4 sm:$0xff]   ;;  %v953_v57 = vld [vmem:[%s1149_s5 + $0xb0] ss:$8 sps:$4 sm:$0xff]  }
  0x30   : > { %v954_v58 = vld [vmem:[%s1149_s5 + $0xc4] ss:$8 sps:$4 sm:$0xff]   ;;  %v956_v59 = vld [vmem:[%s1149_s5 + $0xc0] ss:$8 sps:$4 sm:$0xff]   ;;  %v957_v60 = vld [vmem:[%s1149_s5 + $0xd4] ss:$8 sps:$4 sm:$0xff]  }
  0x31   : > { %v959_v61 = vld [vmem:[%s1149_s5 + $0xd0] ss:$8 sps:$4 sm:$0xff]   ;;  %v960_v62 = vld [vmem:[%s1149_s5 + $0xe4] ss:$8 sps:$4 sm:$0xff]   ;;  %v962_v63 = vld [vmem:[%s1149_s5 + $0xe0] ss:$8 sps:$4 sm:$0xff]  }
  0x32   : > { %635 = vmatpush1.bf16.msra.mxu0 %v926_v39  ;;  %v963_v0 = vld [vmem:[%s1149_s5 + $0xf4] ss:$8 sps:$4 sm:$0xff]   ;;  %v965_v1 = vld [vmem:[%s1149_s5 + $0xf0] ss:$8 sps:$4 sm:$0xff]   ;;  %s1218_s6 = smov (!%p408_p9, %s836_s6), 3  ;;  %v684_v5 = vsub.s32 0, %v683_v4 }
  0x33   : > { %636 = vmatprep.subr.bf16.mxu0 %v927_v40  ;;  %s410_s9 = scalar_lea.vmem %s1209_s2, %s1218_s6  ;;  %v688_v7 = vsub.s32 1, %v683_v4  ;;  %s838_s10 = sshll.u32 %s1218_s6, 2 }
  0x34   : > { %v680_v6 = vld [vmem:[%s410_s9] sm:$0x3]  ;;  %s420_s14 = scalar_lea.vmem %s1210_s3, %s838_s10 }
  0x35   : > { %v685_v8 = vrot.slane %v680_v6, %v684_v5  ;;  %v689_v9 = vrot.slane %v680_v6, %v688_v7 }
  0x36   : > { %637 = vmatpush1.bf16.msra.mxu0 %v929_v41 }
  0x37   : > { %638 = vmatprep.subr.bf16.mxu0 %v930_v42 }
  0x3a   : > { %639 = vmatpush1.bf16.msra.mxu0 %v932_v43 }
  0x3b   : > { %640 = vmatprep.subr.bf16.mxu0 %v933_v44 }
  0x3e   : > { %641 = vmatpush1.bf16.msra.mxu0 %v935_v45 }
  0x3f   : > { %642 = vmatprep.subr.bf16.mxu0 %v936_v46 }
  0x42   : > { %643 = vmatpush1.bf16.msra.mxu0 %v938_v47 }
  0x43   : > { %644 = vmatprep.subr.bf16.mxu0 %v939_v48 }
  0x46   : > { %645 = vmatpush1.bf16.msra.mxu0 %v941_v49 }
  0x47   : > { %646 = vmatprep.subr.bf16.mxu0 %v942_v50 }
  0x4a   : > { %647 = vmatpush1.bf16.msra.mxu0 %v944_v51 }
  0x4b   : > { %648 = vmatprep.subr.bf16.mxu0 %v945_v52 }
  0x4e   : > { %649 = vmatpush1.bf16.msra.mxu0 %v947_v53 }
  0x4f   : > { %650 = vmatprep.subr.bf16.mxu0 %v948_v54 }
  0x52   : > { %651 = vmatpush1.bf16.msra.mxu0 %v950_v55 }
  0x53   : > { %652 = vmatprep.subr.bf16.mxu0 %v951_v56 }
  0x56   : > { %653 = vmatpush1.bf16.msra.mxu0 %v953_v57 }
  0x57   : > { %654 = vmatprep.subr.bf16.mxu0 %v954_v58 }
  0x5a   : > { %655 = vmatpush1.bf16.msra.mxu0 %v956_v59 }
  0x5b   : > { %656 = vmatprep.subr.bf16.mxu0 %v957_v60 }
  0x5e   : > { %657 = vmatpush1.bf16.msra.mxu0 %v959_v61 }
  0x5f   : > { %658 = vmatprep.subr.bf16.mxu0 %v960_v62 }
  0x62   : > { %659 = vmatpush1.bf16.msra.mxu0 %v962_v63 }
  0x63   : > { %660 = vmatprep.subr.bf16.mxu0 %v963_v0 }
  0x66   : > { %661 = vmatpush1.bf16.msra.mxu0 %v965_v1 }
  0x69   : > { %663 = vmatmul.mubr.bf16.vlgmr.msra.gmra.mrb[0].mxu0 %v839_v2 }
 0x13c   : > { %v664_v10 = vpop.f32.mrb[0].mxu0 }
 0x13d   : > { %v692_v11 = vadd.f32 %v685_v8, %v664_v10  ;;  %v666_v12 = vpop.f32.mrb[1].mxu0 }
 0x13e   : > { %v693_v13 = vadd.f32 %v689_v9, %v666_v12  ;;  %v668_v14 = vpop.f32.mrb[2].mxu0 }
 0x13f   : > { %v669_v15 = vpop.f32.mrb[3].mxu0 }
 0x140   : > { %v877_v16 = vpack.c.bf16 %v693_v13, %v692_v11 }
 0x142   : > { %702 = vst [vmem:[%s420_s14] sm:$0xff] %v877_v16 }
 0x143 PF: > { %s13_s16 = sadd.s32 1, %s1006_s16   ;;  %s1211_s12 = smov %s994_s13 }
 0x144   : > { %p10_p10 = scmp.ge.s32.totalorder %s13_s16, 4   ;;  %s1212_s13 = smov %s1063_s20 }
 0x145   : > { %s1213_s14 = smov %s1002_s15  ;;  %s1214_s15 = smov %s1216_s17 }
 0x146   :  { %12 = sbr.rel (!%p10_p10) target bundleno = 3 (0x3), region = 119 }

// kernel: _encoder_cnn_forward.69
= control target key start
LH: loop header
LB: loop body
LE: loop exit
PB: predicated region body
PF: predicated region fallthrough
CT: control target
= control target key end

     0   :  { %s904_s15 = smov 0   ;;  %s906_s16 = smov 0   ;;  %s996_s0 = inlined_call_operand.vmem [shape: bf16[8,128], index: 0, kind: input, shape index: {}]   ;;  %s997_s1 = inlined_call_operand.vmem [shape: bf16[128,512], index: 1, kind: input, shape index: {}]   ;;  %s998_s2 = inlined_call_operand.vmem [shape: f32[1,512], index: 2, kind: input, shape index: {}]   ;;  %s999_s3 = inlined_call_operand.vmem [shape: bf16[8,512], index: 3, kind: input, shape index: {}]   ;;  %s1000_s4 = inlined_call_operand.vmem [shape: bf16[8,512], index: 4, kind: output, shape index: {}]  }
   0x1   :  { %s908_s17 = smov 0   ;;  %s910_s18 = smov 0  }
   0x2   :  { %s912_s19 = smov 0  }
   0x3 LB: > { %s29_s20 = sadd.s32 1, %s872_s18  ;;  %p77_p1 = scmp.ne.s32.totalorder %s864_s16, %s860_s15  ;;  %s876_s19 = sphi %s912_s19, %s14_s19   ;;  %s872_s18 = sphi %s910_s18, %s1004_s18   ;;  %s868_s17 = sphi %s908_s17, %s1003_s17   ;;  %s864_s16 = sphi %s906_s16, %s1002_s16   ;;  %s860_s15 = sphi %s904_s15, %s1001_s15  }
   0x4   : > { %p31_p0 = scmp.ge.s32.totalorder %s29_s20, 2  ;;  %p78_p2 = scmp.eq.s32.totalorder %s876_s19, 0 }
   0x5   : > { %s70_s22 = sadd.s32 1, %s864_s16  ;;  %p741_p5 = scmp.ge.s32.totalorder %s876_s19, 2 }
   0x6   : > { %s1006_s20 = smov (%p31_p0, %s29_s20), 0  ;;  %p79_p3 = por %p78_p2, %p77_p1 }
   0x7   : > { %s66_s21 = ssub.s32 %s872_s18, %s1006_s20  ;;  %195 = sbr.rel (%p741_p5) target bundleno = 26 (0x1a), region = 20 }
   0x8   : > { %p68_p4 = scmp.eq.s32.totalorder %s66_s21, 0 }
   0xa   : > { %s939_s23 = scalar_select %p68_p4, %s864_s16, %s70_s22  }
   0xe   : > { %198 = sbr.rel (!%p79_p3) target bundleno = 26 (0x1a), region = 24  ;;  %s200_s24 = sand.u32 (%p79_p3), 1, %s864_s16  }
   0xf   : > { %s771_s25 = sshll.u32 (%p79_p3), %s872_s18, 3  ;;  %s742_s26 = sshll.u32 (%p79_p3), %s200_s24, 7 }
  0x10   : > { %s947_s29 = scalar_lea.vmem (%p79_p3), %s997_s1, %s771_s25  ;;  %s202_s30 = scalar_lea.vmem (%p79_p3), [#allocation3], %s742_s26 }
  0x11   : > { %v266_v0 = vld [vmem:[%s947_s29] sm:$0xff] (%p79_p3)  ;;  %v268_v1 = vld [vmem:[%s947_s29 + $0x10] sm:$0xff] (%p79_p3) }
  0x12   : > { %v270_v2 = vld [vmem:[%s947_s29 + $0x20] sm:$0xff] (%p79_p3)  ;;  %267 = vst [vmem:[%s202_s30] sm:$0xff] (%p79_p3), %v266_v0  ;;  %269 = vst [vmem:[%s202_s30 + $0x8] sm:$0xff] (%p79_p3), %v268_v1  ;;  %v272_v3 = vld [vmem:[%s947_s29 + $0x30] sm:$0xff] (%p79_p3) }
  0x13   : > { %271 = vst [vmem:[%s202_s30 + $0x10] sm:$0xff] (%p79_p3), %v270_v2  ;;  %v274_v4 = vld [vmem:[%s947_s29 + $0x40] sm:$0xff] (%p79_p3)  ;;  %v276_v5 = vld [vmem:[%s947_s29 + $0x50] sm:$0xff] (%p79_p3)  ;;  %273 = vst [vmem:[%s202_s30 + $0x18] sm:$0xff] (%p79_p3), %v272_v3 }
  0x14   : > { %275 = vst [vmem:[%s202_s30 + $0x20] sm:$0xff] (%p79_p3), %v274_v4  ;;  %277 = vst [vmem:[%s202_s30 + $0x28] sm:$0xff] (%p79_p3), %v276_v5  ;;  %v278_v6 = vld [vmem:[%s947_s29 + $0x60] sm:$0xff] (%p79_p3)  ;;  %v280_v7 = vld [vmem:[%s947_s29 + $0x70] sm:$0xff] (%p79_p3) }
  0x15   : > { %v282_v8 = vld [vmem:[%s947_s29 + $0x80] sm:$0xff]  ;;  %279 = vst [vmem:[%s202_s30 + $0x30] sm:$0xff] %v278_v6  ;;  %281 = vst [vmem:[%s202_s30 + $0x38] sm:$0xff] %v280_v7  ;;  %v284_v9 = vld [vmem:[%s947_s29 + $0x90] sm:$0xff] }
  0x16   : > { %283 = vst [vmem:[%s202_s30 + $0x40] sm:$0xff] %v282_v8  ;;  %v286_v10 = vld [vmem:[%s947_s29 + $0xa0] sm:$0xff]  ;;  %v288_v11 = vld [vmem:[%s947_s29 + $0xb0] sm:$0xff]  ;;  %285 = vst [vmem:[%s202_s30 + $0x48] sm:$0xff] %v284_v9 }
  0x17   : > { %287 = vst [vmem:[%s202_s30 + $0x50] sm:$0xff] %v286_v10  ;;  %289 = vst [vmem:[%s202_s30 + $0x58] sm:$0xff] %v288_v11  ;;  %v290_v12 = vld [vmem:[%s947_s29 + $0xc0] sm:$0xff]  ;;  %v292_v13 = vld [vmem:[%s947_s29 + $0xd0] sm:$0xff] }
  0x18   : > { %v294_v14 = vld [vmem:[%s947_s29 + $0xe0] sm:$0xff]  ;;  %291 = vst [vmem:[%s202_s30 + $0x60] sm:$0xff] %v290_v12  ;;  %293 = vst [vmem:[%s202_s30 + $0x68] sm:$0xff] %v292_v13  ;;  %v296_v15 = vld [vmem:[%s947_s29 + $0xf0] sm:$0xff] }
  0x19   : > { %295 = vst [vmem:[%s202_s30 + $0x70] sm:$0xff] %v294_v14  ;;  %297 = vst [vmem:[%s202_s30 + $0x78] sm:$0xff] %v296_v15 }
  0x1a PF: > { %p745_p6 = scmp.ge.s32.totalorder %s876_s19, 1  ;;  %p323_p7 = scmp.lt.s32.totalorder %s876_s19, 3 }
  0x1c   : > { %p324_p8 = pnand %p745_p6, %p323_p7 }
  0x1d   : > { %s330_s5 = sand.u32 (!%p324_p8), 1, %s860_s15   ;;  %v878_v16 = vmov (!%p324_p8), 0   ;;  %v422_v33 = vld [vmem:[%s996_s0] sm:$0xf] (!%p324_p8)  ;;  %s747_s10 = sshll.u32 (!%p324_p8), %s868_s17, 1  ;;  %v571_v34 = vlaneseq (!%p324_p8) }
  0x1e   : > { %327 = sbr.rel (%p324_p8) target bundleno = 287 (0x11f), region = 70  ;;  %s746_s6 = sshll.u32 (!%p324_p8), %s330_s5, 7  ;;  %551 = vmatprep.mubr.bf16.mxu0 (!%p324_p8), %v878_v16 }
  0x1f   : > { %s332_s7 = scalar_lea.vmem (!%p324_p8), [#allocation3], %s746_s6  ;;  %p389_p9 = scmp.lt.s32.totalorder (!%p324_p8), %s747_s10, 3  ;;  %v572_v35 = vshrl.u32 (!%p324_p8), %v571_v34, 7 }
  0x20   : > { %v814_v17 = vld [vmem:[%s332_s7 + $0x4] ss:$8 sps:$4 sm:$0xff] (!%p324_p8)   ;;  %v816_v18 = vld [vmem:[%s332_s7] ss:$8 sps:$4 sm:$0xff] (!%p324_p8)   ;;  %v817_v19 = vld [vmem:[%s332_s7 + $0x14] ss:$8 sps:$4 sm:$0xff] (!%p324_p8)  }
  0x21   : > { %519 = vmatprep.subr.bf16.mxu0 (!%p324_p8), %v814_v17  ;;  %v819_v20 = vld [vmem:[%s332_s7 + $0x10] ss:$8 sps:$4 sm:$0xff] (!%p324_p8)   ;;  %v820_v21 = vld [vmem:[%s332_s7 + $0x24] ss:$8 sps:$4 sm:$0xff] (!%p324_p8)   ;;  %v822_v22 = vld [vmem:[%s332_s7 + $0x20] ss:$8 sps:$4 sm:$0xff] (!%p324_p8)  }
  0x22   : > { %520 = vmatpush1.bf16.msra.mxu0 (!%p324_p8), %v816_v18  ;;  %v823_v23 = vld [vmem:[%s332_s7 + $0x34] ss:$8 sps:$4 sm:$0xff] (!%p324_p8)   ;;  %v825_v24 = vld [vmem:[%s332_s7 + $0x30] ss:$8 sps:$4 sm:$0xff] (!%p324_p8)   ;;  %v826_v25 = vld [vmem:[%s332_s7 + $0x44] ss:$8 sps:$4 sm:$0xff] (!%p324_p8)  }
  0x23   : > { %521 = vmatprep.subr.bf16.mxu0 (!%p324_p8), %v817_v19  ;;  %v828_v26 = vld [vmem:[%s332_s7 + $0x40] ss:$8 sps:$4 sm:$0xff] (!%p324_p8)   ;;  %v829_v27 = vld [vmem:[%s332_s7 + $0x54] ss:$8 sps:$4 sm:$0xff] (!%p324_p8)   ;;  %v831_v28 = vld [vmem:[%s332_s7 + $0x50] ss:$8 sps:$4 sm:$0xff] (!%p324_p8)  }
  0x24   : > { %v832_v29 = vld [vmem:[%s332_s7 + $0x64] ss:$8 sps:$4 sm:$0xff] (!%p324_p8)   ;;  %v834_v30 = vld [vmem:[%s332_s7 + $0x60] ss:$8 sps:$4 sm:$0xff] (!%p324_p8)   ;;  %v835_v31 = vld [vmem:[%s332_s7 + $0x74] ss:$8 sps:$4 sm:$0xff] (!%p324_p8)  }
  0x25   : > { %v837_v32 = vld [vmem:[%s332_s7 + $0x70] ss:$8 sps:$4 sm:$0xff]   ;;  %s1008_s10 = smov (!%p389_p9, %s747_s10), 3  ;;  %v573_v36 = vsub.s32 0, %v572_v35  ;;  %v577_v38 = vsub.s32 1, %v572_v35 }
  0x26   : > { %522 = vmatpush1.bf16.msra.mxu0 %v819_v20  ;;  %s749_s11 = sshll.u32 %s1008_s10, 2  ;;  %s391_s14 = scalar_lea.vmem %s998_s2, %s1008_s10 }
  0x27   : > { %523 = vmatprep.subr.bf16.mxu0 %v820_v21  ;;  %s401_s22 = scalar_lea.vmem %s999_s3, %s749_s11  ;;  %v569_v37 = vld [vmem:[%s391_s14] sm:$0x3]  ;;  %s411_s25 = scalar_lea.vmem %s1000_s4, %s749_s11 }
  0x28   : > { %v583_v39 = vld [vmem:[%s401_s22] sm:$0xff]  ;;  %v574_v40 = vrot.slane %v569_v37, %v573_v36  ;;  %v578_v41 = vrot.slane %v569_v37, %v577_v38 }
  0x29   : > { %v584_v42 = vunpack.c.l.bf16 %v583_v39  ;;  %v585_v44 = vunpack.c.h.bf16 %v583_v39 }
  0x2a   : > { %524 = vmatpush1.bf16.msra.mxu0 %v822_v22 }
  0x2b   : > { %525 = vmatprep.subr.bf16.mxu0 %v823_v23 }
  0x2e   : > { %526 = vmatpush1.bf16.msra.mxu0 %v825_v24 }
  0x2f   : > { %527 = vmatprep.subr.bf16.mxu0 %v826_v25 }
  0x32   : > { %528 = vmatpush1.bf16.msra.mxu0 %v828_v26 }
  0x33   : > { %529 = vmatprep.subr.bf16.mxu0 %v829_v27 }
  0x36   : > { %530 = vmatpush1.bf16.msra.mxu0 %v831_v28 }
  0x37   : > { %531 = vmatprep.subr.bf16.mxu0 %v832_v29 }
  0x3a   : > { %532 = vmatpush1.bf16.msra.mxu0 %v834_v30 }
  0x3b   : > { %533 = vmatprep.subr.bf16.mxu0 %v835_v31 }
  0x3e   : > { %534 = vmatpush1.bf16.msra.mxu0 %v837_v32 }
  0x41   : > { %552 = vmatmul.mubr.bf16.vlgmr.msra.gmra.mrb[0].mxu0 %v422_v33 }
 0x114   : > { %v553_v43 = vpop.f32.mrb[0].mxu0 }
 0x115   : > { %v581_v45 = vadd.f32 %v574_v40, %v553_v43  ;;  %v555_v46 = vpop.f32.mrb[1].mxu0 }
 0x116   : > { %v582_v47 = vadd.f32 %v578_v41, %v555_v46  ;;  %v557_v48 = vpop.f32.mrb[2].mxu0 }
 0x117   : > { %v586_v49 = vadd.f32 %v584_v42, %v581_v45  ;;  %v558_v50 = vpop.f32.mrb[3].mxu0 }
 0x118   : > { %v587_v51 = vadd.f32 %v585_v44, %v582_v47 }
 0x119   : > { %v588_v52 = vmax.f32 %v586_v49, 0.0 }
 0x11a   : > { %v589_v53 = vmax.f32 %v587_v51, 0.0 }
 0x11c   : > { %v772_v54 = vpack.c.bf16 %v589_v53, %v588_v52 }
 0x11e   : > { %598 = vst [vmem:[%s411_s25] sm:$0xff] %v772_v54 }
 0x11f PF: > { %s14_s19 = sadd.s32 1, %s876_s19   ;;  %s1001_s15 = smov %s864_s16 }
 0x120   : > { %p11_p10 = scmp.ge.s32.totalorder %s14_s19, 4   ;;  %s1002_s16 = smov %s939_s23 }
 0x121   : > { %s1003_s17 = smov %s872_s18  ;;  %s1004_s18 = smov %s1006_s20 }
 0x122   :  { %13 = sbr.rel (!%p11_p10) target bundleno = 3 (0x3), region = 126 }

// kernel: _encoder_cnn_forward.70
= control target key start
LH: loop header
LB: loop body
LE: loop exit
PB: predicated region body
PF: predicated region fallthrough
CT: control target
= control target key end

     0   :  { %s639_s1 = inlined_call_operand.vmem [shape: bf16[512,128], index: 1, kind: input, shape index: {}]   ;;  %s640_s0 = inlined_call_operand.vmem [shape: bf16[8,512], index: 0, kind: input, shape index: {}]   ;;  %s641_s2 = inlined_call_operand.vmem [shape: f32[1,128], index: 2, kind: input, shape index: {}]   ;;  %s642_s3 = inlined_call_operand.vmem [shape: bf16[8,128], index: 3, kind: output, shape index: {}]  }
   0x1   :  { %v475_v0 = vld [vmem:[%s639_s1 + $0x40] sm:$0xff]   ;;  %v479_v4 = vld [vmem:[%s639_s1 + $0x48] sm:$0xff]   ;;  %v483_v8 = vld [vmem:[%s639_s1 + $0x50] sm:$0xff]  }
   0x2   :  { %v476_v1 = vld [vmem:[%s639_s1 + $0xc0] sm:$0xff]   ;;  %431 = vmatprep.subr.bf16.mxu0 %v475_v0  ;;  %v480_v5 = vld [vmem:[%s639_s1 + $0xc8] sm:$0xff]   ;;  %v484_v9 = vld [vmem:[%s639_s1 + $0xd0] sm:$0xff]  }
   0x3   :  { %v477_v2 = vld [vmem:[%s639_s1] sm:$0xff]   ;;  %453 = vmatprep.subr.bf16.mxu1 %v476_v1  ;;  %v481_v6 = vld [vmem:[%s639_s1 + $0x8] sm:$0xff]   ;;  %v485_v10 = vld [vmem:[%s639_s1 + $0x10] sm:$0xff]  }
   0x4   :  { %v478_v3 = vld [vmem:[%s639_s1 + $0x80] sm:$0xff]   ;;  %432 = vmatpush3.bf16.msra.mxu0 %v477_v2  ;;  %v482_v7 = vld [vmem:[%s639_s1 + $0x88] sm:$0xff]   ;;  %v486_v11 = vld [vmem:[%s639_s1 + $0x90] sm:$0xff]  }
   0x5   :  { %454 = vmatpush3.bf16.msra.mxu1 %v478_v3  ;;  %433 = vmatprep.subr.bf16.mxu0 %v479_v4  ;;  %v487_v12 = vld [vmem:[%s639_s1 + $0x58] sm:$0xff]   ;;  %v491_v16 = vld [vmem:[%s639_s1 + $0x60] sm:$0xff]   ;;  %v495_v20 = vld [vmem:[%s639_s1 + $0x68] sm:$0xff]  }
   0x6   :  { %455 = vmatprep.subr.bf16.mxu1 %v480_v5  ;;  %v488_v13 = vld [vmem:[%s639_s1 + $0xd8] sm:$0xff]   ;;  %v492_v17 = vld [vmem:[%s639_s1 + $0xe0] sm:$0xff]   ;;  %v496_v21 = vld [vmem:[%s639_s1 + $0xe8] sm:$0xff]  }
   0x7   :  { %v489_v14 = vld [vmem:[%s639_s1 + $0x18] sm:$0xff]   ;;  %v493_v18 = vld [vmem:[%s639_s1 + $0x20] sm:$0xff]   ;;  %v497_v22 = vld [vmem:[%s639_s1 + $0x28] sm:$0xff]  }
   0x8   :  { %434 = vmatpush3.bf16.msra.mxu0 %v481_v6  ;;  %v490_v15 = vld [vmem:[%s639_s1 + $0x98] sm:$0xff]   ;;  %v494_v19 = vld [vmem:[%s639_s1 + $0xa0] sm:$0xff]   ;;  %v498_v23 = vld [vmem:[%s639_s1 + $0xa8] sm:$0xff]  }
   0x9   :  { %456 = vmatpush3.bf16.msra.mxu1 %v482_v7  ;;  %435 = vmatprep.subr.bf16.mxu0 %v483_v8  ;;  %v499_v24 = vld [vmem:[%s639_s1 + $0x70] sm:$0xff]   ;;  %v503_v28 = vld [vmem:[%s639_s1 + $0x78] sm:$0xff]   ;;  %v21_v32 = vld [vmem:[%s640_s0] sm:$0xff] }
   0xa   :  { %457 = vmatprep.subr.bf16.mxu1 %v484_v9  ;;  %v500_v25 = vld [vmem:[%s639_s1 + $0xf0] sm:$0xff]   ;;  %v504_v29 = vld [vmem:[%s639_s1 + $0xf8] sm:$0xff]   ;;  %v22_v33 = vld [vmem:[%s640_s0 + $0x8] sm:$0xff]  ;;  %v394_v34 = vcombine.low %v21_v32, %v21_v32  ;;  %v395_v35 = vcombine.high %v21_v32, %v21_v32 }
   0xb   :  { %v501_v26 = vld [vmem:[%s639_s1 + $0x30] sm:$0xff]   ;;  %v505_v30 = vld [vmem:[%s639_s1 + $0x38] sm:$0xff]   ;;  %v396_v36 = vcombine.low %v22_v33, %v22_v33  ;;  %v397_v37 = vcombine.high %v22_v33, %v22_v33  ;;  %v430_v46 = vld [vmem:[%s641_s2] ss:$0 sm:$0xff] }
   0xc   :  { %436 = vmatpush3.bf16.msra.mxu0 %v485_v10  ;;  %v502_v27 = vld [vmem:[%s639_s1 + $0xb0] sm:$0xff]   ;;  %v506_v31 = vld [vmem:[%s639_s1 + $0xb8] sm:$0xff]   ;;  %325 = vmatprep.mubr.bf16.mxu0 %v395_v35 }
   0xd   :  { %458 = vmatpush3.bf16.msra.mxu1 %v486_v11  ;;  %437 = vmatprep.subr.bf16.mxu0 %v487_v12 }
   0xe   :  { %459 = vmatprep.subr.bf16.mxu1 %v488_v13  ;;  %365 = vmatprep.mubr.bf16.mxu1 %v397_v37 }
  0x10   :  { %438 = vmatpush3.bf16.msra.mxu0 %v489_v14 }
  0x11   :  { %460 = vmatpush3.bf16.msra.mxu1 %v490_v15  ;;  %439 = vmatprep.subr.bf16.mxu0 %v491_v16 }
  0x12   :  { %461 = vmatprep.subr.bf16.mxu1 %v492_v17 }
  0x14   :  { %440 = vmatpush3.bf16.msra.mxu0 %v493_v18 }
  0x15   :  { %462 = vmatpush3.bf16.msra.mxu1 %v494_v19  ;;  %441 = vmatprep.subr.bf16.mxu0 %v495_v20 }
  0x16   :  { %463 = vmatprep.subr.bf16.mxu1 %v496_v21 }
  0x18   :  { %442 = vmatpush3.bf16.msra.mxu0 %v497_v22 }
  0x19   :  { %464 = vmatpush3.bf16.msra.mxu1 %v498_v23  ;;  %443 = vmatprep.subr.bf16.mxu0 %v499_v24 }
  0x1a   :  { %465 = vmatprep.subr.bf16.mxu1 %v500_v25 }
  0x1c   :  { %444 = vmatpush3.bf16.msra.mxu0 %v501_v26 }
  0x1d   :  { %466 = vmatpush3.bf16.msra.mxu1 %v502_v27  ;;  %445 = vmatprep.subr.bf16.mxu0 %v503_v28 }
  0x1e   :  { %467 = vmatprep.subr.bf16.mxu1 %v504_v29 }
  0x20   :  { %446 = vmatpush3.bf16.msra.mxu0 %v505_v30 }
  0x21   :  { %468 = vmatpush3.bf16.msra.mxu1 %v506_v31 }
  0x23   :  { %326 = vmatmul.mubr.bf16.vlgmr.msra.gmra.mrb[0].mxu0 %v394_v34 }
  0x24   :  { %366 = vmatmul.mubr.bf16.vlgmr.msra.gmra.mrb[0].mxu1 %v396_v36 }
  0xf6   :  { %v447_v38 = vpop.f32.mrb[0].mxu0 }
  0xf7   :  { %v469_v39 = vpop.f32.mrb[0].mxu1  ;;  %v448_v40 = vpop.f32.mrb[1].mxu0 }
  0xf8   :  { %v470_v41 = vpop.f32.mrb[1].mxu1  ;;  %v449_v42 = vadd.f32 %v448_v40, %v447_v38  ;;  %v450_v44 = vpop.f32.mrb[2].mxu0 }
  0xf9   :  { %v471_v43 = vadd.f32 %v470_v41, %v469_v39  ;;  %v472_v45 = vpop.f32.mrb[2].mxu1  ;;  %v451_v47 = vpop.f32.mrb[3].mxu0 }
  0xfa   :  { %v473_v48 = vpop.f32.mrb[3].mxu1 }
  0xfb   :  { %v368_v49 = vadd.f32 %v471_v43, %v449_v42 }
  0xfd   :  { %v386_v50 = vadd.f32 %v430_v46, %v368_v49 }
  0xff   :  { %v387_v51 = vmax.f32 %v386_v50, 0.0 }
 0x101   :  { %v388_v52 = vpack.c.bf16 %v387_v51, %v387_v51 }
 0x103   :  { %389 = vst [vmem:[%s642_s3] sm:$0xf] %v388_v52 }

// kernel: _encoder_cnn_forward.80
= control target key start
LH: loop header
LB: loop body
LE: loop exit
PB: predicated region body
PF: predicated region fallthrough
CT: control target
= control target key end

     0   :  { %s936_s1 = inlined_call_operand.vmem [shape: bf16[512,256], index: 1, kind: input, shape index: {}]   ;;  %s937_s0 = inlined_call_operand.vmem [shape: bf16[8,512], index: 0, kind: input, shape index: {}]   ;;  %s938_s2 = inlined_call_operand.vmem [shape: f32[1,256], index: 2, kind: input, shape index: {}]   ;;  %s939_s3 = inlined_call_operand.vmem [shape: bf16[8,256], index: 3, kind: output, shape index: {}]  }
   0x1   :  { %v612_v0 = vld [vmem:[%s936_s1 + $0x4] ss:$8 sps:$4 sm:$0xff]   ;;  %v616_v2 = vld [vmem:[%s936_s1] ss:$8 sps:$4 sm:$0xff]   ;;  %v618_v4 = vld [vmem:[%s936_s1 + $0x14] ss:$8 sps:$4 sm:$0xff]  }
   0x2   :  { %v614_v1 = vld [vmem:[%s936_s1 + $0x104] ss:$8 sps:$4 sm:$0xff]   ;;  %422 = vmatprep.subr.bf16.mxu0 %v612_v0  ;;  %v617_v3 = vld [vmem:[%s936_s1 + $0x100] ss:$8 sps:$4 sm:$0xff]   ;;  %v620_v5 = vld [vmem:[%s936_s1 + $0x114] ss:$8 sps:$4 sm:$0xff]  }
   0x3   :  { %463 = vmatprep.subr.bf16.mxu1 %v614_v1  ;;  %423 = vmatpush1.bf16.msra.mxu0 %v616_v2  ;;  %v622_v6 = vld [vmem:[%s936_s1 + $0x10] ss:$8 sps:$4 sm:$0xff]   ;;  %v624_v8 = vld [vmem:[%s936_s1 + $0x24] ss:$8 sps:$4 sm:$0xff]   ;;  %v628_v10 = vld [vmem:[%s936_s1 + $0x20] ss:$8 sps:$4 sm:$0xff]  }
   0x4   :  { %464 = vmatpush1.bf16.msra.mxu1 %v617_v3  ;;  %424 = vmatprep.subr.bf16.mxu0 %v618_v4  ;;  %v623_v7 = vld [vmem:[%s936_s1 + $0x110] ss:$8 sps:$4 sm:$0xff]   ;;  %v626_v9 = vld [vmem:[%s936_s1 + $0x124] ss:$8 sps:$4 sm:$0xff]   ;;  %v629_v11 = vld [vmem:[%s936_s1 + $0x120] ss:$8 sps:$4 sm:$0xff]  }
   0x5   :  { %465 = vmatprep.subr.bf16.mxu1 %v620_v5  ;;  %v630_v12 = vld [vmem:[%s936_s1 + $0x34] ss:$8 sps:$4 sm:$0xff]   ;;  %v634_v14 = vld [vmem:[%s936_s1 + $0x30] ss:$8 sps:$4 sm:$0xff]   ;;  %v636_v16 = vld [vmem:[%s936_s1 + $0x44] ss:$8 sps:$4 sm:$0xff]  }
   0x6   :  { %v632_v13 = vld [vmem:[%s936_s1 + $0x134] ss:$8 sps:$4 sm:$0xff]   ;;  %v635_v15 = vld [vmem:[%s936_s1 + $0x130] ss:$8 sps:$4 sm:$0xff]   ;;  %v638_v17 = vld [vmem:[%s936_s1 + $0x144] ss:$8 sps:$4 sm:$0xff]  }
   0x7   :  { %425 = vmatpush1.bf16.msra.mxu0 %v622_v6  ;;  %v640_v18 = vld [vmem:[%s936_s1 + $0x40] ss:$8 sps:$4 sm:$0xff]   ;;  %v642_v20 = vld [vmem:[%s936_s1 + $0x54] ss:$8 sps:$4 sm:$0xff]   ;;  %v646_v22 = vld [vmem:[%s936_s1 + $0x50] ss:$8 sps:$4 sm:$0xff]   ;;  %v515_v6 = vlaneseq }
   0x8   :  { %466 = vmatpush1.bf16.msra.mxu1 %v623_v7  ;;  %426 = vmatprep.subr.bf16.mxu0 %v624_v8  ;;  %v641_v19 = vld [vmem:[%s936_s1 + $0x140] ss:$8 sps:$4 sm:$0xff]   ;;  %v644_v21 = vld [vmem:[%s936_s1 + $0x154] ss:$8 sps:$4 sm:$0xff]   ;;  %v647_v23 = vld [vmem:[%s936_s1 + $0x150] ss:$8 sps:$4 sm:$0xff]  }
   0x9   :  { %467 = vmatprep.subr.bf16.mxu1 %v626_v9  ;;  %v648_v24 = vld [vmem:[%s936_s1 + $0x64] ss:$8 sps:$4 sm:$0xff]   ;;  %v652_v26 = vld [vmem:[%s936_s1 + $0x60] ss:$8 sps:$4 sm:$0xff]   ;;  %v654_v28 = vld [vmem:[%s936_s1 + $0x74] ss:$8 sps:$4 sm:$0xff]  }
   0xa   :  { %v650_v25 = vld [vmem:[%s936_s1 + $0x164] ss:$8 sps:$4 sm:$0xff]   ;;  %v653_v27 = vld [vmem:[%s936_s1 + $0x160] ss:$8 sps:$4 sm:$0xff]   ;;  %v656_v29 = vld [vmem:[%s936_s1 + $0x174] ss:$8 sps:$4 sm:$0xff]  }
   0xb   :  { %427 = vmatpush1.bf16.msra.mxu0 %v628_v10  ;;  %v658_v30 = vld [vmem:[%s936_s1 + $0x70] ss:$8 sps:$4 sm:$0xff]   ;;  %v660_v32 = vld [vmem:[%s936_s1 + $0x84] ss:$8 sps:$4 sm:$0xff]   ;;  %v664_v34 = vld [vmem:[%s936_s1 + $0x80] ss:$8 sps:$4 sm:$0xff]  }
   0xc   :  { %468 = vmatpush1.bf16.msra.mxu1 %v629_v11  ;;  %428 = vmatprep.subr.bf16.mxu0 %v630_v12  ;;  %v659_v31 = vld [vmem:[%s936_s1 + $0x170] ss:$8 sps:$4 sm:$0xff]   ;;  %v662_v33 = vld [vmem:[%s936_s1 + $0x184] ss:$8 sps:$4 sm:$0xff]   ;;  %v665_v35 = vld [vmem:[%s936_s1 + $0x180] ss:$8 sps:$4 sm:$0xff]  }
   0xd   :  { %469 = vmatprep.subr.bf16.mxu1 %v632_v13  ;;  %v666_v36 = vld [vmem:[%s936_s1 + $0x94] ss:$8 sps:$4 sm:$0xff]   ;;  %v670_v38 = vld [vmem:[%s936_s1 + $0x90] ss:$8 sps:$4 sm:$0xff]   ;;  %v672_v40 = vld [vmem:[%s936_s1 + $0xa4] ss:$8 sps:$4 sm:$0xff]  }
   0xe   :  { %v668_v37 = vld [vmem:[%s936_s1 + $0x194] ss:$8 sps:$4 sm:$0xff]   ;;  %v671_v39 = vld [vmem:[%s936_s1 + $0x190] ss:$8 sps:$4 sm:$0xff]   ;;  %v674_v41 = vld [vmem:[%s936_s1 + $0x1a4] ss:$8 sps:$4 sm:$0xff]  }
   0xf   :  { %429 = vmatpush1.bf16.msra.mxu0 %v634_v14  ;;  %v676_v42 = vld [vmem:[%s936_s1 + $0xa0] ss:$8 sps:$4 sm:$0xff]   ;;  %v678_v44 = vld [vmem:[%s936_s1 + $0xb4] ss:$8 sps:$4 sm:$0xff]   ;;  %v682_v49 = vld [vmem:[%s936_s1 + $0xb0] ss:$8 sps:$4 sm:$0xff]  }
  0x10   :  { %470 = vmatpush1.bf16.msra.mxu1 %v635_v15  ;;  %430 = vmatprep.subr.bf16.mxu0 %v636_v16  ;;  %v677_v43 = vld [vmem:[%s936_s1 + $0x1a0] ss:$8 sps:$4 sm:$0xff]   ;;  %v680_v45 = vld [vmem:[%s936_s1 + $0x1b4] ss:$8 sps:$4 sm:$0xff]   ;;  %v683_v50 = vld [vmem:[%s936_s1 + $0x1b0] ss:$8 sps:$4 sm:$0xff]  }
  0x11   :  { %471 = vmatprep.subr.bf16.mxu1 %v638_v17  ;;  %v22_v46 = vld [vmem:[%s937_s0] sm:$0xff]  ;;  %v23_v48 = vld [vmem:[%s937_s0 + $0x8] sm:$0xff]  ;;  %v690_v56 = vld [vmem:[%s936_s1 + $0xd4] ss:$8 sps:$4 sm:$0xff]   ;;  %v516_v7 = vshrl.u32 %v515_v6, 7 }
  0x12   :  { %v543_v47 = vcombine.high %v22_v46, %v22_v46  ;;  %v545_v51 = vcombine.high %v23_v48, %v23_v48  ;;  %v684_v52 = vld [vmem:[%s936_s1 + $0xc4] ss:$8 sps:$4 sm:$0xff]   ;;  %v688_v54 = vld [vmem:[%s936_s1 + $0xc0] ss:$8 sps:$4 sm:$0xff]   ;;  %v692_v57 = vld [vmem:[%s936_s1 + $0x1d4] ss:$8 sps:$4 sm:$0xff]   ;;  %v542_v4 = vcombine.low %v22_v46, %v22_v46  ;;  %v544_v5 = vcombine.low %v23_v48, %v23_v48 }
  0x13   :  { %431 = vmatpush1.bf16.msra.mxu0 %v640_v18  ;;  %v686_v53 = vld [vmem:[%s936_s1 + $0x1c4] ss:$8 sps:$4 sm:$0xff]   ;;  %v689_v55 = vld [vmem:[%s936_s1 + $0x1c0] ss:$8 sps:$4 sm:$0xff]   ;;  %v694_v58 = vld [vmem:[%s936_s1 + $0xd0] ss:$8 sps:$4 sm:$0xff]  }
  0x14   :  { %472 = vmatpush1.bf16.msra.mxu1 %v641_v19  ;;  %432 = vmatprep.subr.bf16.mxu0 %v642_v20  ;;  %v695_v59 = vld [vmem:[%s936_s1 + $0x1d0] ss:$8 sps:$4 sm:$0xff]   ;;  %v696_v60 = vld [vmem:[%s936_s1 + $0xe4] ss:$8 sps:$4 sm:$0xff]   ;;  %v700_v62 = vld [vmem:[%s936_s1 + $0xe0] ss:$8 sps:$4 sm:$0xff]  }
  0x15   :  { %473 = vmatprep.subr.bf16.mxu1 %v644_v21  ;;  %454 = vmatprep.mubr.bf16.mxu0 %v543_v47  ;;  %v698_v61 = vld [vmem:[%s936_s1 + $0x1e4] ss:$8 sps:$4 sm:$0xff]   ;;  %v701_v63 = vld [vmem:[%s936_s1 + $0x1e0] ss:$8 sps:$4 sm:$0xff]   ;;  %v702_v0 = vld [vmem:[%s936_s1 + $0xf4] ss:$8 sps:$4 sm:$0xff]  }
  0x16   :  { %495 = vmatprep.mubr.bf16.mxu1 %v545_v51  ;;  %v704_v1 = vld [vmem:[%s936_s1 + $0x1f4] ss:$8 sps:$4 sm:$0xff]   ;;  %v706_v2 = vld [vmem:[%s936_s1 + $0xf0] ss:$8 sps:$4 sm:$0xff]   ;;  %v517_v8 = vsub.s32 0, %v516_v7  ;;  %v521_v10 = vsub.s32 1, %v516_v7 }
  0x17   :  { %433 = vmatpush1.bf16.msra.mxu0 %v646_v22  ;;  %v707_v3 = vld [vmem:[%s936_s1 + $0x1f0] ss:$8 sps:$4 sm:$0xff]   ;;  %v513_v9 = vld [vmem:[%s938_s2] sm:$0x3] }
  0x18   :  { %474 = vmatpush1.bf16.msra.mxu1 %v647_v23  ;;  %434 = vmatprep.subr.bf16.mxu0 %v648_v24  ;;  %v518_v11 = vrot.slane %v513_v9, %v517_v8  ;;  %v522_v14 = vrot.slane %v513_v9, %v521_v10 }
  0x19   :  { %475 = vmatprep.subr.bf16.mxu1 %v650_v25 }
  0x1b   :  { %435 = vmatpush1.bf16.msra.mxu0 %v652_v26 }
  0x1c   :  { %476 = vmatpush1.bf16.msra.mxu1 %v653_v27  ;;  %436 = vmatprep.subr.bf16.mxu0 %v654_v28 }
  0x1d   :  { %477 = vmatprep.subr.bf16.mxu1 %v656_v29 }
  0x1f   :  { %437 = vmatpush1.bf16.msra.mxu0 %v658_v30 }
  0x20   :  { %478 = vmatpush1.bf16.msra.mxu1 %v659_v31  ;;  %438 = vmatprep.subr.bf16.mxu0 %v660_v32 }
  0x21   :  { %479 = vmatprep.subr.bf16.mxu1 %v662_v33 }
  0x23   :  { %439 = vmatpush1.bf16.msra.mxu0 %v664_v34 }
  0x24   :  { %480 = vmatpush1.bf16.msra.mxu1 %v665_v35  ;;  %440 = vmatprep.subr.bf16.mxu0 %v666_v36 }
  0x25   :  { %481 = vmatprep.subr.bf16.mxu1 %v668_v37 }
  0x27   :  { %441 = vmatpush1.bf16.msra.mxu0 %v670_v38 }
  0x28   :  { %482 = vmatpush1.bf16.msra.mxu1 %v671_v39  ;;  %442 = vmatprep.subr.bf16.mxu0 %v672_v40 }
  0x29   :  { %483 = vmatprep.subr.bf16.mxu1 %v674_v41 }
  0x2b   :  { %443 = vmatpush1.bf16.msra.mxu0 %v676_v42 }
  0x2c   :  { %484 = vmatpush1.bf16.msra.mxu1 %v677_v43  ;;  %444 = vmatprep.subr.bf16.mxu0 %v678_v44 }
  0x2d   :  { %485 = vmatprep.subr.bf16.mxu1 %v680_v45 }
  0x2f   :  { %445 = vmatpush1.bf16.msra.mxu0 %v682_v49 }
  0x30   :  { %486 = vmatpush1.bf16.msra.mxu1 %v683_v50  ;;  %446 = vmatprep.subr.bf16.mxu0 %v684_v52 }
  0x31   :  { %487 = vmatprep.subr.bf16.mxu1 %v686_v53 }
  0x33   :  { %447 = vmatpush1.bf16.msra.mxu0 %v688_v54 }
  0x34   :  { %488 = vmatpush1.bf16.msra.mxu1 %v689_v55  ;;  %448 = vmatprep.subr.bf16.mxu0 %v690_v56 }
  0x35   :  { %489 = vmatprep.subr.bf16.mxu1 %v692_v57 }
  0x37   :  { %449 = vmatpush1.bf16.msra.mxu0 %v694_v58 }
  0x38   :  { %490 = vmatpush1.bf16.msra.mxu1 %v695_v59  ;;  %450 = vmatprep.subr.bf16.mxu0 %v696_v60 }
  0x39   :  { %491 = vmatprep.subr.bf16.mxu1 %v698_v61 }
  0x3b   :  { %451 = vmatpush1.bf16.msra.mxu0 %v700_v62 }
  0x3c   :  { %492 = vmatpush1.bf16.msra.mxu1 %v701_v63  ;;  %452 = vmatprep.subr.bf16.mxu0 %v702_v0 }
  0x3d   :  { %493 = vmatprep.subr.bf16.mxu1 %v704_v1 }
  0x3f   :  { %453 = vmatpush1.bf16.msra.mxu0 %v706_v2 }
  0x40   :  { %494 = vmatpush1.bf16.msra.mxu1 %v707_v3 }
  0x42   :  { %455 = vmatmul.mubr.bf16.vlgmr.msra.gmra.mrb[0].mxu0 %v542_v4 }
  0x43   :  { %496 = vmatmul.mubr.bf16.vlgmr.msra.gmra.mrb[0].mxu1 %v544_v5 }
 0x115   :  { %v456_v12 = vpop.f32.mrb[0].mxu0 }
 0x116   :  { %v497_v13 = vpop.f32.mrb[0].mxu1  ;;  %v458_v16 = vpop.f32.mrb[1].mxu0 }
 0x117   :  { %v498_v15 = vadd.f32 %v497_v13, %v456_v12  ;;  %v499_v17 = vpop.f32.mrb[1].mxu1  ;;  %v460_v19 = vpop.f32.mrb[2].mxu0 }
 0x118   :  { %v500_v18 = vadd.f32 %v499_v17, %v458_v16  ;;  %v501_v20 = vpop.f32.mrb[2].mxu1  ;;  %v461_v22 = vpop.f32.mrb[3].mxu0 }
 0x119   :  { %v525_v21 = vadd.f32 %v518_v11, %v498_v15  ;;  %v502_v23 = vpop.f32.mrb[3].mxu1 }
 0x11a   :  { %v526_v24 = vadd.f32 %v522_v14, %v500_v18 }
 0x11b   :  { %v527_v25 = vmax.f32 %v525_v21, 0.0 }
 0x11c   :  { %v528_v26 = vmax.f32 %v526_v24, 0.0 }
 0x11e   :  { %v611_v27 = vpack.c.bf16 %v528_v26, %v527_v25 }
 0x120   :  { %537 = vst [vmem:[%s939_s3] sm:$0xff] %v611_v27 }

// kernel: _encoder_cnn_forward.81
= control target key start
LH: loop header
LB: loop body
LE: loop exit
PB: predicated region body
PF: predicated region fallthrough
CT: control target
= control target key end

     0   :  { %s1176_s12 = smov 0   ;;  %s1178_s13 = smov 0   ;;  %s1291_s0 = inlined_call_operand.vmem [shape: bf16[8,2560], index: 0, kind: input, shape index: {}]   ;;  %s1292_s1 = inlined_call_operand.vmem [shape: bf16[2560,256], index: 1, kind: input, shape index: {}]   ;;  %s1293_s2 = inlined_call_operand.vmem [shape: f32[1,256], index: 2, kind: input, shape index: {}]   ;;  %s1294_s3 = inlined_call_operand.vmem [shape: bf16[8,256], index: 3, kind: output, shape index: {}]  }
   0x1   :  { %s1180_s14 = smov 0  }
   0x2 LB: > { %s25_s15 = sadd.s32 1, %s1149_s13  ;;  %p923_p0 = scmp.ge.s32.totalorder %s1153_s14, 1  ;;  %s1153_s14 = sphi %s1180_s14, %s13_s14   ;;  %s1149_s13 = sphi %s1178_s13, %s1296_s13   ;;  %s1145_s12 = sphi %s1176_s12, %s1295_s12  }
   0x3   : > { %p26_p1 = scmp.ge.s32.totalorder %s25_s15, 5  ;;  %p194_p2 = scmp.lt.s32.totalorder %s1153_s14, 6 }
   0x5   : > { %s1298_s15 = smov (%p26_p1, %s25_s15), 0  ;;  %p195_p3 = pnand %p923_p0, %p194_p2 }
   0x6   : > { %s924_s16 = sshll.u32 (!%p195_p3), %s1145_s12, 2  ;;  %s926_s17 = sshll.u32 (!%p195_p3), %s1145_s12, 6 }
   0x7   : > { %198 = sbr.rel (%p195_p3) target bundleno = 322 (0x142), region = 32  ;;  %p243_p4 = scmp.lt.s32.totalorder (!%p195_p3), %s924_s16, 19 }
   0x8   : > { %p252_p5 = scmp.lt.s32.totalorder (!%p195_p3), %s926_s17, 319  ;;  %p929_p6 = scmp.ne.s32.totalorder (!%p195_p3), %s1145_s12, 0 }
   0xe   : > { %s1300_s16 = smov (!%p243_p4, %s924_s16), 19  ;;  %s1302_s17 = smov (!%p252_p5, %s926_s17), 319 }
   0xf   : > { %s925_s18 = sshll.u32 %s1300_s16, 2  ;;  %s1004_s22 = sshll.u32 %s1302_s17, 3  ;;  %v1155_v0 = vmov (!%p929_p6), 0.0  }
  0x10   : > { %s1201_s21 = scalar_lea.vmem %s1291_s0, %s925_s18  ;;  %s1206_s25 = scalar_lea.vmem %s1292_s1, %s1004_s22  ;;  %281 = vst [vmem:[#allocation2] sm:$0xff] (!%p929_p6), %v1155_v0  ;;  %282 = vst [vmem:[#allocation2 + $0x8] sm:$0xff] (!%p929_p6), %v1155_v0 }
  0x11   : > { %280 = sbr.rel (%p929_p6) target bundleno = 24 (0x18), region = 36 }
  0x18 PF: > { %v1031_v1 = vld [vmem:[%s1206_s25 + $0x4] ss:$8 sps:$4 sm:$0xff]   ;;  %v1035_v3 = vld [vmem:[%s1206_s25] ss:$8 sps:$4 sm:$0xff]   ;;  %v1037_v5 = vld [vmem:[%s1206_s25 + $0x14] ss:$8 sps:$4 sm:$0xff]  }
  0x19   : > { %v1033_v2 = vld [vmem:[%s1206_s25 + $0x104] ss:$8 sps:$4 sm:$0xff]   ;;  %685 = vmatprep.subr.bf16.mxu0 %v1031_v1  ;;  %v1036_v4 = vld [vmem:[%s1206_s25 + $0x100] ss:$8 sps:$4 sm:$0xff]   ;;  %v1039_v6 = vld [vmem:[%s1206_s25 + $0x114] ss:$8 sps:$4 sm:$0xff]  }
  0x1a   : > { %726 = vmatprep.subr.bf16.mxu1 %v1033_v2  ;;  %686 = vmatpush1.bf16.msra.mxu0 %v1035_v3  ;;  %v1041_v7 = vld [vmem:[%s1206_s25 + $0x10] ss:$8 sps:$4 sm:$0xff]   ;;  %v1043_v9 = vld [vmem:[%s1206_s25 + $0x24] ss:$8 sps:$4 sm:$0xff]   ;;  %v1047_v11 = vld [vmem:[%s1206_s25 + $0x20] ss:$8 sps:$4 sm:$0xff]  }
  0x1b   : > { %727 = vmatpush1.bf16.msra.mxu1 %v1036_v4  ;;  %687 = vmatprep.subr.bf16.mxu0 %v1037_v5  ;;  %v1042_v8 = vld [vmem:[%s1206_s25 + $0x110] ss:$8 sps:$4 sm:$0xff]   ;;  %v1045_v10 = vld [vmem:[%s1206_s25 + $0x124] ss:$8 sps:$4 sm:$0xff]   ;;  %v1048_v12 = vld [vmem:[%s1206_s25 + $0x120] ss:$8 sps:$4 sm:$0xff]  }
  0x1c   : > { %728 = vmatprep.subr.bf16.mxu1 %v1039_v6  ;;  %v1049_v13 = vld [vmem:[%s1206_s25 + $0x34] ss:$8 sps:$4 sm:$0xff]   ;;  %v1053_v15 = vld [vmem:[%s1206_s25 + $0x30] ss:$8 sps:$4 sm:$0xff]   ;;  %v1055_v17 = vld [vmem:[%s1206_s25 + $0x44] ss:$8 sps:$4 sm:$0xff]  }
  0x1d   : > { %v1051_v14 = vld [vmem:[%s1206_s25 + $0x134] ss:$8 sps:$4 sm:$0xff]   ;;  %v1054_v16 = vld [vmem:[%s1206_s25 + $0x130] ss:$8 sps:$4 sm:$0xff]   ;;  %v1057_v18 = vld [vmem:[%s1206_s25 + $0x144] ss:$8 sps:$4 sm:$0xff]  }
  0x1e   : > { %688 = vmatpush1.bf16.msra.mxu0 %v1041_v7  ;;  %v1059_v19 = vld [vmem:[%s1206_s25 + $0x40] ss:$8 sps:$4 sm:$0xff]   ;;  %v1061_v21 = vld [vmem:[%s1206_s25 + $0x54] ss:$8 sps:$4 sm:$0xff]   ;;  %v1065_v23 = vld [vmem:[%s1206_s25 + $0x50] ss:$8 sps:$4 sm:$0xff]  }
  0x1f   : > { %729 = vmatpush1.bf16.msra.mxu1 %v1042_v8  ;;  %689 = vmatprep.subr.bf16.mxu0 %v1043_v9  ;;  %v1060_v20 = vld [vmem:[%s1206_s25 + $0x140] ss:$8 sps:$4 sm:$0xff]   ;;  %v1063_v22 = vld [vmem:[%s1206_s25 + $0x154] ss:$8 sps:$4 sm:$0xff]   ;;  %v1066_v24 = vld [vmem:[%s1206_s25 + $0x150] ss:$8 sps:$4 sm:$0xff]  }
  0x20   : > { %730 = vmatprep.subr.bf16.mxu1 %v1045_v10  ;;  %v1067_v25 = vld [vmem:[%s1206_s25 + $0x64] ss:$8 sps:$4 sm:$0xff]   ;;  %v1071_v27 = vld [vmem:[%s1206_s25 + $0x60] ss:$8 sps:$4 sm:$0xff]   ;;  %v1073_v29 = vld [vmem:[%s1206_s25 + $0x74] ss:$8 sps:$4 sm:$0xff]  }
  0x21   : > { %v1069_v26 = vld [vmem:[%s1206_s25 + $0x164] ss:$8 sps:$4 sm:$0xff]   ;;  %v1072_v28 = vld [vmem:[%s1206_s25 + $0x160] ss:$8 sps:$4 sm:$0xff]   ;;  %v1075_v30 = vld [vmem:[%s1206_s25 + $0x174] ss:$8 sps:$4 sm:$0xff]  }
  0x22   : > { %690 = vmatpush1.bf16.msra.mxu0 %v1047_v11  ;;  %v1077_v31 = vld [vmem:[%s1206_s25 + $0x70] ss:$8 sps:$4 sm:$0xff]   ;;  %v1079_v33 = vld [vmem:[%s1206_s25 + $0x84] ss:$8 sps:$4 sm:$0xff]   ;;  %v1083_v35 = vld [vmem:[%s1206_s25 + $0x80] ss:$8 sps:$4 sm:$0xff]  }
  0x23   : > { %731 = vmatpush1.bf16.msra.mxu1 %v1048_v12  ;;  %691 = vmatprep.subr.bf16.mxu0 %v1049_v13  ;;  %v1078_v32 = vld [vmem:[%s1206_s25 + $0x170] ss:$8 sps:$4 sm:$0xff]   ;;  %v1081_v34 = vld [vmem:[%s1206_s25 + $0x184] ss:$8 sps:$4 sm:$0xff]   ;;  %v1084_v36 = vld [vmem:[%s1206_s25 + $0x180] ss:$8 sps:$4 sm:$0xff]  }
  0x24   : > { %732 = vmatprep.subr.bf16.mxu1 %v1051_v14  ;;  %v1085_v37 = vld [vmem:[%s1206_s25 + $0x94] ss:$8 sps:$4 sm:$0xff]   ;;  %v1089_v39 = vld [vmem:[%s1206_s25 + $0x90] ss:$8 sps:$4 sm:$0xff]   ;;  %v1091_v41 = vld [vmem:[%s1206_s25 + $0xa4] ss:$8 sps:$4 sm:$0xff]  }
  0x25   : > { %v1087_v38 = vld [vmem:[%s1206_s25 + $0x194] ss:$8 sps:$4 sm:$0xff]   ;;  %v1090_v40 = vld [vmem:[%s1206_s25 + $0x190] ss:$8 sps:$4 sm:$0xff]   ;;  %v1093_v42 = vld [vmem:[%s1206_s25 + $0x1a4] ss:$8 sps:$4 sm:$0xff]  }
  0x26   : > { %692 = vmatpush1.bf16.msra.mxu0 %v1053_v15  ;;  %v1095_v43 = vld [vmem:[%s1206_s25 + $0xa0] ss:$8 sps:$4 sm:$0xff]   ;;  %v1097_v45 = vld [vmem:[%s1206_s25 + $0xb4] ss:$8 sps:$4 sm:$0xff]   ;;  %v1101_v50 = vld [vmem:[%s1206_s25 + $0xb0] ss:$8 sps:$4 sm:$0xff]  }
  0x27   : > { %733 = vmatpush1.bf16.msra.mxu1 %v1054_v16  ;;  %693 = vmatprep.subr.bf16.mxu0 %v1055_v17  ;;  %v1096_v44 = vld [vmem:[%s1206_s25 + $0x1a0] ss:$8 sps:$4 sm:$0xff]   ;;  %v1099_v46 = vld [vmem:[%s1206_s25 + $0x1b4] ss:$8 sps:$4 sm:$0xff]   ;;  %v1102_v51 = vld [vmem:[%s1206_s25 + $0x1b0] ss:$8 sps:$4 sm:$0xff]  }
  0x28   : > { %734 = vmatprep.subr.bf16.mxu1 %v1057_v18  ;;  %v285_v47 = vld [vmem:[%s1201_s21] sm:$0xff]  ;;  %v286_v49 = vld [vmem:[%s1201_s21 + $0x8] sm:$0xff]  ;;  %v1109_v57 = vld [vmem:[%s1206_s25 + $0xd4] ss:$8 sps:$4 sm:$0xff]   ;;  %p998_p7 = scmp.ne.s32.totalorder %s1145_s12, 4 }
  0x29   : > { %v931_v48 = vcombine.high %v285_v47, %v285_v47  ;;  %v933_v52 = vcombine.high %v286_v49, %v286_v49  ;;  %v1103_v53 = vld [vmem:[%s1206_s25 + $0xc4] ss:$8 sps:$4 sm:$0xff]   ;;  %v1107_v55 = vld [vmem:[%s1206_s25 + $0xc0] ss:$8 sps:$4 sm:$0xff]   ;;  %v1111_v58 = vld [vmem:[%s1206_s25 + $0x1d4] ss:$8 sps:$4 sm:$0xff]   ;;  %v930_v5 = vcombine.low %v285_v47, %v285_v47  ;;  %v932_v6 = vcombine.low %v286_v49, %v286_v49 }
  0x2a   : > { %694 = vmatpush1.bf16.msra.mxu0 %v1059_v19  ;;  %v1105_v54 = vld [vmem:[%s1206_s25 + $0x1c4] ss:$8 sps:$4 sm:$0xff]   ;;  %v1108_v56 = vld [vmem:[%s1206_s25 + $0x1c0] ss:$8 sps:$4 sm:$0xff]   ;;  %v1113_v59 = vld [vmem:[%s1206_s25 + $0xd0] ss:$8 sps:$4 sm:$0xff]  }
  0x2b   : > { %735 = vmatpush1.bf16.msra.mxu1 %v1060_v20  ;;  %695 = vmatprep.subr.bf16.mxu0 %v1061_v21  ;;  %v1114_v60 = vld [vmem:[%s1206_s25 + $0x1d0] ss:$8 sps:$4 sm:$0xff]   ;;  %v1115_v61 = vld [vmem:[%s1206_s25 + $0xe4] ss:$8 sps:$4 sm:$0xff]   ;;  %v1119_v63 = vld [vmem:[%s1206_s25 + $0xe0] ss:$8 sps:$4 sm:$0xff]   ;;  %v779_v21 = vlaneseq (!%p998_p7) }
  0x2c   : > { %736 = vmatprep.subr.bf16.mxu1 %v1063_v22  ;;  %717 = vmatprep.mubr.bf16.mxu0 %v931_v48  ;;  %v1117_v62 = vld [vmem:[%s1206_s25 + $0x1e4] ss:$8 sps:$4 sm:$0xff]   ;;  %v1120_v0 = vld [vmem:[%s1206_s25 + $0x1e0] ss:$8 sps:$4 sm:$0xff]   ;;  %v1121_v1 = vld [vmem:[%s1206_s25 + $0xf4] ss:$8 sps:$4 sm:$0xff]  }
  0x2d   : > { %758 = vmatprep.mubr.bf16.mxu1 %v933_v52  ;;  %v1123_v2 = vld [vmem:[%s1206_s25 + $0x1f4] ss:$8 sps:$4 sm:$0xff]   ;;  %v1125_v3 = vld [vmem:[%s1206_s25 + $0xf0] ss:$8 sps:$4 sm:$0xff]   ;;  %v283_v8 = vld [vmem:[#allocation2] sm:$0xff]  ;;  %v780_v22 = vshrl.u32 (!%p998_p7), %v779_v21, 7 }
  0x2e   : > { %696 = vmatpush1.bf16.msra.mxu0 %v1065_v23  ;;  %v1126_v4 = vld [vmem:[%s1206_s25 + $0x1f0] ss:$8 sps:$4 sm:$0xff]   ;;  %v284_v12 = vld [vmem:[#allocation2 + $0x8] sm:$0xff]  ;;  %v777_v23 = vld [vmem:[%s1293_s2] sm:$0x3] (!%p998_p7) }
  0x2f   : > { %737 = vmatpush1.bf16.msra.mxu1 %v1066_v24  ;;  %697 = vmatprep.subr.bf16.mxu0 %v1067_v25  ;;  %v781_v24 = vsub.s32 (!%p998_p7), 0, %v780_v22  ;;  %v785_v25 = vsub.s32 (!%p998_p7), 1, %v780_v22 }
  0x30   : > { %738 = vmatprep.subr.bf16.mxu1 %v1069_v26 }
  0x32   : > { %698 = vmatpush1.bf16.msra.mxu0 %v1071_v27 }
  0x33   : > { %739 = vmatpush1.bf16.msra.mxu1 %v1072_v28  ;;  %699 = vmatprep.subr.bf16.mxu0 %v1073_v29  ;;  %v782_v28 = vrot.slane (!%p998_p7), %v777_v23, %v781_v24  ;;  %v786_v29 = vrot.slane (!%p998_p7), %v777_v23, %v785_v25 }
  0x34   : > { %740 = vmatprep.subr.bf16.mxu1 %v1075_v30 }
  0x36   : > { %700 = vmatpush1.bf16.msra.mxu0 %v1077_v31 }
  0x37   : > { %741 = vmatpush1.bf16.msra.mxu1 %v1078_v32  ;;  %701 = vmatprep.subr.bf16.mxu0 %v1079_v33 }
  0x38   : > { %742 = vmatprep.subr.bf16.mxu1 %v1081_v34 }
  0x3a   : > { %702 = vmatpush1.bf16.msra.mxu0 %v1083_v35 }
  0x3b   : > { %743 = vmatpush1.bf16.msra.mxu1 %v1084_v36  ;;  %703 = vmatprep.subr.bf16.mxu0 %v1085_v37 }
  0x3c   : > { %744 = vmatprep.subr.bf16.mxu1 %v1087_v38 }
  0x3e   : > { %704 = vmatpush1.bf16.msra.mxu0 %v1089_v39 }
  0x3f   : > { %745 = vmatpush1.bf16.msra.mxu1 %v1090_v40  ;;  %705 = vmatprep.subr.bf16.mxu0 %v1091_v41 }
  0x40   : > { %746 = vmatprep.subr.bf16.mxu1 %v1093_v42 }
  0x42   : > { %706 = vmatpush1.bf16.msra.mxu0 %v1095_v43 }
  0x43   : > { %747 = vmatpush1.bf16.msra.mxu1 %v1096_v44  ;;  %707 = vmatprep.subr.bf16.mxu0 %v1097_v45 }
  0x44   : > { %748 = vmatprep.subr.bf16.mxu1 %v1099_v46 }
  0x46   : > { %708 = vmatpush1.bf16.msra.mxu0 %v1101_v50 }
  0x47   : > { %749 = vmatpush1.bf16.msra.mxu1 %v1102_v51  ;;  %709 = vmatprep.subr.bf16.mxu0 %v1103_v53 }
  0x48   : > { %750 = vmatprep.subr.bf16.mxu1 %v1105_v54 }
  0x4a   : > { %710 = vmatpush1.bf16.msra.mxu0 %v1107_v55 }
  0x4b   : > { %751 = vmatpush1.bf16.msra.mxu1 %v1108_v56  ;;  %711 = vmatprep.subr.bf16.mxu0 %v1109_v57 }
  0x4c   : > { %752 = vmatprep.subr.bf16.mxu1 %v1111_v58 }
  0x4e   : > { %712 = vmatpush1.bf16.msra.mxu0 %v1113_v59 }
  0x4f   : > { %753 = vmatpush1.bf16.msra.mxu1 %v1114_v60  ;;  %713 = vmatprep.subr.bf16.mxu0 %v1115_v61 }
  0x50   : > { %754 = vmatprep.subr.bf16.mxu1 %v1117_v62 }
  0x52   : > { %714 = vmatpush1.bf16.msra.mxu0 %v1119_v63 }
  0x53   : > { %755 = vmatpush1.bf16.msra.mxu1 %v1120_v0  ;;  %715 = vmatprep.subr.bf16.mxu0 %v1121_v1 }
  0x54   : > { %756 = vmatprep.subr.bf16.mxu1 %v1123_v2 }
  0x56   : > { %716 = vmatpush1.bf16.msra.mxu0 %v1125_v3 }
  0x57   : > { %757 = vmatpush1.bf16.msra.mxu1 %v1126_v4 }
  0x59   : > { %718 = vmatmul.mubr.bf16.vlgmr.msra.gmra.mrb[0].mxu0 %v930_v5 }
  0x5a   : > { %759 = vmatmul.mubr.bf16.vlgmr.msra.gmra.mrb[0].mxu1 %v932_v6 }
 0x12c   : > { %v719_v7 = vpop.f32.mrb[0].mxu0 }
 0x12d   : > { %v760_v9 = vpop.f32.mrb[0].mxu1  ;;  %v721_v11 = vpop.f32.mrb[1].mxu0  ;;  %774 = sbr.rel (%p998_p7) target bundleno = 322 (0x142), region = 40 }
 0x12e   : > { %v761_v10 = vadd.f32 %v760_v9, %v719_v7  ;;  %v762_v13 = vpop.f32.mrb[1].mxu1  ;;  %v723_v15 = vpop.f32.mrb[2].mxu0 }
 0x12f   : > { %v763_v14 = vadd.f32 %v762_v13, %v721_v11  ;;  %v764_v16 = vpop.f32.mrb[2].mxu1  ;;  %v724_v18 = vpop.f32.mrb[3].mxu0 }
 0x130   : > { %v767_v17 = vadd.f32 %v761_v10, %v283_v8  ;;  %v765_v19 = vpop.f32.mrb[3].mxu1 }
 0x131   : > { %v768_v20 = vadd.f32 %v763_v14, %v284_v12 }
 0x132   : > { %769 = vst [vmem:[#allocation2] sm:$0xff] %v767_v17 }
 0x133   : > { %770 = vst [vmem:[#allocation2 + $0x8] sm:$0xff] %v768_v20 }
 0x139   : > { %v775_v26 = vld [vmem:[#allocation2] sm:$0xff] }
 0x13a   : > { %v776_v27 = vld [vmem:[#allocation2 + $0x8] sm:$0xff]  ;;  %v789_v30 = vadd.f32 %v782_v28, %v775_v26 }
 0x13b   : > { %v790_v31 = vadd.f32 %v786_v29, %v776_v27 }
 0x13c   : > { %v791_v32 = vmax.f32 %v789_v30, 0.0 }
 0x13d   : > { %v792_v33 = vmax.f32 %v790_v31, 0.0 }
 0x13f   : > { %v1005_v34 = vpack.c.bf16 %v792_v33, %v791_v32 }
 0x141   : > { %801 = vst [vmem:[%s1294_s3] sm:$0xff] %v1005_v34 }
 0x142 PF: > { %s13_s14 = sadd.s32 1, %s1153_s14   ;;  %s1295_s12 = smov %s1149_s13 }
 0x143   : > { %p10_p8 = scmp.ge.s32.totalorder %s13_s14, 7   ;;  %s1296_s13 = smov %s1298_s15 }
 0x145   :  { %12 = sbr.rel (!%p10_p8) target bundleno = 2 (0x2), region = 76 }

// kernel: _encoder_cnn_forward.79
= control target key start
LH: loop header
LB: loop body
LE: loop exit
PB: predicated region body
PF: predicated region fallthrough
CT: control target
= control target key end

     0   :  { %s1481_s12 = smov 0   ;;  %s1483_s13 = smov 0   ;;  %s1765_s0 = inlined_call_operand.vmem [shape: bf16[8,512], index: 0, kind: input, shape index: {}]   ;;  %s1766_s1 = inlined_call_operand.vmem [shape: bf16[512,1024], index: 1, kind: input, shape index: {}]   ;;  %s1767_s2 = inlined_call_operand.vmem [shape: f32[1,1024], index: 2, kind: input, shape index: {}]   ;;  %s1768_s3 = inlined_call_operand.vmem [shape: bf16[8,1024], index: 3, kind: output, shape index: {}]  }
   0x1   :  { %s1485_s14 = smov 0   ;;  %s1487_s15 = smov 0  }
   0x2   :  { %s1489_s16 = smov 0  }
   0x3 LB: > { %s28_s17 = sadd.s32 1, %s1455_s15  ;;  %p76_p1 = scmp.ne.s32.totalorder %s1447_s13, %s1443_s12  ;;  %s1459_s16 = sphi %s1489_s16, %s13_s16   ;;  %s1455_s15 = sphi %s1487_s15, %s1772_s15   ;;  %s1451_s14 = sphi %s1485_s14, %s1771_s14   ;;  %s1447_s13 = sphi %s1483_s13, %s1770_s13   ;;  %s1443_s12 = sphi %s1481_s12, %s1769_s12  }
   0x4   : > { %p30_p0 = scmp.ge.s32.totalorder %s28_s17, 4  ;;  %p77_p2 = scmp.eq.s32.totalorder %s1459_s16, 0 }
   0x5   : > { %s69_s19 = sadd.s32 1, %s1447_s13  ;;  %p1199_p5 = scmp.ge.s32.totalorder %s1459_s16, 4 }
   0x6   : > { %s1774_s17 = smov (%p30_p0, %s28_s17), 0  ;;  %p78_p3 = por %p77_p2, %p76_p1 }
   0x7   : > { %s65_s18 = ssub.s32 %s1455_s15, %s1774_s17  ;;  %169 = sbr.rel (%p1199_p5) target bundleno = 82 (0x52), region = 20 }
   0x8   : > { %p67_p4 = scmp.eq.s32.totalorder %s65_s18, 0 }
   0xa   : > { %s1516_s20 = scalar_select %p67_p4, %s1447_s13, %s69_s19  }
   0xe   : > { %172 = sbr.rel (!%p78_p3) target bundleno = 82 (0x52), region = 24  ;;  %s174_s21 = sand.u32 (%p78_p3), 1, %s1447_s13  }
   0xf   : > { %s1279_s22 = sshll.u32 (%p78_p3), %s1455_s15, 3  ;;  %s1200_s23 = sshll.u32 (%p78_p3), %s174_s21, 9 }
  0x10   : > { %s1524_s26 = scalar_lea.vmem (%p78_p3), %s1766_s1, %s1279_s22  ;;  %s1529_s27 = scalar_lea.vmem (%p78_p3), [#allocation3], %s1200_s23 }
  0x11   : > { %v336_v0 = vld [vmem:[%s1524_s26] sm:$0xff] (%p78_p3) }
  0x12   : > { %v338_v1 = vld [vmem:[%s1524_s26 + $0x20] sm:$0xff] (%p78_p3)  ;;  %337 = vst [vmem:[%s1529_s27] sm:$0xff] (%p78_p3), %v336_v0 }
  0x13   : > { %v340_v2 = vld [vmem:[%s1524_s26 + $0x40] sm:$0xff] (%p78_p3)  ;;  %339 = vst [vmem:[%s1529_s27 + $0x8] sm:$0xff] (%p78_p3), %v338_v1 }
  0x14   : > { %341 = vst [vmem:[%s1529_s27 + $0x10] sm:$0xff] (%p78_p3), %v340_v2  ;;  %v342_v3 = vld [vmem:[%s1524_s26 + $0x60] sm:$0xff] (%p78_p3) }
  0x15   : > { %v344_v4 = vld [vmem:[%s1524_s26 + $0x80] sm:$0xff]  ;;  %343 = vst [vmem:[%s1529_s27 + $0x18] sm:$0xff] %v342_v3 }
  0x16   : > { %v346_v5 = vld [vmem:[%s1524_s26 + $0xa0] sm:$0xff]  ;;  %345 = vst [vmem:[%s1529_s27 + $0x20] sm:$0xff] %v344_v4 }
  0x17   : > { %347 = vst [vmem:[%s1529_s27 + $0x28] sm:$0xff] %v346_v5  ;;  %v348_v6 = vld [vmem:[%s1524_s26 + $0xc0] sm:$0xff] }
  0x18   : > { %v350_v7 = vld [vmem:[%s1524_s26 + $0xe0] sm:$0xff]  ;;  %349 = vst [vmem:[%s1529_s27 + $0x30] sm:$0xff] %v348_v6 }
  0x19   : > { %v352_v8 = vld [vmem:[%s1524_s26 + $0x100] sm:$0xff]  ;;  %351 = vst [vmem:[%s1529_s27 + $0x38] sm:$0xff] %v350_v7 }
  0x1a   : > { %353 = vst [vmem:[%s1529_s27 + $0x40] sm:$0xff] %v352_v8  ;;  %v354_v9 = vld [vmem:[%s1524_s26 + $0x120] sm:$0xff] }
  0x1b   : > { %v356_v10 = vld [vmem:[%s1524_s26 + $0x140] sm:$0xff]  ;;  %355 = vst [vmem:[%s1529_s27 + $0x48] sm:$0xff] %v354_v9 }
  0x1c   : > { %v358_v11 = vld [vmem:[%s1524_s26 + $0x160] sm:$0xff]  ;;  %357 = vst [vmem:[%s1529_s27 + $0x50] sm:$0xff] %v356_v10 }
  0x1d   : > { %359 = vst [vmem:[%s1529_s27 + $0x58] sm:$0xff] %v358_v11  ;;  %v360_v12 = vld [vmem:[%s1524_s26 + $0x180] sm:$0xff] }
  0x1e   : > { %v362_v13 = vld [vmem:[%s1524_s26 + $0x1a0] sm:$0xff]  ;;  %361 = vst [vmem:[%s1529_s27 + $0x60] sm:$0xff] %v360_v12 }
  0x1f   : > { %v364_v14 = vld [vmem:[%s1524_s26 + $0x1c0] sm:$0xff]  ;;  %363 = vst [vmem:[%s1529_s27 + $0x68] sm:$0xff] %v362_v13 }
  0x20   : > { %365 = vst [vmem:[%s1529_s27 + $0x70] sm:$0xff] %v364_v14  ;;  %v366_v15 = vld [vmem:[%s1524_s26 + $0x1e0] sm:$0xff] }
  0x21   : > { %v368_v16 = vld [vmem:[%s1524_s26 + $0x200] sm:$0xff]  ;;  %367 = vst [vmem:[%s1529_s27 + $0x78] sm:$0xff] %v366_v15 }
  0x22   : > { %v370_v17 = vld [vmem:[%s1524_s26 + $0x220] sm:$0xff]  ;;  %369 = vst [vmem:[%s1529_s27 + $0x80] sm:$0xff] %v368_v16 }
  0x23   : > { %371 = vst [vmem:[%s1529_s27 + $0x88] sm:$0xff] %v370_v17  ;;  %v372_v18 = vld [vmem:[%s1524_s26 + $0x240] sm:$0xff] }
  0x24   : > { %v374_v19 = vld [vmem:[%s1524_s26 + $0x260] sm:$0xff]  ;;  %373 = vst [vmem:[%s1529_s27 + $0x90] sm:$0xff] %v372_v18 }
  0x25   : > { %v376_v20 = vld [vmem:[%s1524_s26 + $0x280] sm:$0xff]  ;;  %375 = vst [vmem:[%s1529_s27 + $0x98] sm:$0xff] %v374_v19 }
  0x26   : > { %377 = vst [vmem:[%s1529_s27 + $0xa0] sm:$0xff] %v376_v20  ;;  %v378_v21 = vld [vmem:[%s1524_s26 + $0x2a0] sm:$0xff] }
  0x27   : > { %v380_v22 = vld [vmem:[%s1524_s26 + $0x2c0] sm:$0xff]  ;;  %379 = vst [vmem:[%s1529_s27 + $0xa8] sm:$0xff] %v378_v21 }
  0x28   : > { %v382_v23 = vld [vmem:[%s1524_s26 + $0x2e0] sm:$0xff]  ;;  %381 = vst [vmem:[%s1529_s27 + $0xb0] sm:$0xff] %v380_v22 }
  0x29   : > { %383 = vst [vmem:[%s1529_s27 + $0xb8] sm:$0xff] %v382_v23  ;;  %v384_v24 = vld [vmem:[%s1524_s26 + $0x300] sm:$0xff] }
  0x2a   : > { %v386_v25 = vld [vmem:[%s1524_s26 + $0x320] sm:$0xff]  ;;  %385 = vst [vmem:[%s1529_s27 + $0xc0] sm:$0xff] %v384_v24 }
  0x2b   : > { %v388_v26 = vld [vmem:[%s1524_s26 + $0x340] sm:$0xff]  ;;  %387 = vst [vmem:[%s1529_s27 + $0xc8] sm:$0xff] %v386_v25 }
  0x2c   : > { %389 = vst [vmem:[%s1529_s27 + $0xd0] sm:$0xff] %v388_v26  ;;  %v390_v27 = vld [vmem:[%s1524_s26 + $0x360] sm:$0xff] }
  0x2d   : > { %v392_v28 = vld [vmem:[%s1524_s26 + $0x380] sm:$0xff]  ;;  %391 = vst [vmem:[%s1529_s27 + $0xd8] sm:$0xff] %v390_v27 }
  0x2e   : > { %v394_v29 = vld [vmem:[%s1524_s26 + $0x3a0] sm:$0xff]  ;;  %393 = vst [vmem:[%s1529_s27 + $0xe0] sm:$0xff] %v392_v28 }
  0x2f   : > { %395 = vst [vmem:[%s1529_s27 + $0xe8] sm:$0xff] %v394_v29  ;;  %v396_v30 = vld [vmem:[%s1524_s26 + $0x3c0] sm:$0xff] }
  0x30   : > { %v398_v31 = vld [vmem:[%s1524_s26 + $0x3e0] sm:$0xff]  ;;  %397 = vst [vmem:[%s1529_s27 + $0xf0] sm:$0xff] %v396_v30 }
  0x31   : > { %v400_v32 = vld [vmem:[%s1524_s26 + $0x400] sm:$0xff]  ;;  %399 = vst [vmem:[%s1529_s27 + $0xf8] sm:$0xff] %v398_v31 }
  0x32   : > { %401 = vst [vmem:[%s1529_s27 + $0x100] sm:$0xff] %v400_v32  ;;  %v402_v33 = vld [vmem:[%s1524_s26 + $0x420] sm:$0xff] }
  0x33   : > { %v404_v34 = vld [vmem:[%s1524_s26 + $0x440] sm:$0xff]  ;;  %403 = vst [vmem:[%s1529_s27 + $0x108] sm:$0xff] %v402_v33 }
  0x34   : > { %v406_v35 = vld [vmem:[%s1524_s26 + $0x460] sm:$0xff]  ;;  %405 = vst [vmem:[%s1529_s27 + $0x110] sm:$0xff] %v404_v34 }
  0x35   : > { %407 = vst [vmem:[%s1529_s27 + $0x118] sm:$0xff] %v406_v35  ;;  %v408_v36 = vld [vmem:[%s1524_s26 + $0x480] sm:$0xff] }
  0x36   : > { %v410_v37 = vld [vmem:[%s1524_s26 + $0x4a0] sm:$0xff]  ;;  %409 = vst [vmem:[%s1529_s27 + $0x120] sm:$0xff] %v408_v36 }
  0x37   : > { %v412_v38 = vld [vmem:[%s1524_s26 + $0x4c0] sm:$0xff]  ;;  %411 = vst [vmem:[%s1529_s27 + $0x128] sm:$0xff] %v410_v37 }
  0x38   : > { %413 = vst [vmem:[%s1529_s27 + $0x130] sm:$0xff] %v412_v38  ;;  %v414_v39 = vld [vmem:[%s1524_s26 + $0x4e0] sm:$0xff] }
  0x39   : > { %v416_v40 = vld [vmem:[%s1524_s26 + $0x500] sm:$0xff]  ;;  %415 = vst [vmem:[%s1529_s27 + $0x138] sm:$0xff] %v414_v39 }
  0x3a   : > { %v418_v41 = vld [vmem:[%s1524_s26 + $0x520] sm:$0xff]  ;;  %417 = vst [vmem:[%s1529_s27 + $0x140] sm:$0xff] %v416_v40 }
  0x3b   : > { %419 = vst [vmem:[%s1529_s27 + $0x148] sm:$0xff] %v418_v41  ;;  %v420_v42 = vld [vmem:[%s1524_s26 + $0x540] sm:$0xff] }
  0x3c   : > { %v422_v43 = vld [vmem:[%s1524_s26 + $0x560] sm:$0xff]  ;;  %421 = vst [vmem:[%s1529_s27 + $0x150] sm:$0xff] %v420_v42 }
  0x3d   : > { %v424_v44 = vld [vmem:[%s1524_s26 + $0x580] sm:$0xff]  ;;  %423 = vst [vmem:[%s1529_s27 + $0x158] sm:$0xff] %v422_v43 }
  0x3e   : > { %425 = vst [vmem:[%s1529_s27 + $0x160] sm:$0xff] %v424_v44  ;;  %v426_v45 = vld [vmem:[%s1524_s26 + $0x5a0] sm:$0xff] }
  0x3f   : > { %v428_v46 = vld [vmem:[%s1524_s26 + $0x5c0] sm:$0xff]  ;;  %427 = vst [vmem:[%s1529_s27 + $0x168] sm:$0xff] %v426_v45 }
  0x40   : > { %v430_v47 = vld [vmem:[%s1524_s26 + $0x5e0] sm:$0xff]  ;;  %429 = vst [vmem:[%s1529_s27 + $0x170] sm:$0xff] %v428_v46 }
  0x41   : > { %431 = vst [vmem:[%s1529_s27 + $0x178] sm:$0xff] %v430_v47  ;;  %v432_v48 = vld [vmem:[%s1524_s26 + $0x600] sm:$0xff] }
  0x42   : > { %v434_v49 = vld [vmem:[%s1524_s26 + $0x620] sm:$0xff]  ;;  %433 = vst [vmem:[%s1529_s27 + $0x180] sm:$0xff] %v432_v48 }
  0x43   : > { %v436_v50 = vld [vmem:[%s1524_s26 + $0x640] sm:$0xff]  ;;  %435 = vst [vmem:[%s1529_s27 + $0x188] sm:$0xff] %v434_v49 }
  0x44   : > { %437 = vst [vmem:[%s1529_s27 + $0x190] sm:$0xff] %v436_v50  ;;  %v438_v51 = vld [vmem:[%s1524_s26 + $0x660] sm:$0xff] }
  0x45   : > { %v440_v52 = vld [vmem:[%s1524_s26 + $0x680] sm:$0xff]  ;;  %439 = vst [vmem:[%s1529_s27 + $0x198] sm:$0xff] %v438_v51 }
  0x46   : > { %v442_v53 = vld [vmem:[%s1524_s26 + $0x6a0] sm:$0xff]  ;;  %441 = vst [vmem:[%s1529_s27 + $0x1a0] sm:$0xff] %v440_v52 }
  0x47   : > { %443 = vst [vmem:[%s1529_s27 + $0x1a8] sm:$0xff] %v442_v53  ;;  %v444_v54 = vld [vmem:[%s1524_s26 + $0x6c0] sm:$0xff] }
  0x48   : > { %v446_v55 = vld [vmem:[%s1524_s26 + $0x6e0] sm:$0xff]  ;;  %445 = vst [vmem:[%s1529_s27 + $0x1b0] sm:$0xff] %v444_v54 }
  0x49   : > { %v448_v56 = vld [vmem:[%s1524_s26 + $0x700] sm:$0xff]  ;;  %447 = vst [vmem:[%s1529_s27 + $0x1b8] sm:$0xff] %v446_v55 }
  0x4a   : > { %449 = vst [vmem:[%s1529_s27 + $0x1c0] sm:$0xff] %v448_v56  ;;  %v450_v57 = vld [vmem:[%s1524_s26 + $0x720] sm:$0xff] }
  0x4b   : > { %v452_v58 = vld [vmem:[%s1524_s26 + $0x740] sm:$0xff]  ;;  %451 = vst [vmem:[%s1529_s27 + $0x1c8] sm:$0xff] %v450_v57 }
  0x4c   : > { %v454_v59 = vld [vmem:[%s1524_s26 + $0x760] sm:$0xff]  ;;  %453 = vst [vmem:[%s1529_s27 + $0x1d0] sm:$0xff] %v452_v58 }
  0x4d   : > { %455 = vst [vmem:[%s1529_s27 + $0x1d8] sm:$0xff] %v454_v59  ;;  %v456_v60 = vld [vmem:[%s1524_s26 + $0x780] sm:$0xff] }
  0x4e   : > { %v458_v61 = vld [vmem:[%s1524_s26 + $0x7a0] sm:$0xff]  ;;  %457 = vst [vmem:[%s1529_s27 + $0x1e0] sm:$0xff] %v456_v60 }
  0x4f   : > { %v460_v62 = vld [vmem:[%s1524_s26 + $0x7c0] sm:$0xff]  ;;  %459 = vst [vmem:[%s1529_s27 + $0x1e8] sm:$0xff] %v458_v61 }
  0x50   : > { %461 = vst [vmem:[%s1529_s27 + $0x1f0] sm:$0xff] %v460_v62  ;;  %v462_v63 = vld [vmem:[%s1524_s26 + $0x7e0] sm:$0xff] }
  0x51   : > { %463 = vst [vmem:[%s1529_s27 + $0x1f8] sm:$0xff] %v462_v63 }
  0x52 PF: > { %p1203_p6 = scmp.ge.s32.totalorder %s1459_s16, 1  ;;  %p476_p7 = scmp.lt.s32.totalorder %s1459_s16, 5 }
  0x54   : > { %p477_p8 = pnand %p1203_p6, %p476_p7 }
  0x55   : > { %s483_s28 = sand.u32 (!%p477_p8), 1, %s1443_s12   ;;  %v1662_v0 = vld [vmem:[%s1765_s0] sm:$0xff] (!%p477_p8)  ;;  %v1667_v1 = vld [vmem:[%s1765_s0 + $0x8] sm:$0xff] (!%p477_p8)  ;;  %s1205_s8 = sshll.u32 (!%p477_p8), %s1451_s14, 1 }
  0x56   : > { %480 = sbr.rel (%p477_p8) target bundleno = 374 (0x176), region = 66  ;;  %s1204_s6 = sshll.u32 (!%p477_p8), %s483_s28, 9  ;;  %v1209_v2 = vcombine.high (!%p477_p8), %v1662_v0, %v1662_v0  ;;  %v1211_v3 = vcombine.high (!%p477_p8), %v1667_v1, %v1667_v1 }
  0x57   : > { %s1673_s7 = scalar_lea.vmem (!%p477_p8), [#allocation3], %s1204_s6  ;;  %p536_p9 = scmp.lt.s32.totalorder (!%p477_p8), %s1205_s8, 7 }
  0x58   : > { %v1321_v4 = vld [vmem:[%s1673_s7 + $0x4] ss:$8 sps:$4 sm:$0xff] (!%p477_p8)   ;;  %990 = vmatprep.mubr.bf16.mxu0 (!%p477_p8), %v1209_v2  ;;  %1031 = vmatprep.mubr.bf16.mxu1 (!%p477_p8), %v1211_v3  ;;  %v1325_v6 = vld [vmem:[%s1673_s7] ss:$8 sps:$4 sm:$0xff] (!%p477_p8)   ;;  %v1327_v8 = vld [vmem:[%s1673_s7 + $0x14] ss:$8 sps:$4 sm:$0xff] (!%p477_p8)  }
  0x59   : > { %v1323_v5 = vld [vmem:[%s1673_s7 + $0x104] ss:$8 sps:$4 sm:$0xff] (!%p477_p8)   ;;  %958 = vmatprep.subr.bf16.mxu0 (!%p477_p8), %v1321_v4  ;;  %v1326_v7 = vld [vmem:[%s1673_s7 + $0x100] ss:$8 sps:$4 sm:$0xff] (!%p477_p8)   ;;  %v1329_v9 = vld [vmem:[%s1673_s7 + $0x114] ss:$8 sps:$4 sm:$0xff] (!%p477_p8)  }
  0x5a   : > { %999 = vmatprep.subr.bf16.mxu1 (!%p477_p8), %v1323_v5  ;;  %959 = vmatpush1.bf16.msra.mxu0 (!%p477_p8), %v1325_v6  ;;  %v1331_v10 = vld [vmem:[%s1673_s7 + $0x10] ss:$8 sps:$4 sm:$0xff] (!%p477_p8)   ;;  %v1333_v12 = vld [vmem:[%s1673_s7 + $0x24] ss:$8 sps:$4 sm:$0xff] (!%p477_p8)   ;;  %v1337_v14 = vld [vmem:[%s1673_s7 + $0x20] ss:$8 sps:$4 sm:$0xff] (!%p477_p8)   ;;  %v1208_v6 = vcombine.low (!%p477_p8), %v1662_v0, %v1662_v0 }
  0x5b   : > { %1000 = vmatpush1.bf16.msra.mxu1 (!%p477_p8), %v1326_v7  ;;  %960 = vmatprep.subr.bf16.mxu0 (!%p477_p8), %v1327_v8  ;;  %v1332_v11 = vld [vmem:[%s1673_s7 + $0x110] ss:$8 sps:$4 sm:$0xff] (!%p477_p8)   ;;  %v1335_v13 = vld [vmem:[%s1673_s7 + $0x124] ss:$8 sps:$4 sm:$0xff] (!%p477_p8)   ;;  %v1338_v15 = vld [vmem:[%s1673_s7 + $0x120] ss:$8 sps:$4 sm:$0xff] (!%p477_p8)   ;;  %v1210_v7 = vcombine.low (!%p477_p8), %v1667_v1, %v1667_v1  ;;  %v1051_v8 = vlaneseq (!%p477_p8) }
  0x5c   : > { %1001 = vmatprep.subr.bf16.mxu1 (!%p477_p8), %v1329_v9  ;;  %v1339_v16 = vld [vmem:[%s1673_s7 + $0x34] ss:$8 sps:$4 sm:$0xff] (!%p477_p8)   ;;  %v1343_v18 = vld [vmem:[%s1673_s7 + $0x30] ss:$8 sps:$4 sm:$0xff] (!%p477_p8)   ;;  %v1345_v20 = vld [vmem:[%s1673_s7 + $0x44] ss:$8 sps:$4 sm:$0xff] (!%p477_p8)  }
  0x5d   : > { %v1341_v17 = vld [vmem:[%s1673_s7 + $0x134] ss:$8 sps:$4 sm:$0xff]   ;;  %v1344_v19 = vld [vmem:[%s1673_s7 + $0x130] ss:$8 sps:$4 sm:$0xff]   ;;  %v1347_v21 = vld [vmem:[%s1673_s7 + $0x144] ss:$8 sps:$4 sm:$0xff]  }
  0x5e   : > { %961 = vmatpush1.bf16.msra.mxu0 %v1331_v10  ;;  %v1349_v22 = vld [vmem:[%s1673_s7 + $0x40] ss:$8 sps:$4 sm:$0xff]   ;;  %v1351_v24 = vld [vmem:[%s1673_s7 + $0x54] ss:$8 sps:$4 sm:$0xff]   ;;  %v1355_v26 = vld [vmem:[%s1673_s7 + $0x50] ss:$8 sps:$4 sm:$0xff]  }
  0x5f   : > { %1002 = vmatpush1.bf16.msra.mxu1 %v1332_v11  ;;  %962 = vmatprep.subr.bf16.mxu0 %v1333_v12  ;;  %v1350_v23 = vld [vmem:[%s1673_s7 + $0x140] ss:$8 sps:$4 sm:$0xff]   ;;  %v1353_v25 = vld [vmem:[%s1673_s7 + $0x154] ss:$8 sps:$4 sm:$0xff]   ;;  %v1356_v27 = vld [vmem:[%s1673_s7 + $0x150] ss:$8 sps:$4 sm:$0xff]  }
  0x60   : > { %1003 = vmatprep.subr.bf16.mxu1 %v1335_v13  ;;  %v1357_v28 = vld [vmem:[%s1673_s7 + $0x64] ss:$8 sps:$4 sm:$0xff]   ;;  %v1361_v30 = vld [vmem:[%s1673_s7 + $0x60] ss:$8 sps:$4 sm:$0xff]   ;;  %v1363_v32 = vld [vmem:[%s1673_s7 + $0x74] ss:$8 sps:$4 sm:$0xff]  }
  0x61   : > { %v1359_v29 = vld [vmem:[%s1673_s7 + $0x164] ss:$8 sps:$4 sm:$0xff]   ;;  %v1362_v31 = vld [vmem:[%s1673_s7 + $0x160] ss:$8 sps:$4 sm:$0xff]   ;;  %v1365_v33 = vld [vmem:[%s1673_s7 + $0x174] ss:$8 sps:$4 sm:$0xff]  }
  0x62   : > { %963 = vmatpush1.bf16.msra.mxu0 %v1337_v14  ;;  %v1367_v34 = vld [vmem:[%s1673_s7 + $0x70] ss:$8 sps:$4 sm:$0xff]   ;;  %v1369_v36 = vld [vmem:[%s1673_s7 + $0x84] ss:$8 sps:$4 sm:$0xff]   ;;  %v1373_v38 = vld [vmem:[%s1673_s7 + $0x80] ss:$8 sps:$4 sm:$0xff]  }
  0x63   : > { %1004 = vmatpush1.bf16.msra.mxu1 %v1338_v15  ;;  %964 = vmatprep.subr.bf16.mxu0 %v1339_v16  ;;  %v1368_v35 = vld [vmem:[%s1673_s7 + $0x170] ss:$8 sps:$4 sm:$0xff]   ;;  %v1371_v37 = vld [vmem:[%s1673_s7 + $0x184] ss:$8 sps:$4 sm:$0xff]   ;;  %v1374_v39 = vld [vmem:[%s1673_s7 + $0x180] ss:$8 sps:$4 sm:$0xff]  }
  0x64   : > { %1005 = vmatprep.subr.bf16.mxu1 %v1341_v17  ;;  %v1375_v40 = vld [vmem:[%s1673_s7 + $0x94] ss:$8 sps:$4 sm:$0xff]   ;;  %v1379_v42 = vld [vmem:[%s1673_s7 + $0x90] ss:$8 sps:$4 sm:$0xff]   ;;  %v1381_v44 = vld [vmem:[%s1673_s7 + $0xa4] ss:$8 sps:$4 sm:$0xff]  }
  0x65   : > { %v1377_v41 = vld [vmem:[%s1673_s7 + $0x194] ss:$8 sps:$4 sm:$0xff]   ;;  %v1380_v43 = vld [vmem:[%s1673_s7 + $0x190] ss:$8 sps:$4 sm:$0xff]   ;;  %v1383_v45 = vld [vmem:[%s1673_s7 + $0x1a4] ss:$8 sps:$4 sm:$0xff]  }
  0x66   : > { %965 = vmatpush1.bf16.msra.mxu0 %v1343_v18  ;;  %v1385_v46 = vld [vmem:[%s1673_s7 + $0xa0] ss:$8 sps:$4 sm:$0xff]   ;;  %v1387_v48 = vld [vmem:[%s1673_s7 + $0xb4] ss:$8 sps:$4 sm:$0xff]   ;;  %v1391_v50 = vld [vmem:[%s1673_s7 + $0xb0] ss:$8 sps:$4 sm:$0xff]  }
  0x67   : > { %1006 = vmatpush1.bf16.msra.mxu1 %v1344_v19  ;;  %966 = vmatprep.subr.bf16.mxu0 %v1345_v20  ;;  %v1386_v47 = vld [vmem:[%s1673_s7 + $0x1a0] ss:$8 sps:$4 sm:$0xff]   ;;  %v1389_v49 = vld [vmem:[%s1673_s7 + $0x1b4] ss:$8 sps:$4 sm:$0xff]   ;;  %v1392_v51 = vld [vmem:[%s1673_s7 + $0x1b0] ss:$8 sps:$4 sm:$0xff]  }
  0x68   : > { %1007 = vmatprep.subr.bf16.mxu1 %v1347_v21  ;;  %v1393_v52 = vld [vmem:[%s1673_s7 + $0xc4] ss:$8 sps:$4 sm:$0xff]   ;;  %v1397_v54 = vld [vmem:[%s1673_s7 + $0xc0] ss:$8 sps:$4 sm:$0xff]   ;;  %v1399_v56 = vld [vmem:[%s1673_s7 + $0xd4] ss:$8 sps:$4 sm:$0xff]  }
  0x69   : > { %v1395_v53 = vld [vmem:[%s1673_s7 + $0x1c4] ss:$8 sps:$4 sm:$0xff]   ;;  %v1398_v55 = vld [vmem:[%s1673_s7 + $0x1c0] ss:$8 sps:$4 sm:$0xff]   ;;  %v1401_v57 = vld [vmem:[%s1673_s7 + $0x1d4] ss:$8 sps:$4 sm:$0xff]  }
  0x6a   : > { %967 = vmatpush1.bf16.msra.mxu0 %v1349_v22  ;;  %v1403_v58 = vld [vmem:[%s1673_s7 + $0xd0] ss:$8 sps:$4 sm:$0xff]   ;;  %v1405_v60 = vld [vmem:[%s1673_s7 + $0xe4] ss:$8 sps:$4 sm:$0xff]   ;;  %v1409_v62 = vld [vmem:[%s1673_s7 + $0xe0] ss:$8 sps:$4 sm:$0xff]  }
  0x6b   : > { %1008 = vmatpush1.bf16.msra.mxu1 %v1350_v23  ;;  %968 = vmatprep.subr.bf16.mxu0 %v1351_v24  ;;  %v1404_v59 = vld [vmem:[%s1673_s7 + $0x1d0] ss:$8 sps:$4 sm:$0xff]   ;;  %v1407_v61 = vld [vmem:[%s1673_s7 + $0x1e4] ss:$8 sps:$4 sm:$0xff]   ;;  %v1410_v63 = vld [vmem:[%s1673_s7 + $0x1e0] ss:$8 sps:$4 sm:$0xff]  }
  0x6c   : > { %1009 = vmatprep.subr.bf16.mxu1 %v1353_v25  ;;  %v1411_v2 = vld [vmem:[%s1673_s7 + $0xf4] ss:$8 sps:$4 sm:$0xff]   ;;  %v1415_v4 = vld [vmem:[%s1673_s7 + $0xf0] ss:$8 sps:$4 sm:$0xff]   ;;  %s1776_s8 = smov (!%p536_p9, %s1205_s8), 7  ;;  %v1052_v9 = vshrl.u32 %v1051_v8, 7 }
  0x6d   : > { %v1413_v3 = vld [vmem:[%s1673_s7 + $0x1f4] ss:$8 sps:$4 sm:$0xff]   ;;  %v1416_v5 = vld [vmem:[%s1673_s7 + $0x1f0] ss:$8 sps:$4 sm:$0xff]   ;;  %s538_s11 = scalar_lea.vmem %s1767_s2, %s1776_s8  ;;  %s1207_s12 = sshll.u32 %s1776_s8, 2 }
  0x6e   : > { %969 = vmatpush1.bf16.msra.mxu0 %v1355_v26  ;;  %v1053_v10 = vsub.s32 0, %v1052_v9  ;;  %v1049_v11 = vld [vmem:[%s538_s11] sm:$0x3]  ;;  %v1057_v12 = vsub.s32 1, %v1052_v9  ;;  %s548_s19 = scalar_lea.vmem %s1768_s3, %s1207_s12 }
  0x6f   : > { %1010 = vmatpush1.bf16.msra.mxu1 %v1356_v27  ;;  %970 = vmatprep.subr.bf16.mxu0 %v1357_v28 }
  0x70   : > { %1011 = vmatprep.subr.bf16.mxu1 %v1359_v29  ;;  %v1054_v0 = vrot.slane %v1049_v11, %v1053_v10  ;;  %v1058_v1 = vrot.slane %v1049_v11, %v1057_v12 }
  0x72   : > { %971 = vmatpush1.bf16.msra.mxu0 %v1361_v30 }
  0x73   : > { %1012 = vmatpush1.bf16.msra.mxu1 %v1362_v31  ;;  %972 = vmatprep.subr.bf16.mxu0 %v1363_v32 }
  0x74   : > { %1013 = vmatprep.subr.bf16.mxu1 %v1365_v33 }
  0x76   : > { %973 = vmatpush1.bf16.msra.mxu0 %v1367_v34 }
  0x77   : > { %1014 = vmatpush1.bf16.msra.mxu1 %v1368_v35  ;;  %974 = vmatprep.subr.bf16.mxu0 %v1369_v36 }
  0x78   : > { %1015 = vmatprep.subr.bf16.mxu1 %v1371_v37 }
  0x7a   : > { %975 = vmatpush1.bf16.msra.mxu0 %v1373_v38 }
  0x7b   : > { %1016 = vmatpush1.bf16.msra.mxu1 %v1374_v39  ;;  %976 = vmatprep.subr.bf16.mxu0 %v1375_v40 }
  0x7c   : > { %1017 = vmatprep.subr.bf16.mxu1 %v1377_v41 }
  0x7e   : > { %977 = vmatpush1.bf16.msra.mxu0 %v1379_v42 }
  0x7f   : > { %1018 = vmatpush1.bf16.msra.mxu1 %v1380_v43  ;;  %978 = vmatprep.subr.bf16.mxu0 %v1381_v44 }
  0x80   : > { %1019 = vmatprep.subr.bf16.mxu1 %v1383_v45 }
  0x82   : > { %979 = vmatpush1.bf16.msra.mxu0 %v1385_v46 }
  0x83   : > { %1020 = vmatpush1.bf16.msra.mxu1 %v1386_v47  ;;  %980 = vmatprep.subr.bf16.mxu0 %v1387_v48 }
  0x84   : > { %1021 = vmatprep.subr.bf16.mxu1 %v1389_v49 }
  0x86   : > { %981 = vmatpush1.bf16.msra.mxu0 %v1391_v50 }
  0x87   : > { %1022 = vmatpush1.bf16.msra.mxu1 %v1392_v51  ;;  %982 = vmatprep.subr.bf16.mxu0 %v1393_v52 }
  0x88   : > { %1023 = vmatprep.subr.bf16.mxu1 %v1395_v53 }
  0x8a   : > { %983 = vmatpush1.bf16.msra.mxu0 %v1397_v54 }
  0x8b   : > { %1024 = vmatpush1.bf16.msra.mxu1 %v1398_v55  ;;  %984 = vmatprep.subr.bf16.mxu0 %v1399_v56 }
  0x8c   : > { %1025 = vmatprep.subr.bf16.mxu1 %v1401_v57 }
  0x8e   : > { %985 = vmatpush1.bf16.msra.mxu0 %v1403_v58 }
  0x8f   : > { %1026 = vmatpush1.bf16.msra.mxu1 %v1404_v59  ;;  %986 = vmatprep.subr.bf16.mxu0 %v1405_v60 }
  0x90   : > { %1027 = vmatprep.subr.bf16.mxu1 %v1407_v61 }
  0x92   : > { %987 = vmatpush1.bf16.msra.mxu0 %v1409_v62 }
  0x93   : > { %1028 = vmatpush1.bf16.msra.mxu1 %v1410_v63  ;;  %988 = vmatprep.subr.bf16.mxu0 %v1411_v2 }
  0x94   : > { %1029 = vmatprep.subr.bf16.mxu1 %v1413_v3 }
  0x96   : > { %989 = vmatpush1.bf16.msra.mxu0 %v1415_v4 }
  0x97   : > { %1030 = vmatpush1.bf16.msra.mxu1 %v1416_v5 }
  0x99   : > { %991 = vmatmul.mubr.bf16.vlgmr.msra.gmra.mrb[0].mxu0 %v1208_v6 }
  0x9a   : > { %1032 = vmatmul.mubr.bf16.vlgmr.msra.gmra.mrb[0].mxu1 %v1210_v7 }
 0x16c   : > { %v992_v13 = vpop.f32.mrb[0].mxu0 }
 0x16d   : > { %v1033_v14 = vpop.f32.mrb[0].mxu1  ;;  %v994_v16 = vpop.f32.mrb[1].mxu0 }
 0x16e   : > { %v1034_v15 = vadd.f32 %v1033_v14, %v992_v13  ;;  %v1035_v17 = vpop.f32.mrb[1].mxu1  ;;  %v996_v19 = vpop.f32.mrb[2].mxu0 }
 0x16f   : > { %v1036_v18 = vadd.f32 %v1035_v17, %v994_v16  ;;  %v1037_v20 = vpop.f32.mrb[2].mxu1  ;;  %v997_v22 = vpop.f32.mrb[3].mxu0 }
 0x170   : > { %v1061_v21 = vadd.f32 %v1054_v0, %v1034_v15  ;;  %v1038_v23 = vpop.f32.mrb[3].mxu1 }
 0x171   : > { %v1062_v24 = vadd.f32 %v1058_v1, %v1036_v18 }
 0x173   : > { %v1280_v25 = vpack.c.bf16 %v1062_v24, %v1061_v21 }
 0x175   : > { %1071 = vst [vmem:[%s548_s19] sm:$0xff] %v1280_v25 }
 0x176 PF: > { %s13_s16 = sadd.s32 1, %s1459_s16   ;;  %s1769_s12 = smov %s1447_s13 }
 0x177   : > { %p10_p10 = scmp.ge.s32.totalorder %s13_s16, 6   ;;  %s1770_s13 = smov %s1516_s20 }
 0x178   : > { %s1771_s14 = smov %s1455_s15  ;;  %s1772_s15 = smov %s1774_s17 }
 0x179   :  { %12 = sbr.rel (!%p10_p10) target bundleno = 3 (0x3), region = 119 }

// kernel: _encoder_cnn_forward.82
= control target key start
LH: loop header
LB: loop body
LE: loop exit
PB: predicated region body
PF: predicated region fallthrough
CT: control target
= control target key end

     0   :  { %s1123_s15 = smov 0   ;;  %s1125_s16 = smov 0   ;;  %s1305_s0 = inlined_call_operand.vmem [shape: bf16[8,256], index: 0, kind: input, shape index: {}]   ;;  %s1306_s1 = inlined_call_operand.vmem [shape: bf16[256,1024], index: 1, kind: input, shape index: {}]   ;;  %s1307_s2 = inlined_call_operand.vmem [shape: f32[1,1024], index: 2, kind: input, shape index: {}]   ;;  %s1308_s3 = inlined_call_operand.vmem [shape: bf16[8,1024], index: 3, kind: input, shape index: {}]   ;;  %s1309_s4 = inlined_call_operand.vmem [shape: bf16[8,1024], index: 4, kind: output, shape index: {}]  }
   0x1   :  { %s1127_s17 = smov 0   ;;  %s1129_s18 = smov 0  }
   0x2   :  { %s1131_s19 = smov 0  }
   0x3 LB: > { %s29_s20 = sadd.s32 1, %s1092_s18  ;;  %p77_p1 = scmp.ne.s32.totalorder %s1084_s16, %s1080_s15  ;;  %s1096_s19 = sphi %s1131_s19, %s14_s19   ;;  %s1092_s18 = sphi %s1129_s18, %s1313_s18   ;;  %s1088_s17 = sphi %s1127_s17, %s1312_s17   ;;  %s1084_s16 = sphi %s1125_s16, %s1311_s16   ;;  %s1080_s15 = sphi %s1123_s15, %s1310_s15  }
   0x4   : > { %p31_p0 = scmp.ge.s32.totalorder %s29_s20, 4  ;;  %p78_p2 = scmp.eq.s32.totalorder %s1096_s19, 0 }
   0x5   : > { %s70_s22 = sadd.s32 1, %s1084_s16  ;;  %p918_p5 = scmp.ge.s32.totalorder %s1096_s19, 4 }
   0x6   : > { %s1315_s20 = smov (%p31_p0, %s29_s20), 0  ;;  %p79_p3 = por %p78_p2, %p77_p1 }
   0x7   : > { %s66_s21 = ssub.s32 %s1092_s18, %s1315_s20  ;;  %198 = sbr.rel (%p918_p5) target bundleno = 50 (0x32), region = 20 }
   0x8   : > { %p68_p4 = scmp.eq.s32.totalorder %s66_s21, 0 }
   0xa   : > { %s1158_s23 = scalar_select %p68_p4, %s1084_s16, %s70_s22  }
   0xe   : > { %201 = sbr.rel (!%p79_p3) target bundleno = 50 (0x32), region = 24  ;;  %s203_s24 = sand.u32 (%p79_p3), 1, %s1084_s16  }
   0xf   : > { %s966_s25 = sshll.u32 (%p79_p3), %s1092_s18, 3  ;;  %s919_s26 = sshll.u32 (%p79_p3), %s203_s24, 8 }
  0x10   : > { %s1166_s29 = scalar_lea.vmem (%p79_p3), %s1306_s1, %s966_s25  ;;  %s1171_s30 = scalar_lea.vmem (%p79_p3), [#allocation3], %s919_s26 }
  0x11   : > { %v301_v0 = vld [vmem:[%s1166_s29] sm:$0xff] (%p79_p3) }
  0x12   : > { %v303_v1 = vld [vmem:[%s1166_s29 + $0x20] sm:$0xff] (%p79_p3)  ;;  %302 = vst [vmem:[%s1171_s30] sm:$0xff] (%p79_p3), %v301_v0 }
  0x13   : > { %v305_v2 = vld [vmem:[%s1166_s29 + $0x40] sm:$0xff] (%p79_p3)  ;;  %304 = vst [vmem:[%s1171_s30 + $0x8] sm:$0xff] (%p79_p3), %v303_v1 }
  0x14   : > { %306 = vst [vmem:[%s1171_s30 + $0x10] sm:$0xff] (%p79_p3), %v305_v2  ;;  %v307_v3 = vld [vmem:[%s1166_s29 + $0x60] sm:$0xff] (%p79_p3) }
  0x15   : > { %v309_v4 = vld [vmem:[%s1166_s29 + $0x80] sm:$0xff]  ;;  %308 = vst [vmem:[%s1171_s30 + $0x18] sm:$0xff] %v307_v3 }
  0x16   : > { %v311_v5 = vld [vmem:[%s1166_s29 + $0xa0] sm:$0xff]  ;;  %310 = vst [vmem:[%s1171_s30 + $0x20] sm:$0xff] %v309_v4 }
  0x17   : > { %312 = vst [vmem:[%s1171_s30 + $0x28] sm:$0xff] %v311_v5  ;;  %v313_v6 = vld [vmem:[%s1166_s29 + $0xc0] sm:$0xff] }
  0x18   : > { %v315_v7 = vld [vmem:[%s1166_s29 + $0xe0] sm:$0xff]  ;;  %314 = vst [vmem:[%s1171_s30 + $0x30] sm:$0xff] %v313_v6 }
  0x19   : > { %v317_v8 = vld [vmem:[%s1166_s29 + $0x100] sm:$0xff]  ;;  %316 = vst [vmem:[%s1171_s30 + $0x38] sm:$0xff] %v315_v7 }
  0x1a   : > { %318 = vst [vmem:[%s1171_s30 + $0x40] sm:$0xff] %v317_v8  ;;  %v319_v9 = vld [vmem:[%s1166_s29 + $0x120] sm:$0xff] }
  0x1b   : > { %v321_v10 = vld [vmem:[%s1166_s29 + $0x140] sm:$0xff]  ;;  %320 = vst [vmem:[%s1171_s30 + $0x48] sm:$0xff] %v319_v9 }
  0x1c   : > { %v323_v11 = vld [vmem:[%s1166_s29 + $0x160] sm:$0xff]  ;;  %322 = vst [vmem:[%s1171_s30 + $0x50] sm:$0xff] %v321_v10 }
  0x1d   : > { %324 = vst [vmem:[%s1171_s30 + $0x58] sm:$0xff] %v323_v11  ;;  %v325_v12 = vld [vmem:[%s1166_s29 + $0x180] sm:$0xff] }
  0x1e   : > { %v327_v13 = vld [vmem:[%s1166_s29 + $0x1a0] sm:$0xff]  ;;  %326 = vst [vmem:[%s1171_s30 + $0x60] sm:$0xff] %v325_v12 }
  0x1f   : > { %v329_v14 = vld [vmem:[%s1166_s29 + $0x1c0] sm:$0xff]  ;;  %328 = vst [vmem:[%s1171_s30 + $0x68] sm:$0xff] %v327_v13 }
  0x20   : > { %330 = vst [vmem:[%s1171_s30 + $0x70] sm:$0xff] %v329_v14  ;;  %v331_v15 = vld [vmem:[%s1166_s29 + $0x1e0] sm:$0xff] }
  0x21   : > { %v333_v16 = vld [vmem:[%s1166_s29 + $0x200] sm:$0xff]  ;;  %332 = vst [vmem:[%s1171_s30 + $0x78] sm:$0xff] %v331_v15 }
  0x22   : > { %v335_v17 = vld [vmem:[%s1166_s29 + $0x220] sm:$0xff]  ;;  %334 = vst [vmem:[%s1171_s30 + $0x80] sm:$0xff] %v333_v16 }
  0x23   : > { %336 = vst [vmem:[%s1171_s30 + $0x88] sm:$0xff] %v335_v17  ;;  %v337_v18 = vld [vmem:[%s1166_s29 + $0x240] sm:$0xff] }
  0x24   : > { %v339_v19 = vld [vmem:[%s1166_s29 + $0x260] sm:$0xff]  ;;  %338 = vst [vmem:[%s1171_s30 + $0x90] sm:$0xff] %v337_v18 }
  0x25   : > { %v341_v20 = vld [vmem:[%s1166_s29 + $0x280] sm:$0xff]  ;;  %340 = vst [vmem:[%s1171_s30 + $0x98] sm:$0xff] %v339_v19 }
  0x26   : > { %342 = vst [vmem:[%s1171_s30 + $0xa0] sm:$0xff] %v341_v20  ;;  %v343_v21 = vld [vmem:[%s1166_s29 + $0x2a0] sm:$0xff] }
  0x27   : > { %v345_v22 = vld [vmem:[%s1166_s29 + $0x2c0] sm:$0xff]  ;;  %344 = vst [vmem:[%s1171_s30 + $0xa8] sm:$0xff] %v343_v21 }
  0x28   : > { %v347_v23 = vld [vmem:[%s1166_s29 + $0x2e0] sm:$0xff]  ;;  %346 = vst [vmem:[%s1171_s30 + $0xb0] sm:$0xff] %v345_v22 }
  0x29   : > { %348 = vst [vmem:[%s1171_s30 + $0xb8] sm:$0xff] %v347_v23  ;;  %v349_v24 = vld [vmem:[%s1166_s29 + $0x300] sm:$0xff] }
  0x2a   : > { %v351_v25 = vld [vmem:[%s1166_s29 + $0x320] sm:$0xff]  ;;  %350 = vst [vmem:[%s1171_s30 + $0xc0] sm:$0xff] %v349_v24 }
  0x2b   : > { %v353_v26 = vld [vmem:[%s1166_s29 + $0x340] sm:$0xff]  ;;  %352 = vst [vmem:[%s1171_s30 + $0xc8] sm:$0xff] %v351_v25 }
  0x2c   : > { %354 = vst [vmem:[%s1171_s30 + $0xd0] sm:$0xff] %v353_v26  ;;  %v355_v27 = vld [vmem:[%s1166_s29 + $0x360] sm:$0xff] }
  0x2d   : > { %v357_v28 = vld [vmem:[%s1166_s29 + $0x380] sm:$0xff]  ;;  %356 = vst [vmem:[%s1171_s30 + $0xd8] sm:$0xff] %v355_v27 }
  0x2e   : > { %v359_v29 = vld [vmem:[%s1166_s29 + $0x3a0] sm:$0xff]  ;;  %358 = vst [vmem:[%s1171_s30 + $0xe0] sm:$0xff] %v357_v28 }
  0x2f   : > { %360 = vst [vmem:[%s1171_s30 + $0xe8] sm:$0xff] %v359_v29  ;;  %v361_v30 = vld [vmem:[%s1166_s29 + $0x3c0] sm:$0xff] }
  0x30   : > { %v363_v31 = vld [vmem:[%s1166_s29 + $0x3e0] sm:$0xff]  ;;  %362 = vst [vmem:[%s1171_s30 + $0xf0] sm:$0xff] %v361_v30 }
  0x31   : > { %364 = vst [vmem:[%s1171_s30 + $0xf8] sm:$0xff] %v363_v31 }
  0x32 PF: > { %p922_p6 = scmp.ge.s32.totalorder %s1096_s19, 1  ;;  %p390_p7 = scmp.lt.s32.totalorder %s1096_s19, 5 }
  0x34   : > { %p391_p8 = pnand %p922_p6, %p390_p7 }
  0x35   : > { %s397_s5 = sand.u32 (!%p391_p8), 1, %s1080_s15   ;;  %v1240_v32 = vld [vmem:[%s1305_s0] sm:$0xff] (!%p391_p8)  ;;  %s924_s10 = sshll.u32 (!%p391_p8), %s1088_s17, 1  ;;  %v745_v3 = vlaneseq (!%p391_p8) }
  0x36   : > { %394 = sbr.rel (%p391_p8) target bundleno = 343 (0x157), region = 70  ;;  %s923_s8 = sshll.u32 (!%p391_p8), %s397_s5, 8  ;;  %v930_v33 = vcombine.high (!%p391_p8), %v1240_v32, %v1240_v32  ;;  %v929_v2 = vcombine.low (!%p391_p8), %v1240_v32, %v1240_v32 }
  0x37   : > { %s1244_s9 = scalar_lea.vmem (!%p391_p8), [#allocation3], %s923_s8  ;;  %p461_p9 = scmp.lt.s32.totalorder (!%p391_p8), %s924_s10, 7  ;;  %v746_v4 = vshrl.u32 (!%p391_p8), %v745_v3, 7 }
  0x38   : > { %v1008_v34 = vld [vmem:[%s1244_s9 + $0x4] ss:$8 sps:$4 sm:$0xff] (!%p391_p8)   ;;  %725 = vmatprep.mubr.bf16.mxu0 (!%p391_p8), %v930_v33  ;;  %v1010_v35 = vld [vmem:[%s1244_s9] ss:$8 sps:$4 sm:$0xff] (!%p391_p8)   ;;  %v1011_v36 = vld [vmem:[%s1244_s9 + $0x14] ss:$8 sps:$4 sm:$0xff] (!%p391_p8)  }
  0x39   : > { %693 = vmatprep.subr.bf16.mxu0 (!%p391_p8), %v1008_v34  ;;  %v1013_v37 = vld [vmem:[%s1244_s9 + $0x10] ss:$8 sps:$4 sm:$0xff] (!%p391_p8)   ;;  %v1014_v38 = vld [vmem:[%s1244_s9 + $0x24] ss:$8 sps:$4 sm:$0xff] (!%p391_p8)   ;;  %v1016_v39 = vld [vmem:[%s1244_s9 + $0x20] ss:$8 sps:$4 sm:$0xff] (!%p391_p8)  }
  0x3a   : > { %694 = vmatpush1.bf16.msra.mxu0 (!%p391_p8), %v1010_v35  ;;  %v1017_v40 = vld [vmem:[%s1244_s9 + $0x34] ss:$8 sps:$4 sm:$0xff] (!%p391_p8)   ;;  %v1019_v41 = vld [vmem:[%s1244_s9 + $0x30] ss:$8 sps:$4 sm:$0xff] (!%p391_p8)   ;;  %v1020_v42 = vld [vmem:[%s1244_s9 + $0x44] ss:$8 sps:$4 sm:$0xff] (!%p391_p8)  }
  0x3b   : > { %695 = vmatprep.subr.bf16.mxu0 (!%p391_p8), %v1011_v36  ;;  %v1022_v43 = vld [vmem:[%s1244_s9 + $0x40] ss:$8 sps:$4 sm:$0xff] (!%p391_p8)   ;;  %v1023_v44 = vld [vmem:[%s1244_s9 + $0x54] ss:$8 sps:$4 sm:$0xff] (!%p391_p8)   ;;  %v1025_v45 = vld [vmem:[%s1244_s9 + $0x50] ss:$8 sps:$4 sm:$0xff] (!%p391_p8)  }
  0x3c   : > { %v1026_v46 = vld [vmem:[%s1244_s9 + $0x64] ss:$8 sps:$4 sm:$0xff] (!%p391_p8)   ;;  %v1028_v47 = vld [vmem:[%s1244_s9 + $0x60] ss:$8 sps:$4 sm:$0xff] (!%p391_p8)   ;;  %v1029_v48 = vld [vmem:[%s1244_s9 + $0x74] ss:$8 sps:$4 sm:$0xff] (!%p391_p8)  }
  0x3d   : > { %v1031_v49 = vld [vmem:[%s1244_s9 + $0x70] ss:$8 sps:$4 sm:$0xff]   ;;  %v1032_v50 = vld [vmem:[%s1244_s9 + $0x84] ss:$8 sps:$4 sm:$0xff]   ;;  %v1034_v51 = vld [vmem:[%s1244_s9 + $0x80] ss:$8 sps:$4 sm:$0xff]  }
  0x3e   : > { %696 = vmatpush1.bf16.msra.mxu0 %v1013_v37  ;;  %v1035_v52 = vld [vmem:[%s1244_s9 + $0x94] ss:$8 sps:$4 sm:$0xff]   ;;  %v1037_v53 = vld [vmem:[%s1244_s9 + $0x90] ss:$8 sps:$4 sm:$0xff]   ;;  %v1038_v54 = vld [vmem:[%s1244_s9 + $0xa4] ss:$8 sps:$4 sm:$0xff]  }
  0x3f   : > { %697 = vmatprep.subr.bf16.mxu0 %v1014_v38  ;;  %v1040_v55 = vld [vmem:[%s1244_s9 + $0xa0] ss:$8 sps:$4 sm:$0xff]   ;;  %v1041_v56 = vld [vmem:[%s1244_s9 + $0xb4] ss:$8 sps:$4 sm:$0xff]   ;;  %v1043_v57 = vld [vmem:[%s1244_s9 + $0xb0] ss:$8 sps:$4 sm:$0xff]  }
  0x40   : > { %v1044_v58 = vld [vmem:[%s1244_s9 + $0xc4] ss:$8 sps:$4 sm:$0xff]   ;;  %v1046_v59 = vld [vmem:[%s1244_s9 + $0xc0] ss:$8 sps:$4 sm:$0xff]   ;;  %v1047_v60 = vld [vmem:[%s1244_s9 + $0xd4] ss:$8 sps:$4 sm:$0xff]  }
  0x41   : > { %v1049_v61 = vld [vmem:[%s1244_s9 + $0xd0] ss:$8 sps:$4 sm:$0xff]   ;;  %v1050_v62 = vld [vmem:[%s1244_s9 + $0xe4] ss:$8 sps:$4 sm:$0xff]   ;;  %v1052_v63 = vld [vmem:[%s1244_s9 + $0xe0] ss:$8 sps:$4 sm:$0xff]  }
  0x42   : > { %698 = vmatpush1.bf16.msra.mxu0 %v1016_v39  ;;  %v1053_v0 = vld [vmem:[%s1244_s9 + $0xf4] ss:$8 sps:$4 sm:$0xff]   ;;  %v1055_v1 = vld [vmem:[%s1244_s9 + $0xf0] ss:$8 sps:$4 sm:$0xff]   ;;  %s1317_s10 = smov (!%p461_p9, %s924_s10), 7  ;;  %v747_v5 = vsub.s32 0, %v746_v4 }
  0x43   : > { %699 = vmatprep.subr.bf16.mxu0 %v1017_v40  ;;  %s926_s11 = sshll.u32 %s1317_s10, 2  ;;  %s463_s14 = scalar_lea.vmem %s1307_s2, %s1317_s10  ;;  %v751_v7 = vsub.s32 1, %v746_v4 }
  0x44   : > { %s473_s22 = scalar_lea.vmem %s1308_s3, %s926_s11  ;;  %v743_v6 = vld [vmem:[%s463_s14] sm:$0x3]  ;;  %s483_s25 = scalar_lea.vmem %s1309_s4, %s926_s11 }
  0x45   : > { %v757_v8 = vld [vmem:[%s473_s22] sm:$0xff]  ;;  %v748_v9 = vrot.slane %v743_v6, %v747_v5  ;;  %v752_v10 = vrot.slane %v743_v6, %v751_v7 }
  0x46   : > { %700 = vmatpush1.bf16.msra.mxu0 %v1019_v41  ;;  %v758_v11 = vunpack.c.l.bf16 %v757_v8  ;;  %v759_v13 = vunpack.c.h.bf16 %v757_v8 }
  0x47   : > { %701 = vmatprep.subr.bf16.mxu0 %v1020_v42 }
  0x4a   : > { %702 = vmatpush1.bf16.msra.mxu0 %v1022_v43 }
  0x4b   : > { %703 = vmatprep.subr.bf16.mxu0 %v1023_v44 }
  0x4e   : > { %704 = vmatpush1.bf16.msra.mxu0 %v1025_v45 }
  0x4f   : > { %705 = vmatprep.subr.bf16.mxu0 %v1026_v46 }
  0x52   : > { %706 = vmatpush1.bf16.msra.mxu0 %v1028_v47 }
  0x53   : > { %707 = vmatprep.subr.bf16.mxu0 %v1029_v48 }
  0x56   : > { %708 = vmatpush1.bf16.msra.mxu0 %v1031_v49 }
  0x57   : > { %709 = vmatprep.subr.bf16.mxu0 %v1032_v50 }
  0x5a   : > { %710 = vmatpush1.bf16.msra.mxu0 %v1034_v51 }
  0x5b   : > { %711 = vmatprep.subr.bf16.mxu0 %v1035_v52 }
  0x5e   : > { %712 = vmatpush1.bf16.msra.mxu0 %v1037_v53 }
  0x5f   : > { %713 = vmatprep.subr.bf16.mxu0 %v1038_v54 }
  0x62   : > { %714 = vmatpush1.bf16.msra.mxu0 %v1040_v55 }
  0x63   : > { %715 = vmatprep.subr.bf16.mxu0 %v1041_v56 }
  0x66   : > { %716 = vmatpush1.bf16.msra.mxu0 %v1043_v57 }
  0x67   : > { %717 = vmatprep.subr.bf16.mxu0 %v1044_v58 }
  0x6a   : > { %718 = vmatpush1.bf16.msra.mxu0 %v1046_v59 }
  0x6b   : > { %719 = vmatprep.subr.bf16.mxu0 %v1047_v60 }
  0x6e   : > { %720 = vmatpush1.bf16.msra.mxu0 %v1049_v61 }
  0x6f   : > { %721 = vmatprep.subr.bf16.mxu0 %v1050_v62 }
  0x72   : > { %722 = vmatpush1.bf16.msra.mxu0 %v1052_v63 }
  0x73   : > { %723 = vmatprep.subr.bf16.mxu0 %v1053_v0 }
  0x76   : > { %724 = vmatpush1.bf16.msra.mxu0 %v1055_v1 }
  0x79   : > { %726 = vmatmul.mubr.bf16.vlgmr.msra.gmra.mrb[0].mxu0 %v929_v2 }
 0x14c   : > { %v727_v12 = vpop.f32.mrb[0].mxu0 }
 0x14d   : > { %v755_v14 = vadd.f32 %v748_v9, %v727_v12  ;;  %v729_v15 = vpop.f32.mrb[1].mxu0 }
 0x14e   : > { %v756_v16 = vadd.f32 %v752_v10, %v729_v15  ;;  %v731_v17 = vpop.f32.mrb[2].mxu0 }
 0x14f   : > { %v760_v18 = vadd.f32 %v758_v11, %v755_v14  ;;  %v732_v19 = vpop.f32.mrb[3].mxu0 }
 0x150   : > { %v761_v20 = vadd.f32 %v759_v13, %v756_v16 }
 0x151   : > { %v762_v21 = vmax.f32 %v760_v18, 0.0 }
 0x152   : > { %v763_v22 = vmax.f32 %v761_v20, 0.0 }
 0x154   : > { %v967_v23 = vpack.c.bf16 %v763_v22, %v762_v21 }
 0x156   : > { %772 = vst [vmem:[%s483_s25] sm:$0xff] %v967_v23 }
 0x157 PF: > { %s14_s19 = sadd.s32 1, %s1096_s19   ;;  %s1310_s15 = smov %s1084_s16 }
 0x158   : > { %p11_p10 = scmp.ge.s32.totalorder %s14_s19, 6   ;;  %s1311_s16 = smov %s1158_s23 }
 0x159   : > { %s1312_s17 = smov %s1092_s18  ;;  %s1313_s18 = smov %s1315_s20 }
 0x15a   :  { %13 = sbr.rel (!%p11_p10) target bundleno = 3 (0x3), region = 126 }

// kernel: _encoder_cnn_forward.83
= control target key start
LH: loop header
LB: loop body
LE: loop exit
PB: predicated region body
PF: predicated region fallthrough
CT: control target
= control target key end

     0   :  { %s1176_s12 = smov 0   ;;  %s1178_s13 = smov 0   ;;  %s1291_s0 = inlined_call_operand.vmem [shape: bf16[8,1024], index: 0, kind: input, shape index: {}]   ;;  %s1292_s1 = inlined_call_operand.vmem [shape: bf16[1024,256], index: 1, kind: input, shape index: {}]   ;;  %s1293_s2 = inlined_call_operand.vmem [shape: f32[1,256], index: 2, kind: input, shape index: {}]   ;;  %s1294_s3 = inlined_call_operand.vmem [shape: bf16[8,256], index: 3, kind: output, shape index: {}]  }
   0x1   :  { %s1180_s14 = smov 0  }
   0x2 LB: > { %s25_s15 = sadd.s32 1, %s1149_s13  ;;  %p923_p0 = scmp.ge.s32.totalorder %s1153_s14, 1  ;;  %s1153_s14 = sphi %s1180_s14, %s13_s14   ;;  %s1149_s13 = sphi %s1178_s13, %s1296_s13   ;;  %s1145_s12 = sphi %s1176_s12, %s1295_s12  }
   0x3   : > { %p26_p1 = scmp.ge.s32.totalorder %s25_s15, 2  ;;  %p194_p2 = scmp.lt.s32.totalorder %s1153_s14, 3 }
   0x5   : > { %s1298_s15 = smov (%p26_p1, %s25_s15), 0  ;;  %p195_p3 = pnand %p923_p0, %p194_p2 }
   0x6   : > { %s924_s16 = sshll.u32 (!%p195_p3), %s1145_s12, 2  ;;  %s926_s17 = sshll.u32 (!%p195_p3), %s1145_s12, 6 }
   0x7   : > { %198 = sbr.rel (%p195_p3) target bundleno = 322 (0x142), region = 32  ;;  %p243_p4 = scmp.lt.s32.totalorder (!%p195_p3), %s924_s16, 7 }
   0x8   : > { %p252_p5 = scmp.lt.s32.totalorder (!%p195_p3), %s926_s17, 127  ;;  %p929_p6 = scmp.ne.s32.totalorder (!%p195_p3), %s1145_s12, 0 }
   0xe   : > { %s1300_s16 = smov (!%p243_p4, %s924_s16), 7  ;;  %s1302_s17 = smov (!%p252_p5, %s926_s17), 127 }
   0xf   : > { %s925_s18 = sshll.u32 %s1300_s16, 2  ;;  %s1004_s22 = sshll.u32 %s1302_s17, 3  ;;  %v1155_v0 = vmov (!%p929_p6), 0.0  }
  0x10   : > { %s1201_s21 = scalar_lea.vmem %s1291_s0, %s925_s18  ;;  %s1206_s25 = scalar_lea.vmem %s1292_s1, %s1004_s22  ;;  %281 = vst [vmem:[#allocation2] sm:$0xff] (!%p929_p6), %v1155_v0  ;;  %282 = vst [vmem:[#allocation2 + $0x8] sm:$0xff] (!%p929_p6), %v1155_v0 }
  0x11   : > { %280 = sbr.rel (%p929_p6) target bundleno = 24 (0x18), region = 36 }
  0x18 PF: > { %v1031_v1 = vld [vmem:[%s1206_s25 + $0x4] ss:$8 sps:$4 sm:$0xff]   ;;  %v1035_v3 = vld [vmem:[%s1206_s25] ss:$8 sps:$4 sm:$0xff]   ;;  %v1037_v5 = vld [vmem:[%s1206_s25 + $0x14] ss:$8 sps:$4 sm:$0xff]  }
  0x19   : > { %v1033_v2 = vld [vmem:[%s1206_s25 + $0x104] ss:$8 sps:$4 sm:$0xff]   ;;  %685 = vmatprep.subr.bf16.mxu0 %v1031_v1  ;;  %v1036_v4 = vld [vmem:[%s1206_s25 + $0x100] ss:$8 sps:$4 sm:$0xff]   ;;  %v1039_v6 = vld [vmem:[%s1206_s25 + $0x114] ss:$8 sps:$4 sm:$0xff]  }
  0x1a   : > { %726 = vmatprep.subr.bf16.mxu1 %v1033_v2  ;;  %686 = vmatpush1.bf16.msra.mxu0 %v1035_v3  ;;  %v1041_v7 = vld [vmem:[%s1206_s25 + $0x10] ss:$8 sps:$4 sm:$0xff]   ;;  %v1043_v9 = vld [vmem:[%s1206_s25 + $0x24] ss:$8 sps:$4 sm:$0xff]   ;;  %v1047_v11 = vld [vmem:[%s1206_s25 + $0x20] ss:$8 sps:$4 sm:$0xff]  }
  0x1b   : > { %727 = vmatpush1.bf16.msra.mxu1 %v1036_v4  ;;  %687 = vmatprep.subr.bf16.mxu0 %v1037_v5  ;;  %v1042_v8 = vld [vmem:[%s1206_s25 + $0x110] ss:$8 sps:$4 sm:$0xff]   ;;  %v1045_v10 = vld [vmem:[%s1206_s25 + $0x124] ss:$8 sps:$4 sm:$0xff]   ;;  %v1048_v12 = vld [vmem:[%s1206_s25 + $0x120] ss:$8 sps:$4 sm:$0xff]  }
  0x1c   : > { %728 = vmatprep.subr.bf16.mxu1 %v1039_v6  ;;  %v1049_v13 = vld [vmem:[%s1206_s25 + $0x34] ss:$8 sps:$4 sm:$0xff]   ;;  %v1053_v15 = vld [vmem:[%s1206_s25 + $0x30] ss:$8 sps:$4 sm:$0xff]   ;;  %v1055_v17 = vld [vmem:[%s1206_s25 + $0x44] ss:$8 sps:$4 sm:$0xff]  }
  0x1d   : > { %v1051_v14 = vld [vmem:[%s1206_s25 + $0x134] ss:$8 sps:$4 sm:$0xff]   ;;  %v1054_v16 = vld [vmem:[%s1206_s25 + $0x130] ss:$8 sps:$4 sm:$0xff]   ;;  %v1057_v18 = vld [vmem:[%s1206_s25 + $0x144] ss:$8 sps:$4 sm:$0xff]  }
  0x1e   : > { %688 = vmatpush1.bf16.msra.mxu0 %v1041_v7  ;;  %v1059_v19 = vld [vmem:[%s1206_s25 + $0x40] ss:$8 sps:$4 sm:$0xff]   ;;  %v1061_v21 = vld [vmem:[%s1206_s25 + $0x54] ss:$8 sps:$4 sm:$0xff]   ;;  %v1065_v23 = vld [vmem:[%s1206_s25 + $0x50] ss:$8 sps:$4 sm:$0xff]  }
  0x1f   : > { %729 = vmatpush1.bf16.msra.mxu1 %v1042_v8  ;;  %689 = vmatprep.subr.bf16.mxu0 %v1043_v9  ;;  %v1060_v20 = vld [vmem:[%s1206_s25 + $0x140] ss:$8 sps:$4 sm:$0xff]   ;;  %v1063_v22 = vld [vmem:[%s1206_s25 + $0x154] ss:$8 sps:$4 sm:$0xff]   ;;  %v1066_v24 = vld [vmem:[%s1206_s25 + $0x150] ss:$8 sps:$4 sm:$0xff]  }
  0x20   : > { %730 = vmatprep.subr.bf16.mxu1 %v1045_v10  ;;  %v1067_v25 = vld [vmem:[%s1206_s25 + $0x64] ss:$8 sps:$4 sm:$0xff]   ;;  %v1071_v27 = vld [vmem:[%s1206_s25 + $0x60] ss:$8 sps:$4 sm:$0xff]   ;;  %v1073_v29 = vld [vmem:[%s1206_s25 + $0x74] ss:$8 sps:$4 sm:$0xff]  }
  0x21   : > { %v1069_v26 = vld [vmem:[%s1206_s25 + $0x164] ss:$8 sps:$4 sm:$0xff]   ;;  %v1072_v28 = vld [vmem:[%s1206_s25 + $0x160] ss:$8 sps:$4 sm:$0xff]   ;;  %v1075_v30 = vld [vmem:[%s1206_s25 + $0x174] ss:$8 sps:$4 sm:$0xff]  }
  0x22   : > { %690 = vmatpush1.bf16.msra.mxu0 %v1047_v11  ;;  %v1077_v31 = vld [vmem:[%s1206_s25 + $0x70] ss:$8 sps:$4 sm:$0xff]   ;;  %v1079_v33 = vld [vmem:[%s1206_s25 + $0x84] ss:$8 sps:$4 sm:$0xff]   ;;  %v1083_v35 = vld [vmem:[%s1206_s25 + $0x80] ss:$8 sps:$4 sm:$0xff]  }
  0x23   : > { %731 = vmatpush1.bf16.msra.mxu1 %v1048_v12  ;;  %691 = vmatprep.subr.bf16.mxu0 %v1049_v13  ;;  %v1078_v32 = vld [vmem:[%s1206_s25 + $0x170] ss:$8 sps:$4 sm:$0xff]   ;;  %v1081_v34 = vld [vmem:[%s1206_s25 + $0x184] ss:$8 sps:$4 sm:$0xff]   ;;  %v1084_v36 = vld [vmem:[%s1206_s25 + $0x180] ss:$8 sps:$4 sm:$0xff]  }
  0x24   : > { %732 = vmatprep.subr.bf16.mxu1 %v1051_v14  ;;  %v1085_v37 = vld [vmem:[%s1206_s25 + $0x94] ss:$8 sps:$4 sm:$0xff]   ;;  %v1089_v39 = vld [vmem:[%s1206_s25 + $0x90] ss:$8 sps:$4 sm:$0xff]   ;;  %v1091_v41 = vld [vmem:[%s1206_s25 + $0xa4] ss:$8 sps:$4 sm:$0xff]  }
  0x25   : > { %v1087_v38 = vld [vmem:[%s1206_s25 + $0x194] ss:$8 sps:$4 sm:$0xff]   ;;  %v1090_v40 = vld [vmem:[%s1206_s25 + $0x190] ss:$8 sps:$4 sm:$0xff]   ;;  %v1093_v42 = vld [vmem:[%s1206_s25 + $0x1a4] ss:$8 sps:$4 sm:$0xff]  }
  0x26   : > { %692 = vmatpush1.bf16.msra.mxu0 %v1053_v15  ;;  %v1095_v43 = vld [vmem:[%s1206_s25 + $0xa0] ss:$8 sps:$4 sm:$0xff]   ;;  %v1097_v45 = vld [vmem:[%s1206_s25 + $0xb4] ss:$8 sps:$4 sm:$0xff]   ;;  %v1101_v50 = vld [vmem:[%s1206_s25 + $0xb0] ss:$8 sps:$4 sm:$0xff]  }
  0x27   : > { %733 = vmatpush1.bf16.msra.mxu1 %v1054_v16  ;;  %693 = vmatprep.subr.bf16.mxu0 %v1055_v17  ;;  %v1096_v44 = vld [vmem:[%s1206_s25 + $0x1a0] ss:$8 sps:$4 sm:$0xff]   ;;  %v1099_v46 = vld [vmem:[%s1206_s25 + $0x1b4] ss:$8 sps:$4 sm:$0xff]   ;;  %v1102_v51 = vld [vmem:[%s1206_s25 + $0x1b0] ss:$8 sps:$4 sm:$0xff]  }
  0x28   : > { %734 = vmatprep.subr.bf16.mxu1 %v1057_v18  ;;  %v285_v47 = vld [vmem:[%s1201_s21] sm:$0xff]  ;;  %v286_v49 = vld [vmem:[%s1201_s21 + $0x8] sm:$0xff]  ;;  %v1109_v57 = vld [vmem:[%s1206_s25 + $0xd4] ss:$8 sps:$4 sm:$0xff]   ;;  %p998_p7 = scmp.ne.s32.totalorder %s1145_s12, 1 }
  0x29   : > { %v931_v48 = vcombine.high %v285_v47, %v285_v47  ;;  %v933_v52 = vcombine.high %v286_v49, %v286_v49  ;;  %v1103_v53 = vld [vmem:[%s1206_s25 + $0xc4] ss:$8 sps:$4 sm:$0xff]   ;;  %v1107_v55 = vld [vmem:[%s1206_s25 + $0xc0] ss:$8 sps:$4 sm:$0xff]   ;;  %v1111_v58 = vld [vmem:[%s1206_s25 + $0x1d4] ss:$8 sps:$4 sm:$0xff]   ;;  %v930_v5 = vcombine.low %v285_v47, %v285_v47  ;;  %v932_v6 = vcombine.low %v286_v49, %v286_v49 }
  0x2a   : > { %694 = vmatpush1.bf16.msra.mxu0 %v1059_v19  ;;  %v1105_v54 = vld [vmem:[%s1206_s25 + $0x1c4] ss:$8 sps:$4 sm:$0xff]   ;;  %v1108_v56 = vld [vmem:[%s1206_s25 + $0x1c0] ss:$8 sps:$4 sm:$0xff]   ;;  %v1113_v59 = vld [vmem:[%s1206_s25 + $0xd0] ss:$8 sps:$4 sm:$0xff]  }
  0x2b   : > { %735 = vmatpush1.bf16.msra.mxu1 %v1060_v20  ;;  %695 = vmatprep.subr.bf16.mxu0 %v1061_v21  ;;  %v1114_v60 = vld [vmem:[%s1206_s25 + $0x1d0] ss:$8 sps:$4 sm:$0xff]   ;;  %v1115_v61 = vld [vmem:[%s1206_s25 + $0xe4] ss:$8 sps:$4 sm:$0xff]   ;;  %v1119_v63 = vld [vmem:[%s1206_s25 + $0xe0] ss:$8 sps:$4 sm:$0xff]   ;;  %v779_v21 = vlaneseq (!%p998_p7) }
  0x2c   : > { %736 = vmatprep.subr.bf16.mxu1 %v1063_v22  ;;  %717 = vmatprep.mubr.bf16.mxu0 %v931_v48  ;;  %v1117_v62 = vld [vmem:[%s1206_s25 + $0x1e4] ss:$8 sps:$4 sm:$0xff]   ;;  %v1120_v0 = vld [vmem:[%s1206_s25 + $0x1e0] ss:$8 sps:$4 sm:$0xff]   ;;  %v1121_v1 = vld [vmem:[%s1206_s25 + $0xf4] ss:$8 sps:$4 sm:$0xff]  }
  0x2d   : > { %758 = vmatprep.mubr.bf16.mxu1 %v933_v52  ;;  %v1123_v2 = vld [vmem:[%s1206_s25 + $0x1f4] ss:$8 sps:$4 sm:$0xff]   ;;  %v1125_v3 = vld [vmem:[%s1206_s25 + $0xf0] ss:$8 sps:$4 sm:$0xff]   ;;  %v283_v8 = vld [vmem:[#allocation2] sm:$0xff]  ;;  %v780_v22 = vshrl.u32 (!%p998_p7), %v779_v21, 7 }
  0x2e   : > { %696 = vmatpush1.bf16.msra.mxu0 %v1065_v23  ;;  %v1126_v4 = vld [vmem:[%s1206_s25 + $0x1f0] ss:$8 sps:$4 sm:$0xff]   ;;  %v284_v12 = vld [vmem:[#allocation2 + $0x8] sm:$0xff]  ;;  %v777_v23 = vld [vmem:[%s1293_s2] sm:$0x3] (!%p998_p7) }
  0x2f   : > { %737 = vmatpush1.bf16.msra.mxu1 %v1066_v24  ;;  %697 = vmatprep.subr.bf16.mxu0 %v1067_v25  ;;  %v781_v24 = vsub.s32 (!%p998_p7), 0, %v780_v22  ;;  %v785_v25 = vsub.s32 (!%p998_p7), 1, %v780_v22 }
  0x30   : > { %738 = vmatprep.subr.bf16.mxu1 %v1069_v26 }
  0x32   : > { %698 = vmatpush1.bf16.msra.mxu0 %v1071_v27 }
  0x33   : > { %739 = vmatpush1.bf16.msra.mxu1 %v1072_v28  ;;  %699 = vmatprep.subr.bf16.mxu0 %v1073_v29  ;;  %v782_v28 = vrot.slane (!%p998_p7), %v777_v23, %v781_v24  ;;  %v786_v29 = vrot.slane (!%p998_p7), %v777_v23, %v785_v25 }
  0x34   : > { %740 = vmatprep.subr.bf16.mxu1 %v1075_v30 }
  0x36   : > { %700 = vmatpush1.bf16.msra.mxu0 %v1077_v31 }
  0x37   : > { %741 = vmatpush1.bf16.msra.mxu1 %v1078_v32  ;;  %701 = vmatprep.subr.bf16.mxu0 %v1079_v33 }
  0x38   : > { %742 = vmatprep.subr.bf16.mxu1 %v1081_v34 }
  0x3a   : > { %702 = vmatpush1.bf16.msra.mxu0 %v1083_v35 }
  0x3b   : > { %743 = vmatpush1.bf16.msra.mxu1 %v1084_v36  ;;  %703 = vmatprep.subr.bf16.mxu0 %v1085_v37 }
  0x3c   : > { %744 = vmatprep.subr.bf16.mxu1 %v1087_v38 }
  0x3e   : > { %704 = vmatpush1.bf16.msra.mxu0 %v1089_v39 }
  0x3f   : > { %745 = vmatpush1.bf16.msra.mxu1 %v1090_v40  ;;  %705 = vmatprep.subr.bf16.mxu0 %v1091_v41 }
  0x40   : > { %746 = vmatprep.subr.bf16.mxu1 %v1093_v42 }
  0x42   : > { %706 = vmatpush1.bf16.msra.mxu0 %v1095_v43 }
  0x43   : > { %747 = vmatpush1.bf16.msra.mxu1 %v1096_v44  ;;  %707 = vmatprep.subr.bf16.mxu0 %v1097_v45 }
  0x44   : > { %748 = vmatprep.subr.bf16.mxu1 %v1099_v46 }
  0x46   : > { %708 = vmatpush1.bf16.msra.mxu0 %v1101_v50 }
  0x47   : > { %749 = vmatpush1.bf16.msra.mxu1 %v1102_v51  ;;  %709 = vmatprep.subr.bf16.mxu0 %v1103_v53 }
  0x48   : > { %750 = vmatprep.subr.bf16.mxu1 %v1105_v54 }
  0x4a   : > { %710 = vmatpush1.bf16.msra.mxu0 %v1107_v55 }
  0x4b   : > { %751 = vmatpush1.bf16.msra.mxu1 %v1108_v56  ;;  %711 = vmatprep.subr.bf16.mxu0 %v1109_v57 }
  0x4c   : > { %752 = vmatprep.subr.bf16.mxu1 %v1111_v58 }
  0x4e   : > { %712 = vmatpush1.bf16.msra.mxu0 %v1113_v59 }
  0x4f   : > { %753 = vmatpush1.bf16.msra.mxu1 %v1114_v60  ;;  %713 = vmatprep.subr.bf16.mxu0 %v1115_v61 }
  0x50   : > { %754 = vmatprep.subr.bf16.mxu1 %v1117_v62 }
  0x52   : > { %714 = vmatpush1.bf16.msra.mxu0 %v1119_v63 }
  0x53   : > { %755 = vmatpush1.bf16.msra.mxu1 %v1120_v0  ;;  %715 = vmatprep.subr.bf16.mxu0 %v1121_v1 }
  0x54   : > { %756 = vmatprep.subr.bf16.mxu1 %v1123_v2 }
  0x56   : > { %716 = vmatpush1.bf16.msra.mxu0 %v1125_v3 }
  0x57   : > { %757 = vmatpush1.bf16.msra.mxu1 %v1126_v4 }
  0x59   : > { %718 = vmatmul.mubr.bf16.vlgmr.msra.gmra.mrb[0].mxu0 %v930_v5 }
  0x5a   : > { %759 = vmatmul.mubr.bf16.vlgmr.msra.gmra.mrb[0].mxu1 %v932_v6 }
 0x12c   : > { %v719_v7 = vpop.f32.mrb[0].mxu0 }
 0x12d   : > { %v760_v9 = vpop.f32.mrb[0].mxu1  ;;  %v721_v11 = vpop.f32.mrb[1].mxu0  ;;  %774 = sbr.rel (%p998_p7) target bundleno = 322 (0x142), region = 40 }
 0x12e   : > { %v761_v10 = vadd.f32 %v760_v9, %v719_v7  ;;  %v762_v13 = vpop.f32.mrb[1].mxu1  ;;  %v723_v15 = vpop.f32.mrb[2].mxu0 }
 0x12f   : > { %v763_v14 = vadd.f32 %v762_v13, %v721_v11  ;;  %v764_v16 = vpop.f32.mrb[2].mxu1  ;;  %v724_v18 = vpop.f32.mrb[3].mxu0 }
 0x130   : > { %v767_v17 = vadd.f32 %v761_v10, %v283_v8  ;;  %v765_v19 = vpop.f32.mrb[3].mxu1 }
 0x131   : > { %v768_v20 = vadd.f32 %v763_v14, %v284_v12 }
 0x132   : > { %769 = vst [vmem:[#allocation2] sm:$0xff] %v767_v17 }
 0x133   : > { %770 = vst [vmem:[#allocation2 + $0x8] sm:$0xff] %v768_v20 }
 0x139   : > { %v775_v26 = vld [vmem:[#allocation2] sm:$0xff] }
 0x13a   : > { %v776_v27 = vld [vmem:[#allocation2 + $0x8] sm:$0xff]  ;;  %v789_v30 = vadd.f32 %v782_v28, %v775_v26 }
 0x13b   : > { %v790_v31 = vadd.f32 %v786_v29, %v776_v27 }
 0x13c   : > { %v791_v32 = vmax.f32 %v789_v30, 0.0 }
 0x13d   : > { %v792_v33 = vmax.f32 %v790_v31, 0.0 }
 0x13f   : > { %v1005_v34 = vpack.c.bf16 %v792_v33, %v791_v32 }
 0x141   : > { %801 = vst [vmem:[%s1294_s3] sm:$0xff] %v1005_v34 }
 0x142 PF: > { %s13_s14 = sadd.s32 1, %s1153_s14   ;;  %s1295_s12 = smov %s1149_s13 }
 0x143   : > { %p10_p8 = scmp.ge.s32.totalorder %s13_s14, 4   ;;  %s1296_s13 = smov %s1298_s15 }
 0x145   :  { %12 = sbr.rel (!%p10_p8) target bundleno = 2 (0x2), region = 76 }

// kernel: _encoder_cnn_forward.99
= control target key start
LH: loop header
LB: loop body
LE: loop exit
PB: predicated region body
PF: predicated region fallthrough
CT: control target
= control target key end

     0   :  { %s1523_s12 = smov 0   ;;  %s1525_s13 = smov 0   ;;  %s1834_s0 = inlined_call_operand.vmem [shape: bf16[8,1024], index: 0, kind: input, shape index: {}]   ;;  %s1835_s1 = inlined_call_operand.vmem [shape: bf16[1024,512], index: 1, kind: input, shape index: {}]   ;;  %s1836_s2 = inlined_call_operand.vmem [shape: f32[1,512], index: 2, kind: input, shape index: {}]   ;;  %s1837_s3 = inlined_call_operand.vmem [shape: bf16[8,512], index: 3, kind: output, shape index: {}]  }
   0x1   :  { %s1527_s14 = smov 0   ;;  %s1529_s15 = smov 0  }
   0x2   :  { %s1531_s16 = smov 0   ;;  %s1533_s17 = smov 0  }
   0x3   :  { %s1535_s18 = smov 0  }
   0x4 LB: > { %s25_s19 = sadd.s32 1, %s1492_s16  ;;  %s28_s20 = sadd.s32 1, %s1496_s17  ;;  %s1500_s18 = sphi %s1535_s18, %s13_s18   ;;  %s1496_s17 = sphi %s1533_s17, %s1843_s17   ;;  %s1492_s16 = sphi %s1531_s16, %s1842_s16   ;;  %s1488_s15 = sphi %s1529_s15, %s1841_s15   ;;  %s1484_s14 = sphi %s1527_s14, %s1840_s14   ;;  %s1480_s13 = sphi %s1525_s13, %s1839_s13   ;;  %s1476_s12 = sphi %s1523_s12, %s1838_s12  }
   0x5   : > { %p26_p0 = scmp.ge.s32.totalorder %s25_s19, 2  ;;  %p76_p1 = scmp.ne.s32.totalorder %s1480_s13, %s1476_s12 }
   0x6   : > { %p77_p2 = scmp.eq.s32.totalorder %s1500_s18, 0  ;;  %s69_s24 = sadd.s32 1, %s1480_s13 }
   0x7   : > { %s1845_s19 = smov (%p26_p0, %s25_s19), 0  ;;  %s1847_s20 = smov (!%p26_p0, %s28_s20), %s1496_s17 }
   0x8   : > { %p78_p3 = por %p77_p2, %p76_p1  ;;  %p30_p4 = scmp.ge.s32.totalorder %s1847_s20, 2 }
   0x9   : > { %s64_s21 = ssub.s32 %s1492_s16, %s1845_s19  ;;  %p1201_p6 = scmp.ge.s32.totalorder %s1500_s18, 4 }
   0xa   : > { %s1849_s20 = smov (%p30_p4, %s1847_s20), 0 }
   0xb   : > { %s65_s22 = ssub.s32 %s1496_s17, %s1849_s20  ;;  %156 = sbr.rel (%p1201_p6) target bundleno = 57 (0x39), region = 16 }
   0xc   : > { %s66_s23 = sor.u32 %s65_s22, %s64_s21 }
   0xd   : > { %p67_p5 = scmp.eq.s32.totalorder %s66_s23, 0 }
   0xf   : > { %s1574_s25 = scalar_select %p67_p5, %s1480_s13, %s69_s24  }
  0x12   : > { %172 = sbr.rel (!%p78_p3) target bundleno = 57 (0x39), region = 24  ;;  %s174_s26 = sand.u32 (%p78_p3), 1, %s1480_s13  }
  0x13   : > { %s1204_s27 = sshll.u32 (%p78_p3), %s1496_s17, 1  ;;  %s1202_s28 = sshll.u32 (%p78_p3), %s174_s26, 9 }
  0x14   : > { %s1287_s29 = sshll.u32 (%p78_p3), %s1492_s16, 8  ;;  %s1588_s8 = scalar_lea.vmem (%p78_p3), [#allocation3], %s1202_s28 }
  0x15   : > { %s180_s30 = sadd.s32 (%p78_p3), %s1287_s29, %s1204_s27 }
  0x16   : > { %s1206_s4 = sshll.u32 (%p78_p3), %s180_s30, 2 }
  0x17   : > { %s1583_s7 = scalar_lea.vmem (%p78_p3), %s1835_s1, %s1206_s4 }
  0x18   : > { %v336_v0 = vld [vmem:[%s1583_s7] sm:$0xff] (%p78_p3)  ;;  %v338_v1 = vld [vmem:[%s1583_s7 + $0x10] sm:$0xff] (%p78_p3) }
  0x19   : > { %v340_v2 = vld [vmem:[%s1583_s7 + $0x20] sm:$0xff]  ;;  %337 = vst [vmem:[%s1588_s8] sm:$0xff] %v336_v0  ;;  %339 = vst [vmem:[%s1588_s8 + $0x8] sm:$0xff] %v338_v1  ;;  %v342_v3 = vld [vmem:[%s1583_s7 + $0x30] sm:$0xff] }
  0x1a   : > { %341 = vst [vmem:[%s1588_s8 + $0x10] sm:$0xff] %v340_v2  ;;  %v344_v4 = vld [vmem:[%s1583_s7 + $0x40] sm:$0xff]  ;;  %v346_v5 = vld [vmem:[%s1583_s7 + $0x50] sm:$0xff]  ;;  %343 = vst [vmem:[%s1588_s8 + $0x18] sm:$0xff] %v342_v3 }
  0x1b   : > { %345 = vst [vmem:[%s1588_s8 + $0x20] sm:$0xff] %v344_v4  ;;  %347 = vst [vmem:[%s1588_s8 + $0x28] sm:$0xff] %v346_v5  ;;  %v348_v6 = vld [vmem:[%s1583_s7 + $0x60] sm:$0xff]  ;;  %v350_v7 = vld [vmem:[%s1583_s7 + $0x70] sm:$0xff] }
  0x1c   : > { %v352_v8 = vld [vmem:[%s1583_s7 + $0x80] sm:$0xff]  ;;  %349 = vst [vmem:[%s1588_s8 + $0x30] sm:$0xff] %v348_v6  ;;  %351 = vst [vmem:[%s1588_s8 + $0x38] sm:$0xff] %v350_v7  ;;  %v354_v9 = vld [vmem:[%s1583_s7 + $0x90] sm:$0xff] }
  0x1d   : > { %353 = vst [vmem:[%s1588_s8 + $0x40] sm:$0xff] %v352_v8  ;;  %v356_v10 = vld [vmem:[%s1583_s7 + $0xa0] sm:$0xff]  ;;  %v358_v11 = vld [vmem:[%s1583_s7 + $0xb0] sm:$0xff]  ;;  %355 = vst [vmem:[%s1588_s8 + $0x48] sm:$0xff] %v354_v9 }
  0x1e   : > { %357 = vst [vmem:[%s1588_s8 + $0x50] sm:$0xff] %v356_v10  ;;  %359 = vst [vmem:[%s1588_s8 + $0x58] sm:$0xff] %v358_v11  ;;  %v360_v12 = vld [vmem:[%s1583_s7 + $0xc0] sm:$0xff]  ;;  %v362_v13 = vld [vmem:[%s1583_s7 + $0xd0] sm:$0xff] }
  0x1f   : > { %v364_v14 = vld [vmem:[%s1583_s7 + $0xe0] sm:$0xff]  ;;  %361 = vst [vmem:[%s1588_s8 + $0x60] sm:$0xff] %v360_v12  ;;  %363 = vst [vmem:[%s1588_s8 + $0x68] sm:$0xff] %v362_v13  ;;  %v366_v15 = vld [vmem:[%s1583_s7 + $0xf0] sm:$0xff] }
  0x20   : > { %365 = vst [vmem:[%s1588_s8 + $0x70] sm:$0xff] %v364_v14  ;;  %v368_v16 = vld [vmem:[%s1583_s7 + $0x100] sm:$0xff]  ;;  %v370_v17 = vld [vmem:[%s1583_s7 + $0x110] sm:$0xff]  ;;  %367 = vst [vmem:[%s1588_s8 + $0x78] sm:$0xff] %v366_v15 }
  0x21   : > { %369 = vst [vmem:[%s1588_s8 + $0x80] sm:$0xff] %v368_v16  ;;  %371 = vst [vmem:[%s1588_s8 + $0x88] sm:$0xff] %v370_v17  ;;  %v372_v18 = vld [vmem:[%s1583_s7 + $0x120] sm:$0xff]  ;;  %v374_v19 = vld [vmem:[%s1583_s7 + $0x130] sm:$0xff] }
  0x22   : > { %v376_v20 = vld [vmem:[%s1583_s7 + $0x140] sm:$0xff]  ;;  %373 = vst [vmem:[%s1588_s8 + $0x90] sm:$0xff] %v372_v18  ;;  %375 = vst [vmem:[%s1588_s8 + $0x98] sm:$0xff] %v374_v19  ;;  %v378_v21 = vld [vmem:[%s1583_s7 + $0x150] sm:$0xff] }
  0x23   : > { %377 = vst [vmem:[%s1588_s8 + $0xa0] sm:$0xff] %v376_v20  ;;  %v380_v22 = vld [vmem:[%s1583_s7 + $0x160] sm:$0xff]  ;;  %v382_v23 = vld [vmem:[%s1583_s7 + $0x170] sm:$0xff]  ;;  %379 = vst [vmem:[%s1588_s8 + $0xa8] sm:$0xff] %v378_v21 }
  0x24   : > { %381 = vst [vmem:[%s1588_s8 + $0xb0] sm:$0xff] %v380_v22  ;;  %383 = vst [vmem:[%s1588_s8 + $0xb8] sm:$0xff] %v382_v23  ;;  %v384_v24 = vld [vmem:[%s1583_s7 + $0x180] sm:$0xff]  ;;  %v386_v25 = vld [vmem:[%s1583_s7 + $0x190] sm:$0xff] }
  0x25   : > { %v388_v26 = vld [vmem:[%s1583_s7 + $0x1a0] sm:$0xff]  ;;  %385 = vst [vmem:[%s1588_s8 + $0xc0] sm:$0xff] %v384_v24  ;;  %387 = vst [vmem:[%s1588_s8 + $0xc8] sm:$0xff] %v386_v25  ;;  %v390_v27 = vld [vmem:[%s1583_s7 + $0x1b0] sm:$0xff] }
  0x26   : > { %389 = vst [vmem:[%s1588_s8 + $0xd0] sm:$0xff] %v388_v26  ;;  %v392_v28 = vld [vmem:[%s1583_s7 + $0x1c0] sm:$0xff]  ;;  %v394_v29 = vld [vmem:[%s1583_s7 + $0x1d0] sm:$0xff]  ;;  %391 = vst [vmem:[%s1588_s8 + $0xd8] sm:$0xff] %v390_v27 }
  0x27   : > { %393 = vst [vmem:[%s1588_s8 + $0xe0] sm:$0xff] %v392_v28  ;;  %395 = vst [vmem:[%s1588_s8 + $0xe8] sm:$0xff] %v394_v29  ;;  %v396_v30 = vld [vmem:[%s1583_s7 + $0x1e0] sm:$0xff]  ;;  %v398_v31 = vld [vmem:[%s1583_s7 + $0x1f0] sm:$0xff] }
  0x28   : > { %v400_v32 = vld [vmem:[%s1583_s7 + $0x200] sm:$0xff]  ;;  %397 = vst [vmem:[%s1588_s8 + $0xf0] sm:$0xff] %v396_v30  ;;  %399 = vst [vmem:[%s1588_s8 + $0xf8] sm:$0xff] %v398_v31  ;;  %v402_v33 = vld [vmem:[%s1583_s7 + $0x210] sm:$0xff] }
  0x29   : > { %401 = vst [vmem:[%s1588_s8 + $0x100] sm:$0xff] %v400_v32  ;;  %v404_v34 = vld [vmem:[%s1583_s7 + $0x220] sm:$0xff]  ;;  %v406_v35 = vld [vmem:[%s1583_s7 + $0x230] sm:$0xff]  ;;  %403 = vst [vmem:[%s1588_s8 + $0x108] sm:$0xff] %v402_v33 }
  0x2a   : > { %405 = vst [vmem:[%s1588_s8 + $0x110] sm:$0xff] %v404_v34  ;;  %407 = vst [vmem:[%s1588_s8 + $0x118] sm:$0xff] %v406_v35  ;;  %v408_v36 = vld [vmem:[%s1583_s7 + $0x240] sm:$0xff]  ;;  %v410_v37 = vld [vmem:[%s1583_s7 + $0x250] sm:$0xff] }
  0x2b   : > { %v412_v38 = vld [vmem:[%s1583_s7 + $0x260] sm:$0xff]  ;;  %409 = vst [vmem:[%s1588_s8 + $0x120] sm:$0xff] %v408_v36  ;;  %411 = vst [vmem:[%s1588_s8 + $0x128] sm:$0xff] %v410_v37  ;;  %v414_v39 = vld [vmem:[%s1583_s7 + $0x270] sm:$0xff] }
  0x2c   : > { %413 = vst [vmem:[%s1588_s8 + $0x130] sm:$0xff] %v412_v38  ;;  %v416_v40 = vld [vmem:[%s1583_s7 + $0x280] sm:$0xff]  ;;  %v418_v41 = vld [vmem:[%s1583_s7 + $0x290] sm:$0xff]  ;;  %415 = vst [vmem:[%s1588_s8 + $0x138] sm:$0xff] %v414_v39 }
  0x2d   : > { %417 = vst [vmem:[%s1588_s8 + $0x140] sm:$0xff] %v416_v40  ;;  %419 = vst [vmem:[%s1588_s8 + $0x148] sm:$0xff] %v418_v41  ;;  %v420_v42 = vld [vmem:[%s1583_s7 + $0x2a0] sm:$0xff]  ;;  %v422_v43 = vld [vmem:[%s1583_s7 + $0x2b0] sm:$0xff] }
  0x2e   : > { %v424_v44 = vld [vmem:[%s1583_s7 + $0x2c0] sm:$0xff]  ;;  %421 = vst [vmem:[%s1588_s8 + $0x150] sm:$0xff] %v420_v42  ;;  %423 = vst [vmem:[%s1588_s8 + $0x158] sm:$0xff] %v422_v43  ;;  %v426_v45 = vld [vmem:[%s1583_s7 + $0x2d0] sm:$0xff] }
  0x2f   : > { %425 = vst [vmem:[%s1588_s8 + $0x160] sm:$0xff] %v424_v44  ;;  %v428_v46 = vld [vmem:[%s1583_s7 + $0x2e0] sm:$0xff]  ;;  %v430_v47 = vld [vmem:[%s1583_s7 + $0x2f0] sm:$0xff]  ;;  %427 = vst [vmem:[%s1588_s8 + $0x168] sm:$0xff] %v426_v45 }
  0x30   : > { %429 = vst [vmem:[%s1588_s8 + $0x170] sm:$0xff] %v428_v46  ;;  %431 = vst [vmem:[%s1588_s8 + $0x178] sm:$0xff] %v430_v47  ;;  %v432_v48 = vld [vmem:[%s1583_s7 + $0x300] sm:$0xff]  ;;  %v434_v49 = vld [vmem:[%s1583_s7 + $0x310] sm:$0xff] }
  0x31   : > { %v436_v50 = vld [vmem:[%s1583_s7 + $0x320] sm:$0xff]  ;;  %433 = vst [vmem:[%s1588_s8 + $0x180] sm:$0xff] %v432_v48  ;;  %435 = vst [vmem:[%s1588_s8 + $0x188] sm:$0xff] %v434_v49  ;;  %v438_v51 = vld [vmem:[%s1583_s7 + $0x330] sm:$0xff] }
  0x32   : > { %437 = vst [vmem:[%s1588_s8 + $0x190] sm:$0xff] %v436_v50  ;;  %v440_v52 = vld [vmem:[%s1583_s7 + $0x340] sm:$0xff]  ;;  %v442_v53 = vld [vmem:[%s1583_s7 + $0x350] sm:$0xff]  ;;  %439 = vst [vmem:[%s1588_s8 + $0x198] sm:$0xff] %v438_v51 }
  0x33   : > { %441 = vst [vmem:[%s1588_s8 + $0x1a0] sm:$0xff] %v440_v52  ;;  %443 = vst [vmem:[%s1588_s8 + $0x1a8] sm:$0xff] %v442_v53  ;;  %v444_v54 = vld [vmem:[%s1583_s7 + $0x360] sm:$0xff]  ;;  %v446_v55 = vld [vmem:[%s1583_s7 + $0x370] sm:$0xff] }
  0x34   : > { %v448_v56 = vld [vmem:[%s1583_s7 + $0x380] sm:$0xff]  ;;  %445 = vst [vmem:[%s1588_s8 + $0x1b0] sm:$0xff] %v444_v54  ;;  %447 = vst [vmem:[%s1588_s8 + $0x1b8] sm:$0xff] %v446_v55  ;;  %v450_v57 = vld [vmem:[%s1583_s7 + $0x390] sm:$0xff] }
  0x35   : > { %449 = vst [vmem:[%s1588_s8 + $0x1c0] sm:$0xff] %v448_v56  ;;  %v452_v58 = vld [vmem:[%s1583_s7 + $0x3a0] sm:$0xff]  ;;  %v454_v59 = vld [vmem:[%s1583_s7 + $0x3b0] sm:$0xff]  ;;  %451 = vst [vmem:[%s1588_s8 + $0x1c8] sm:$0xff] %v450_v57 }
  0x36   : > { %453 = vst [vmem:[%s1588_s8 + $0x1d0] sm:$0xff] %v452_v58  ;;  %455 = vst [vmem:[%s1588_s8 + $0x1d8] sm:$0xff] %v454_v59  ;;  %v456_v60 = vld [vmem:[%s1583_s7 + $0x3c0] sm:$0xff]  ;;  %v458_v61 = vld [vmem:[%s1583_s7 + $0x3d0] sm:$0xff] }
  0x37   : > { %v460_v62 = vld [vmem:[%s1583_s7 + $0x3e0] sm:$0xff]  ;;  %457 = vst [vmem:[%s1588_s8 + $0x1e0] sm:$0xff] %v456_v60  ;;  %459 = vst [vmem:[%s1588_s8 + $0x1e8] sm:$0xff] %v458_v61  ;;  %v462_v63 = vld [vmem:[%s1583_s7 + $0x3f0] sm:$0xff] }
  0x38   : > { %461 = vst [vmem:[%s1588_s8 + $0x1f0] sm:$0xff] %v460_v62  ;;  %463 = vst [vmem:[%s1588_s8 + $0x1f8] sm:$0xff] %v462_v63 }
  0x39 PF: > { %p1207_p7 = scmp.ge.s32.totalorder %s1500_s18, 1  ;;  %p476_p8 = scmp.lt.s32.totalorder %s1500_s18, 5 }
  0x3b   : > { %p477_p9 = pnand %p1207_p7, %p476_p8 }
  0x3c   : > { %s483_s9 = sand.u32 (!%p477_p9), 1, %s1476_s12   ;;  %s1209_s10 = sshll.u32 (!%p477_p9), %s1484_s14, 2 }
  0x3d   : > { %480 = sbr.rel (%p477_p9) target bundleno = 376 (0x178), region = 66  ;;  %s1208_s11 = sshll.u32 (!%p477_p9), %s483_s9, 9 }
  0x3e   : > { %p526_p10 = scmp.lt.s32.totalorder (!%p477_p9), %s1209_s10, 7  ;;  %s1211_s21 = sshll.u32 (!%p477_p9), %s1488_s15, 1 }
  0x3f   : > { %p536_p11 = scmp.lt.s32.totalorder (!%p477_p9), %s1211_s21, 3  ;;  %s1737_s5 = scalar_lea.vmem (!%p477_p9), [#allocation3], %s1208_s11 }
  0x40   : > { %p1214_p12 = scmp.ne.s32.totalorder (!%p477_p9), %s1484_s14, 0 }
  0x44   : > { %s1851_s10 = smov (!%p526_p10, %s1209_s10), 7  ;;  %s1853_s21 = smov (!%p536_p11, %s1211_s21), 3 }
  0x45   : > { %s1210_s22 = sshll.u32 %s1851_s10, 2  ;;  %s538_s12 = scalar_lea.vmem %s1836_s2, %s1853_s21  ;;  %v1502_v0 = vmov (!%p1214_p12), 0.0  }
  0x46   : > { %s1723_s26 = scalar_lea.vmem %s1834_s0, %s1210_s22  ;;  %s1213_s29 = sshll.u32 %s1853_s21, 2  ;;  %554 = vst [vmem:[#allocation2] sm:$0xff] (!%p1214_p12), %v1502_v0  ;;  %555 = vst [vmem:[#allocation2 + $0x8] sm:$0xff] (!%p1214_p12), %v1502_v0 }
  0x47   : > { %s1735_s15 = scalar_lea.vmem %s1837_s3, %s1213_s29  ;;  %553 = sbr.rel (%p1214_p12) target bundleno = 78 (0x4e), region = 74 }
  0x4e PF: > { %v1346_v1 = vld [vmem:[%s1737_s5 + $0x4] ss:$8 sps:$4 sm:$0xff]   ;;  %v1350_v3 = vld [vmem:[%s1737_s5] ss:$8 sps:$4 sm:$0xff]   ;;  %v1352_v5 = vld [vmem:[%s1737_s5 + $0x14] ss:$8 sps:$4 sm:$0xff]  }
  0x4f   : > { %v1348_v2 = vld [vmem:[%s1737_s5 + $0x104] ss:$8 sps:$4 sm:$0xff]   ;;  %958 = vmatprep.subr.bf16.mxu0 %v1346_v1  ;;  %v1351_v4 = vld [vmem:[%s1737_s5 + $0x100] ss:$8 sps:$4 sm:$0xff]   ;;  %v1354_v6 = vld [vmem:[%s1737_s5 + $0x114] ss:$8 sps:$4 sm:$0xff]  }
  0x50   : > { %999 = vmatprep.subr.bf16.mxu1 %v1348_v2  ;;  %959 = vmatpush1.bf16.msra.mxu0 %v1350_v3  ;;  %v1356_v7 = vld [vmem:[%s1737_s5 + $0x10] ss:$8 sps:$4 sm:$0xff]   ;;  %v1358_v9 = vld [vmem:[%s1737_s5 + $0x24] ss:$8 sps:$4 sm:$0xff]   ;;  %v1362_v11 = vld [vmem:[%s1737_s5 + $0x20] ss:$8 sps:$4 sm:$0xff]  }
  0x51   : > { %1000 = vmatpush1.bf16.msra.mxu1 %v1351_v4  ;;  %960 = vmatprep.subr.bf16.mxu0 %v1352_v5  ;;  %v1357_v8 = vld [vmem:[%s1737_s5 + $0x110] ss:$8 sps:$4 sm:$0xff]   ;;  %v1360_v10 = vld [vmem:[%s1737_s5 + $0x124] ss:$8 sps:$4 sm:$0xff]   ;;  %v1363_v12 = vld [vmem:[%s1737_s5 + $0x120] ss:$8 sps:$4 sm:$0xff]  }
  0x52   : > { %1001 = vmatprep.subr.bf16.mxu1 %v1354_v6  ;;  %v1364_v13 = vld [vmem:[%s1737_s5 + $0x34] ss:$8 sps:$4 sm:$0xff]   ;;  %v1368_v15 = vld [vmem:[%s1737_s5 + $0x30] ss:$8 sps:$4 sm:$0xff]   ;;  %v1370_v17 = vld [vmem:[%s1737_s5 + $0x44] ss:$8 sps:$4 sm:$0xff]  }
  0x53   : > { %v1366_v14 = vld [vmem:[%s1737_s5 + $0x134] ss:$8 sps:$4 sm:$0xff]   ;;  %v1369_v16 = vld [vmem:[%s1737_s5 + $0x130] ss:$8 sps:$4 sm:$0xff]   ;;  %v1372_v18 = vld [vmem:[%s1737_s5 + $0x144] ss:$8 sps:$4 sm:$0xff]  }
  0x54   : > { %961 = vmatpush1.bf16.msra.mxu0 %v1356_v7  ;;  %v1374_v19 = vld [vmem:[%s1737_s5 + $0x40] ss:$8 sps:$4 sm:$0xff]   ;;  %v1376_v21 = vld [vmem:[%s1737_s5 + $0x54] ss:$8 sps:$4 sm:$0xff]   ;;  %v1380_v23 = vld [vmem:[%s1737_s5 + $0x50] ss:$8 sps:$4 sm:$0xff]  }
  0x55   : > { %1002 = vmatpush1.bf16.msra.mxu1 %v1357_v8  ;;  %962 = vmatprep.subr.bf16.mxu0 %v1358_v9  ;;  %v1375_v20 = vld [vmem:[%s1737_s5 + $0x140] ss:$8 sps:$4 sm:$0xff]   ;;  %v1378_v22 = vld [vmem:[%s1737_s5 + $0x154] ss:$8 sps:$4 sm:$0xff]   ;;  %v1381_v24 = vld [vmem:[%s1737_s5 + $0x150] ss:$8 sps:$4 sm:$0xff]  }
  0x56   : > { %1003 = vmatprep.subr.bf16.mxu1 %v1360_v10  ;;  %v1382_v25 = vld [vmem:[%s1737_s5 + $0x64] ss:$8 sps:$4 sm:$0xff]   ;;  %v1386_v27 = vld [vmem:[%s1737_s5 + $0x60] ss:$8 sps:$4 sm:$0xff]   ;;  %v1388_v29 = vld [vmem:[%s1737_s5 + $0x74] ss:$8 sps:$4 sm:$0xff]  }
  0x57   : > { %v1384_v26 = vld [vmem:[%s1737_s5 + $0x164] ss:$8 sps:$4 sm:$0xff]   ;;  %v1387_v28 = vld [vmem:[%s1737_s5 + $0x160] ss:$8 sps:$4 sm:$0xff]   ;;  %v1390_v30 = vld [vmem:[%s1737_s5 + $0x174] ss:$8 sps:$4 sm:$0xff]  }
  0x58   : > { %963 = vmatpush1.bf16.msra.mxu0 %v1362_v11  ;;  %v1392_v31 = vld [vmem:[%s1737_s5 + $0x70] ss:$8 sps:$4 sm:$0xff]   ;;  %v1394_v33 = vld [vmem:[%s1737_s5 + $0x84] ss:$8 sps:$4 sm:$0xff]   ;;  %v1398_v35 = vld [vmem:[%s1737_s5 + $0x80] ss:$8 sps:$4 sm:$0xff]  }
  0x59   : > { %1004 = vmatpush1.bf16.msra.mxu1 %v1363_v12  ;;  %964 = vmatprep.subr.bf16.mxu0 %v1364_v13  ;;  %v1393_v32 = vld [vmem:[%s1737_s5 + $0x170] ss:$8 sps:$4 sm:$0xff]   ;;  %v1396_v34 = vld [vmem:[%s1737_s5 + $0x184] ss:$8 sps:$4 sm:$0xff]   ;;  %v1399_v36 = vld [vmem:[%s1737_s5 + $0x180] ss:$8 sps:$4 sm:$0xff]  }
  0x5a   : > { %1005 = vmatprep.subr.bf16.mxu1 %v1366_v14  ;;  %v1400_v37 = vld [vmem:[%s1737_s5 + $0x94] ss:$8 sps:$4 sm:$0xff]   ;;  %v1404_v39 = vld [vmem:[%s1737_s5 + $0x90] ss:$8 sps:$4 sm:$0xff]   ;;  %v1406_v41 = vld [vmem:[%s1737_s5 + $0xa4] ss:$8 sps:$4 sm:$0xff]  }
  0x5b   : > { %v1402_v38 = vld [vmem:[%s1737_s5 + $0x194] ss:$8 sps:$4 sm:$0xff]   ;;  %v1405_v40 = vld [vmem:[%s1737_s5 + $0x190] ss:$8 sps:$4 sm:$0xff]   ;;  %v1408_v42 = vld [vmem:[%s1737_s5 + $0x1a4] ss:$8 sps:$4 sm:$0xff]  }
  0x5c   : > { %965 = vmatpush1.bf16.msra.mxu0 %v1368_v15  ;;  %v1410_v43 = vld [vmem:[%s1737_s5 + $0xa0] ss:$8 sps:$4 sm:$0xff]   ;;  %v1412_v45 = vld [vmem:[%s1737_s5 + $0xb4] ss:$8 sps:$4 sm:$0xff]   ;;  %v1416_v50 = vld [vmem:[%s1737_s5 + $0xb0] ss:$8 sps:$4 sm:$0xff]  }
  0x5d   : > { %1006 = vmatpush1.bf16.msra.mxu1 %v1369_v16  ;;  %966 = vmatprep.subr.bf16.mxu0 %v1370_v17  ;;  %v1411_v44 = vld [vmem:[%s1737_s5 + $0x1a0] ss:$8 sps:$4 sm:$0xff]   ;;  %v1414_v46 = vld [vmem:[%s1737_s5 + $0x1b4] ss:$8 sps:$4 sm:$0xff]   ;;  %v1417_v51 = vld [vmem:[%s1737_s5 + $0x1b0] ss:$8 sps:$4 sm:$0xff]  }
  0x5e   : > { %1007 = vmatprep.subr.bf16.mxu1 %v1372_v18  ;;  %v558_v47 = vld [vmem:[%s1723_s26] sm:$0xff]  ;;  %v559_v49 = vld [vmem:[%s1723_s26 + $0x8] sm:$0xff]  ;;  %v1418_v53 = vld [vmem:[%s1737_s5 + $0xc4] ss:$8 sps:$4 sm:$0xff]   ;;  %p1283_p13 = scmp.ne.s32.totalorder %s1484_s14, 1 }
  0x5f   : > { %v1216_v48 = vcombine.high %v558_v47, %v558_v47  ;;  %v1218_v52 = vcombine.high %v559_v49, %v559_v49  ;;  %v1420_v54 = vld [vmem:[%s1737_s5 + $0x1c4] ss:$8 sps:$4 sm:$0xff]   ;;  %v1422_v55 = vld [vmem:[%s1737_s5 + $0xc0] ss:$8 sps:$4 sm:$0xff]   ;;  %v1424_v57 = vld [vmem:[%s1737_s5 + $0xd4] ss:$8 sps:$4 sm:$0xff]   ;;  %v1215_v5 = vcombine.low %v558_v47, %v558_v47  ;;  %v1217_v6 = vcombine.low %v559_v49, %v559_v49 }
  0x60   : > { %967 = vmatpush1.bf16.msra.mxu0 %v1374_v19  ;;  %v1423_v56 = vld [vmem:[%s1737_s5 + $0x1c0] ss:$8 sps:$4 sm:$0xff]   ;;  %v1426_v58 = vld [vmem:[%s1737_s5 + $0x1d4] ss:$8 sps:$4 sm:$0xff]   ;;  %v1428_v59 = vld [vmem:[%s1737_s5 + $0xd0] ss:$8 sps:$4 sm:$0xff]  }
  0x61   : > { %1008 = vmatpush1.bf16.msra.mxu1 %v1375_v20  ;;  %968 = vmatprep.subr.bf16.mxu0 %v1376_v21  ;;  %v1429_v60 = vld [vmem:[%s1737_s5 + $0x1d0] ss:$8 sps:$4 sm:$0xff]   ;;  %v1430_v61 = vld [vmem:[%s1737_s5 + $0xe4] ss:$8 sps:$4 sm:$0xff]   ;;  %v1434_v63 = vld [vmem:[%s1737_s5 + $0xe0] ss:$8 sps:$4 sm:$0xff]   ;;  %v1052_v21 = vlaneseq (!%p1283_p13) }
  0x62   : > { %1009 = vmatprep.subr.bf16.mxu1 %v1378_v22  ;;  %990 = vmatprep.mubr.bf16.mxu0 %v1216_v48  ;;  %v1432_v62 = vld [vmem:[%s1737_s5 + $0x1e4] ss:$8 sps:$4 sm:$0xff]   ;;  %v1435_v0 = vld [vmem:[%s1737_s5 + $0x1e0] ss:$8 sps:$4 sm:$0xff]   ;;  %v1436_v1 = vld [vmem:[%s1737_s5 + $0xf4] ss:$8 sps:$4 sm:$0xff]  }
  0x63   : > { %1031 = vmatprep.mubr.bf16.mxu1 %v1218_v52  ;;  %v1438_v2 = vld [vmem:[%s1737_s5 + $0x1f4] ss:$8 sps:$4 sm:$0xff]   ;;  %v1440_v3 = vld [vmem:[%s1737_s5 + $0xf0] ss:$8 sps:$4 sm:$0xff]   ;;  %v1053_v22 = vshrl.u32 (!%p1283_p13), %v1052_v21, 7 }
  0x64   : > { %969 = vmatpush1.bf16.msra.mxu0 %v1380_v23  ;;  %v1441_v4 = vld [vmem:[%s1737_s5 + $0x1f0] ss:$8 sps:$4 sm:$0xff]  }
  0x65   : > { %1010 = vmatpush1.bf16.msra.mxu1 %v1381_v24  ;;  %970 = vmatprep.subr.bf16.mxu0 %v1382_v25  ;;  %v556_v8 = vld [vmem:[#allocation2] sm:$0xff]  ;;  %v557_v12 = vld [vmem:[#allocation2 + $0x8] sm:$0xff]  ;;  %v1054_v24 = vsub.s32 (!%p1283_p13), 0, %v1053_v22  ;;  %v1058_v25 = vsub.s32 (!%p1283_p13), 1, %v1053_v22 }
  0x66   : > { %1011 = vmatprep.subr.bf16.mxu1 %v1384_v26  ;;  %v1050_v23 = vld [vmem:[%s538_s12] sm:$0x3] (!%p1283_p13) }
  0x68   : > { %971 = vmatpush1.bf16.msra.mxu0 %v1386_v27 }
  0x69   : > { %1012 = vmatpush1.bf16.msra.mxu1 %v1387_v28  ;;  %972 = vmatprep.subr.bf16.mxu0 %v1388_v29  ;;  %v1055_v28 = vrot.slane (!%p1283_p13), %v1050_v23, %v1054_v24  ;;  %v1059_v29 = vrot.slane (!%p1283_p13), %v1050_v23, %v1058_v25 }
  0x6a   : > { %1013 = vmatprep.subr.bf16.mxu1 %v1390_v30 }
  0x6c   : > { %973 = vmatpush1.bf16.msra.mxu0 %v1392_v31 }
  0x6d   : > { %1014 = vmatpush1.bf16.msra.mxu1 %v1393_v32  ;;  %974 = vmatprep.subr.bf16.mxu0 %v1394_v33 }
  0x6e   : > { %1015 = vmatprep.subr.bf16.mxu1 %v1396_v34 }
  0x70   : > { %975 = vmatpush1.bf16.msra.mxu0 %v1398_v35 }
  0x71   : > { %1016 = vmatpush1.bf16.msra.mxu1 %v1399_v36  ;;  %976 = vmatprep.subr.bf16.mxu0 %v1400_v37 }
  0x72   : > { %1017 = vmatprep.subr.bf16.mxu1 %v1402_v38 }
  0x74   : > { %977 = vmatpush1.bf16.msra.mxu0 %v1404_v39 }
  0x75   : > { %1018 = vmatpush1.bf16.msra.mxu1 %v1405_v40  ;;  %978 = vmatprep.subr.bf16.mxu0 %v1406_v41 }
  0x76   : > { %1019 = vmatprep.subr.bf16.mxu1 %v1408_v42 }
  0x78   : > { %979 = vmatpush1.bf16.msra.mxu0 %v1410_v43 }
  0x79   : > { %1020 = vmatpush1.bf16.msra.mxu1 %v1411_v44  ;;  %980 = vmatprep.subr.bf16.mxu0 %v1412_v45 }
  0x7a   : > { %1021 = vmatprep.subr.bf16.mxu1 %v1414_v46 }
  0x7c   : > { %981 = vmatpush1.bf16.msra.mxu0 %v1416_v50 }
  0x7d   : > { %1022 = vmatpush1.bf16.msra.mxu1 %v1417_v51  ;;  %982 = vmatprep.subr.bf16.mxu0 %v1418_v53 }
  0x7e   : > { %1023 = vmatprep.subr.bf16.mxu1 %v1420_v54 }
  0x80   : > { %983 = vmatpush1.bf16.msra.mxu0 %v1422_v55 }
  0x81   : > { %1024 = vmatpush1.bf16.msra.mxu1 %v1423_v56  ;;  %984 = vmatprep.subr.bf16.mxu0 %v1424_v57 }
  0x82   : > { %1025 = vmatprep.subr.bf16.mxu1 %v1426_v58 }
  0x84   : > { %985 = vmatpush1.bf16.msra.mxu0 %v1428_v59 }
  0x85   : > { %1026 = vmatpush1.bf16.msra.mxu1 %v1429_v60  ;;  %986 = vmatprep.subr.bf16.mxu0 %v1430_v61 }
  0x86   : > { %1027 = vmatprep.subr.bf16.mxu1 %v1432_v62 }
  0x88   : > { %987 = vmatpush1.bf16.msra.mxu0 %v1434_v63 }
  0x89   : > { %1028 = vmatpush1.bf16.msra.mxu1 %v1435_v0  ;;  %988 = vmatprep.subr.bf16.mxu0 %v1436_v1 }
  0x8a   : > { %1029 = vmatprep.subr.bf16.mxu1 %v1438_v2 }
  0x8c   : > { %989 = vmatpush1.bf16.msra.mxu0 %v1440_v3 }
  0x8d   : > { %1030 = vmatpush1.bf16.msra.mxu1 %v1441_v4 }
  0x8f   : > { %991 = vmatmul.mubr.bf16.vlgmr.msra.gmra.mrb[0].mxu0 %v1215_v5 }
  0x90   : > { %1032 = vmatmul.mubr.bf16.vlgmr.msra.gmra.mrb[0].mxu1 %v1217_v6 }
 0x162   : > { %v992_v7 = vpop.f32.mrb[0].mxu0 }
 0x163   : > { %v1033_v9 = vpop.f32.mrb[0].mxu1  ;;  %v994_v11 = vpop.f32.mrb[1].mxu0  ;;  %1047 = sbr.rel (%p1283_p13) target bundleno = 376 (0x178), region = 78 }
 0x164   : > { %v1034_v10 = vadd.f32 %v1033_v9, %v992_v7  ;;  %v1035_v13 = vpop.f32.mrb[1].mxu1  ;;  %v996_v15 = vpop.f32.mrb[2].mxu0 }
 0x165   : > { %v1036_v14 = vadd.f32 %v1035_v13, %v994_v11  ;;  %v1037_v16 = vpop.f32.mrb[2].mxu1  ;;  %v997_v18 = vpop.f32.mrb[3].mxu0 }
 0x166   : > { %v1040_v17 = vadd.f32 %v1034_v10, %v556_v8  ;;  %v1038_v19 = vpop.f32.mrb[3].mxu1 }
 0x167   : > { %v1041_v20 = vadd.f32 %v1036_v14, %v557_v12 }
 0x168   : > { %1042 = vst [vmem:[#allocation2] sm:$0xff] %v1040_v17 }
 0x169   : > { %1043 = vst [vmem:[#allocation2 + $0x8] sm:$0xff] %v1041_v20 }
 0x16f   : > { %v1048_v26 = vld [vmem:[#allocation2] sm:$0xff] }
 0x170   : > { %v1049_v27 = vld [vmem:[#allocation2 + $0x8] sm:$0xff]  ;;  %v1062_v30 = vadd.f32 %v1055_v28, %v1048_v26 }
 0x171   : > { %v1063_v31 = vadd.f32 %v1059_v29, %v1049_v27 }
 0x172   : > { %v1064_v32 = vmax.f32 %v1062_v30, 0.0 }
 0x173   : > { %v1065_v33 = vmax.f32 %v1063_v31, 0.0 }
 0x175   : > { %v1288_v34 = vpack.c.bf16 %v1065_v33, %v1064_v32 }
 0x177   : > { %1074 = vst [vmem:[%s1735_s15] sm:$0xff] %v1288_v34 }
 0x178 PF: > { %s13_s18 = sadd.s32 1, %s1500_s18   ;;  %s1838_s12 = smov %s1480_s13 }
 0x179   : > { %p10_p0 = scmp.ge.s32.totalorder %s13_s18, 6   ;;  %s1839_s13 = smov %s1574_s25 }
 0x17a   : > { %s1840_s14 = smov %s1492_s16  ;;  %s1841_s15 = smov %s1496_s17 }
 0x17b   : > { %s1842_s16 = smov %s1845_s19  ;;  %s1843_s17 = smov %s1849_s20 }
 0x17c   :  { %12 = sbr.rel (!%p10_p0) target bundleno = 4 (0x4), region = 119 }

// kernel: _encoder_cnn_forward.100
= control target key start
LH: loop header
LB: loop body
LE: loop exit
PB: predicated region body
PF: predicated region fallthrough
CT: control target
= control target key end

     0   :  { %s1523_s12 = smov 0   ;;  %s1525_s13 = smov 0   ;;  %s1834_s0 = inlined_call_operand.vmem [shape: bf16[8,4608], index: 0, kind: input, shape index: {}]   ;;  %s1835_s1 = inlined_call_operand.vmem [shape: bf16[4608,512], index: 1, kind: input, shape index: {}]   ;;  %s1836_s2 = inlined_call_operand.vmem [shape: f32[1,512], index: 2, kind: input, shape index: {}]   ;;  %s1837_s3 = inlined_call_operand.vmem [shape: bf16[8,512], index: 3, kind: output, shape index: {}]  }
   0x1   :  { %s1527_s14 = smov 0   ;;  %s1529_s15 = smov 0  }
   0x2   :  { %s1531_s16 = smov 0   ;;  %s1533_s17 = smov 0  }
   0x3   :  { %s1535_s18 = smov 0  }
   0x4 LB: > { %s25_s19 = sadd.s32 1, %s1492_s16  ;;  %s28_s20 = sadd.s32 1, %s1496_s17  ;;  %s1500_s18 = sphi %s1535_s18, %s13_s18   ;;  %s1496_s17 = sphi %s1533_s17, %s1843_s17   ;;  %s1492_s16 = sphi %s1531_s16, %s1842_s16   ;;  %s1488_s15 = sphi %s1529_s15, %s1841_s15   ;;  %s1484_s14 = sphi %s1527_s14, %s1840_s14   ;;  %s1480_s13 = sphi %s1525_s13, %s1839_s13   ;;  %s1476_s12 = sphi %s1523_s12, %s1838_s12  }
   0x5   : > { %p26_p0 = scmp.ge.s32.totalorder %s25_s19, 9  ;;  %p76_p1 = scmp.ne.s32.totalorder %s1480_s13, %s1476_s12 }
   0x6   : > { %p77_p2 = scmp.eq.s32.totalorder %s1500_s18, 0  ;;  %s69_s24 = sadd.s32 1, %s1480_s13 }
   0x7   : > { %s1845_s19 = smov (%p26_p0, %s25_s19), 0  ;;  %s1847_s20 = smov (!%p26_p0, %s28_s20), %s1496_s17 }
   0x8   : > { %p78_p3 = por %p77_p2, %p76_p1  ;;  %p30_p4 = scmp.ge.s32.totalorder %s1847_s20, 2 }
   0x9   : > { %s64_s21 = ssub.s32 %s1492_s16, %s1845_s19  ;;  %p1201_p6 = scmp.ge.s32.totalorder %s1500_s18, 18 }
   0xa   : > { %s1849_s20 = smov (%p30_p4, %s1847_s20), 0 }
   0xb   : > { %s65_s22 = ssub.s32 %s1496_s17, %s1849_s20  ;;  %156 = sbr.rel (%p1201_p6) target bundleno = 57 (0x39), region = 16 }
   0xc   : > { %s66_s23 = sor.u32 %s65_s22, %s64_s21 }
   0xd   : > { %p67_p5 = scmp.eq.s32.totalorder %s66_s23, 0 }
   0xf   : > { %s1574_s25 = scalar_select %p67_p5, %s1480_s13, %s69_s24  }
  0x12   : > { %172 = sbr.rel (!%p78_p3) target bundleno = 57 (0x39), region = 24  ;;  %s174_s26 = sand.u32 (%p78_p3), 1, %s1480_s13  }
  0x13   : > { %s1204_s27 = sshll.u32 (%p78_p3), %s1496_s17, 1  ;;  %s1202_s28 = sshll.u32 (%p78_p3), %s174_s26, 9 }
  0x14   : > { %s1287_s29 = sshll.u32 (%p78_p3), %s1492_s16, 8  ;;  %s1588_s8 = scalar_lea.vmem (%p78_p3), [#allocation3], %s1202_s28 }
  0x15   : > { %s180_s30 = sadd.s32 (%p78_p3), %s1287_s29, %s1204_s27 }
  0x16   : > { %s1206_s4 = sshll.u32 (%p78_p3), %s180_s30, 2 }
  0x17   : > { %s1583_s7 = scalar_lea.vmem (%p78_p3), %s1835_s1, %s1206_s4 }
  0x18   : > { %v336_v0 = vld [vmem:[%s1583_s7] sm:$0xff] (%p78_p3)  ;;  %v338_v1 = vld [vmem:[%s1583_s7 + $0x10] sm:$0xff] (%p78_p3) }
  0x19   : > { %v340_v2 = vld [vmem:[%s1583_s7 + $0x20] sm:$0xff]  ;;  %337 = vst [vmem:[%s1588_s8] sm:$0xff] %v336_v0  ;;  %339 = vst [vmem:[%s1588_s8 + $0x8] sm:$0xff] %v338_v1  ;;  %v342_v3 = vld [vmem:[%s1583_s7 + $0x30] sm:$0xff] }
  0x1a   : > { %341 = vst [vmem:[%s1588_s8 + $0x10] sm:$0xff] %v340_v2  ;;  %v344_v4 = vld [vmem:[%s1583_s7 + $0x40] sm:$0xff]  ;;  %v346_v5 = vld [vmem:[%s1583_s7 + $0x50] sm:$0xff]  ;;  %343 = vst [vmem:[%s1588_s8 + $0x18] sm:$0xff] %v342_v3 }
  0x1b   : > { %345 = vst [vmem:[%s1588_s8 + $0x20] sm:$0xff] %v344_v4  ;;  %347 = vst [vmem:[%s1588_s8 + $0x28] sm:$0xff] %v346_v5  ;;  %v348_v6 = vld [vmem:[%s1583_s7 + $0x60] sm:$0xff]  ;;  %v350_v7 = vld [vmem:[%s1583_s7 + $0x70] sm:$0xff] }
  0x1c   : > { %v352_v8 = vld [vmem:[%s1583_s7 + $0x80] sm:$0xff]  ;;  %349 = vst [vmem:[%s1588_s8 + $0x30] sm:$0xff] %v348_v6  ;;  %351 = vst [vmem:[%s1588_s8 + $0x38] sm:$0xff] %v350_v7  ;;  %v354_v9 = vld [vmem:[%s1583_s7 + $0x90] sm:$0xff] }
  0x1d   : > { %353 = vst [vmem:[%s1588_s8 + $0x40] sm:$0xff] %v352_v8  ;;  %v356_v10 = vld [vmem:[%s1583_s7 + $0xa0] sm:$0xff]  ;;  %v358_v11 = vld [vmem:[%s1583_s7 + $0xb0] sm:$0xff]  ;;  %355 = vst [vmem:[%s1588_s8 + $0x48] sm:$0xff] %v354_v9 }
  0x1e   : > { %357 = vst [vmem:[%s1588_s8 + $0x50] sm:$0xff] %v356_v10  ;;  %359 = vst [vmem:[%s1588_s8 + $0x58] sm:$0xff] %v358_v11  ;;  %v360_v12 = vld [vmem:[%s1583_s7 + $0xc0] sm:$0xff]  ;;  %v362_v13 = vld [vmem:[%s1583_s7 + $0xd0] sm:$0xff] }
  0x1f   : > { %v364_v14 = vld [vmem:[%s1583_s7 + $0xe0] sm:$0xff]  ;;  %361 = vst [vmem:[%s1588_s8 + $0x60] sm:$0xff] %v360_v12  ;;  %363 = vst [vmem:[%s1588_s8 + $0x68] sm:$0xff] %v362_v13  ;;  %v366_v15 = vld [vmem:[%s1583_s7 + $0xf0] sm:$0xff] }
  0x20   : > { %365 = vst [vmem:[%s1588_s8 + $0x70] sm:$0xff] %v364_v14  ;;  %v368_v16 = vld [vmem:[%s1583_s7 + $0x100] sm:$0xff]  ;;  %v370_v17 = vld [vmem:[%s1583_s7 + $0x110] sm:$0xff]  ;;  %367 = vst [vmem:[%s1588_s8 + $0x78] sm:$0xff] %v366_v15 }
  0x21   : > { %369 = vst [vmem:[%s1588_s8 + $0x80] sm:$0xff] %v368_v16  ;;  %371 = vst [vmem:[%s1588_s8 + $0x88] sm:$0xff] %v370_v17  ;;  %v372_v18 = vld [vmem:[%s1583_s7 + $0x120] sm:$0xff]  ;;  %v374_v19 = vld [vmem:[%s1583_s7 + $0x130] sm:$0xff] }
  0x22   : > { %v376_v20 = vld [vmem:[%s1583_s7 + $0x140] sm:$0xff]  ;;  %373 = vst [vmem:[%s1588_s8 + $0x90] sm:$0xff] %v372_v18  ;;  %375 = vst [vmem:[%s1588_s8 + $0x98] sm:$0xff] %v374_v19  ;;  %v378_v21 = vld [vmem:[%s1583_s7 + $0x150] sm:$0xff] }
  0x23   : > { %377 = vst [vmem:[%s1588_s8 + $0xa0] sm:$0xff] %v376_v20  ;;  %v380_v22 = vld [vmem:[%s1583_s7 + $0x160] sm:$0xff]  ;;  %v382_v23 = vld [vmem:[%s1583_s7 + $0x170] sm:$0xff]  ;;  %379 = vst [vmem:[%s1588_s8 + $0xa8] sm:$0xff] %v378_v21 }
  0x24   : > { %381 = vst [vmem:[%s1588_s8 + $0xb0] sm:$0xff] %v380_v22  ;;  %383 = vst [vmem:[%s1588_s8 + $0xb8] sm:$0xff] %v382_v23  ;;  %v384_v24 = vld [vmem:[%s1583_s7 + $0x180] sm:$0xff]  ;;  %v386_v25 = vld [vmem:[%s1583_s7 + $0x190] sm:$0xff] }
  0x25   : > { %v388_v26 = vld [vmem:[%s1583_s7 + $0x1a0] sm:$0xff]  ;;  %385 = vst [vmem:[%s1588_s8 + $0xc0] sm:$0xff] %v384_v24  ;;  %387 = vst [vmem:[%s1588_s8 + $0xc8] sm:$0xff] %v386_v25  ;;  %v390_v27 = vld [vmem:[%s1583_s7 + $0x1b0] sm:$0xff] }
  0x26   : > { %389 = vst [vmem:[%s1588_s8 + $0xd0] sm:$0xff] %v388_v26  ;;  %v392_v28 = vld [vmem:[%s1583_s7 + $0x1c0] sm:$0xff]  ;;  %v394_v29 = vld [vmem:[%s1583_s7 + $0x1d0] sm:$0xff]  ;;  %391 = vst [vmem:[%s1588_s8 + $0xd8] sm:$0xff] %v390_v27 }
  0x27   : > { %393 = vst [vmem:[%s1588_s8 + $0xe0] sm:$0xff] %v392_v28  ;;  %395 = vst [vmem:[%s1588_s8 + $0xe8] sm:$0xff] %v394_v29  ;;  %v396_v30 = vld [vmem:[%s1583_s7 + $0x1e0] sm:$0xff]  ;;  %v398_v31 = vld [vmem:[%s1583_s7 + $0x1f0] sm:$0xff] }
  0x28   : > { %v400_v32 = vld [vmem:[%s1583_s7 + $0x200] sm:$0xff]  ;;  %397 = vst [vmem:[%s1588_s8 + $0xf0] sm:$0xff] %v396_v30  ;;  %399 = vst [vmem:[%s1588_s8 + $0xf8] sm:$0xff] %v398_v31  ;;  %v402_v33 = vld [vmem:[%s1583_s7 + $0x210] sm:$0xff] }
  0x29   : > { %401 = vst [vmem:[%s1588_s8 + $0x100] sm:$0xff] %v400_v32  ;;  %v404_v34 = vld [vmem:[%s1583_s7 + $0x220] sm:$0xff]  ;;  %v406_v35 = vld [vmem:[%s1583_s7 + $0x230] sm:$0xff]  ;;  %403 = vst [vmem:[%s1588_s8 + $0x108] sm:$0xff] %v402_v33 }
  0x2a   : > { %405 = vst [vmem:[%s1588_s8 + $0x110] sm:$0xff] %v404_v34  ;;  %407 = vst [vmem:[%s1588_s8 + $0x118] sm:$0xff] %v406_v35  ;;  %v408_v36 = vld [vmem:[%s1583_s7 + $0x240] sm:$0xff]  ;;  %v410_v37 = vld [vmem:[%s1583_s7 + $0x250] sm:$0xff] }
  0x2b   : > { %v412_v38 = vld [vmem:[%s1583_s7 + $0x260] sm:$0xff]  ;;  %409 = vst [vmem:[%s1588_s8 + $0x120] sm:$0xff] %v408_v36  ;;  %411 = vst [vmem:[%s1588_s8 + $0x128] sm:$0xff] %v410_v37  ;;  %v414_v39 = vld [vmem:[%s1583_s7 + $0x270] sm:$0xff] }
  0x2c   : > { %413 = vst [vmem:[%s1588_s8 + $0x130] sm:$0xff] %v412_v38  ;;  %v416_v40 = vld [vmem:[%s1583_s7 + $0x280] sm:$0xff]  ;;  %v418_v41 = vld [vmem:[%s1583_s7 + $0x290] sm:$0xff]  ;;  %415 = vst [vmem:[%s1588_s8 + $0x138] sm:$0xff] %v414_v39 }
  0x2d   : > { %417 = vst [vmem:[%s1588_s8 + $0x140] sm:$0xff] %v416_v40  ;;  %419 = vst [vmem:[%s1588_s8 + $0x148] sm:$0xff] %v418_v41  ;;  %v420_v42 = vld [vmem:[%s1583_s7 + $0x2a0] sm:$0xff]  ;;  %v422_v43 = vld [vmem:[%s1583_s7 + $0x2b0] sm:$0xff] }
  0x2e   : > { %v424_v44 = vld [vmem:[%s1583_s7 + $0x2c0] sm:$0xff]  ;;  %421 = vst [vmem:[%s1588_s8 + $0x150] sm:$0xff] %v420_v42  ;;  %423 = vst [vmem:[%s1588_s8 + $0x158] sm:$0xff] %v422_v43  ;;  %v426_v45 = vld [vmem:[%s1583_s7 + $0x2d0] sm:$0xff] }
  0x2f   : > { %425 = vst [vmem:[%s1588_s8 + $0x160] sm:$0xff] %v424_v44  ;;  %v428_v46 = vld [vmem:[%s1583_s7 + $0x2e0] sm:$0xff]  ;;  %v430_v47 = vld [vmem:[%s1583_s7 + $0x2f0] sm:$0xff]  ;;  %427 = vst [vmem:[%s1588_s8 + $0x168] sm:$0xff] %v426_v45 }
  0x30   : > { %429 = vst [vmem:[%s1588_s8 + $0x170] sm:$0xff] %v428_v46  ;;  %431 = vst [vmem:[%s1588_s8 + $0x178] sm:$0xff] %v430_v47  ;;  %v432_v48 = vld [vmem:[%s1583_s7 + $0x300] sm:$0xff]  ;;  %v434_v49 = vld [vmem:[%s1583_s7 + $0x310] sm:$0xff] }
  0x31   : > { %v436_v50 = vld [vmem:[%s1583_s7 + $0x320] sm:$0xff]  ;;  %433 = vst [vmem:[%s1588_s8 + $0x180] sm:$0xff] %v432_v48  ;;  %435 = vst [vmem:[%s1588_s8 + $0x188] sm:$0xff] %v434_v49  ;;  %v438_v51 = vld [vmem:[%s1583_s7 + $0x330] sm:$0xff] }
  0x32   : > { %437 = vst [vmem:[%s1588_s8 + $0x190] sm:$0xff] %v436_v50  ;;  %v440_v52 = vld [vmem:[%s1583_s7 + $0x340] sm:$0xff]  ;;  %v442_v53 = vld [vmem:[%s1583_s7 + $0x350] sm:$0xff]  ;;  %439 = vst [vmem:[%s1588_s8 + $0x198] sm:$0xff] %v438_v51 }
  0x33   : > { %441 = vst [vmem:[%s1588_s8 + $0x1a0] sm:$0xff] %v440_v52  ;;  %443 = vst [vmem:[%s1588_s8 + $0x1a8] sm:$0xff] %v442_v53  ;;  %v444_v54 = vld [vmem:[%s1583_s7 + $0x360] sm:$0xff]  ;;  %v446_v55 = vld [vmem:[%s1583_s7 + $0x370] sm:$0xff] }
  0x34   : > { %v448_v56 = vld [vmem:[%s1583_s7 + $0x380] sm:$0xff]  ;;  %445 = vst [vmem:[%s1588_s8 + $0x1b0] sm:$0xff] %v444_v54  ;;  %447 = vst [vmem:[%s1588_s8 + $0x1b8] sm:$0xff] %v446_v55  ;;  %v450_v57 = vld [vmem:[%s1583_s7 + $0x390] sm:$0xff] }
  0x35   : > { %449 = vst [vmem:[%s1588_s8 + $0x1c0] sm:$0xff] %v448_v56  ;;  %v452_v58 = vld [vmem:[%s1583_s7 + $0x3a0] sm:$0xff]  ;;  %v454_v59 = vld [vmem:[%s1583_s7 + $0x3b0] sm:$0xff]  ;;  %451 = vst [vmem:[%s1588_s8 + $0x1c8] sm:$0xff] %v450_v57 }
  0x36   : > { %453 = vst [vmem:[%s1588_s8 + $0x1d0] sm:$0xff] %v452_v58  ;;  %455 = vst [vmem:[%s1588_s8 + $0x1d8] sm:$0xff] %v454_v59  ;;  %v456_v60 = vld [vmem:[%s1583_s7 + $0x3c0] sm:$0xff]  ;;  %v458_v61 = vld [vmem:[%s1583_s7 + $0x3d0] sm:$0xff] }
  0x37   : > { %v460_v62 = vld [vmem:[%s1583_s7 + $0x3e0] sm:$0xff]  ;;  %457 = vst [vmem:[%s1588_s8 + $0x1e0] sm:$0xff] %v456_v60  ;;  %459 = vst [vmem:[%s1588_s8 + $0x1e8] sm:$0xff] %v458_v61  ;;  %v462_v63 = vld [vmem:[%s1583_s7 + $0x3f0] sm:$0xff] }
  0x38   : > { %461 = vst [vmem:[%s1588_s8 + $0x1f0] sm:$0xff] %v460_v62  ;;  %463 = vst [vmem:[%s1588_s8 + $0x1f8] sm:$0xff] %v462_v63 }
  0x39 PF: > { %p1207_p7 = scmp.ge.s32.totalorder %s1500_s18, 1  ;;  %p476_p8 = scmp.lt.s32.totalorder %s1500_s18, 19 }
  0x3b   : > { %p477_p9 = pnand %p1207_p7, %p476_p8 }
  0x3c   : > { %s483_s9 = sand.u32 (!%p477_p9), 1, %s1476_s12   ;;  %s1209_s10 = sshll.u32 (!%p477_p9), %s1484_s14, 2 }
  0x3d   : > { %480 = sbr.rel (%p477_p9) target bundleno = 376 (0x178), region = 66  ;;  %s1208_s11 = sshll.u32 (!%p477_p9), %s483_s9, 9 }
  0x3e   : > { %p526_p10 = scmp.lt.s32.totalorder (!%p477_p9), %s1209_s10, 35  ;;  %s1211_s21 = sshll.u32 (!%p477_p9), %s1488_s15, 1 }
  0x3f   : > { %p536_p11 = scmp.lt.s32.totalorder (!%p477_p9), %s1211_s21, 3  ;;  %s1737_s5 = scalar_lea.vmem (!%p477_p9), [#allocation3], %s1208_s11 }
  0x40   : > { %p1214_p12 = scmp.ne.s32.totalorder (!%p477_p9), %s1484_s14, 0 }
  0x44   : > { %s1851_s10 = smov (!%p526_p10, %s1209_s10), 35  ;;  %s1853_s21 = smov (!%p536_p11, %s1211_s21), 3 }
  0x45   : > { %s1210_s22 = sshll.u32 %s1851_s10, 2  ;;  %s538_s12 = scalar_lea.vmem %s1836_s2, %s1853_s21  ;;  %v1502_v0 = vmov (!%p1214_p12), 0.0  }
  0x46   : > { %s1723_s26 = scalar_lea.vmem %s1834_s0, %s1210_s22  ;;  %s1213_s29 = sshll.u32 %s1853_s21, 2  ;;  %554 = vst [vmem:[#allocation2] sm:$0xff] (!%p1214_p12), %v1502_v0  ;;  %555 = vst [vmem:[#allocation2 + $0x8] sm:$0xff] (!%p1214_p12), %v1502_v0 }
  0x47   : > { %s1735_s15 = scalar_lea.vmem %s1837_s3, %s1213_s29  ;;  %553 = sbr.rel (%p1214_p12) target bundleno = 78 (0x4e), region = 74 }
  0x4e PF: > { %v1346_v1 = vld [vmem:[%s1737_s5 + $0x4] ss:$8 sps:$4 sm:$0xff]   ;;  %v1350_v3 = vld [vmem:[%s1737_s5] ss:$8 sps:$4 sm:$0xff]   ;;  %v1352_v5 = vld [vmem:[%s1737_s5 + $0x14] ss:$8 sps:$4 sm:$0xff]  }
  0x4f   : > { %v1348_v2 = vld [vmem:[%s1737_s5 + $0x104] ss:$8 sps:$4 sm:$0xff]   ;;  %958 = vmatprep.subr.bf16.mxu0 %v1346_v1  ;;  %v1351_v4 = vld [vmem:[%s1737_s5 + $0x100] ss:$8 sps:$4 sm:$0xff]   ;;  %v1354_v6 = vld [vmem:[%s1737_s5 + $0x114] ss:$8 sps:$4 sm:$0xff]  }
  0x50   : > { %999 = vmatprep.subr.bf16.mxu1 %v1348_v2  ;;  %959 = vmatpush1.bf16.msra.mxu0 %v1350_v3  ;;  %v1356_v7 = vld [vmem:[%s1737_s5 + $0x10] ss:$8 sps:$4 sm:$0xff]   ;;  %v1358_v9 = vld [vmem:[%s1737_s5 + $0x24] ss:$8 sps:$4 sm:$0xff]   ;;  %v1362_v11 = vld [vmem:[%s1737_s5 + $0x20] ss:$8 sps:$4 sm:$0xff]  }
  0x51   : > { %1000 = vmatpush1.bf16.msra.mxu1 %v1351_v4  ;;  %960 = vmatprep.subr.bf16.mxu0 %v1352_v5  ;;  %v1357_v8 = vld [vmem:[%s1737_s5 + $0x110] ss:$8 sps:$4 sm:$0xff]   ;;  %v1360_v10 = vld [vmem:[%s1737_s5 + $0x124] ss:$8 sps:$4 sm:$0xff]   ;;  %v1363_v12 = vld [vmem:[%s1737_s5 + $0x120] ss:$8 sps:$4 sm:$0xff]  }
  0x52   : > { %1001 = vmatprep.subr.bf16.mxu1 %v1354_v6  ;;  %v1364_v13 = vld [vmem:[%s1737_s5 + $0x34] ss:$8 sps:$4 sm:$0xff]   ;;  %v1368_v15 = vld [vmem:[%s1737_s5 + $0x30] ss:$8 sps:$4 sm:$0xff]   ;;  %v1370_v17 = vld [vmem:[%s1737_s5 + $0x44] ss:$8 sps:$4 sm:$0xff]  }
  0x53   : > { %v1366_v14 = vld [vmem:[%s1737_s5 + $0x134] ss:$8 sps:$4 sm:$0xff]   ;;  %v1369_v16 = vld [vmem:[%s1737_s5 + $0x130] ss:$8 sps:$4 sm:$0xff]   ;;  %v1372_v18 = vld [vmem:[%s1737_s5 + $0x144] ss:$8 sps:$4 sm:$0xff]  }
  0x54   : > { %961 = vmatpush1.bf16.msra.mxu0 %v1356_v7  ;;  %v1374_v19 = vld [vmem:[%s1737_s5 + $0x40] ss:$8 sps:$4 sm:$0xff]   ;;  %v1376_v21 = vld [vmem:[%s1737_s5 + $0x54] ss:$8 sps:$4 sm:$0xff]   ;;  %v1380_v23 = vld [vmem:[%s1737_s5 + $0x50] ss:$8 sps:$4 sm:$0xff]  }
  0x55   : > { %1002 = vmatpush1.bf16.msra.mxu1 %v1357_v8  ;;  %962 = vmatprep.subr.bf16.mxu0 %v1358_v9  ;;  %v1375_v20 = vld [vmem:[%s1737_s5 + $0x140] ss:$8 sps:$4 sm:$0xff]   ;;  %v1378_v22 = vld [vmem:[%s1737_s5 + $0x154] ss:$8 sps:$4 sm:$0xff]   ;;  %v1381_v24 = vld [vmem:[%s1737_s5 + $0x150] ss:$8 sps:$4 sm:$0xff]  }
  0x56   : > { %1003 = vmatprep.subr.bf16.mxu1 %v1360_v10  ;;  %v1382_v25 = vld [vmem:[%s1737_s5 + $0x64] ss:$8 sps:$4 sm:$0xff]   ;;  %v1386_v27 = vld [vmem:[%s1737_s5 + $0x60] ss:$8 sps:$4 sm:$0xff]   ;;  %v1388_v29 = vld [vmem:[%s1737_s5 + $0x74] ss:$8 sps:$4 sm:$0xff]  }
  0x57   : > { %v1384_v26 = vld [vmem:[%s1737_s5 + $0x164] ss:$8 sps:$4 sm:$0xff]   ;;  %v1387_v28 = vld [vmem:[%s1737_s5 + $0x160] ss:$8 sps:$4 sm:$0xff]   ;;  %v1390_v30 = vld [vmem:[%s1737_s5 + $0x174] ss:$8 sps:$4 sm:$0xff]  }
  0x58   : > { %963 = vmatpush1.bf16.msra.mxu0 %v1362_v11  ;;  %v1392_v31 = vld [vmem:[%s1737_s5 + $0x70] ss:$8 sps:$4 sm:$0xff]   ;;  %v1394_v33 = vld [vmem:[%s1737_s5 + $0x84] ss:$8 sps:$4 sm:$0xff]   ;;  %v1398_v35 = vld [vmem:[%s1737_s5 + $0x80] ss:$8 sps:$4 sm:$0xff]  }
  0x59   : > { %1004 = vmatpush1.bf16.msra.mxu1 %v1363_v12  ;;  %964 = vmatprep.subr.bf16.mxu0 %v1364_v13  ;;  %v1393_v32 = vld [vmem:[%s1737_s5 + $0x170] ss:$8 sps:$4 sm:$0xff]   ;;  %v1396_v34 = vld [vmem:[%s1737_s5 + $0x184] ss:$8 sps:$4 sm:$0xff]   ;;  %v1399_v36 = vld [vmem:[%s1737_s5 + $0x180] ss:$8 sps:$4 sm:$0xff]  }
  0x5a   : > { %1005 = vmatprep.subr.bf16.mxu1 %v1366_v14  ;;  %v1400_v37 = vld [vmem:[%s1737_s5 + $0x94] ss:$8 sps:$4 sm:$0xff]   ;;  %v1404_v39 = vld [vmem:[%s1737_s5 + $0x90] ss:$8 sps:$4 sm:$0xff]   ;;  %v1406_v41 = vld [vmem:[%s1737_s5 + $0xa4] ss:$8 sps:$4 sm:$0xff]  }
  0x5b   : > { %v1402_v38 = vld [vmem:[%s1737_s5 + $0x194] ss:$8 sps:$4 sm:$0xff]   ;;  %v1405_v40 = vld [vmem:[%s1737_s5 + $0x190] ss:$8 sps:$4 sm:$0xff]   ;;  %v1408_v42 = vld [vmem:[%s1737_s5 + $0x1a4] ss:$8 sps:$4 sm:$0xff]  }
  0x5c   : > { %965 = vmatpush1.bf16.msra.mxu0 %v1368_v15  ;;  %v1410_v43 = vld [vmem:[%s1737_s5 + $0xa0] ss:$8 sps:$4 sm:$0xff]   ;;  %v1412_v45 = vld [vmem:[%s1737_s5 + $0xb4] ss:$8 sps:$4 sm:$0xff]   ;;  %v1416_v50 = vld [vmem:[%s1737_s5 + $0xb0] ss:$8 sps:$4 sm:$0xff]  }
  0x5d   : > { %1006 = vmatpush1.bf16.msra.mxu1 %v1369_v16  ;;  %966 = vmatprep.subr.bf16.mxu0 %v1370_v17  ;;  %v1411_v44 = vld [vmem:[%s1737_s5 + $0x1a0] ss:$8 sps:$4 sm:$0xff]   ;;  %v1414_v46 = vld [vmem:[%s1737_s5 + $0x1b4] ss:$8 sps:$4 sm:$0xff]   ;;  %v1417_v51 = vld [vmem:[%s1737_s5 + $0x1b0] ss:$8 sps:$4 sm:$0xff]  }
  0x5e   : > { %1007 = vmatprep.subr.bf16.mxu1 %v1372_v18  ;;  %v558_v47 = vld [vmem:[%s1723_s26] sm:$0xff]  ;;  %v559_v49 = vld [vmem:[%s1723_s26 + $0x8] sm:$0xff]  ;;  %v1418_v53 = vld [vmem:[%s1737_s5 + $0xc4] ss:$8 sps:$4 sm:$0xff]   ;;  %p1283_p13 = scmp.ne.s32.totalorder %s1484_s14, 8 }
  0x5f   : > { %v1216_v48 = vcombine.high %v558_v47, %v558_v47  ;;  %v1218_v52 = vcombine.high %v559_v49, %v559_v49  ;;  %v1420_v54 = vld [vmem:[%s1737_s5 + $0x1c4] ss:$8 sps:$4 sm:$0xff]   ;;  %v1422_v55 = vld [vmem:[%s1737_s5 + $0xc0] ss:$8 sps:$4 sm:$0xff]   ;;  %v1424_v57 = vld [vmem:[%s1737_s5 + $0xd4] ss:$8 sps:$4 sm:$0xff]   ;;  %v1215_v5 = vcombine.low %v558_v47, %v558_v47  ;;  %v1217_v6 = vcombine.low %v559_v49, %v559_v49 }
  0x60   : > { %967 = vmatpush1.bf16.msra.mxu0 %v1374_v19  ;;  %v1423_v56 = vld [vmem:[%s1737_s5 + $0x1c0] ss:$8 sps:$4 sm:$0xff]   ;;  %v1426_v58 = vld [vmem:[%s1737_s5 + $0x1d4] ss:$8 sps:$4 sm:$0xff]   ;;  %v1428_v59 = vld [vmem:[%s1737_s5 + $0xd0] ss:$8 sps:$4 sm:$0xff]  }
  0x61   : > { %1008 = vmatpush1.bf16.msra.mxu1 %v1375_v20  ;;  %968 = vmatprep.subr.bf16.mxu0 %v1376_v21  ;;  %v1429_v60 = vld [vmem:[%s1737_s5 + $0x1d0] ss:$8 sps:$4 sm:$0xff]   ;;  %v1430_v61 = vld [vmem:[%s1737_s5 + $0xe4] ss:$8 sps:$4 sm:$0xff]   ;;  %v1434_v63 = vld [vmem:[%s1737_s5 + $0xe0] ss:$8 sps:$4 sm:$0xff]   ;;  %v1052_v21 = vlaneseq (!%p1283_p13) }
  0x62   : > { %1009 = vmatprep.subr.bf16.mxu1 %v1378_v22  ;;  %990 = vmatprep.mubr.bf16.mxu0 %v1216_v48  ;;  %v1432_v62 = vld [vmem:[%s1737_s5 + $0x1e4] ss:$8 sps:$4 sm:$0xff]   ;;  %v1435_v0 = vld [vmem:[%s1737_s5 + $0x1e0] ss:$8 sps:$4 sm:$0xff]   ;;  %v1436_v1 = vld [vmem:[%s1737_s5 + $0xf4] ss:$8 sps:$4 sm:$0xff]  }
  0x63   : > { %1031 = vmatprep.mubr.bf16.mxu1 %v1218_v52  ;;  %v1438_v2 = vld [vmem:[%s1737_s5 + $0x1f4] ss:$8 sps:$4 sm:$0xff]   ;;  %v1440_v3 = vld [vmem:[%s1737_s5 + $0xf0] ss:$8 sps:$4 sm:$0xff]   ;;  %v1053_v22 = vshrl.u32 (!%p1283_p13), %v1052_v21, 7 }
  0x64   : > { %969 = vmatpush1.bf16.msra.mxu0 %v1380_v23  ;;  %v1441_v4 = vld [vmem:[%s1737_s5 + $0x1f0] ss:$8 sps:$4 sm:$0xff]  }
  0x65   : > { %1010 = vmatpush1.bf16.msra.mxu1 %v1381_v24  ;;  %970 = vmatprep.subr.bf16.mxu0 %v1382_v25  ;;  %v556_v8 = vld [vmem:[#allocation2] sm:$0xff]  ;;  %v557_v12 = vld [vmem:[#allocation2 + $0x8] sm:$0xff]  ;;  %v1054_v24 = vsub.s32 (!%p1283_p13), 0, %v1053_v22  ;;  %v1058_v25 = vsub.s32 (!%p1283_p13), 1, %v1053_v22 }
  0x66   : > { %1011 = vmatprep.subr.bf16.mxu1 %v1384_v26  ;;  %v1050_v23 = vld [vmem:[%s538_s12] sm:$0x3] (!%p1283_p13) }
  0x68   : > { %971 = vmatpush1.bf16.msra.mxu0 %v1386_v27 }
  0x69   : > { %1012 = vmatpush1.bf16.msra.mxu1 %v1387_v28  ;;  %972 = vmatprep.subr.bf16.mxu0 %v1388_v29  ;;  %v1055_v28 = vrot.slane (!%p1283_p13), %v1050_v23, %v1054_v24  ;;  %v1059_v29 = vrot.slane (!%p1283_p13), %v1050_v23, %v1058_v25 }
  0x6a   : > { %1013 = vmatprep.subr.bf16.mxu1 %v1390_v30 }
  0x6c   : > { %973 = vmatpush1.bf16.msra.mxu0 %v1392_v31 }
  0x6d   : > { %1014 = vmatpush1.bf16.msra.mxu1 %v1393_v32  ;;  %974 = vmatprep.subr.bf16.mxu0 %v1394_v33 }
  0x6e   : > { %1015 = vmatprep.subr.bf16.mxu1 %v1396_v34 }
  0x70   : > { %975 = vmatpush1.bf16.msra.mxu0 %v1398_v35 }
  0x71   : > { %1016 = vmatpush1.bf16.msra.mxu1 %v1399_v36  ;;  %976 = vmatprep.subr.bf16.mxu0 %v1400_v37 }
  0x72   : > { %1017 = vmatprep.subr.bf16.mxu1 %v1402_v38 }
  0x74   : > { %977 = vmatpush1.bf16.msra.mxu0 %v1404_v39 }
  0x75   : > { %1018 = vmatpush1.bf16.msra.mxu1 %v1405_v40  ;;  %978 = vmatprep.subr.bf16.mxu0 %v1406_v41 }
  0x76   : > { %1019 = vmatprep.subr.bf16.mxu1 %v1408_v42 }
  0x78   : > { %979 = vmatpush1.bf16.msra.mxu0 %v1410_v43 }
  0x79   : > { %1020 = vmatpush1.bf16.msra.mxu1 %v1411_v44  ;;  %980 = vmatprep.subr.bf16.mxu0 %v1412_v45 }
  0x7a   : > { %1021 = vmatprep.subr.bf16.mxu1 %v1414_v46 }
  0x7c   : > { %981 = vmatpush1.bf16.msra.mxu0 %v1416_v50 }
  0x7d   : > { %1022 = vmatpush1.bf16.msra.mxu1 %v1417_v51  ;;  %982 = vmatprep.subr.bf16.mxu0 %v1418_v53 }
  0x7e   : > { %1023 = vmatprep.subr.bf16.mxu1 %v1420_v54 }
  0x80   : > { %983 = vmatpush1.bf16.msra.mxu0 %v1422_v55 }
  0x81   : > { %1024 = vmatpush1.bf16.msra.mxu1 %v1423_v56  ;;  %984 = vmatprep.subr.bf16.mxu0 %v1424_v57 }
  0x82   : > { %1025 = vmatprep.subr.bf16.mxu1 %v1426_v58 }
  0x84   : > { %985 = vmatpush1.bf16.msra.mxu0 %v1428_v59 }
  0x85   : > { %1026 = vmatpush1.bf16.msra.mxu1 %v1429_v60  ;;  %986 = vmatprep.subr.bf16.mxu0 %v1430_v61 }
  0x86   : > { %1027 = vmatprep.subr.bf16.mxu1 %v1432_v62 }
  0x88   : > { %987 = vmatpush1.bf16.msra.mxu0 %v1434_v63 }
  0x89   : > { %1028 = vmatpush1.bf16.msra.mxu1 %v1435_v0  ;;  %988 = vmatprep.subr.bf16.mxu0 %v1436_v1 }
  0x8a   : > { %1029 = vmatprep.subr.bf16.mxu1 %v1438_v2 }
  0x8c   : > { %989 = vmatpush1.bf16.msra.mxu0 %v1440_v3 }
  0x8d   : > { %1030 = vmatpush1.bf16.msra.mxu1 %v1441_v4 }
  0x8f   : > { %991 = vmatmul.mubr.bf16.vlgmr.msra.gmra.mrb[0].mxu0 %v1215_v5 }
  0x90   : > { %1032 = vmatmul.mubr.bf16.vlgmr.msra.gmra.mrb[0].mxu1 %v1217_v6 }
 0x162   : > { %v992_v7 = vpop.f32.mrb[0].mxu0 }
 0x163   : > { %v1033_v9 = vpop.f32.mrb[0].mxu1  ;;  %v994_v11 = vpop.f32.mrb[1].mxu0  ;;  %1047 = sbr.rel (%p1283_p13) target bundleno = 376 (0x178), region = 78 }
 0x164   : > { %v1034_v10 = vadd.f32 %v1033_v9, %v992_v7  ;;  %v1035_v13 = vpop.f32.mrb[1].mxu1  ;;  %v996_v15 = vpop.f32.mrb[2].mxu0 }
 0x165   : > { %v1036_v14 = vadd.f32 %v1035_v13, %v994_v11  ;;  %v1037_v16 = vpop.f32.mrb[2].mxu1  ;;  %v997_v18 = vpop.f32.mrb[3].mxu0 }
 0x166   : > { %v1040_v17 = vadd.f32 %v1034_v10, %v556_v8  ;;  %v1038_v19 = vpop.f32.mrb[3].mxu1 }
 0x167   : > { %v1041_v20 = vadd.f32 %v1036_v14, %v557_v12 }
 0x168   : > { %1042 = vst [vmem:[#allocation2] sm:$0xff] %v1040_v17 }
 0x169   : > { %1043 = vst [vmem:[#allocation2 + $0x8] sm:$0xff] %v1041_v20 }
 0x16f   : > { %v1048_v26 = vld [vmem:[#allocation2] sm:$0xff] }
 0x170   : > { %v1049_v27 = vld [vmem:[#allocation2 + $0x8] sm:$0xff]  ;;  %v1062_v30 = vadd.f32 %v1055_v28, %v1048_v26 }
 0x171   : > { %v1063_v31 = vadd.f32 %v1059_v29, %v1049_v27 }
 0x172   : > { %v1064_v32 = vmax.f32 %v1062_v30, 0.0 }
 0x173   : > { %v1065_v33 = vmax.f32 %v1063_v31, 0.0 }
 0x175   : > { %v1288_v34 = vpack.c.bf16 %v1065_v33, %v1064_v32 }
 0x177   : > { %1074 = vst [vmem:[%s1735_s15] sm:$0xff] %v1288_v34 }
 0x178 PF: > { %s13_s18 = sadd.s32 1, %s1500_s18   ;;  %s1838_s12 = smov %s1480_s13 }
 0x179   : > { %p10_p0 = scmp.ge.s32.totalorder %s13_s18, 20   ;;  %s1839_s13 = smov %s1574_s25 }
 0x17a   : > { %s1840_s14 = smov %s1492_s16  ;;  %s1841_s15 = smov %s1496_s17 }
 0x17b   : > { %s1842_s16 = smov %s1845_s19  ;;  %s1843_s17 = smov %s1849_s20 }
 0x17c   :  { %12 = sbr.rel (!%p10_p0) target bundleno = 4 (0x4), region = 119 }

// kernel: _encoder_cnn_forward.98
= control target key start
LH: loop header
LB: loop body
LE: loop exit
PB: predicated region body
PF: predicated region fallthrough
CT: control target
= control target key end

     0   :  { %s1521_s12 = smov 0   ;;  %s1523_s13 = smov 0   ;;  %s1832_s0 = inlined_call_operand.vmem [shape: bf16[8,1024], index: 0, kind: input, shape index: {}]   ;;  %s1833_s1 = inlined_call_operand.vmem [shape: bf16[1024,2048], index: 1, kind: input, shape index: {}]   ;;  %s1834_s2 = inlined_call_operand.vmem [shape: f32[1,2048], index: 2, kind: input, shape index: {}]   ;;  %s1835_s3 = inlined_call_operand.vmem [shape: bf16[8,2048], index: 3, kind: output, shape index: {}]  }
   0x1   :  { %s1525_s14 = smov 0   ;;  %s1527_s15 = smov 0  }
   0x2   :  { %s1529_s16 = smov 0   ;;  %s1531_s17 = smov 0  }
   0x3   :  { %s1533_s18 = smov 0  }
   0x4 LB: > { %s25_s19 = sadd.s32 1, %s1490_s16  ;;  %s28_s20 = sadd.s32 1, %s1494_s17  ;;  %s1498_s18 = sphi %s1533_s18, %s13_s18   ;;  %s1494_s17 = sphi %s1531_s17, %s1841_s17   ;;  %s1490_s16 = sphi %s1529_s16, %s1840_s16   ;;  %s1486_s15 = sphi %s1527_s15, %s1839_s15   ;;  %s1482_s14 = sphi %s1525_s14, %s1838_s14   ;;  %s1478_s13 = sphi %s1523_s13, %s1837_s13   ;;  %s1474_s12 = sphi %s1521_s12, %s1836_s12  }
   0x5   : > { %p26_p0 = scmp.ge.s32.totalorder %s25_s19, 2  ;;  %p76_p1 = scmp.ne.s32.totalorder %s1478_s13, %s1474_s12 }
   0x6   : > { %p77_p2 = scmp.eq.s32.totalorder %s1498_s18, 0  ;;  %s69_s24 = sadd.s32 1, %s1478_s13 }
   0x7   : > { %s1843_s19 = smov (%p26_p0, %s25_s19), 0  ;;  %s1845_s20 = smov (!%p26_p0, %s28_s20), %s1494_s17 }
   0x8   : > { %p78_p3 = por %p77_p2, %p76_p1  ;;  %p30_p4 = scmp.ge.s32.totalorder %s1845_s20, 8 }
   0x9   : > { %s64_s21 = ssub.s32 %s1490_s16, %s1843_s19  ;;  %p1199_p6 = scmp.ge.s32.totalorder %s1498_s18, 16 }
   0xa   : > { %s1847_s20 = smov (%p30_p4, %s1845_s20), 0 }
   0xb   : > { %s65_s22 = ssub.s32 %s1494_s17, %s1847_s20  ;;  %156 = sbr.rel (%p1199_p6) target bundleno = 89 (0x59), region = 16 }
   0xc   : > { %s66_s23 = sor.u32 %s65_s22, %s64_s21 }
   0xd   : > { %p67_p5 = scmp.eq.s32.totalorder %s66_s23, 0 }
   0xf   : > { %s1572_s25 = scalar_select %p67_p5, %s1478_s13, %s69_s24  }
  0x12   : > { %172 = sbr.rel (!%p78_p3) target bundleno = 89 (0x59), region = 24  ;;  %s174_s26 = sand.u32 (%p78_p3), 1, %s1478_s13  }
  0x13   : > { %s1202_s27 = sshll.u32 (%p78_p3), %s1494_s17, 1  ;;  %s1200_s28 = sshll.u32 (%p78_p3), %s174_s26, 9 }
  0x14   : > { %s1285_s29 = sshll.u32 (%p78_p3), %s1490_s16, 10  ;;  %s1586_s8 = scalar_lea.vmem (%p78_p3), [#allocation3], %s1200_s28 }
  0x15   : > { %s180_s30 = sadd.s32 (%p78_p3), %s1285_s29, %s1202_s27 }
  0x16   : > { %s1204_s4 = sshll.u32 (%p78_p3), %s180_s30, 2 }
  0x17   : > { %s1581_s7 = scalar_lea.vmem (%p78_p3), %s1833_s1, %s1204_s4 }
  0x18   : > { %v336_v0 = vld [vmem:[%s1581_s7] sm:$0xff] (%p78_p3) }
  0x19   : > { %v338_v1 = vld [vmem:[%s1581_s7 + $0x40] sm:$0xff]  ;;  %337 = vst [vmem:[%s1586_s8] sm:$0xff] %v336_v0 }
  0x1a   : > { %v340_v2 = vld [vmem:[%s1581_s7 + $0x80] sm:$0xff]  ;;  %339 = vst [vmem:[%s1586_s8 + $0x8] sm:$0xff] %v338_v1 }
  0x1b   : > { %341 = vst [vmem:[%s1586_s8 + $0x10] sm:$0xff] %v340_v2  ;;  %v342_v3 = vld [vmem:[%s1581_s7 + $0xc0] sm:$0xff] }
  0x1c   : > { %v344_v4 = vld [vmem:[%s1581_s7 + $0x100] sm:$0xff]  ;;  %343 = vst [vmem:[%s1586_s8 + $0x18] sm:$0xff] %v342_v3 }
  0x1d   : > { %v346_v5 = vld [vmem:[%s1581_s7 + $0x140] sm:$0xff]  ;;  %345 = vst [vmem:[%s1586_s8 + $0x20] sm:$0xff] %v344_v4 }
  0x1e   : > { %347 = vst [vmem:[%s1586_s8 + $0x28] sm:$0xff] %v346_v5  ;;  %v348_v6 = vld [vmem:[%s1581_s7 + $0x180] sm:$0xff] }
  0x1f   : > { %v350_v7 = vld [vmem:[%s1581_s7 + $0x1c0] sm:$0xff]  ;;  %349 = vst [vmem:[%s1586_s8 + $0x30] sm:$0xff] %v348_v6 }
  0x20   : > { %v352_v8 = vld [vmem:[%s1581_s7 + $0x200] sm:$0xff]  ;;  %351 = vst [vmem:[%s1586_s8 + $0x38] sm:$0xff] %v350_v7 }
  0x21   : > { %353 = vst [vmem:[%s1586_s8 + $0x40] sm:$0xff] %v352_v8  ;;  %v354_v9 = vld [vmem:[%s1581_s7 + $0x240] sm:$0xff] }
  0x22   : > { %v356_v10 = vld [vmem:[%s1581_s7 + $0x280] sm:$0xff]  ;;  %355 = vst [vmem:[%s1586_s8 + $0x48] sm:$0xff] %v354_v9 }
  0x23   : > { %v358_v11 = vld [vmem:[%s1581_s7 + $0x2c0] sm:$0xff]  ;;  %357 = vst [vmem:[%s1586_s8 + $0x50] sm:$0xff] %v356_v10 }
  0x24   : > { %359 = vst [vmem:[%s1586_s8 + $0x58] sm:$0xff] %v358_v11  ;;  %v360_v12 = vld [vmem:[%s1581_s7 + $0x300] sm:$0xff] }
  0x25   : > { %v362_v13 = vld [vmem:[%s1581_s7 + $0x340] sm:$0xff]  ;;  %361 = vst [vmem:[%s1586_s8 + $0x60] sm:$0xff] %v360_v12 }
  0x26   : > { %v364_v14 = vld [vmem:[%s1581_s7 + $0x380] sm:$0xff]  ;;  %363 = vst [vmem:[%s1586_s8 + $0x68] sm:$0xff] %v362_v13 }
  0x27   : > { %365 = vst [vmem:[%s1586_s8 + $0x70] sm:$0xff] %v364_v14  ;;  %v366_v15 = vld [vmem:[%s1581_s7 + $0x3c0] sm:$0xff] }
  0x28   : > { %v368_v16 = vld [vmem:[%s1581_s7 + $0x400] sm:$0xff]  ;;  %367 = vst [vmem:[%s1586_s8 + $0x78] sm:$0xff] %v366_v15 }
  0x29   : > { %v370_v17 = vld [vmem:[%s1581_s7 + $0x440] sm:$0xff]  ;;  %369 = vst [vmem:[%s1586_s8 + $0x80] sm:$0xff] %v368_v16 }
  0x2a   : > { %371 = vst [vmem:[%s1586_s8 + $0x88] sm:$0xff] %v370_v17  ;;  %v372_v18 = vld [vmem:[%s1581_s7 + $0x480] sm:$0xff] }
  0x2b   : > { %v374_v19 = vld [vmem:[%s1581_s7 + $0x4c0] sm:$0xff]  ;;  %373 = vst [vmem:[%s1586_s8 + $0x90] sm:$0xff] %v372_v18 }
  0x2c   : > { %v376_v20 = vld [vmem:[%s1581_s7 + $0x500] sm:$0xff]  ;;  %375 = vst [vmem:[%s1586_s8 + $0x98] sm:$0xff] %v374_v19 }
  0x2d   : > { %377 = vst [vmem:[%s1586_s8 + $0xa0] sm:$0xff] %v376_v20  ;;  %v378_v21 = vld [vmem:[%s1581_s7 + $0x540] sm:$0xff] }
  0x2e   : > { %v380_v22 = vld [vmem:[%s1581_s7 + $0x580] sm:$0xff]  ;;  %379 = vst [vmem:[%s1586_s8 + $0xa8] sm:$0xff] %v378_v21 }
  0x2f   : > { %v382_v23 = vld [vmem:[%s1581_s7 + $0x5c0] sm:$0xff]  ;;  %381 = vst [vmem:[%s1586_s8 + $0xb0] sm:$0xff] %v380_v22 }
  0x30   : > { %383 = vst [vmem:[%s1586_s8 + $0xb8] sm:$0xff] %v382_v23  ;;  %v384_v24 = vld [vmem:[%s1581_s7 + $0x600] sm:$0xff] }
  0x31   : > { %v386_v25 = vld [vmem:[%s1581_s7 + $0x640] sm:$0xff]  ;;  %385 = vst [vmem:[%s1586_s8 + $0xc0] sm:$0xff] %v384_v24 }
  0x32   : > { %v388_v26 = vld [vmem:[%s1581_s7 + $0x680] sm:$0xff]  ;;  %387 = vst [vmem:[%s1586_s8 + $0xc8] sm:$0xff] %v386_v25 }
  0x33   : > { %389 = vst [vmem:[%s1586_s8 + $0xd0] sm:$0xff] %v388_v26  ;;  %v390_v27 = vld [vmem:[%s1581_s7 + $0x6c0] sm:$0xff] }
  0x34   : > { %v392_v28 = vld [vmem:[%s1581_s7 + $0x700] sm:$0xff]  ;;  %391 = vst [vmem:[%s1586_s8 + $0xd8] sm:$0xff] %v390_v27 }
  0x35   : > { %v394_v29 = vld [vmem:[%s1581_s7 + $0x740] sm:$0xff]  ;;  %393 = vst [vmem:[%s1586_s8 + $0xe0] sm:$0xff] %v392_v28 }
  0x36   : > { %395 = vst [vmem:[%s1586_s8 + $0xe8] sm:$0xff] %v394_v29  ;;  %v396_v30 = vld [vmem:[%s1581_s7 + $0x780] sm:$0xff] }
  0x37   : > { %v398_v31 = vld [vmem:[%s1581_s7 + $0x7c0] sm:$0xff]  ;;  %397 = vst [vmem:[%s1586_s8 + $0xf0] sm:$0xff] %v396_v30 }
  0x38   : > { %v400_v32 = vld [vmem:[%s1581_s7 + $0x800] sm:$0xff]  ;;  %399 = vst [vmem:[%s1586_s8 + $0xf8] sm:$0xff] %v398_v31 }
  0x39   : > { %401 = vst [vmem:[%s1586_s8 + $0x100] sm:$0xff] %v400_v32  ;;  %v402_v33 = vld [vmem:[%s1581_s7 + $0x840] sm:$0xff] }
  0x3a   : > { %v404_v34 = vld [vmem:[%s1581_s7 + $0x880] sm:$0xff]  ;;  %403 = vst [vmem:[%s1586_s8 + $0x108] sm:$0xff] %v402_v33 }
  0x3b   : > { %v406_v35 = vld [vmem:[%s1581_s7 + $0x8c0] sm:$0xff]  ;;  %405 = vst [vmem:[%s1586_s8 + $0x110] sm:$0xff] %v404_v34 }
  0x3c   : > { %407 = vst [vmem:[%s1586_s8 + $0x118] sm:$0xff] %v406_v35  ;;  %v408_v36 = vld [vmem:[%s1581_s7 + $0x900] sm:$0xff] }
  0x3d   : > { %v410_v37 = vld [vmem:[%s1581_s7 + $0x940] sm:$0xff]  ;;  %409 = vst [vmem:[%s1586_s8 + $0x120] sm:$0xff] %v408_v36 }
  0x3e   : > { %v412_v38 = vld [vmem:[%s1581_s7 + $0x980] sm:$0xff]  ;;  %411 = vst [vmem:[%s1586_s8 + $0x128] sm:$0xff] %v410_v37 }
  0x3f   : > { %413 = vst [vmem:[%s1586_s8 + $0x130] sm:$0xff] %v412_v38  ;;  %v414_v39 = vld [vmem:[%s1581_s7 + $0x9c0] sm:$0xff] }
  0x40   : > { %v416_v40 = vld [vmem:[%s1581_s7 + $0xa00] sm:$0xff]  ;;  %415 = vst [vmem:[%s1586_s8 + $0x138] sm:$0xff] %v414_v39 }
  0x41   : > { %v418_v41 = vld [vmem:[%s1581_s7 + $0xa40] sm:$0xff]  ;;  %417 = vst [vmem:[%s1586_s8 + $0x140] sm:$0xff] %v416_v40 }
  0x42   : > { %419 = vst [vmem:[%s1586_s8 + $0x148] sm:$0xff] %v418_v41  ;;  %v420_v42 = vld [vmem:[%s1581_s7 + $0xa80] sm:$0xff] }
  0x43   : > { %v422_v43 = vld [vmem:[%s1581_s7 + $0xac0] sm:$0xff]  ;;  %421 = vst [vmem:[%s1586_s8 + $0x150] sm:$0xff] %v420_v42 }
  0x44   : > { %v424_v44 = vld [vmem:[%s1581_s7 + $0xb00] sm:$0xff]  ;;  %423 = vst [vmem:[%s1586_s8 + $0x158] sm:$0xff] %v422_v43 }
  0x45   : > { %425 = vst [vmem:[%s1586_s8 + $0x160] sm:$0xff] %v424_v44  ;;  %v426_v45 = vld [vmem:[%s1581_s7 + $0xb40] sm:$0xff] }
  0x46   : > { %v428_v46 = vld [vmem:[%s1581_s7 + $0xb80] sm:$0xff]  ;;  %427 = vst [vmem:[%s1586_s8 + $0x168] sm:$0xff] %v426_v45 }
  0x47   : > { %v430_v47 = vld [vmem:[%s1581_s7 + $0xbc0] sm:$0xff]  ;;  %429 = vst [vmem:[%s1586_s8 + $0x170] sm:$0xff] %v428_v46 }
  0x48   : > { %431 = vst [vmem:[%s1586_s8 + $0x178] sm:$0xff] %v430_v47  ;;  %v432_v48 = vld [vmem:[%s1581_s7 + $0xc00] sm:$0xff] }
  0x49   : > { %v434_v49 = vld [vmem:[%s1581_s7 + $0xc40] sm:$0xff]  ;;  %433 = vst [vmem:[%s1586_s8 + $0x180] sm:$0xff] %v432_v48 }
  0x4a   : > { %v436_v50 = vld [vmem:[%s1581_s7 + $0xc80] sm:$0xff]  ;;  %435 = vst [vmem:[%s1586_s8 + $0x188] sm:$0xff] %v434_v49 }
  0x4b   : > { %437 = vst [vmem:[%s1586_s8 + $0x190] sm:$0xff] %v436_v50  ;;  %v438_v51 = vld [vmem:[%s1581_s7 + $0xcc0] sm:$0xff] }
  0x4c   : > { %v440_v52 = vld [vmem:[%s1581_s7 + $0xd00] sm:$0xff]  ;;  %439 = vst [vmem:[%s1586_s8 + $0x198] sm:$0xff] %v438_v51 }
  0x4d   : > { %v442_v53 = vld [vmem:[%s1581_s7 + $0xd40] sm:$0xff]  ;;  %441 = vst [vmem:[%s1586_s8 + $0x1a0] sm:$0xff] %v440_v52 }
  0x4e   : > { %443 = vst [vmem:[%s1586_s8 + $0x1a8] sm:$0xff] %v442_v53  ;;  %v444_v54 = vld [vmem:[%s1581_s7 + $0xd80] sm:$0xff] }
  0x4f   : > { %v446_v55 = vld [vmem:[%s1581_s7 + $0xdc0] sm:$0xff]  ;;  %445 = vst [vmem:[%s1586_s8 + $0x1b0] sm:$0xff] %v444_v54 }
  0x50   : > { %v448_v56 = vld [vmem:[%s1581_s7 + $0xe00] sm:$0xff]  ;;  %447 = vst [vmem:[%s1586_s8 + $0x1b8] sm:$0xff] %v446_v55 }
  0x51   : > { %449 = vst [vmem:[%s1586_s8 + $0x1c0] sm:$0xff] %v448_v56  ;;  %v450_v57 = vld [vmem:[%s1581_s7 + $0xe40] sm:$0xff] }
  0x52   : > { %v452_v58 = vld [vmem:[%s1581_s7 + $0xe80] sm:$0xff]  ;;  %451 = vst [vmem:[%s1586_s8 + $0x1c8] sm:$0xff] %v450_v57 }
  0x53   : > { %v454_v59 = vld [vmem:[%s1581_s7 + $0xec0] sm:$0xff]  ;;  %453 = vst [vmem:[%s1586_s8 + $0x1d0] sm:$0xff] %v452_v58 }
  0x54   : > { %455 = vst [vmem:[%s1586_s8 + $0x1d8] sm:$0xff] %v454_v59  ;;  %v456_v60 = vld [vmem:[%s1581_s7 + $0xf00] sm:$0xff] }
  0x55   : > { %v458_v61 = vld [vmem:[%s1581_s7 + $0xf40] sm:$0xff]  ;;  %457 = vst [vmem:[%s1586_s8 + $0x1e0] sm:$0xff] %v456_v60 }
  0x56   : > { %v460_v62 = vld [vmem:[%s1581_s7 + $0xf80] sm:$0xff]  ;;  %459 = vst [vmem:[%s1586_s8 + $0x1e8] sm:$0xff] %v458_v61 }
  0x57   : > { %461 = vst [vmem:[%s1586_s8 + $0x1f0] sm:$0xff] %v460_v62  ;;  %v462_v63 = vld [vmem:[%s1581_s7 + $0xfc0] sm:$0xff] }
  0x58   : > { %463 = vst [vmem:[%s1586_s8 + $0x1f8] sm:$0xff] %v462_v63 }
  0x59 PF: > { %p1205_p7 = scmp.ge.s32.totalorder %s1498_s18, 1  ;;  %p476_p8 = scmp.lt.s32.totalorder %s1498_s18, 17 }
  0x5b   : > { %p477_p9 = pnand %p1205_p7, %p476_p8 }
  0x5c   : > { %s483_s9 = sand.u32 (!%p477_p9), 1, %s1474_s12   ;;  %s1207_s10 = sshll.u32 (!%p477_p9), %s1482_s14, 2 }
  0x5d   : > { %480 = sbr.rel (%p477_p9) target bundleno = 406 (0x196), region = 66  ;;  %s1206_s11 = sshll.u32 (!%p477_p9), %s483_s9, 9 }
  0x5e   : > { %p526_p10 = scmp.lt.s32.totalorder (!%p477_p9), %s1207_s10, 7  ;;  %s1209_s21 = sshll.u32 (!%p477_p9), %s1486_s15, 1 }
  0x5f   : > { %p536_p11 = scmp.lt.s32.totalorder (!%p477_p9), %s1209_s21, 15  ;;  %s1735_s5 = scalar_lea.vmem (!%p477_p9), [#allocation3], %s1206_s11 }
  0x60   : > { %p1212_p12 = scmp.ne.s32.totalorder (!%p477_p9), %s1482_s14, 0 }
  0x64   : > { %s1849_s10 = smov (!%p526_p10, %s1207_s10), 7  ;;  %s1851_s21 = smov (!%p536_p11, %s1209_s21), 15 }
  0x65   : > { %s1208_s22 = sshll.u32 %s1849_s10, 2  ;;  %s538_s12 = scalar_lea.vmem %s1834_s2, %s1851_s21  ;;  %v1500_v0 = vmov (!%p1212_p12), 0.0  }
  0x66   : > { %s1721_s26 = scalar_lea.vmem %s1832_s0, %s1208_s22  ;;  %s1211_s29 = sshll.u32 %s1851_s21, 2  ;;  %554 = vst [vmem:[#allocation2] sm:$0xff] (!%p1212_p12), %v1500_v0  ;;  %555 = vst [vmem:[#allocation2 + $0x8] sm:$0xff] (!%p1212_p12), %v1500_v0 }
  0x67   : > { %s1733_s15 = scalar_lea.vmem %s1835_s3, %s1211_s29  ;;  %553 = sbr.rel (%p1212_p12) target bundleno = 110 (0x6e), region = 74 }
  0x6e PF: > { %v1344_v1 = vld [vmem:[%s1735_s5 + $0x4] ss:$8 sps:$4 sm:$0xff]   ;;  %v1348_v3 = vld [vmem:[%s1735_s5] ss:$8 sps:$4 sm:$0xff]   ;;  %v1350_v5 = vld [vmem:[%s1735_s5 + $0x14] ss:$8 sps:$4 sm:$0xff]  }
  0x6f   : > { %v1346_v2 = vld [vmem:[%s1735_s5 + $0x104] ss:$8 sps:$4 sm:$0xff]   ;;  %958 = vmatprep.subr.bf16.mxu0 %v1344_v1  ;;  %v1349_v4 = vld [vmem:[%s1735_s5 + $0x100] ss:$8 sps:$4 sm:$0xff]   ;;  %v1352_v6 = vld [vmem:[%s1735_s5 + $0x114] ss:$8 sps:$4 sm:$0xff]  }
  0x70   : > { %999 = vmatprep.subr.bf16.mxu1 %v1346_v2  ;;  %959 = vmatpush1.bf16.msra.mxu0 %v1348_v3  ;;  %v1354_v7 = vld [vmem:[%s1735_s5 + $0x10] ss:$8 sps:$4 sm:$0xff]   ;;  %v1356_v9 = vld [vmem:[%s1735_s5 + $0x24] ss:$8 sps:$4 sm:$0xff]   ;;  %v1360_v11 = vld [vmem:[%s1735_s5 + $0x20] ss:$8 sps:$4 sm:$0xff]  }
  0x71   : > { %1000 = vmatpush1.bf16.msra.mxu1 %v1349_v4  ;;  %960 = vmatprep.subr.bf16.mxu0 %v1350_v5  ;;  %v1355_v8 = vld [vmem:[%s1735_s5 + $0x110] ss:$8 sps:$4 sm:$0xff]   ;;  %v1358_v10 = vld [vmem:[%s1735_s5 + $0x124] ss:$8 sps:$4 sm:$0xff]   ;;  %v1361_v12 = vld [vmem:[%s1735_s5 + $0x120] ss:$8 sps:$4 sm:$0xff]  }
  0x72   : > { %1001 = vmatprep.subr.bf16.mxu1 %v1352_v6  ;;  %v1362_v13 = vld [vmem:[%s1735_s5 + $0x34] ss:$8 sps:$4 sm:$0xff]   ;;  %v1366_v15 = vld [vmem:[%s1735_s5 + $0x30] ss:$8 sps:$4 sm:$0xff]   ;;  %v1368_v17 = vld [vmem:[%s1735_s5 + $0x44] ss:$8 sps:$4 sm:$0xff]  }
  0x73   : > { %v1364_v14 = vld [vmem:[%s1735_s5 + $0x134] ss:$8 sps:$4 sm:$0xff]   ;;  %v1367_v16 = vld [vmem:[%s1735_s5 + $0x130] ss:$8 sps:$4 sm:$0xff]   ;;  %v1370_v18 = vld [vmem:[%s1735_s5 + $0x144] ss:$8 sps:$4 sm:$0xff]  }
  0x74   : > { %961 = vmatpush1.bf16.msra.mxu0 %v1354_v7  ;;  %v1372_v19 = vld [vmem:[%s1735_s5 + $0x40] ss:$8 sps:$4 sm:$0xff]   ;;  %v1374_v21 = vld [vmem:[%s1735_s5 + $0x54] ss:$8 sps:$4 sm:$0xff]   ;;  %v1378_v23 = vld [vmem:[%s1735_s5 + $0x50] ss:$8 sps:$4 sm:$0xff]  }
  0x75   : > { %1002 = vmatpush1.bf16.msra.mxu1 %v1355_v8  ;;  %962 = vmatprep.subr.bf16.mxu0 %v1356_v9  ;;  %v1373_v20 = vld [vmem:[%s1735_s5 + $0x140] ss:$8 sps:$4 sm:$0xff]   ;;  %v1376_v22 = vld [vmem:[%s1735_s5 + $0x154] ss:$8 sps:$4 sm:$0xff]   ;;  %v1379_v24 = vld [vmem:[%s1735_s5 + $0x150] ss:$8 sps:$4 sm:$0xff]  }
  0x76   : > { %1003 = vmatprep.subr.bf16.mxu1 %v1358_v10  ;;  %v1380_v25 = vld [vmem:[%s1735_s5 + $0x64] ss:$8 sps:$4 sm:$0xff]   ;;  %v1384_v27 = vld [vmem:[%s1735_s5 + $0x60] ss:$8 sps:$4 sm:$0xff]   ;;  %v1386_v29 = vld [vmem:[%s1735_s5 + $0x74] ss:$8 sps:$4 sm:$0xff]  }
  0x77   : > { %v1382_v26 = vld [vmem:[%s1735_s5 + $0x164] ss:$8 sps:$4 sm:$0xff]   ;;  %v1385_v28 = vld [vmem:[%s1735_s5 + $0x160] ss:$8 sps:$4 sm:$0xff]   ;;  %v1388_v30 = vld [vmem:[%s1735_s5 + $0x174] ss:$8 sps:$4 sm:$0xff]  }
  0x78   : > { %963 = vmatpush1.bf16.msra.mxu0 %v1360_v11  ;;  %v1390_v31 = vld [vmem:[%s1735_s5 + $0x70] ss:$8 sps:$4 sm:$0xff]   ;;  %v1392_v33 = vld [vmem:[%s1735_s5 + $0x84] ss:$8 sps:$4 sm:$0xff]   ;;  %v1396_v35 = vld [vmem:[%s1735_s5 + $0x80] ss:$8 sps:$4 sm:$0xff]  }
  0x79   : > { %1004 = vmatpush1.bf16.msra.mxu1 %v1361_v12  ;;  %964 = vmatprep.subr.bf16.mxu0 %v1362_v13  ;;  %v1391_v32 = vld [vmem:[%s1735_s5 + $0x170] ss:$8 sps:$4 sm:$0xff]   ;;  %v1394_v34 = vld [vmem:[%s1735_s5 + $0x184] ss:$8 sps:$4 sm:$0xff]   ;;  %v1397_v36 = vld [vmem:[%s1735_s5 + $0x180] ss:$8 sps:$4 sm:$0xff]  }
  0x7a   : > { %1005 = vmatprep.subr.bf16.mxu1 %v1364_v14  ;;  %v1398_v37 = vld [vmem:[%s1735_s5 + $0x94] ss:$8 sps:$4 sm:$0xff]   ;;  %v1402_v39 = vld [vmem:[%s1735_s5 + $0x90] ss:$8 sps:$4 sm:$0xff]   ;;  %v1404_v41 = vld [vmem:[%s1735_s5 + $0xa4] ss:$8 sps:$4 sm:$0xff]  }
  0x7b   : > { %v1400_v38 = vld [vmem:[%s1735_s5 + $0x194] ss:$8 sps:$4 sm:$0xff]   ;;  %v1403_v40 = vld [vmem:[%s1735_s5 + $0x190] ss:$8 sps:$4 sm:$0xff]   ;;  %v1406_v42 = vld [vmem:[%s1735_s5 + $0x1a4] ss:$8 sps:$4 sm:$0xff]  }
  0x7c   : > { %965 = vmatpush1.bf16.msra.mxu0 %v1366_v15  ;;  %v1408_v43 = vld [vmem:[%s1735_s5 + $0xa0] ss:$8 sps:$4 sm:$0xff]   ;;  %v1410_v45 = vld [vmem:[%s1735_s5 + $0xb4] ss:$8 sps:$4 sm:$0xff]   ;;  %v1414_v50 = vld [vmem:[%s1735_s5 + $0xb0] ss:$8 sps:$4 sm:$0xff]  }
  0x7d   : > { %1006 = vmatpush1.bf16.msra.mxu1 %v1367_v16  ;;  %966 = vmatprep.subr.bf16.mxu0 %v1368_v17  ;;  %v1409_v44 = vld [vmem:[%s1735_s5 + $0x1a0] ss:$8 sps:$4 sm:$0xff]   ;;  %v1412_v46 = vld [vmem:[%s1735_s5 + $0x1b4] ss:$8 sps:$4 sm:$0xff]   ;;  %v1415_v51 = vld [vmem:[%s1735_s5 + $0x1b0] ss:$8 sps:$4 sm:$0xff]  }
  0x7e   : > { %1007 = vmatprep.subr.bf16.mxu1 %v1370_v18  ;;  %v558_v47 = vld [vmem:[%s1721_s26] sm:$0xff]  ;;  %v559_v49 = vld [vmem:[%s1721_s26 + $0x8] sm:$0xff]  ;;  %v1416_v53 = vld [vmem:[%s1735_s5 + $0xc4] ss:$8 sps:$4 sm:$0xff]   ;;  %p1281_p13 = scmp.ne.s32.totalorder %s1482_s14, 1 }
  0x7f   : > { %v1214_v48 = vcombine.high %v558_v47, %v558_v47  ;;  %v1216_v52 = vcombine.high %v559_v49, %v559_v49  ;;  %v1418_v54 = vld [vmem:[%s1735_s5 + $0x1c4] ss:$8 sps:$4 sm:$0xff]   ;;  %v1420_v55 = vld [vmem:[%s1735_s5 + $0xc0] ss:$8 sps:$4 sm:$0xff]   ;;  %v1422_v57 = vld [vmem:[%s1735_s5 + $0xd4] ss:$8 sps:$4 sm:$0xff]   ;;  %v1213_v5 = vcombine.low %v558_v47, %v558_v47  ;;  %v1215_v6 = vcombine.low %v559_v49, %v559_v49 }
  0x80   : > { %967 = vmatpush1.bf16.msra.mxu0 %v1372_v19  ;;  %v1421_v56 = vld [vmem:[%s1735_s5 + $0x1c0] ss:$8 sps:$4 sm:$0xff]   ;;  %v1424_v58 = vld [vmem:[%s1735_s5 + $0x1d4] ss:$8 sps:$4 sm:$0xff]   ;;  %v1426_v59 = vld [vmem:[%s1735_s5 + $0xd0] ss:$8 sps:$4 sm:$0xff]  }
  0x81   : > { %1008 = vmatpush1.bf16.msra.mxu1 %v1373_v20  ;;  %968 = vmatprep.subr.bf16.mxu0 %v1374_v21  ;;  %v1427_v60 = vld [vmem:[%s1735_s5 + $0x1d0] ss:$8 sps:$4 sm:$0xff]   ;;  %v1428_v61 = vld [vmem:[%s1735_s5 + $0xe4] ss:$8 sps:$4 sm:$0xff]   ;;  %v1432_v63 = vld [vmem:[%s1735_s5 + $0xe0] ss:$8 sps:$4 sm:$0xff]   ;;  %v1052_v21 = vlaneseq (!%p1281_p13) }
  0x82   : > { %1009 = vmatprep.subr.bf16.mxu1 %v1376_v22  ;;  %990 = vmatprep.mubr.bf16.mxu0 %v1214_v48  ;;  %v1430_v62 = vld [vmem:[%s1735_s5 + $0x1e4] ss:$8 sps:$4 sm:$0xff]   ;;  %v1433_v0 = vld [vmem:[%s1735_s5 + $0x1e0] ss:$8 sps:$4 sm:$0xff]   ;;  %v1434_v1 = vld [vmem:[%s1735_s5 + $0xf4] ss:$8 sps:$4 sm:$0xff]  }
  0x83   : > { %1031 = vmatprep.mubr.bf16.mxu1 %v1216_v52  ;;  %v1436_v2 = vld [vmem:[%s1735_s5 + $0x1f4] ss:$8 sps:$4 sm:$0xff]   ;;  %v1438_v3 = vld [vmem:[%s1735_s5 + $0xf0] ss:$8 sps:$4 sm:$0xff]   ;;  %v1053_v22 = vshrl.u32 (!%p1281_p13), %v1052_v21, 7 }
  0x84   : > { %969 = vmatpush1.bf16.msra.mxu0 %v1378_v23  ;;  %v1439_v4 = vld [vmem:[%s1735_s5 + $0x1f0] ss:$8 sps:$4 sm:$0xff]  }
  0x85   : > { %1010 = vmatpush1.bf16.msra.mxu1 %v1379_v24  ;;  %970 = vmatprep.subr.bf16.mxu0 %v1380_v25  ;;  %v556_v8 = vld [vmem:[#allocation2] sm:$0xff]  ;;  %v557_v12 = vld [vmem:[#allocation2 + $0x8] sm:$0xff]  ;;  %v1054_v24 = vsub.s32 (!%p1281_p13), 0, %v1053_v22  ;;  %v1058_v25 = vsub.s32 (!%p1281_p13), 1, %v1053_v22 }
  0x86   : > { %1011 = vmatprep.subr.bf16.mxu1 %v1382_v26  ;;  %v1050_v23 = vld [vmem:[%s538_s12] sm:$0x3] (!%p1281_p13) }
  0x88   : > { %971 = vmatpush1.bf16.msra.mxu0 %v1384_v27 }
  0x89   : > { %1012 = vmatpush1.bf16.msra.mxu1 %v1385_v28  ;;  %972 = vmatprep.subr.bf16.mxu0 %v1386_v29  ;;  %v1055_v28 = vrot.slane (!%p1281_p13), %v1050_v23, %v1054_v24  ;;  %v1059_v29 = vrot.slane (!%p1281_p13), %v1050_v23, %v1058_v25 }
  0x8a   : > { %1013 = vmatprep.subr.bf16.mxu1 %v1388_v30 }
  0x8c   : > { %973 = vmatpush1.bf16.msra.mxu0 %v1390_v31 }
  0x8d   : > { %1014 = vmatpush1.bf16.msra.mxu1 %v1391_v32  ;;  %974 = vmatprep.subr.bf16.mxu0 %v1392_v33 }
  0x8e   : > { %1015 = vmatprep.subr.bf16.mxu1 %v1394_v34 }
  0x90   : > { %975 = vmatpush1.bf16.msra.mxu0 %v1396_v35 }
  0x91   : > { %1016 = vmatpush1.bf16.msra.mxu1 %v1397_v36  ;;  %976 = vmatprep.subr.bf16.mxu0 %v1398_v37 }
  0x92   : > { %1017 = vmatprep.subr.bf16.mxu1 %v1400_v38 }
  0x94   : > { %977 = vmatpush1.bf16.msra.mxu0 %v1402_v39 }
  0x95   : > { %1018 = vmatpush1.bf16.msra.mxu1 %v1403_v40  ;;  %978 = vmatprep.subr.bf16.mxu0 %v1404_v41 }
  0x96   : > { %1019 = vmatprep.subr.bf16.mxu1 %v1406_v42 }
  0x98   : > { %979 = vmatpush1.bf16.msra.mxu0 %v1408_v43 }
  0x99   : > { %1020 = vmatpush1.bf16.msra.mxu1 %v1409_v44  ;;  %980 = vmatprep.subr.bf16.mxu0 %v1410_v45 }
  0x9a   : > { %1021 = vmatprep.subr.bf16.mxu1 %v1412_v46 }
  0x9c   : > { %981 = vmatpush1.bf16.msra.mxu0 %v1414_v50 }
  0x9d   : > { %1022 = vmatpush1.bf16.msra.mxu1 %v1415_v51  ;;  %982 = vmatprep.subr.bf16.mxu0 %v1416_v53 }
  0x9e   : > { %1023 = vmatprep.subr.bf16.mxu1 %v1418_v54 }
  0xa0   : > { %983 = vmatpush1.bf16.msra.mxu0 %v1420_v55 }
  0xa1   : > { %1024 = vmatpush1.bf16.msra.mxu1 %v1421_v56  ;;  %984 = vmatprep.subr.bf16.mxu0 %v1422_v57 }
  0xa2   : > { %1025 = vmatprep.subr.bf16.mxu1 %v1424_v58 }
  0xa4   : > { %985 = vmatpush1.bf16.msra.mxu0 %v1426_v59 }
  0xa5   : > { %1026 = vmatpush1.bf16.msra.mxu1 %v1427_v60  ;;  %986 = vmatprep.subr.bf16.mxu0 %v1428_v61 }
  0xa6   : > { %1027 = vmatprep.subr.bf16.mxu1 %v1430_v62 }
  0xa8   : > { %987 = vmatpush1.bf16.msra.mxu0 %v1432_v63 }
  0xa9   : > { %1028 = vmatpush1.bf16.msra.mxu1 %v1433_v0  ;;  %988 = vmatprep.subr.bf16.mxu0 %v1434_v1 }
  0xaa   : > { %1029 = vmatprep.subr.bf16.mxu1 %v1436_v2 }
  0xac   : > { %989 = vmatpush1.bf16.msra.mxu0 %v1438_v3 }
  0xad   : > { %1030 = vmatpush1.bf16.msra.mxu1 %v1439_v4 }
  0xaf   : > { %991 = vmatmul.mubr.bf16.vlgmr.msra.gmra.mrb[0].mxu0 %v1213_v5 }
  0xb0   : > { %1032 = vmatmul.mubr.bf16.vlgmr.msra.gmra.mrb[0].mxu1 %v1215_v6 }
 0x182   : > { %v992_v7 = vpop.f32.mrb[0].mxu0 }
 0x183   : > { %v1033_v9 = vpop.f32.mrb[0].mxu1  ;;  %v994_v11 = vpop.f32.mrb[1].mxu0  ;;  %1047 = sbr.rel (%p1281_p13) target bundleno = 406 (0x196), region = 78 }
 0x184   : > { %v1034_v10 = vadd.f32 %v1033_v9, %v992_v7  ;;  %v1035_v13 = vpop.f32.mrb[1].mxu1  ;;  %v996_v15 = vpop.f32.mrb[2].mxu0 }
 0x185   : > { %v1036_v14 = vadd.f32 %v1035_v13, %v994_v11  ;;  %v1037_v16 = vpop.f32.mrb[2].mxu1  ;;  %v997_v18 = vpop.f32.mrb[3].mxu0 }
 0x186   : > { %v1040_v17 = vadd.f32 %v1034_v10, %v556_v8  ;;  %v1038_v19 = vpop.f32.mrb[3].mxu1 }
 0x187   : > { %v1041_v20 = vadd.f32 %v1036_v14, %v557_v12 }
 0x188   : > { %1042 = vst [vmem:[#allocation2] sm:$0xff] %v1040_v17 }
 0x189   : > { %1043 = vst [vmem:[#allocation2 + $0x8] sm:$0xff] %v1041_v20 }
 0x18f   : > { %v1048_v26 = vld [vmem:[#allocation2] sm:$0xff] }
 0x190   : > { %v1049_v27 = vld [vmem:[#allocation2 + $0x8] sm:$0xff]  ;;  %v1062_v30 = vadd.f32 %v1055_v28, %v1048_v26 }
 0x191   : > { %v1063_v31 = vadd.f32 %v1059_v29, %v1049_v27 }
 0x193   : > { %v1286_v32 = vpack.c.bf16 %v1063_v31, %v1062_v30 }
 0x195   : > { %1072 = vst [vmem:[%s1733_s15] sm:$0xff] %v1286_v32 }
 0x196 PF: > { %s13_s18 = sadd.s32 1, %s1498_s18   ;;  %s1836_s12 = smov %s1478_s13 }
 0x197   : > { %p10_p0 = scmp.ge.s32.totalorder %s13_s18, 18   ;;  %s1837_s13 = smov %s1572_s25 }
 0x198   : > { %s1838_s14 = smov %s1490_s16  ;;  %s1839_s15 = smov %s1494_s17 }
 0x199   : > { %s1840_s16 = smov %s1843_s19  ;;  %s1841_s17 = smov %s1847_s20 }
 0x19a   :  { %12 = sbr.rel (!%p10_p0) target bundleno = 4 (0x4), region = 119 }

// kernel: _encoder_cnn_forward.101
= control target key start
LH: loop header
LB: loop body
LE: loop exit
PB: predicated region body
PF: predicated region fallthrough
CT: control target
= control target key end

     0   :  { %s1576_s15 = smov 0   ;;  %s1578_s16 = smov 0   ;;  %s1867_s0 = inlined_call_operand.vmem [shape: bf16[8,512], index: 0, kind: input, shape index: {}]   ;;  %s1868_s1 = inlined_call_operand.vmem [shape: bf16[512,2048], index: 1, kind: input, shape index: {}]   ;;  %s1869_s2 = inlined_call_operand.vmem [shape: f32[1,2048], index: 2, kind: input, shape index: {}]   ;;  %s1870_s3 = inlined_call_operand.vmem [shape: bf16[8,2048], index: 3, kind: input, shape index: {}]   ;;  %s1871_s4 = inlined_call_operand.vmem [shape: bf16[8,2048], index: 4, kind: output, shape index: {}]  }
   0x1   :  { %s1580_s17 = smov 0   ;;  %s1582_s18 = smov 0  }
   0x2   :  { %s1584_s19 = smov 0  }
   0x3 LB: > { %s29_s20 = sadd.s32 1, %s1545_s18  ;;  %p77_p1 = scmp.ne.s32.totalorder %s1537_s16, %s1533_s15  ;;  %s1549_s19 = sphi %s1584_s19, %s14_s19   ;;  %s1545_s18 = sphi %s1582_s18, %s1875_s18   ;;  %s1541_s17 = sphi %s1580_s17, %s1874_s17   ;;  %s1537_s16 = sphi %s1578_s16, %s1873_s16   ;;  %s1533_s15 = sphi %s1576_s15, %s1872_s15  }
   0x4   : > { %p31_p0 = scmp.ge.s32.totalorder %s29_s20, 8  ;;  %p78_p2 = scmp.eq.s32.totalorder %s1549_s19, 0 }
   0x5   : > { %s70_s22 = sadd.s32 1, %s1537_s16  ;;  %p1287_p5 = scmp.ge.s32.totalorder %s1549_s19, 8 }
   0x6   : > { %s1877_s20 = smov (%p31_p0, %s29_s20), 0  ;;  %p79_p3 = por %p78_p2, %p77_p1 }
   0x7   : > { %s66_s21 = ssub.s32 %s1545_s18, %s1877_s20  ;;  %198 = sbr.rel (%p1287_p5) target bundleno = 82 (0x52), region = 20 }
   0x8   : > { %p68_p4 = scmp.eq.s32.totalorder %s66_s21, 0 }
   0xa   : > { %s1611_s23 = scalar_select %p68_p4, %s1537_s16, %s70_s22  }
   0xe   : > { %201 = sbr.rel (!%p79_p3) target bundleno = 82 (0x52), region = 24  ;;  %s203_s24 = sand.u32 (%p79_p3), 1, %s1537_s16  }
   0xf   : > { %s1369_s25 = sshll.u32 (%p79_p3), %s1545_s18, 3  ;;  %s1288_s26 = sshll.u32 (%p79_p3), %s203_s24, 9 }
  0x10   : > { %s1619_s29 = scalar_lea.vmem (%p79_p3), %s1868_s1, %s1369_s25  ;;  %s1624_s30 = scalar_lea.vmem (%p79_p3), [#allocation3], %s1288_s26 }
  0x11   : > { %v365_v0 = vld [vmem:[%s1619_s29] sm:$0xff] (%p79_p3) }
  0x12   : > { %v367_v1 = vld [vmem:[%s1619_s29 + $0x40] sm:$0xff] (%p79_p3)  ;;  %366 = vst [vmem:[%s1624_s30] sm:$0xff] (%p79_p3), %v365_v0 }
  0x13   : > { %v369_v2 = vld [vmem:[%s1619_s29 + $0x80] sm:$0xff] (%p79_p3)  ;;  %368 = vst [vmem:[%s1624_s30 + $0x8] sm:$0xff] (%p79_p3), %v367_v1 }
  0x14   : > { %370 = vst [vmem:[%s1624_s30 + $0x10] sm:$0xff] (%p79_p3), %v369_v2  ;;  %v371_v3 = vld [vmem:[%s1619_s29 + $0xc0] sm:$0xff] (%p79_p3) }
  0x15   : > { %v373_v4 = vld [vmem:[%s1619_s29 + $0x100] sm:$0xff]  ;;  %372 = vst [vmem:[%s1624_s30 + $0x18] sm:$0xff] %v371_v3 }
  0x16   : > { %v375_v5 = vld [vmem:[%s1619_s29 + $0x140] sm:$0xff]  ;;  %374 = vst [vmem:[%s1624_s30 + $0x20] sm:$0xff] %v373_v4 }
  0x17   : > { %376 = vst [vmem:[%s1624_s30 + $0x28] sm:$0xff] %v375_v5  ;;  %v377_v6 = vld [vmem:[%s1619_s29 + $0x180] sm:$0xff] }
  0x18   : > { %v379_v7 = vld [vmem:[%s1619_s29 + $0x1c0] sm:$0xff]  ;;  %378 = vst [vmem:[%s1624_s30 + $0x30] sm:$0xff] %v377_v6 }
  0x19   : > { %v381_v8 = vld [vmem:[%s1619_s29 + $0x200] sm:$0xff]  ;;  %380 = vst [vmem:[%s1624_s30 + $0x38] sm:$0xff] %v379_v7 }
  0x1a   : > { %382 = vst [vmem:[%s1624_s30 + $0x40] sm:$0xff] %v381_v8  ;;  %v383_v9 = vld [vmem:[%s1619_s29 + $0x240] sm:$0xff] }
  0x1b   : > { %v385_v10 = vld [vmem:[%s1619_s29 + $0x280] sm:$0xff]  ;;  %384 = vst [vmem:[%s1624_s30 + $0x48] sm:$0xff] %v383_v9 }
  0x1c   : > { %v387_v11 = vld [vmem:[%s1619_s29 + $0x2c0] sm:$0xff]  ;;  %386 = vst [vmem:[%s1624_s30 + $0x50] sm:$0xff] %v385_v10 }
  0x1d   : > { %388 = vst [vmem:[%s1624_s30 + $0x58] sm:$0xff] %v387_v11  ;;  %v389_v12 = vld [vmem:[%s1619_s29 + $0x300] sm:$0xff] }
  0x1e   : > { %v391_v13 = vld [vmem:[%s1619_s29 + $0x340] sm:$0xff]  ;;  %390 = vst [vmem:[%s1624_s30 + $0x60] sm:$0xff] %v389_v12 }
  0x1f   : > { %v393_v14 = vld [vmem:[%s1619_s29 + $0x380] sm:$0xff]  ;;  %392 = vst [vmem:[%s1624_s30 + $0x68] sm:$0xff] %v391_v13 }
  0x20   : > { %394 = vst [vmem:[%s1624_s30 + $0x70] sm:$0xff] %v393_v14  ;;  %v395_v15 = vld [vmem:[%s1619_s29 + $0x3c0] sm:$0xff] }
  0x21   : > { %v397_v16 = vld [vmem:[%s1619_s29 + $0x400] sm:$0xff]  ;;  %396 = vst [vmem:[%s1624_s30 + $0x78] sm:$0xff] %v395_v15 }
  0x22   : > { %v399_v17 = vld [vmem:[%s1619_s29 + $0x440] sm:$0xff]  ;;  %398 = vst [vmem:[%s1624_s30 + $0x80] sm:$0xff] %v397_v16 }
  0x23   : > { %400 = vst [vmem:[%s1624_s30 + $0x88] sm:$0xff] %v399_v17  ;;  %v401_v18 = vld [vmem:[%s1619_s29 + $0x480] sm:$0xff] }
  0x24   : > { %v403_v19 = vld [vmem:[%s1619_s29 + $0x4c0] sm:$0xff]  ;;  %402 = vst [vmem:[%s1624_s30 + $0x90] sm:$0xff] %v401_v18 }
  0x25   : > { %v405_v20 = vld [vmem:[%s1619_s29 + $0x500] sm:$0xff]  ;;  %404 = vst [vmem:[%s1624_s30 + $0x98] sm:$0xff] %v403_v19 }
  0x26   : > { %406 = vst [vmem:[%s1624_s30 + $0xa0] sm:$0xff] %v405_v20  ;;  %v407_v21 = vld [vmem:[%s1619_s29 + $0x540] sm:$0xff] }
  0x27   : > { %v409_v22 = vld [vmem:[%s1619_s29 + $0x580] sm:$0xff]  ;;  %408 = vst [vmem:[%s1624_s30 + $0xa8] sm:$0xff] %v407_v21 }
  0x28   : > { %v411_v23 = vld [vmem:[%s1619_s29 + $0x5c0] sm:$0xff]  ;;  %410 = vst [vmem:[%s1624_s30 + $0xb0] sm:$0xff] %v409_v22 }
  0x29   : > { %412 = vst [vmem:[%s1624_s30 + $0xb8] sm:$0xff] %v411_v23  ;;  %v413_v24 = vld [vmem:[%s1619_s29 + $0x600] sm:$0xff] }
  0x2a   : > { %v415_v25 = vld [vmem:[%s1619_s29 + $0x640] sm:$0xff]  ;;  %414 = vst [vmem:[%s1624_s30 + $0xc0] sm:$0xff] %v413_v24 }
  0x2b   : > { %v417_v26 = vld [vmem:[%s1619_s29 + $0x680] sm:$0xff]  ;;  %416 = vst [vmem:[%s1624_s30 + $0xc8] sm:$0xff] %v415_v25 }
  0x2c   : > { %418 = vst [vmem:[%s1624_s30 + $0xd0] sm:$0xff] %v417_v26  ;;  %v419_v27 = vld [vmem:[%s1619_s29 + $0x6c0] sm:$0xff] }
  0x2d   : > { %v421_v28 = vld [vmem:[%s1619_s29 + $0x700] sm:$0xff]  ;;  %420 = vst [vmem:[%s1624_s30 + $0xd8] sm:$0xff] %v419_v27 }
  0x2e   : > { %v423_v29 = vld [vmem:[%s1619_s29 + $0x740] sm:$0xff]  ;;  %422 = vst [vmem:[%s1624_s30 + $0xe0] sm:$0xff] %v421_v28 }
  0x2f   : > { %424 = vst [vmem:[%s1624_s30 + $0xe8] sm:$0xff] %v423_v29  ;;  %v425_v30 = vld [vmem:[%s1619_s29 + $0x780] sm:$0xff] }
  0x30   : > { %v427_v31 = vld [vmem:[%s1619_s29 + $0x7c0] sm:$0xff]  ;;  %426 = vst [vmem:[%s1624_s30 + $0xf0] sm:$0xff] %v425_v30 }
  0x31   : > { %v429_v32 = vld [vmem:[%s1619_s29 + $0x800] sm:$0xff]  ;;  %428 = vst [vmem:[%s1624_s30 + $0xf8] sm:$0xff] %v427_v31 }
  0x32   : > { %430 = vst [vmem:[%s1624_s30 + $0x100] sm:$0xff] %v429_v32  ;;  %v431_v33 = vld [vmem:[%s1619_s29 + $0x840] sm:$0xff] }
  0x33   : > { %v433_v34 = vld [vmem:[%s1619_s29 + $0x880] sm:$0xff]  ;;  %432 = vst [vmem:[%s1624_s30 + $0x108] sm:$0xff] %v431_v33 }
  0x34   : > { %v435_v35 = vld [vmem:[%s1619_s29 + $0x8c0] sm:$0xff]  ;;  %434 = vst [vmem:[%s1624_s30 + $0x110] sm:$0xff] %v433_v34 }
  0x35   : > { %436 = vst [vmem:[%s1624_s30 + $0x118] sm:$0xff] %v435_v35  ;;  %v437_v36 = vld [vmem:[%s1619_s29 + $0x900] sm:$0xff] }
  0x36   : > { %v439_v37 = vld [vmem:[%s1619_s29 + $0x940] sm:$0xff]  ;;  %438 = vst [vmem:[%s1624_s30 + $0x120] sm:$0xff] %v437_v36 }
  0x37   : > { %v441_v38 = vld [vmem:[%s1619_s29 + $0x980] sm:$0xff]  ;;  %440 = vst [vmem:[%s1624_s30 + $0x128] sm:$0xff] %v439_v37 }
  0x38   : > { %442 = vst [vmem:[%s1624_s30 + $0x130] sm:$0xff] %v441_v38  ;;  %v443_v39 = vld [vmem:[%s1619_s29 + $0x9c0] sm:$0xff] }
  0x39   : > { %v445_v40 = vld [vmem:[%s1619_s29 + $0xa00] sm:$0xff]  ;;  %444 = vst [vmem:[%s1624_s30 + $0x138] sm:$0xff] %v443_v39 }
  0x3a   : > { %v447_v41 = vld [vmem:[%s1619_s29 + $0xa40] sm:$0xff]  ;;  %446 = vst [vmem:[%s1624_s30 + $0x140] sm:$0xff] %v445_v40 }
  0x3b   : > { %448 = vst [vmem:[%s1624_s30 + $0x148] sm:$0xff] %v447_v41  ;;  %v449_v42 = vld [vmem:[%s1619_s29 + $0xa80] sm:$0xff] }
  0x3c   : > { %v451_v43 = vld [vmem:[%s1619_s29 + $0xac0] sm:$0xff]  ;;  %450 = vst [vmem:[%s1624_s30 + $0x150] sm:$0xff] %v449_v42 }
  0x3d   : > { %v453_v44 = vld [vmem:[%s1619_s29 + $0xb00] sm:$0xff]  ;;  %452 = vst [vmem:[%s1624_s30 + $0x158] sm:$0xff] %v451_v43 }
  0x3e   : > { %454 = vst [vmem:[%s1624_s30 + $0x160] sm:$0xff] %v453_v44  ;;  %v455_v45 = vld [vmem:[%s1619_s29 + $0xb40] sm:$0xff] }
  0x3f   : > { %v457_v46 = vld [vmem:[%s1619_s29 + $0xb80] sm:$0xff]  ;;  %456 = vst [vmem:[%s1624_s30 + $0x168] sm:$0xff] %v455_v45 }
  0x40   : > { %v459_v47 = vld [vmem:[%s1619_s29 + $0xbc0] sm:$0xff]  ;;  %458 = vst [vmem:[%s1624_s30 + $0x170] sm:$0xff] %v457_v46 }
  0x41   : > { %460 = vst [vmem:[%s1624_s30 + $0x178] sm:$0xff] %v459_v47  ;;  %v461_v48 = vld [vmem:[%s1619_s29 + $0xc00] sm:$0xff] }
  0x42   : > { %v463_v49 = vld [vmem:[%s1619_s29 + $0xc40] sm:$0xff]  ;;  %462 = vst [vmem:[%s1624_s30 + $0x180] sm:$0xff] %v461_v48 }
  0x43   : > { %v465_v50 = vld [vmem:[%s1619_s29 + $0xc80] sm:$0xff]  ;;  %464 = vst [vmem:[%s1624_s30 + $0x188] sm:$0xff] %v463_v49 }
  0x44   : > { %466 = vst [vmem:[%s1624_s30 + $0x190] sm:$0xff] %v465_v50  ;;  %v467_v51 = vld [vmem:[%s1619_s29 + $0xcc0] sm:$0xff] }
  0x45   : > { %v469_v52 = vld [vmem:[%s1619_s29 + $0xd00] sm:$0xff]  ;;  %468 = vst [vmem:[%s1624_s30 + $0x198] sm:$0xff] %v467_v51 }
  0x46   : > { %v471_v53 = vld [vmem:[%s1619_s29 + $0xd40] sm:$0xff]  ;;  %470 = vst [vmem:[%s1624_s30 + $0x1a0] sm:$0xff] %v469_v52 }
  0x47   : > { %472 = vst [vmem:[%s1624_s30 + $0x1a8] sm:$0xff] %v471_v53  ;;  %v473_v54 = vld [vmem:[%s1619_s29 + $0xd80] sm:$0xff] }
  0x48   : > { %v475_v55 = vld [vmem:[%s1619_s29 + $0xdc0] sm:$0xff]  ;;  %474 = vst [vmem:[%s1624_s30 + $0x1b0] sm:$0xff] %v473_v54 }
  0x49   : > { %v477_v56 = vld [vmem:[%s1619_s29 + $0xe00] sm:$0xff]  ;;  %476 = vst [vmem:[%s1624_s30 + $0x1b8] sm:$0xff] %v475_v55 }
  0x4a   : > { %478 = vst [vmem:[%s1624_s30 + $0x1c0] sm:$0xff] %v477_v56  ;;  %v479_v57 = vld [vmem:[%s1619_s29 + $0xe40] sm:$0xff] }
  0x4b   : > { %v481_v58 = vld [vmem:[%s1619_s29 + $0xe80] sm:$0xff]  ;;  %480 = vst [vmem:[%s1624_s30 + $0x1c8] sm:$0xff] %v479_v57 }
  0x4c   : > { %v483_v59 = vld [vmem:[%s1619_s29 + $0xec0] sm:$0xff]  ;;  %482 = vst [vmem:[%s1624_s30 + $0x1d0] sm:$0xff] %v481_v58 }
  0x4d   : > { %484 = vst [vmem:[%s1624_s30 + $0x1d8] sm:$0xff] %v483_v59  ;;  %v485_v60 = vld [vmem:[%s1619_s29 + $0xf00] sm:$0xff] }
  0x4e   : > { %v487_v61 = vld [vmem:[%s1619_s29 + $0xf40] sm:$0xff]  ;;  %486 = vst [vmem:[%s1624_s30 + $0x1e0] sm:$0xff] %v485_v60 }
  0x4f   : > { %v489_v62 = vld [vmem:[%s1619_s29 + $0xf80] sm:$0xff]  ;;  %488 = vst [vmem:[%s1624_s30 + $0x1e8] sm:$0xff] %v487_v61 }
  0x50   : > { %490 = vst [vmem:[%s1624_s30 + $0x1f0] sm:$0xff] %v489_v62  ;;  %v491_v63 = vld [vmem:[%s1619_s29 + $0xfc0] sm:$0xff] }
  0x51   : > { %492 = vst [vmem:[%s1624_s30 + $0x1f8] sm:$0xff] %v491_v63 }
  0x52 PF: > { %p1291_p6 = scmp.ge.s32.totalorder %s1549_s19, 1  ;;  %p518_p7 = scmp.lt.s32.totalorder %s1549_s19, 9 }
  0x54   : > { %p519_p8 = pnand %p1291_p6, %p518_p7 }
  0x55   : > { %s525_s5 = sand.u32 (!%p519_p8), 1, %s1533_s15   ;;  %v1757_v0 = vld [vmem:[%s1867_s0] sm:$0xff] (!%p519_p8)  ;;  %v1762_v1 = vld [vmem:[%s1867_s0 + $0x8] sm:$0xff] (!%p519_p8)  ;;  %s1293_s12 = sshll.u32 (!%p519_p8), %s1541_s17, 1 }
  0x56   : > { %522 = sbr.rel (%p519_p8) target bundleno = 378 (0x17a), region = 70  ;;  %s1292_s10 = sshll.u32 (!%p519_p8), %s525_s5, 9  ;;  %v1299_v2 = vcombine.high (!%p519_p8), %v1757_v0, %v1757_v0  ;;  %v1301_v3 = vcombine.high (!%p519_p8), %v1762_v1, %v1762_v1 }
  0x57   : > { %s1768_s11 = scalar_lea.vmem (!%p519_p8), [#allocation3], %s1292_s10  ;;  %p589_p9 = scmp.lt.s32.totalorder (!%p519_p8), %s1293_s12, 15 }
  0x58   : > { %v1411_v4 = vld [vmem:[%s1768_s11 + $0x4] ss:$8 sps:$4 sm:$0xff] (!%p519_p8)   ;;  %1053 = vmatprep.mubr.bf16.mxu0 (!%p519_p8), %v1299_v2  ;;  %1094 = vmatprep.mubr.bf16.mxu1 (!%p519_p8), %v1301_v3  ;;  %v1415_v6 = vld [vmem:[%s1768_s11] ss:$8 sps:$4 sm:$0xff] (!%p519_p8)   ;;  %v1417_v8 = vld [vmem:[%s1768_s11 + $0x14] ss:$8 sps:$4 sm:$0xff] (!%p519_p8)  }
  0x59   : > { %v1413_v5 = vld [vmem:[%s1768_s11 + $0x104] ss:$8 sps:$4 sm:$0xff] (!%p519_p8)   ;;  %1021 = vmatprep.subr.bf16.mxu0 (!%p519_p8), %v1411_v4  ;;  %v1416_v7 = vld [vmem:[%s1768_s11 + $0x100] ss:$8 sps:$4 sm:$0xff] (!%p519_p8)   ;;  %v1419_v9 = vld [vmem:[%s1768_s11 + $0x114] ss:$8 sps:$4 sm:$0xff] (!%p519_p8)  }
  0x5a   : > { %1062 = vmatprep.subr.bf16.mxu1 (!%p519_p8), %v1413_v5  ;;  %1022 = vmatpush1.bf16.msra.mxu0 (!%p519_p8), %v1415_v6  ;;  %v1421_v10 = vld [vmem:[%s1768_s11 + $0x10] ss:$8 sps:$4 sm:$0xff] (!%p519_p8)   ;;  %v1423_v12 = vld [vmem:[%s1768_s11 + $0x24] ss:$8 sps:$4 sm:$0xff] (!%p519_p8)   ;;  %v1427_v14 = vld [vmem:[%s1768_s11 + $0x20] ss:$8 sps:$4 sm:$0xff] (!%p519_p8)   ;;  %v1298_v6 = vcombine.low (!%p519_p8), %v1757_v0, %v1757_v0 }
  0x5b   : > { %1063 = vmatpush1.bf16.msra.mxu1 (!%p519_p8), %v1416_v7  ;;  %1023 = vmatprep.subr.bf16.mxu0 (!%p519_p8), %v1417_v8  ;;  %v1422_v11 = vld [vmem:[%s1768_s11 + $0x110] ss:$8 sps:$4 sm:$0xff] (!%p519_p8)   ;;  %v1425_v13 = vld [vmem:[%s1768_s11 + $0x124] ss:$8 sps:$4 sm:$0xff] (!%p519_p8)   ;;  %v1428_v15 = vld [vmem:[%s1768_s11 + $0x120] ss:$8 sps:$4 sm:$0xff] (!%p519_p8)   ;;  %v1300_v7 = vcombine.low (!%p519_p8), %v1762_v1, %v1762_v1  ;;  %v1114_v8 = vlaneseq (!%p519_p8) }
  0x5c   : > { %1064 = vmatprep.subr.bf16.mxu1 (!%p519_p8), %v1419_v9  ;;  %v1429_v16 = vld [vmem:[%s1768_s11 + $0x34] ss:$8 sps:$4 sm:$0xff] (!%p519_p8)   ;;  %v1433_v18 = vld [vmem:[%s1768_s11 + $0x30] ss:$8 sps:$4 sm:$0xff] (!%p519_p8)   ;;  %v1435_v20 = vld [vmem:[%s1768_s11 + $0x44] ss:$8 sps:$4 sm:$0xff] (!%p519_p8)  }
  0x5d   : > { %v1431_v17 = vld [vmem:[%s1768_s11 + $0x134] ss:$8 sps:$4 sm:$0xff]   ;;  %v1434_v19 = vld [vmem:[%s1768_s11 + $0x130] ss:$8 sps:$4 sm:$0xff]   ;;  %v1437_v21 = vld [vmem:[%s1768_s11 + $0x144] ss:$8 sps:$4 sm:$0xff]  }
  0x5e   : > { %1024 = vmatpush1.bf16.msra.mxu0 %v1421_v10  ;;  %v1439_v22 = vld [vmem:[%s1768_s11 + $0x40] ss:$8 sps:$4 sm:$0xff]   ;;  %v1441_v24 = vld [vmem:[%s1768_s11 + $0x54] ss:$8 sps:$4 sm:$0xff]   ;;  %v1445_v26 = vld [vmem:[%s1768_s11 + $0x50] ss:$8 sps:$4 sm:$0xff]  }
  0x5f   : > { %1065 = vmatpush1.bf16.msra.mxu1 %v1422_v11  ;;  %1025 = vmatprep.subr.bf16.mxu0 %v1423_v12  ;;  %v1440_v23 = vld [vmem:[%s1768_s11 + $0x140] ss:$8 sps:$4 sm:$0xff]   ;;  %v1443_v25 = vld [vmem:[%s1768_s11 + $0x154] ss:$8 sps:$4 sm:$0xff]   ;;  %v1446_v27 = vld [vmem:[%s1768_s11 + $0x150] ss:$8 sps:$4 sm:$0xff]  }
  0x60   : > { %1066 = vmatprep.subr.bf16.mxu1 %v1425_v13  ;;  %v1447_v28 = vld [vmem:[%s1768_s11 + $0x64] ss:$8 sps:$4 sm:$0xff]   ;;  %v1451_v30 = vld [vmem:[%s1768_s11 + $0x60] ss:$8 sps:$4 sm:$0xff]   ;;  %v1453_v32 = vld [vmem:[%s1768_s11 + $0x74] ss:$8 sps:$4 sm:$0xff]  }
  0x61   : > { %v1449_v29 = vld [vmem:[%s1768_s11 + $0x164] ss:$8 sps:$4 sm:$0xff]   ;;  %v1452_v31 = vld [vmem:[%s1768_s11 + $0x160] ss:$8 sps:$4 sm:$0xff]   ;;  %v1455_v33 = vld [vmem:[%s1768_s11 + $0x174] ss:$8 sps:$4 sm:$0xff]  }
  0x62   : > { %1026 = vmatpush1.bf16.msra.mxu0 %v1427_v14  ;;  %v1457_v34 = vld [vmem:[%s1768_s11 + $0x70] ss:$8 sps:$4 sm:$0xff]   ;;  %v1459_v36 = vld [vmem:[%s1768_s11 + $0x84] ss:$8 sps:$4 sm:$0xff]   ;;  %v1463_v38 = vld [vmem:[%s1768_s11 + $0x80] ss:$8 sps:$4 sm:$0xff]  }
  0x63   : > { %1067 = vmatpush1.bf16.msra.mxu1 %v1428_v15  ;;  %1027 = vmatprep.subr.bf16.mxu0 %v1429_v16  ;;  %v1458_v35 = vld [vmem:[%s1768_s11 + $0x170] ss:$8 sps:$4 sm:$0xff]   ;;  %v1461_v37 = vld [vmem:[%s1768_s11 + $0x184] ss:$8 sps:$4 sm:$0xff]   ;;  %v1464_v39 = vld [vmem:[%s1768_s11 + $0x180] ss:$8 sps:$4 sm:$0xff]  }
  0x64   : > { %1068 = vmatprep.subr.bf16.mxu1 %v1431_v17  ;;  %v1465_v40 = vld [vmem:[%s1768_s11 + $0x94] ss:$8 sps:$4 sm:$0xff]   ;;  %v1469_v42 = vld [vmem:[%s1768_s11 + $0x90] ss:$8 sps:$4 sm:$0xff]   ;;  %v1471_v44 = vld [vmem:[%s1768_s11 + $0xa4] ss:$8 sps:$4 sm:$0xff]  }
  0x65   : > { %v1467_v41 = vld [vmem:[%s1768_s11 + $0x194] ss:$8 sps:$4 sm:$0xff]   ;;  %v1470_v43 = vld [vmem:[%s1768_s11 + $0x190] ss:$8 sps:$4 sm:$0xff]   ;;  %v1473_v45 = vld [vmem:[%s1768_s11 + $0x1a4] ss:$8 sps:$4 sm:$0xff]  }
  0x66   : > { %1028 = vmatpush1.bf16.msra.mxu0 %v1433_v18  ;;  %v1475_v46 = vld [vmem:[%s1768_s11 + $0xa0] ss:$8 sps:$4 sm:$0xff]   ;;  %v1477_v48 = vld [vmem:[%s1768_s11 + $0xb4] ss:$8 sps:$4 sm:$0xff]   ;;  %v1481_v50 = vld [vmem:[%s1768_s11 + $0xb0] ss:$8 sps:$4 sm:$0xff]  }
  0x67   : > { %1069 = vmatpush1.bf16.msra.mxu1 %v1434_v19  ;;  %1029 = vmatprep.subr.bf16.mxu0 %v1435_v20  ;;  %v1476_v47 = vld [vmem:[%s1768_s11 + $0x1a0] ss:$8 sps:$4 sm:$0xff]   ;;  %v1479_v49 = vld [vmem:[%s1768_s11 + $0x1b4] ss:$8 sps:$4 sm:$0xff]   ;;  %v1482_v51 = vld [vmem:[%s1768_s11 + $0x1b0] ss:$8 sps:$4 sm:$0xff]  }
  0x68   : > { %1070 = vmatprep.subr.bf16.mxu1 %v1437_v21  ;;  %v1483_v52 = vld [vmem:[%s1768_s11 + $0xc4] ss:$8 sps:$4 sm:$0xff]   ;;  %v1487_v54 = vld [vmem:[%s1768_s11 + $0xc0] ss:$8 sps:$4 sm:$0xff]   ;;  %v1489_v56 = vld [vmem:[%s1768_s11 + $0xd4] ss:$8 sps:$4 sm:$0xff]  }
  0x69   : > { %v1485_v53 = vld [vmem:[%s1768_s11 + $0x1c4] ss:$8 sps:$4 sm:$0xff]   ;;  %v1488_v55 = vld [vmem:[%s1768_s11 + $0x1c0] ss:$8 sps:$4 sm:$0xff]   ;;  %v1491_v57 = vld [vmem:[%s1768_s11 + $0x1d4] ss:$8 sps:$4 sm:$0xff]  }
  0x6a   : > { %1030 = vmatpush1.bf16.msra.mxu0 %v1439_v22  ;;  %v1493_v58 = vld [vmem:[%s1768_s11 + $0xd0] ss:$8 sps:$4 sm:$0xff]   ;;  %v1495_v60 = vld [vmem:[%s1768_s11 + $0xe4] ss:$8 sps:$4 sm:$0xff]   ;;  %v1499_v62 = vld [vmem:[%s1768_s11 + $0xe0] ss:$8 sps:$4 sm:$0xff]  }
  0x6b   : > { %1071 = vmatpush1.bf16.msra.mxu1 %v1440_v23  ;;  %1031 = vmatprep.subr.bf16.mxu0 %v1441_v24  ;;  %v1494_v59 = vld [vmem:[%s1768_s11 + $0x1d0] ss:$8 sps:$4 sm:$0xff]   ;;  %v1497_v61 = vld [vmem:[%s1768_s11 + $0x1e4] ss:$8 sps:$4 sm:$0xff]   ;;  %v1500_v63 = vld [vmem:[%s1768_s11 + $0x1e0] ss:$8 sps:$4 sm:$0xff]  }
  0x6c   : > { %1072 = vmatprep.subr.bf16.mxu1 %v1443_v25  ;;  %v1501_v2 = vld [vmem:[%s1768_s11 + $0xf4] ss:$8 sps:$4 sm:$0xff]   ;;  %v1505_v4 = vld [vmem:[%s1768_s11 + $0xf0] ss:$8 sps:$4 sm:$0xff]   ;;  %s1879_s12 = smov (!%p589_p9, %s1293_s12), 15  ;;  %v1115_v9 = vshrl.u32 %v1114_v8, 7 }
  0x6d   : > { %v1503_v3 = vld [vmem:[%s1768_s11 + $0x1f4] ss:$8 sps:$4 sm:$0xff]   ;;  %v1506_v5 = vld [vmem:[%s1768_s11 + $0x1f0] ss:$8 sps:$4 sm:$0xff]   ;;  %s1295_s13 = sshll.u32 %s1879_s12, 2  ;;  %s591_s21 = scalar_lea.vmem %s1869_s2, %s1879_s12 }
  0x6e   : > { %1032 = vmatpush1.bf16.msra.mxu0 %v1445_v26  ;;  %s601_s25 = scalar_lea.vmem %s1870_s3, %s1295_s13  ;;  %v1116_v0 = vsub.s32 0, %v1115_v9  ;;  %v1112_v1 = vld [vmem:[%s591_s21] sm:$0x3]  ;;  %v1120_v10 = vsub.s32 1, %v1115_v9  ;;  %s611_s27 = scalar_lea.vmem %s1871_s4, %s1295_s13 }
  0x6f   : > { %1073 = vmatpush1.bf16.msra.mxu1 %v1446_v27  ;;  %1033 = vmatprep.subr.bf16.mxu0 %v1447_v28  ;;  %v1126_v11 = vld [vmem:[%s601_s25] sm:$0xff] }
  0x70   : > { %1074 = vmatprep.subr.bf16.mxu1 %v1449_v29  ;;  %v1117_v12 = vrot.slane %v1112_v1, %v1116_v0  ;;  %v1121_v15 = vrot.slane %v1112_v1, %v1120_v10  ;;  %v1127_v17 = vunpack.c.l.bf16 %v1126_v11  ;;  %v1128_v21 = vunpack.c.h.bf16 %v1126_v11 }
  0x72   : > { %1034 = vmatpush1.bf16.msra.mxu0 %v1451_v30 }
  0x73   : > { %1075 = vmatpush1.bf16.msra.mxu1 %v1452_v31  ;;  %1035 = vmatprep.subr.bf16.mxu0 %v1453_v32 }
  0x74   : > { %1076 = vmatprep.subr.bf16.mxu1 %v1455_v33 }
  0x76   : > { %1036 = vmatpush1.bf16.msra.mxu0 %v1457_v34 }
  0x77   : > { %1077 = vmatpush1.bf16.msra.mxu1 %v1458_v35  ;;  %1037 = vmatprep.subr.bf16.mxu0 %v1459_v36 }
  0x78   : > { %1078 = vmatprep.subr.bf16.mxu1 %v1461_v37 }
  0x7a   : > { %1038 = vmatpush1.bf16.msra.mxu0 %v1463_v38 }
  0x7b   : > { %1079 = vmatpush1.bf16.msra.mxu1 %v1464_v39  ;;  %1039 = vmatprep.subr.bf16.mxu0 %v1465_v40 }
  0x7c   : > { %1080 = vmatprep.subr.bf16.mxu1 %v1467_v41 }
  0x7e   : > { %1040 = vmatpush1.bf16.msra.mxu0 %v1469_v42 }
  0x7f   : > { %1081 = vmatpush1.bf16.msra.mxu1 %v1470_v43  ;;  %1041 = vmatprep.subr.bf16.mxu0 %v1471_v44 }
  0x80   : > { %1082 = vmatprep.subr.bf16.mxu1 %v1473_v45 }
  0x82   : > { %1042 = vmatpush1.bf16.msra.mxu0 %v1475_v46 }
  0x83   : > { %1083 = vmatpush1.bf16.msra.mxu1 %v1476_v47  ;;  %1043 = vmatprep.subr.bf16.mxu0 %v1477_v48 }
  0x84   : > { %1084 = vmatprep.subr.bf16.mxu1 %v1479_v49 }
  0x86   : > { %1044 = vmatpush1.bf16.msra.mxu0 %v1481_v50 }
  0x87   : > { %1085 = vmatpush1.bf16.msra.mxu1 %v1482_v51  ;;  %1045 = vmatprep.subr.bf16.mxu0 %v1483_v52 }
  0x88   : > { %1086 = vmatprep.subr.bf16.mxu1 %v1485_v53 }
  0x8a   : > { %1046 = vmatpush1.bf16.msra.mxu0 %v1487_v54 }
  0x8b   : > { %1087 = vmatpush1.bf16.msra.mxu1 %v1488_v55  ;;  %1047 = vmatprep.subr.bf16.mxu0 %v1489_v56 }
  0x8c   : > { %1088 = vmatprep.subr.bf16.mxu1 %v1491_v57 }
  0x8e   : > { %1048 = vmatpush1.bf16.msra.mxu0 %v1493_v58 }
  0x8f   : > { %1089 = vmatpush1.bf16.msra.mxu1 %v1494_v59  ;;  %1049 = vmatprep.subr.bf16.mxu0 %v1495_v60 }
  0x90   : > { %1090 = vmatprep.subr.bf16.mxu1 %v1497_v61 }
  0x92   : > { %1050 = vmatpush1.bf16.msra.mxu0 %v1499_v62 }
  0x93   : > { %1091 = vmatpush1.bf16.msra.mxu1 %v1500_v63  ;;  %1051 = vmatprep.subr.bf16.mxu0 %v1501_v2 }
  0x94   : > { %1092 = vmatprep.subr.bf16.mxu1 %v1503_v3 }
  0x96   : > { %1052 = vmatpush1.bf16.msra.mxu0 %v1505_v4 }
  0x97   : > { %1093 = vmatpush1.bf16.msra.mxu1 %v1506_v5 }
  0x99   : > { %1054 = vmatmul.mubr.bf16.vlgmr.msra.gmra.mrb[0].mxu0 %v1298_v6 }
  0x9a   : > { %1095 = vmatmul.mubr.bf16.vlgmr.msra.gmra.mrb[0].mxu1 %v1300_v7 }
 0x16c   : > { %v1055_v13 = vpop.f32.mrb[0].mxu0 }
 0x16d   : > { %v1096_v14 = vpop.f32.mrb[0].mxu1  ;;  %v1057_v18 = vpop.f32.mrb[1].mxu0 }
 0x16e   : > { %v1097_v16 = vadd.f32 %v1096_v14, %v1055_v13  ;;  %v1098_v19 = vpop.f32.mrb[1].mxu1  ;;  %v1059_v22 = vpop.f32.mrb[2].mxu0 }
 0x16f   : > { %v1099_v20 = vadd.f32 %v1098_v19, %v1057_v18  ;;  %v1100_v23 = vpop.f32.mrb[2].mxu1  ;;  %v1060_v25 = vpop.f32.mrb[3].mxu0 }
 0x170   : > { %v1124_v24 = vadd.f32 %v1117_v12, %v1097_v16  ;;  %v1101_v26 = vpop.f32.mrb[3].mxu1 }
 0x171   : > { %v1125_v27 = vadd.f32 %v1121_v15, %v1099_v20 }
 0x172   : > { %v1129_v28 = vadd.f32 %v1127_v17, %v1124_v24 }
 0x173   : > { %v1130_v29 = vadd.f32 %v1128_v21, %v1125_v27 }
 0x174   : > { %v1131_v30 = vmax.f32 %v1129_v28, 0.0 }
 0x175   : > { %v1132_v31 = vmax.f32 %v1130_v29, 0.0 }
 0x177   : > { %v1370_v32 = vpack.c.bf16 %v1132_v31, %v1131_v30 }
 0x179   : > { %1141 = vst [vmem:[%s611_s27] sm:$0xff] %v1370_v32 }
 0x17a PF: > { %s14_s19 = sadd.s32 1, %s1549_s19   ;;  %s1872_s15 = smov %s1537_s16 }
 0x17b   : > { %p11_p10 = scmp.ge.s32.totalorder %s14_s19, 10   ;;  %s1873_s16 = smov %s1611_s23 }
 0x17c   : > { %s1874_s17 = smov %s1545_s18  ;;  %s1875_s18 = smov %s1877_s20 }
 0x17d   :  { %13 = sbr.rel (!%p11_p10) target bundleno = 3 (0x3), region = 126 }

// kernel: _encoder_cnn_forward.102
= control target key start
LH: loop header
LB: loop body
LE: loop exit
PB: predicated region body
PF: predicated region fallthrough
CT: control target
= control target key end

     0   :  { %s1523_s12 = smov 0   ;;  %s1525_s13 = smov 0   ;;  %s1834_s0 = inlined_call_operand.vmem [shape: bf16[8,2048], index: 0, kind: input, shape index: {}]   ;;  %s1835_s1 = inlined_call_operand.vmem [shape: bf16[2048,512], index: 1, kind: input, shape index: {}]   ;;  %s1836_s2 = inlined_call_operand.vmem [shape: f32[1,512], index: 2, kind: input, shape index: {}]   ;;  %s1837_s3 = inlined_call_operand.vmem [shape: bf16[8,512], index: 3, kind: output, shape index: {}]  }
   0x1   :  { %s1527_s14 = smov 0   ;;  %s1529_s15 = smov 0  }
   0x2   :  { %s1531_s16 = smov 0   ;;  %s1533_s17 = smov 0  }
   0x3   :  { %s1535_s18 = smov 0  }
   0x4 LB: > { %s25_s19 = sadd.s32 1, %s1492_s16  ;;  %s28_s20 = sadd.s32 1, %s1496_s17  ;;  %s1500_s18 = sphi %s1535_s18, %s13_s18   ;;  %s1496_s17 = sphi %s1533_s17, %s1843_s17   ;;  %s1492_s16 = sphi %s1531_s16, %s1842_s16   ;;  %s1488_s15 = sphi %s1529_s15, %s1841_s15   ;;  %s1484_s14 = sphi %s1527_s14, %s1840_s14   ;;  %s1480_s13 = sphi %s1525_s13, %s1839_s13   ;;  %s1476_s12 = sphi %s1523_s12, %s1838_s12  }
   0x5   : > { %p26_p0 = scmp.ge.s32.totalorder %s25_s19, 4  ;;  %p76_p1 = scmp.ne.s32.totalorder %s1480_s13, %s1476_s12 }
   0x6   : > { %p77_p2 = scmp.eq.s32.totalorder %s1500_s18, 0  ;;  %s69_s24 = sadd.s32 1, %s1480_s13 }
   0x7   : > { %s1845_s19 = smov (%p26_p0, %s25_s19), 0  ;;  %s1847_s20 = smov (!%p26_p0, %s28_s20), %s1496_s17 }
   0x8   : > { %p78_p3 = por %p77_p2, %p76_p1  ;;  %p30_p4 = scmp.ge.s32.totalorder %s1847_s20, 2 }
   0x9   : > { %s64_s21 = ssub.s32 %s1492_s16, %s1845_s19  ;;  %p1201_p6 = scmp.ge.s32.totalorder %s1500_s18, 8 }
   0xa   : > { %s1849_s20 = smov (%p30_p4, %s1847_s20), 0 }
   0xb   : > { %s65_s22 = ssub.s32 %s1496_s17, %s1849_s20  ;;  %156 = sbr.rel (%p1201_p6) target bundleno = 57 (0x39), region = 16 }
   0xc   : > { %s66_s23 = sor.u32 %s65_s22, %s64_s21 }
   0xd   : > { %p67_p5 = scmp.eq.s32.totalorder %s66_s23, 0 }
   0xf   : > { %s1574_s25 = scalar_select %p67_p5, %s1480_s13, %s69_s24  }
  0x12   : > { %172 = sbr.rel (!%p78_p3) target bundleno = 57 (0x39), region = 24  ;;  %s174_s26 = sand.u32 (%p78_p3), 1, %s1480_s13  }
  0x13   : > { %s1204_s27 = sshll.u32 (%p78_p3), %s1496_s17, 1  ;;  %s1202_s28 = sshll.u32 (%p78_p3), %s174_s26, 9 }
  0x14   : > { %s1287_s29 = sshll.u32 (%p78_p3), %s1492_s16, 8  ;;  %s1588_s8 = scalar_lea.vmem (%p78_p3), [#allocation3], %s1202_s28 }
  0x15   : > { %s180_s30 = sadd.s32 (%p78_p3), %s1287_s29, %s1204_s27 }
  0x16   : > { %s1206_s4 = sshll.u32 (%p78_p3), %s180_s30, 2 }
  0x17   : > { %s1583_s7 = scalar_lea.vmem (%p78_p3), %s1835_s1, %s1206_s4 }
  0x18   : > { %v336_v0 = vld [vmem:[%s1583_s7] sm:$0xff] (%p78_p3)  ;;  %v338_v1 = vld [vmem:[%s1583_s7 + $0x10] sm:$0xff] (%p78_p3) }
  0x19   : > { %v340_v2 = vld [vmem:[%s1583_s7 + $0x20] sm:$0xff]  ;;  %337 = vst [vmem:[%s1588_s8] sm:$0xff] %v336_v0  ;;  %339 = vst [vmem:[%s1588_s8 + $0x8] sm:$0xff] %v338_v1  ;;  %v342_v3 = vld [vmem:[%s1583_s7 + $0x30] sm:$0xff] }
  0x1a   : > { %341 = vst [vmem:[%s1588_s8 + $0x10] sm:$0xff] %v340_v2  ;;  %v344_v4 = vld [vmem:[%s1583_s7 + $0x40] sm:$0xff]  ;;  %v346_v5 = vld [vmem:[%s1583_s7 + $0x50] sm:$0xff]  ;;  %343 = vst [vmem:[%s1588_s8 + $0x18] sm:$0xff] %v342_v3 }
  0x1b   : > { %345 = vst [vmem:[%s1588_s8 + $0x20] sm:$0xff] %v344_v4  ;;  %347 = vst [vmem:[%s1588_s8 + $0x28] sm:$0xff] %v346_v5  ;;  %v348_v6 = vld [vmem:[%s1583_s7 + $0x60] sm:$0xff]  ;;  %v350_v7 = vld [vmem:[%s1583_s7 + $0x70] sm:$0xff] }
  0x1c   : > { %v352_v8 = vld [vmem:[%s1583_s7 + $0x80] sm:$0xff]  ;;  %349 = vst [vmem:[%s1588_s8 + $0x30] sm:$0xff] %v348_v6  ;;  %351 = vst [vmem:[%s1588_s8 + $0x38] sm:$0xff] %v350_v7  ;;  %v354_v9 = vld [vmem:[%s1583_s7 + $0x90] sm:$0xff] }
  0x1d   : > { %353 = vst [vmem:[%s1588_s8 + $0x40] sm:$0xff] %v352_v8  ;;  %v356_v10 = vld [vmem:[%s1583_s7 + $0xa0] sm:$0xff]  ;;  %v358_v11 = vld [vmem:[%s1583_s7 + $0xb0] sm:$0xff]  ;;  %355 = vst [vmem:[%s1588_s8 + $0x48] sm:$0xff] %v354_v9 }
  0x1e   : > { %357 = vst [vmem:[%s1588_s8 + $0x50] sm:$0xff] %v356_v10  ;;  %359 = vst [vmem:[%s1588_s8 + $0x58] sm:$0xff] %v358_v11  ;;  %v360_v12 = vld [vmem:[%s1583_s7 + $0xc0] sm:$0xff]  ;;  %v362_v13 = vld [vmem:[%s1583_s7 + $0xd0] sm:$0xff] }
  0x1f   : > { %v364_v14 = vld [vmem:[%s1583_s7 + $0xe0] sm:$0xff]  ;;  %361 = vst [vmem:[%s1588_s8 + $0x60] sm:$0xff] %v360_v12  ;;  %363 = vst [vmem:[%s1588_s8 + $0x68] sm:$0xff] %v362_v13  ;;  %v366_v15 = vld [vmem:[%s1583_s7 + $0xf0] sm:$0xff] }
  0x20   : > { %365 = vst [vmem:[%s1588_s8 + $0x70] sm:$0xff] %v364_v14  ;;  %v368_v16 = vld [vmem:[%s1583_s7 + $0x100] sm:$0xff]  ;;  %v370_v17 = vld [vmem:[%s1583_s7 + $0x110] sm:$0xff]  ;;  %367 = vst [vmem:[%s1588_s8 + $0x78] sm:$0xff] %v366_v15 }
  0x21   : > { %369 = vst [vmem:[%s1588_s8 + $0x80] sm:$0xff] %v368_v16  ;;  %371 = vst [vmem:[%s1588_s8 + $0x88] sm:$0xff] %v370_v17  ;;  %v372_v18 = vld [vmem:[%s1583_s7 + $0x120] sm:$0xff]  ;;  %v374_v19 = vld [vmem:[%s1583_s7 + $0x130] sm:$0xff] }
  0x22   : > { %v376_v20 = vld [vmem:[%s1583_s7 + $0x140] sm:$0xff]  ;;  %373 = vst [vmem:[%s1588_s8 + $0x90] sm:$0xff] %v372_v18  ;;  %375 = vst [vmem:[%s1588_s8 + $0x98] sm:$0xff] %v374_v19  ;;  %v378_v21 = vld [vmem:[%s1583_s7 + $0x150] sm:$0xff] }
  0x23   : > { %377 = vst [vmem:[%s1588_s8 + $0xa0] sm:$0xff] %v376_v20  ;;  %v380_v22 = vld [vmem:[%s1583_s7 + $0x160] sm:$0xff]  ;;  %v382_v23 = vld [vmem:[%s1583_s7 + $0x170] sm:$0xff]  ;;  %379 = vst [vmem:[%s1588_s8 + $0xa8] sm:$0xff] %v378_v21 }
  0x24   : > { %381 = vst [vmem:[%s1588_s8 + $0xb0] sm:$0xff] %v380_v22  ;;  %383 = vst [vmem:[%s1588_s8 + $0xb8] sm:$0xff] %v382_v23  ;;  %v384_v24 = vld [vmem:[%s1583_s7 + $0x180] sm:$0xff]  ;;  %v386_v25 = vld [vmem:[%s1583_s7 + $0x190] sm:$0xff] }
  0x25   : > { %v388_v26 = vld [vmem:[%s1583_s7 + $0x1a0] sm:$0xff]  ;;  %385 = vst [vmem:[%s1588_s8 + $0xc0] sm:$0xff] %v384_v24  ;;  %387 = vst [vmem:[%s1588_s8 + $0xc8] sm:$0xff] %v386_v25  ;;  %v390_v27 = vld [vmem:[%s1583_s7 + $0x1b0] sm:$0xff] }
  0x26   : > { %389 = vst [vmem:[%s1588_s8 + $0xd0] sm:$0xff] %v388_v26  ;;  %v392_v28 = vld [vmem:[%s1583_s7 + $0x1c0] sm:$0xff]  ;;  %v394_v29 = vld [vmem:[%s1583_s7 + $0x1d0] sm:$0xff]  ;;  %391 = vst [vmem:[%s1588_s8 + $0xd8] sm:$0xff] %v390_v27 }
  0x27   : > { %393 = vst [vmem:[%s1588_s8 + $0xe0] sm:$0xff] %v392_v28  ;;  %395 = vst [vmem:[%s1588_s8 + $0xe8] sm:$0xff] %v394_v29  ;;  %v396_v30 = vld [vmem:[%s1583_s7 + $0x1e0] sm:$0xff]  ;;  %v398_v31 = vld [vmem:[%s1583_s7 + $0x1f0] sm:$0xff] }
  0x28   : > { %v400_v32 = vld [vmem:[%s1583_s7 + $0x200] sm:$0xff]  ;;  %397 = vst [vmem:[%s1588_s8 + $0xf0] sm:$0xff] %v396_v30  ;;  %399 = vst [vmem:[%s1588_s8 + $0xf8] sm:$0xff] %v398_v31  ;;  %v402_v33 = vld [vmem:[%s1583_s7 + $0x210] sm:$0xff] }
  0x29   : > { %401 = vst [vmem:[%s1588_s8 + $0x100] sm:$0xff] %v400_v32  ;;  %v404_v34 = vld [vmem:[%s1583_s7 + $0x220] sm:$0xff]  ;;  %v406_v35 = vld [vmem:[%s1583_s7 + $0x230] sm:$0xff]  ;;  %403 = vst [vmem:[%s1588_s8 + $0x108] sm:$0xff] %v402_v33 }
  0x2a   : > { %405 = vst [vmem:[%s1588_s8 + $0x110] sm:$0xff] %v404_v34  ;;  %407 = vst [vmem:[%s1588_s8 + $0x118] sm:$0xff] %v406_v35  ;;  %v408_v36 = vld [vmem:[%s1583_s7 + $0x240] sm:$0xff]  ;;  %v410_v37 = vld [vmem:[%s1583_s7 + $0x250] sm:$0xff] }
  0x2b   : > { %v412_v38 = vld [vmem:[%s1583_s7 + $0x260] sm:$0xff]  ;;  %409 = vst [vmem:[%s1588_s8 + $0x120] sm:$0xff] %v408_v36  ;;  %411 = vst [vmem:[%s1588_s8 + $0x128] sm:$0xff] %v410_v37  ;;  %v414_v39 = vld [vmem:[%s1583_s7 + $0x270] sm:$0xff] }
  0x2c   : > { %413 = vst [vmem:[%s1588_s8 + $0x130] sm:$0xff] %v412_v38  ;;  %v416_v40 = vld [vmem:[%s1583_s7 + $0x280] sm:$0xff]  ;;  %v418_v41 = vld [vmem:[%s1583_s7 + $0x290] sm:$0xff]  ;;  %415 = vst [vmem:[%s1588_s8 + $0x138] sm:$0xff] %v414_v39 }
  0x2d   : > { %417 = vst [vmem:[%s1588_s8 + $0x140] sm:$0xff] %v416_v40  ;;  %419 = vst [vmem:[%s1588_s8 + $0x148] sm:$0xff] %v418_v41  ;;  %v420_v42 = vld [vmem:[%s1583_s7 + $0x2a0] sm:$0xff]  ;;  %v422_v43 = vld [vmem:[%s1583_s7 + $0x2b0] sm:$0xff] }
  0x2e   : > { %v424_v44 = vld [vmem:[%s1583_s7 + $0x2c0] sm:$0xff]  ;;  %421 = vst [vmem:[%s1588_s8 + $0x150] sm:$0xff] %v420_v42  ;;  %423 = vst [vmem:[%s1588_s8 + $0x158] sm:$0xff] %v422_v43  ;;  %v426_v45 = vld [vmem:[%s1583_s7 + $0x2d0] sm:$0xff] }
  0x2f   : > { %425 = vst [vmem:[%s1588_s8 + $0x160] sm:$0xff] %v424_v44  ;;  %v428_v46 = vld [vmem:[%s1583_s7 + $0x2e0] sm:$0xff]  ;;  %v430_v47 = vld [vmem:[%s1583_s7 + $0x2f0] sm:$0xff]  ;;  %427 = vst [vmem:[%s1588_s8 + $0x168] sm:$0xff] %v426_v45 }
  0x30   : > { %429 = vst [vmem:[%s1588_s8 + $0x170] sm:$0xff] %v428_v46  ;;  %431 = vst [vmem:[%s1588_s8 + $0x178] sm:$0xff] %v430_v47  ;;  %v432_v48 = vld [vmem:[%s1583_s7 + $0x300] sm:$0xff]  ;;  %v434_v49 = vld [vmem:[%s1583_s7 + $0x310] sm:$0xff] }
  0x31   : > { %v436_v50 = vld [vmem:[%s1583_s7 + $0x320] sm:$0xff]  ;;  %433 = vst [vmem:[%s1588_s8 + $0x180] sm:$0xff] %v432_v48  ;;  %435 = vst [vmem:[%s1588_s8 + $0x188] sm:$0xff] %v434_v49  ;;  %v438_v51 = vld [vmem:[%s1583_s7 + $0x330] sm:$0xff] }
  0x32   : > { %437 = vst [vmem:[%s1588_s8 + $0x190] sm:$0xff] %v436_v50  ;;  %v440_v52 = vld [vmem:[%s1583_s7 + $0x340] sm:$0xff]  ;;  %v442_v53 = vld [vmem:[%s1583_s7 + $0x350] sm:$0xff]  ;;  %439 = vst [vmem:[%s1588_s8 + $0x198] sm:$0xff] %v438_v51 }
  0x33   : > { %441 = vst [vmem:[%s1588_s8 + $0x1a0] sm:$0xff] %v440_v52  ;;  %443 = vst [vmem:[%s1588_s8 + $0x1a8] sm:$0xff] %v442_v53  ;;  %v444_v54 = vld [vmem:[%s1583_s7 + $0x360] sm:$0xff]  ;;  %v446_v55 = vld [vmem:[%s1583_s7 + $0x370] sm:$0xff] }
  0x34   : > { %v448_v56 = vld [vmem:[%s1583_s7 + $0x380] sm:$0xff]  ;;  %445 = vst [vmem:[%s1588_s8 + $0x1b0] sm:$0xff] %v444_v54  ;;  %447 = vst [vmem:[%s1588_s8 + $0x1b8] sm:$0xff] %v446_v55  ;;  %v450_v57 = vld [vmem:[%s1583_s7 + $0x390] sm:$0xff] }
  0x35   : > { %449 = vst [vmem:[%s1588_s8 + $0x1c0] sm:$0xff] %v448_v56  ;;  %v452_v58 = vld [vmem:[%s1583_s7 + $0x3a0] sm:$0xff]  ;;  %v454_v59 = vld [vmem:[%s1583_s7 + $0x3b0] sm:$0xff]  ;;  %451 = vst [vmem:[%s1588_s8 + $0x1c8] sm:$0xff] %v450_v57 }
  0x36   : > { %453 = vst [vmem:[%s1588_s8 + $0x1d0] sm:$0xff] %v452_v58  ;;  %455 = vst [vmem:[%s1588_s8 + $0x1d8] sm:$0xff] %v454_v59  ;;  %v456_v60 = vld [vmem:[%s1583_s7 + $0x3c0] sm:$0xff]  ;;  %v458_v61 = vld [vmem:[%s1583_s7 + $0x3d0] sm:$0xff] }
  0x37   : > { %v460_v62 = vld [vmem:[%s1583_s7 + $0x3e0] sm:$0xff]  ;;  %457 = vst [vmem:[%s1588_s8 + $0x1e0] sm:$0xff] %v456_v60  ;;  %459 = vst [vmem:[%s1588_s8 + $0x1e8] sm:$0xff] %v458_v61  ;;  %v462_v63 = vld [vmem:[%s1583_s7 + $0x3f0] sm:$0xff] }
  0x38   : > { %461 = vst [vmem:[%s1588_s8 + $0x1f0] sm:$0xff] %v460_v62  ;;  %463 = vst [vmem:[%s1588_s8 + $0x1f8] sm:$0xff] %v462_v63 }
  0x39 PF: > { %p1207_p7 = scmp.ge.s32.totalorder %s1500_s18, 1  ;;  %p476_p8 = scmp.lt.s32.totalorder %s1500_s18, 9 }
  0x3b   : > { %p477_p9 = pnand %p1207_p7, %p476_p8 }
  0x3c   : > { %s483_s9 = sand.u32 (!%p477_p9), 1, %s1476_s12   ;;  %s1209_s10 = sshll.u32 (!%p477_p9), %s1484_s14, 2 }
  0x3d   : > { %480 = sbr.rel (%p477_p9) target bundleno = 376 (0x178), region = 66  ;;  %s1208_s11 = sshll.u32 (!%p477_p9), %s483_s9, 9 }
  0x3e   : > { %p526_p10 = scmp.lt.s32.totalorder (!%p477_p9), %s1209_s10, 15  ;;  %s1211_s21 = sshll.u32 (!%p477_p9), %s1488_s15, 1 }
  0x3f   : > { %p536_p11 = scmp.lt.s32.totalorder (!%p477_p9), %s1211_s21, 3  ;;  %s1737_s5 = scalar_lea.vmem (!%p477_p9), [#allocation3], %s1208_s11 }
  0x40   : > { %p1214_p12 = scmp.ne.s32.totalorder (!%p477_p9), %s1484_s14, 0 }
  0x44   : > { %s1851_s10 = smov (!%p526_p10, %s1209_s10), 15  ;;  %s1853_s21 = smov (!%p536_p11, %s1211_s21), 3 }
  0x45   : > { %s1210_s22 = sshll.u32 %s1851_s10, 2  ;;  %s538_s12 = scalar_lea.vmem %s1836_s2, %s1853_s21  ;;  %v1502_v0 = vmov (!%p1214_p12), 0.0  }
  0x46   : > { %s1723_s26 = scalar_lea.vmem %s1834_s0, %s1210_s22  ;;  %s1213_s29 = sshll.u32 %s1853_s21, 2  ;;  %554 = vst [vmem:[#allocation2] sm:$0xff] (!%p1214_p12), %v1502_v0  ;;  %555 = vst [vmem:[#allocation2 + $0x8] sm:$0xff] (!%p1214_p12), %v1502_v0 }
  0x47   : > { %s1735_s15 = scalar_lea.vmem %s1837_s3, %s1213_s29  ;;  %553 = sbr.rel (%p1214_p12) target bundleno = 78 (0x4e), region = 74 }
  0x4e PF: > { %v1346_v1 = vld [vmem:[%s1737_s5 + $0x4] ss:$8 sps:$4 sm:$0xff]   ;;  %v1350_v3 = vld [vmem:[%s1737_s5] ss:$8 sps:$4 sm:$0xff]   ;;  %v1352_v5 = vld [vmem:[%s1737_s5 + $0x14] ss:$8 sps:$4 sm:$0xff]  }
  0x4f   : > { %v1348_v2 = vld [vmem:[%s1737_s5 + $0x104] ss:$8 sps:$4 sm:$0xff]   ;;  %958 = vmatprep.subr.bf16.mxu0 %v1346_v1  ;;  %v1351_v4 = vld [vmem:[%s1737_s5 + $0x100] ss:$8 sps:$4 sm:$0xff]   ;;  %v1354_v6 = vld [vmem:[%s1737_s5 + $0x114] ss:$8 sps:$4 sm:$0xff]  }
  0x50   : > { %999 = vmatprep.subr.bf16.mxu1 %v1348_v2  ;;  %959 = vmatpush1.bf16.msra.mxu0 %v1350_v3  ;;  %v1356_v7 = vld [vmem:[%s1737_s5 + $0x10] ss:$8 sps:$4 sm:$0xff]   ;;  %v1358_v9 = vld [vmem:[%s1737_s5 + $0x24] ss:$8 sps:$4 sm:$0xff]   ;;  %v1362_v11 = vld [vmem:[%s1737_s5 + $0x20] ss:$8 sps:$4 sm:$0xff]  }
  0x51   : > { %1000 = vmatpush1.bf16.msra.mxu1 %v1351_v4  ;;  %960 = vmatprep.subr.bf16.mxu0 %v1352_v5  ;;  %v1357_v8 = vld [vmem:[%s1737_s5 + $0x110] ss:$8 sps:$4 sm:$0xff]   ;;  %v1360_v10 = vld [vmem:[%s1737_s5 + $0x124] ss:$8 sps:$4 sm:$0xff]   ;;  %v1363_v12 = vld [vmem:[%s1737_s5 + $0x120] ss:$8 sps:$4 sm:$0xff]  }
  0x52   : > { %1001 = vmatprep.subr.bf16.mxu1 %v1354_v6  ;;  %v1364_v13 = vld [vmem:[%s1737_s5 + $0x34] ss:$8 sps:$4 sm:$0xff]   ;;  %v1368_v15 = vld [vmem:[%s1737_s5 + $0x30] ss:$8 sps:$4 sm:$0xff]   ;;  %v1370_v17 = vld [vmem:[%s1737_s5 + $0x44] ss:$8 sps:$4 sm:$0xff]  }
  0x53   : > { %v1366_v14 = vld [vmem:[%s1737_s5 + $0x134] ss:$8 sps:$4 sm:$0xff]   ;;  %v1369_v16 = vld [vmem:[%s1737_s5 + $0x130] ss:$8 sps:$4 sm:$0xff]   ;;  %v1372_v18 = vld [vmem:[%s1737_s5 + $0x144] ss:$8 sps:$4 sm:$0xff]  }
  0x54   : > { %961 = vmatpush1.bf16.msra.mxu0 %v1356_v7  ;;  %v1374_v19 = vld [vmem:[%s1737_s5 + $0x40] ss:$8 sps:$4 sm:$0xff]   ;;  %v1376_v21 = vld [vmem:[%s1737_s5 + $0x54] ss:$8 sps:$4 sm:$0xff]   ;;  %v1380_v23 = vld [vmem:[%s1737_s5 + $0x50] ss:$8 sps:$4 sm:$0xff]  }
  0x55   : > { %1002 = vmatpush1.bf16.msra.mxu1 %v1357_v8  ;;  %962 = vmatprep.subr.bf16.mxu0 %v1358_v9  ;;  %v1375_v20 = vld [vmem:[%s1737_s5 + $0x140] ss:$8 sps:$4 sm:$0xff]   ;;  %v1378_v22 = vld [vmem:[%s1737_s5 + $0x154] ss:$8 sps:$4 sm:$0xff]   ;;  %v1381_v24 = vld [vmem:[%s1737_s5 + $0x150] ss:$8 sps:$4 sm:$0xff]  }
  0x56   : > { %1003 = vmatprep.subr.bf16.mxu1 %v1360_v10  ;;  %v1382_v25 = vld [vmem:[%s1737_s5 + $0x64] ss:$8 sps:$4 sm:$0xff]   ;;  %v1386_v27 = vld [vmem:[%s1737_s5 + $0x60] ss:$8 sps:$4 sm:$0xff]   ;;  %v1388_v29 = vld [vmem:[%s1737_s5 + $0x74] ss:$8 sps:$4 sm:$0xff]  }
  0x57   : > { %v1384_v26 = vld [vmem:[%s1737_s5 + $0x164] ss:$8 sps:$4 sm:$0xff]   ;;  %v1387_v28 = vld [vmem:[%s1737_s5 + $0x160] ss:$8 sps:$4 sm:$0xff]   ;;  %v1390_v30 = vld [vmem:[%s1737_s5 + $0x174] ss:$8 sps:$4 sm:$0xff]  }
  0x58   : > { %963 = vmatpush1.bf16.msra.mxu0 %v1362_v11  ;;  %v1392_v31 = vld [vmem:[%s1737_s5 + $0x70] ss:$8 sps:$4 sm:$0xff]   ;;  %v1394_v33 = vld [vmem:[%s1737_s5 + $0x84] ss:$8 sps:$4 sm:$0xff]   ;;  %v1398_v35 = vld [vmem:[%s1737_s5 + $0x80] ss:$8 sps:$4 sm:$0xff]  }
  0x59   : > { %1004 = vmatpush1.bf16.msra.mxu1 %v1363_v12  ;;  %964 = vmatprep.subr.bf16.mxu0 %v1364_v13  ;;  %v1393_v32 = vld [vmem:[%s1737_s5 + $0x170] ss:$8 sps:$4 sm:$0xff]   ;;  %v1396_v34 = vld [vmem:[%s1737_s5 + $0x184] ss:$8 sps:$4 sm:$0xff]   ;;  %v1399_v36 = vld [vmem:[%s1737_s5 + $0x180] ss:$8 sps:$4 sm:$0xff]  }
  0x5a   : > { %1005 = vmatprep.subr.bf16.mxu1 %v1366_v14  ;;  %v1400_v37 = vld [vmem:[%s1737_s5 + $0x94] ss:$8 sps:$4 sm:$0xff]   ;;  %v1404_v39 = vld [vmem:[%s1737_s5 + $0x90] ss:$8 sps:$4 sm:$0xff]   ;;  %v1406_v41 = vld [vmem:[%s1737_s5 + $0xa4] ss:$8 sps:$4 sm:$0xff]  }
  0x5b   : > { %v1402_v38 = vld [vmem:[%s1737_s5 + $0x194] ss:$8 sps:$4 sm:$0xff]   ;;  %v1405_v40 = vld [vmem:[%s1737_s5 + $0x190] ss:$8 sps:$4 sm:$0xff]   ;;  %v1408_v42 = vld [vmem:[%s1737_s5 + $0x1a4] ss:$8 sps:$4 sm:$0xff]  }
  0x5c   : > { %965 = vmatpush1.bf16.msra.mxu0 %v1368_v15  ;;  %v1410_v43 = vld [vmem:[%s1737_s5 + $0xa0] ss:$8 sps:$4 sm:$0xff]   ;;  %v1412_v45 = vld [vmem:[%s1737_s5 + $0xb4] ss:$8 sps:$4 sm:$0xff]   ;;  %v1416_v50 = vld [vmem:[%s1737_s5 + $0xb0] ss:$8 sps:$4 sm:$0xff]  }
  0x5d   : > { %1006 = vmatpush1.bf16.msra.mxu1 %v1369_v16  ;;  %966 = vmatprep.subr.bf16.mxu0 %v1370_v17  ;;  %v1411_v44 = vld [vmem:[%s1737_s5 + $0x1a0] ss:$8 sps:$4 sm:$0xff]   ;;  %v1414_v46 = vld [vmem:[%s1737_s5 + $0x1b4] ss:$8 sps:$4 sm:$0xff]   ;;  %v1417_v51 = vld [vmem:[%s1737_s5 + $0x1b0] ss:$8 sps:$4 sm:$0xff]  }
  0x5e   : > { %1007 = vmatprep.subr.bf16.mxu1 %v1372_v18  ;;  %v558_v47 = vld [vmem:[%s1723_s26] sm:$0xff]  ;;  %v559_v49 = vld [vmem:[%s1723_s26 + $0x8] sm:$0xff]  ;;  %v1418_v53 = vld [vmem:[%s1737_s5 + $0xc4] ss:$8 sps:$4 sm:$0xff]   ;;  %p1283_p13 = scmp.ne.s32.totalorder %s1484_s14, 3 }
  0x5f   : > { %v1216_v48 = vcombine.high %v558_v47, %v558_v47  ;;  %v1218_v52 = vcombine.high %v559_v49, %v559_v49  ;;  %v1420_v54 = vld [vmem:[%s1737_s5 + $0x1c4] ss:$8 sps:$4 sm:$0xff]   ;;  %v1422_v55 = vld [vmem:[%s1737_s5 + $0xc0] ss:$8 sps:$4 sm:$0xff]   ;;  %v1424_v57 = vld [vmem:[%s1737_s5 + $0xd4] ss:$8 sps:$4 sm:$0xff]   ;;  %v1215_v5 = vcombine.low %v558_v47, %v558_v47  ;;  %v1217_v6 = vcombine.low %v559_v49, %v559_v49 }
  0x60   : > { %967 = vmatpush1.bf16.msra.mxu0 %v1374_v19  ;;  %v1423_v56 = vld [vmem:[%s1737_s5 + $0x1c0] ss:$8 sps:$4 sm:$0xff]   ;;  %v1426_v58 = vld [vmem:[%s1737_s5 + $0x1d4] ss:$8 sps:$4 sm:$0xff]   ;;  %v1428_v59 = vld [vmem:[%s1737_s5 + $0xd0] ss:$8 sps:$4 sm:$0xff]  }
  0x61   : > { %1008 = vmatpush1.bf16.msra.mxu1 %v1375_v20  ;;  %968 = vmatprep.subr.bf16.mxu0 %v1376_v21  ;;  %v1429_v60 = vld [vmem:[%s1737_s5 + $0x1d0] ss:$8 sps:$4 sm:$0xff]   ;;  %v1430_v61 = vld [vmem:[%s1737_s5 + $0xe4] ss:$8 sps:$4 sm:$0xff]   ;;  %v1434_v63 = vld [vmem:[%s1737_s5 + $0xe0] ss:$8 sps:$4 sm:$0xff]   ;;  %v1052_v21 = vlaneseq (!%p1283_p13) }
  0x62   : > { %1009 = vmatprep.subr.bf16.mxu1 %v1378_v22  ;;  %990 = vmatprep.mubr.bf16.mxu0 %v1216_v48  ;;  %v1432_v62 = vld [vmem:[%s1737_s5 + $0x1e4] ss:$8 sps:$4 sm:$0xff]   ;;  %v1435_v0 = vld [vmem:[%s1737_s5 + $0x1e0] ss:$8 sps:$4 sm:$0xff]   ;;  %v1436_v1 = vld [vmem:[%s1737_s5 + $0xf4] ss:$8 sps:$4 sm:$0xff]  }
  0x63   : > { %1031 = vmatprep.mubr.bf16.mxu1 %v1218_v52  ;;  %v1438_v2 = vld [vmem:[%s1737_s5 + $0x1f4] ss:$8 sps:$4 sm:$0xff]   ;;  %v1440_v3 = vld [vmem:[%s1737_s5 + $0xf0] ss:$8 sps:$4 sm:$0xff]   ;;  %v1053_v22 = vshrl.u32 (!%p1283_p13), %v1052_v21, 7 }
  0x64   : > { %969 = vmatpush1.bf16.msra.mxu0 %v1380_v23  ;;  %v1441_v4 = vld [vmem:[%s1737_s5 + $0x1f0] ss:$8 sps:$4 sm:$0xff]  }
  0x65   : > { %1010 = vmatpush1.bf16.msra.mxu1 %v1381_v24  ;;  %970 = vmatprep.subr.bf16.mxu0 %v1382_v25  ;;  %v556_v8 = vld [vmem:[#allocation2] sm:$0xff]  ;;  %v557_v12 = vld [vmem:[#allocation2 + $0x8] sm:$0xff]  ;;  %v1054_v24 = vsub.s32 (!%p1283_p13), 0, %v1053_v22  ;;  %v1058_v25 = vsub.s32 (!%p1283_p13), 1, %v1053_v22 }
  0x66   : > { %1011 = vmatprep.subr.bf16.mxu1 %v1384_v26  ;;  %v1050_v23 = vld [vmem:[%s538_s12] sm:$0x3] (!%p1283_p13) }
  0x68   : > { %971 = vmatpush1.bf16.msra.mxu0 %v1386_v27 }
  0x69   : > { %1012 = vmatpush1.bf16.msra.mxu1 %v1387_v28  ;;  %972 = vmatprep.subr.bf16.mxu0 %v1388_v29  ;;  %v1055_v28 = vrot.slane (!%p1283_p13), %v1050_v23, %v1054_v24  ;;  %v1059_v29 = vrot.slane (!%p1283_p13), %v1050_v23, %v1058_v25 }
  0x6a   : > { %1013 = vmatprep.subr.bf16.mxu1 %v1390_v30 }
  0x6c   : > { %973 = vmatpush1.bf16.msra.mxu0 %v1392_v31 }
  0x6d   : > { %1014 = vmatpush1.bf16.msra.mxu1 %v1393_v32  ;;  %974 = vmatprep.subr.bf16.mxu0 %v1394_v33 }
  0x6e   : > { %1015 = vmatprep.subr.bf16.mxu1 %v1396_v34 }
  0x70   : > { %975 = vmatpush1.bf16.msra.mxu0 %v1398_v35 }
  0x71   : > { %1016 = vmatpush1.bf16.msra.mxu1 %v1399_v36  ;;  %976 = vmatprep.subr.bf16.mxu0 %v1400_v37 }
  0x72   : > { %1017 = vmatprep.subr.bf16.mxu1 %v1402_v38 }
  0x74   : > { %977 = vmatpush1.bf16.msra.mxu0 %v1404_v39 }
  0x75   : > { %1018 = vmatpush1.bf16.msra.mxu1 %v1405_v40  ;;  %978 = vmatprep.subr.bf16.mxu0 %v1406_v41 }
  0x76   : > { %1019 = vmatprep.subr.bf16.mxu1 %v1408_v42 }
  0x78   : > { %979 = vmatpush1.bf16.msra.mxu0 %v1410_v43 }
  0x79   : > { %1020 = vmatpush1.bf16.msra.mxu1 %v1411_v44  ;;  %980 = vmatprep.subr.bf16.mxu0 %v1412_v45 }
  0x7a   : > { %1021 = vmatprep.subr.bf16.mxu1 %v1414_v46 }
  0x7c   : > { %981 = vmatpush1.bf16.msra.mxu0 %v1416_v50 }
  0x7d   : > { %1022 = vmatpush1.bf16.msra.mxu1 %v1417_v51  ;;  %982 = vmatprep.subr.bf16.mxu0 %v1418_v53 }
  0x7e   : > { %1023 = vmatprep.subr.bf16.mxu1 %v1420_v54 }
  0x80   : > { %983 = vmatpush1.bf16.msra.mxu0 %v1422_v55 }
  0x81   : > { %1024 = vmatpush1.bf16.msra.mxu1 %v1423_v56  ;;  %984 = vmatprep.subr.bf16.mxu0 %v1424_v57 }
  0x82   : > { %1025 = vmatprep.subr.bf16.mxu1 %v1426_v58 }
  0x84   : > { %985 = vmatpush1.bf16.msra.mxu0 %v1428_v59 }
  0x85   : > { %1026 = vmatpush1.bf16.msra.mxu1 %v1429_v60  ;;  %986 = vmatprep.subr.bf16.mxu0 %v1430_v61 }
  0x86   : > { %1027 = vmatprep.subr.bf16.mxu1 %v1432_v62 }
  0x88   : > { %987 = vmatpush1.bf16.msra.mxu0 %v1434_v63 }
  0x89   : > { %1028 = vmatpush1.bf16.msra.mxu1 %v1435_v0  ;;  %988 = vmatprep.subr.bf16.mxu0 %v1436_v1 }
  0x8a   : > { %1029 = vmatprep.subr.bf16.mxu1 %v1438_v2 }
  0x8c   : > { %989 = vmatpush1.bf16.msra.mxu0 %v1440_v3 }
  0x8d   : > { %1030 = vmatpush1.bf16.msra.mxu1 %v1441_v4 }
  0x8f   : > { %991 = vmatmul.mubr.bf16.vlgmr.msra.gmra.mrb[0].mxu0 %v1215_v5 }
  0x90   : > { %1032 = vmatmul.mubr.bf16.vlgmr.msra.gmra.mrb[0].mxu1 %v1217_v6 }
 0x162   : > { %v992_v7 = vpop.f32.mrb[0].mxu0 }
 0x163   : > { %v1033_v9 = vpop.f32.mrb[0].mxu1  ;;  %v994_v11 = vpop.f32.mrb[1].mxu0  ;;  %1047 = sbr.rel (%p1283_p13) target bundleno = 376 (0x178), region = 78 }
 0x164   : > { %v1034_v10 = vadd.f32 %v1033_v9, %v992_v7  ;;  %v1035_v13 = vpop.f32.mrb[1].mxu1  ;;  %v996_v15 = vpop.f32.mrb[2].mxu0 }
 0x165   : > { %v1036_v14 = vadd.f32 %v1035_v13, %v994_v11  ;;  %v1037_v16 = vpop.f32.mrb[2].mxu1  ;;  %v997_v18 = vpop.f32.mrb[3].mxu0 }
 0x166   : > { %v1040_v17 = vadd.f32 %v1034_v10, %v556_v8  ;;  %v1038_v19 = vpop.f32.mrb[3].mxu1 }
 0x167   : > { %v1041_v20 = vadd.f32 %v1036_v14, %v557_v12 }
 0x168   : > { %1042 = vst [vmem:[#allocation2] sm:$0xff] %v1040_v17 }
 0x169   : > { %1043 = vst [vmem:[#allocation2 + $0x8] sm:$0xff] %v1041_v20 }
 0x16f   : > { %v1048_v26 = vld [vmem:[#allocation2] sm:$0xff] }
 0x170   : > { %v1049_v27 = vld [vmem:[#allocation2 + $0x8] sm:$0xff]  ;;  %v1062_v30 = vadd.f32 %v1055_v28, %v1048_v26 }
 0x171   : > { %v1063_v31 = vadd.f32 %v1059_v29, %v1049_v27 }
 0x172   : > { %v1064_v32 = vmax.f32 %v1062_v30, 0.0 }
 0x173   : > { %v1065_v33 = vmax.f32 %v1063_v31, 0.0 }
 0x175   : > { %v1288_v34 = vpack.c.bf16 %v1065_v33, %v1064_v32 }
 0x177   : > { %1074 = vst [vmem:[%s1735_s15] sm:$0xff] %v1288_v34 }
 0x178 PF: > { %s13_s18 = sadd.s32 1, %s1500_s18   ;;  %s1838_s12 = smov %s1480_s13 }
 0x179   : > { %p10_p0 = scmp.ge.s32.totalorder %s13_s18, 10   ;;  %s1839_s13 = smov %s1574_s25 }
 0x17a   : > { %s1840_s14 = smov %s1492_s16  ;;  %s1841_s15 = smov %s1496_s17 }
 0x17b   : > { %s1842_s16 = smov %s1845_s19  ;;  %s1843_s17 = smov %s1849_s20 }
 0x17c   :  { %12 = sbr.rel (!%p10_p0) target bundleno = 4 (0x4), region = 119 }

// kernel: _encoder_cnn_forward.108
= control target key start
LH: loop header
LB: loop body
LE: loop exit
PB: predicated region body
PF: predicated region fallthrough
CT: control target
= control target key end

     0   :  { %s323_s6 = smov 0   ;;  %s325_s7 = smov 0   ;;  %s373_s0 = inlined_call_operand.vmem [shape: bf16[2,1,2048], index: 0, kind: input, shape index: {}]   ;;  %s374_s1 = inlined_call_operand.vmem [shape: f32[2,2048], index: 1, kind: output, shape index: {}]  }
   0x1   :  { %s327_s8 = smov 0  }
   0x2 LB: > { %s249_s9 = sadd.s32 4294967295, %s311_s8   ;;  %s340_s10 = sadd.s32 1, %s311_s8   ;;  %s311_s8 = sphi %s327_s8, %s377_s8   ;;  %s307_s7 = sphi %s325_s7, %s376_s7   ;;  %s303_s6 = sphi %s323_s6, %s375_s6  }
   0x3   : > { %s15_s11 = ssub.s32 %s311_s8, %s340_s10  ;;  %s18_s12 = sadd.s32 1, %s307_s7 }
   0x4   : > { %p16_p0 = scmp.eq.s32.totalorder %s15_s11, 0  ;;  %p25_p1 = scmp.ne.s32.totalorder %s307_s7, %s303_s6 }
   0x5   : > { %p26_p2 = scmp.eq.s32.totalorder %s311_s8, 0  ;;  %p252_p4 = scmp.ge.s32.totalorder %s311_s8, 4 }
   0x6   : > { %s349_s13 = scalar_select %p16_p0, %s307_s7, %s18_s12  }
   0x7   : > { %p27_p3 = por %p26_p2, %p25_p1  ;;  %77 = sbr.rel (%p252_p4) target bundleno = 21 (0x15), region = 16 }
   0xe   : > { %80 = sbr.rel (!%p27_p3) target bundleno = 21 (0x15), region = 20  ;;  %s82_s14 = sand.u32 (%p27_p3), 1, %s307_s7  }
   0xf   : > { %s254_s15 = sshll.u32 (%p27_p3), %s311_s8, 2  ;;  %s253_s16 = sshll.u32 (%p27_p3), %s82_s14, 3 }
  0x10   : > { %s86_s19 = scalar_lea.vmem (%p27_p3), %s373_s0, %s254_s15  ;;  %s84_s20 = scalar_lea.vmem (%p27_p3), [#allocation2], %s253_s16 }
  0x11   : > { %v102_v0 = vld [vmem:[%s86_s19] sm:$0xf] (%p27_p3)  ;;  %v104_v1 = vld [vmem:[%s86_s19 + $0x10] sm:$0xf] (%p27_p3) }
  0x12   : > { %103 = vst [vmem:[%s84_s20] sm:$0xf] (%p27_p3), %v102_v0  ;;  %105 = vst [vmem:[%s84_s20 + $0x4] sm:$0xf] (%p27_p3), %v104_v1 }
  0x15 PF: > { %p255_p5 = scmp.ge.s32.totalorder %s311_s8, 1  ;;  %p131_p6 = scmp.lt.s32.totalorder %s311_s8, 5 }
  0x17   : > { %p132_p7 = pnand %p255_p5, %p131_p6 }
  0x18   : > { %s138_s21 = sand.u32 (!%p132_p7), 1, %s303_s6   ;;  %s257_s22 = sshll.u32 (!%p132_p7), %s249_s9, 2  ;;  %vm177_vm0 = vcmask (!%p132_p7), 1041409   ;;  %vm179_vm1 = vcmask (!%p132_p7), 1043459   ;;  %vm181_vm2 = vcmask (!%p132_p7), 1045509   ;;  %vm183_vm3 = vcmask (!%p132_p7), 1047559  }
  0x19   : > { %135 = sbr.rel (%p132_p7) target bundleno = 37 (0x25), region = 61  ;;  %s256_s23 = sshll.u32 (!%p132_p7), %s138_s21, 3 }
  0x1a   : > { %p159_p8 = scmp.lt.s32.totalorder (!%p132_p7), %s257_s22, 15  ;;  %s140_s24 = scalar_lea.vmem (!%p132_p7), [#allocation2], %s256_s23 }
  0x1b   : > { %v262_v2 = vld [vmem:[%s140_s24] sm:$0xff] (!%p132_p7)  }
  0x1c   : > { %v263_v3 = vunpack.c.l.bf16 (!%p132_p7), %v262_v2  ;;  %v264_v4 = vunpack.c.h.bf16 (!%p132_p7), %v262_v2 }
  0x1e   : > { %v176_v5 = vrot.slane (!%p132_p7), %v264_v4, 7 }
  0x20   : > { %s379_s22 = smov (!%p159_p8, %s257_s22), 15  ;;  %v178_v6 = vsel %vm177_vm0, %v176_v5, %v263_v3 }
  0x21   : > { %s258_s25 = sshll.u32 %s379_s22, 1  ;;  %v180_v7 = vsel %vm179_vm1, %v176_v5, %v178_v6 }
  0x22   : > { %s162_s28 = scalar_lea.vmem %s374_s1, %s258_s25  ;;  %v182_v8 = vsel %vm181_vm2, %v176_v5, %v180_v7 }
  0x23   : > { %v184_v9 = vsel %vm183_vm3, %v176_v5, %v182_v8 }
  0x24   : > { %186 = vst [vmem:[%s162_s28] sm:$0xff] %v184_v9 }
  0x25 PF: > { %p8_p9 = scmp.ge.s32.totalorder %s340_s10, 6   ;;  %s375_s6 = smov %s307_s7 }
  0x26   : > { %s376_s7 = smov %s349_s13  ;;  %s377_s8 = smov %s340_s10 }
  0x27   :  { %10 = sbr.rel (!%p8_p9) target bundleno = 2 (0x2), region = 100 }

// kernel: _encoder_cnn_forward.109
= control target key start
LH: loop header
LB: loop body
LE: loop exit
PB: predicated region body
PF: predicated region fallthrough
CT: control target
= control target key end

     0   :  { %s940_s12 = smov 0   ;;  %s942_s13 = smov 0   ;;  %s1023_s0 = inlined_call_operand.vmem [shape: bf16[8,2048], index: 0, kind: input, shape index: {}]   ;;  %s1024_s1 = inlined_call_operand.vmem [shape: bf16[2048,128], index: 1, kind: input, shape index: {}]   ;;  %s1025_s2 = inlined_call_operand.vmem [shape: f32[1,128], index: 2, kind: input, shape index: {}]   ;;  %s1026_s3 = inlined_call_operand.vmem [shape: f32[8,128], index: 3, kind: output, shape index: {}]  }
   0x1   :  { %s944_s14 = smov 0  }
   0x2 LB: > { %s25_s15 = sadd.s32 1, %s913_s13  ;;  %p743_p0 = scmp.ge.s32.totalorder %s917_s14, 1  ;;  %s917_s14 = sphi %s944_s14, %s13_s14   ;;  %s913_s13 = sphi %s942_s13, %s1028_s13   ;;  %s909_s12 = sphi %s940_s12, %s1027_s12  }
   0x3   : > { %p26_p1 = scmp.ge.s32.totalorder %s25_s15, 4  ;;  %p189_p2 = scmp.lt.s32.totalorder %s917_s14, 5 }
   0x5   : > { %s1030_s15 = smov (%p26_p1, %s25_s15), 0  ;;  %p190_p3 = pnand %p743_p0, %p189_p2 }
   0x6   : > { %s744_s16 = sshll.u32 (!%p190_p3), %s909_s12, 2  ;;  %s746_s17 = sshll.u32 (!%p190_p3), %s909_s12, 6 }
   0x7   : > { %193 = sbr.rel (%p190_p3) target bundleno = 289 (0x121), region = 32  ;;  %p233_p4 = scmp.lt.s32.totalorder (!%p190_p3), %s744_s16, 15 }
   0x8   : > { %p241_p5 = scmp.lt.s32.totalorder (!%p190_p3), %s746_s17, 255  ;;  %p748_p6 = scmp.ne.s32.totalorder (!%p190_p3), %s909_s12, 0 }
   0xe   : > { %s1032_s16 = smov (!%p233_p4, %s744_s16), 15  ;;  %s1034_s17 = smov (!%p241_p5, %s746_s17), 255 }
   0xf   : > { %s745_s18 = sshll.u32 %s1032_s16, 2  ;;  %s747_s22 = sshll.u32 %s1034_s17, 2  ;;  %v919_v0 = vmov (!%p748_p6), 0.0  }
  0x10   : > { %s965_s21 = scalar_lea.vmem %s1023_s0, %s745_s18  ;;  %s970_s25 = scalar_lea.vmem %s1024_s1, %s747_s22  ;;  %264 = vst [vmem:[#allocation2] sm:$0xff] (!%p748_p6), %v919_v0 }
  0x11   : > { %263 = sbr.rel (%p748_p6) target bundleno = 24 (0x18), region = 36 }
  0x18 PF: > { %v859_v1 = vld [vmem:[%s970_s25 + $0x40] sm:$0xff]   ;;  %v863_v5 = vld [vmem:[%s970_s25 + $0x48] sm:$0xff]   ;;  %v867_v9 = vld [vmem:[%s970_s25 + $0x50] sm:$0xff]   ;;  %p785_p7 = scmp.ne.s32.totalorder %s909_s12, 3 }
  0x19   : > { %v860_v2 = vld [vmem:[%s970_s25 + $0xc0] sm:$0xff]   ;;  %790 = vmatprep.subr.bf16.mxu0 %v859_v1  ;;  %v864_v6 = vld [vmem:[%s970_s25 + $0xc8] sm:$0xff]   ;;  %v868_v10 = vld [vmem:[%s970_s25 + $0xd0] sm:$0xff]  }
  0x1a   : > { %v861_v3 = vld [vmem:[%s970_s25] sm:$0xff]   ;;  %812 = vmatprep.subr.bf16.mxu1 %v860_v2  ;;  %v865_v7 = vld [vmem:[%s970_s25 + $0x8] sm:$0xff]   ;;  %v869_v11 = vld [vmem:[%s970_s25 + $0x10] sm:$0xff]  }
  0x1b   : > { %v862_v4 = vld [vmem:[%s970_s25 + $0x80] sm:$0xff]   ;;  %791 = vmatpush3.bf16.msra.mxu0 %v861_v3  ;;  %v866_v8 = vld [vmem:[%s970_s25 + $0x88] sm:$0xff]   ;;  %v870_v12 = vld [vmem:[%s970_s25 + $0x90] sm:$0xff]  }
  0x1c   : > { %813 = vmatpush3.bf16.msra.mxu1 %v862_v4  ;;  %792 = vmatprep.subr.bf16.mxu0 %v863_v5  ;;  %v871_v13 = vld [vmem:[%s970_s25 + $0x58] sm:$0xff]   ;;  %v875_v17 = vld [vmem:[%s970_s25 + $0x60] sm:$0xff]   ;;  %v879_v21 = vld [vmem:[%s970_s25 + $0x68] sm:$0xff]  }
  0x1d   : > { %814 = vmatprep.subr.bf16.mxu1 %v864_v6  ;;  %v872_v14 = vld [vmem:[%s970_s25 + $0xd8] sm:$0xff]   ;;  %v876_v18 = vld [vmem:[%s970_s25 + $0xe0] sm:$0xff]   ;;  %v880_v22 = vld [vmem:[%s970_s25 + $0xe8] sm:$0xff]  }
  0x1e   : > { %v873_v15 = vld [vmem:[%s970_s25 + $0x18] sm:$0xff]   ;;  %v877_v19 = vld [vmem:[%s970_s25 + $0x20] sm:$0xff]   ;;  %v881_v23 = vld [vmem:[%s970_s25 + $0x28] sm:$0xff]  }
  0x1f   : > { %793 = vmatpush3.bf16.msra.mxu0 %v865_v7  ;;  %v874_v16 = vld [vmem:[%s970_s25 + $0x98] sm:$0xff]   ;;  %v878_v20 = vld [vmem:[%s970_s25 + $0xa0] sm:$0xff]   ;;  %v882_v24 = vld [vmem:[%s970_s25 + $0xa8] sm:$0xff]  }
  0x20   : > { %815 = vmatpush3.bf16.msra.mxu1 %v866_v8  ;;  %794 = vmatprep.subr.bf16.mxu0 %v867_v9  ;;  %v883_v25 = vld [vmem:[%s970_s25 + $0x70] sm:$0xff]   ;;  %v887_v29 = vld [vmem:[%s970_s25 + $0x78] sm:$0xff]   ;;  %v266_v33 = vld [vmem:[%s965_s21] sm:$0xff] }
  0x21   : > { %816 = vmatprep.subr.bf16.mxu1 %v868_v10  ;;  %v884_v26 = vld [vmem:[%s970_s25 + $0xf0] sm:$0xff]   ;;  %v888_v30 = vld [vmem:[%s970_s25 + $0xf8] sm:$0xff]   ;;  %v267_v34 = vld [vmem:[%s965_s21 + $0x8] sm:$0xff]  ;;  %v749_v35 = vcombine.low %v266_v33, %v266_v33  ;;  %v750_v36 = vcombine.high %v266_v33, %v266_v33 }
  0x22   : > { %v885_v27 = vld [vmem:[%s970_s25 + $0x30] sm:$0xff]   ;;  %v889_v31 = vld [vmem:[%s970_s25 + $0x38] sm:$0xff]   ;;  %v751_v37 = vcombine.low %v267_v34, %v267_v34  ;;  %v752_v38 = vcombine.high %v267_v34, %v267_v34  ;;  %v265_v47 = vld [vmem:[#allocation2] sm:$0xff] }
  0x23   : > { %795 = vmatpush3.bf16.msra.mxu0 %v869_v11  ;;  %v886_v28 = vld [vmem:[%s970_s25 + $0xb0] sm:$0xff]   ;;  %v890_v32 = vld [vmem:[%s970_s25 + $0xb8] sm:$0xff]   ;;  %570 = vmatprep.mubr.bf16.mxu0 %v750_v36  ;;  %v786_v53 = vld [vmem:[%s1025_s2] ss:$0 sm:$0xff] (!%p785_p7) }
  0x24   : > { %817 = vmatpush3.bf16.msra.mxu1 %v870_v12  ;;  %796 = vmatprep.subr.bf16.mxu0 %v871_v13 }
  0x25   : > { %818 = vmatprep.subr.bf16.mxu1 %v872_v14  ;;  %610 = vmatprep.mubr.bf16.mxu1 %v752_v38 }
  0x27   : > { %797 = vmatpush3.bf16.msra.mxu0 %v873_v15 }
  0x28   : > { %819 = vmatpush3.bf16.msra.mxu1 %v874_v16  ;;  %798 = vmatprep.subr.bf16.mxu0 %v875_v17 }
  0x29   : > { %820 = vmatprep.subr.bf16.mxu1 %v876_v18 }
  0x2b   : > { %799 = vmatpush3.bf16.msra.mxu0 %v877_v19 }
  0x2c   : > { %821 = vmatpush3.bf16.msra.mxu1 %v878_v20  ;;  %800 = vmatprep.subr.bf16.mxu0 %v879_v21 }
  0x2d   : > { %822 = vmatprep.subr.bf16.mxu1 %v880_v22 }
  0x2f   : > { %801 = vmatpush3.bf16.msra.mxu0 %v881_v23 }
  0x30   : > { %823 = vmatpush3.bf16.msra.mxu1 %v882_v24  ;;  %802 = vmatprep.subr.bf16.mxu0 %v883_v25 }
  0x31   : > { %824 = vmatprep.subr.bf16.mxu1 %v884_v26 }
  0x33   : > { %803 = vmatpush3.bf16.msra.mxu0 %v885_v27 }
  0x34   : > { %825 = vmatpush3.bf16.msra.mxu1 %v886_v28  ;;  %804 = vmatprep.subr.bf16.mxu0 %v887_v29 }
  0x35   : > { %826 = vmatprep.subr.bf16.mxu1 %v888_v30 }
  0x37   : > { %805 = vmatpush3.bf16.msra.mxu0 %v889_v31 }
  0x38   : > { %827 = vmatpush3.bf16.msra.mxu1 %v890_v32 }
  0x3a   : > { %571 = vmatmul.mubr.bf16.vlgmr.msra.gmra.mrb[0].mxu0 %v749_v35 }
  0x3b   : > { %611 = vmatmul.mubr.bf16.vlgmr.msra.gmra.mrb[0].mxu1 %v751_v37 }
 0x10d   : > { %v806_v39 = vpop.f32.mrb[0].mxu0 }
 0x10e   : > { %v828_v40 = vpop.f32.mrb[0].mxu1  ;;  %v807_v41 = vpop.f32.mrb[1].mxu0 }
 0x10f   : > { %v829_v42 = vpop.f32.mrb[1].mxu1  ;;  %v808_v43 = vadd.f32 %v807_v41, %v806_v39  ;;  %v809_v45 = vpop.f32.mrb[2].mxu0 }
 0x110   : > { %v830_v44 = vadd.f32 %v829_v42, %v828_v40  ;;  %v831_v46 = vpop.f32.mrb[2].mxu1  ;;  %v810_v48 = vpop.f32.mrb[3].mxu0  ;;  %623 = sbr.rel (%p785_p7) target bundleno = 289 (0x121), region = 40 }
 0x111   : > { %v832_v49 = vpop.f32.mrb[3].mxu1 }
 0x112   : > { %v613_v50 = vadd.f32 %v830_v44, %v808_v43 }
 0x114   : > { %v618_v51 = vadd.f32 %v613_v50, %v265_v47 }
 0x116   : > { %619 = vst [vmem:[#allocation2] sm:$0xff] %v618_v51 }
 0x11d   : > { %v624_v52 = vld [vmem:[#allocation2] sm:$0xff] }
 0x11e   : > { %v632_v54 = vadd.f32 %v786_v53, %v624_v52 }
 0x120   : > { %633 = vst [vmem:[%s1026_s3] sm:$0xff] %v632_v54 }
 0x121 PF: > { %s13_s14 = sadd.s32 1, %s917_s14   ;;  %s1027_s12 = smov %s913_s13 }
 0x122   : > { %p10_p8 = scmp.ge.s32.totalorder %s13_s14, 6   ;;  %s1028_s13 = smov %s1030_s15 }
 0x124   :  { %12 = sbr.rel (!%p10_p8) target bundleno = 2 (0x2), region = 76 }

</bundles_post_ra>
